<compile_context>
chip_gen: v7x
topology: tpu7x:2x2x1
jax: 0.10.0
libtpu: 0.0.40
codegen_flags: <defaults>
</compile_context>

<pallas_src>
import jax
import jax.numpy as jnp
from jax import lax
from jax.experimental import pallas as pl
from jax.experimental.pallas import tpu as pltpu

HIDDEN_SIZE = 64
INPUT_SIZE = 1
TARGETS = 4          # `targets` is undefined in the original source; pick a small value.
NEG_SLOPE = 0.01     # PyTorch nn.LeakyReLU default


def _leaky_relu(x):
    return jnp.where(x >= 0, x, NEG_SLOPE * x)


def _round_up(n, m):
    return ((n + m - 1) // m) * m


def lstm_mlp_kernel(x_ref,     # (T, 1, Bt)   raw inputs, time-major, batch on lanes
                    w_hh_ref,  # (4H, H)      PyTorch W_hh, gate order [i, f, g, o]
                    w_ih_ref,  # (4H, 1)      PyTorch W_ih (INPUT_SIZE == 1)
                    b_ref,     # (4H, 1)      b_ih + b_hh
                    w1_ref,    # (32, H)
                    b1_ref,    # (32, 1)
                    w2_ref,    # (16, 32)
                    b2_ref,    # (16, 1)
                    w3_ref,    # (TARGETS, 16)
                    b3_ref,    # (TARGETS, 1)
                    out_ref):  # (TARGETS, Bt)
    T = x_ref.shape[0]
    Bt = x_ref.shape[2]
    H = HIDDEN_SIZE

    w_hh = w_hh_ref[...]       # resident for the whole recurrence (64 KiB)
    w_ih = w_ih_ref[...]
    b = b_ref[...]

    h0 = jnp.zeros((H, Bt), jnp.float32)
    c0 = jnp.zeros((H, Bt), jnp.float32)

    def step(t, carry):
        h, c = carry
        x_t = x_ref[t]                                           # (1, Bt)
        # One exact-FLOP MXU matmul + rank-1 broadcast FMA (input projection + bias).
        gates = (jnp.dot(w_hh, h, preferred_element_type=jnp.float32)
                 + w_ih * x_t + b)                               # (4H, Bt)
        i_g = jax.nn.sigmoid(gates[0 * H:1 * H, :])
        f_g = jax.nn.sigmoid(gates[1 * H:2 * H, :])
        g_g = jnp.tanh(gates[2 * H:3 * H, :])
        o_g = jax.nn.sigmoid(gates[3 * H:4 * H, :])
        c_new = f_g * c + i_g * g_g
        h_new = o_g * jnp.tanh(c_new)
        return h_new, c_new

    if T <= 64:
        # Small static T: fully unroll at trace time (max LLO scheduling visibility,
        # static sublane/leading-dim indices everywhere).
        carry = (h0, c0)
        for t in range(T):
            carry = step(t, carry)
        h_last = carry[0]
    else:
        # Large T: partial unroll keeps code size bounded.
        h_last, _ = lax.fori_loop(0, T, step, (h0, c0), unroll=8)

    # MLP head, still transposed (batch on lanes): 64 -> 32 -> 16 -> TARGETS.
    y = _leaky_relu(jnp.dot(w1_ref[...], h_last,
                            preferred_element_type=jnp.float32) + b1_ref[...])
    y = _leaky_relu(jnp.dot(w2_ref[...], y,
                            preferred_element_type=jnp.float32) + b2_ref[...])
    y = jnp.dot(w3_ref[...], y, preferred_element_type=jnp.float32) + b3_ref[...]
    out_ref[...] = y.astype(out_ref.dtype)


def init_params(key):
    H = HIDDEN_SIZE
    ks = jax.random.split(key, 9)
    s = 0.1
    return {
        "w_ih": jax.random.normal(ks[0], (4 * H, INPUT_SIZE), jnp.float32) * s,
        "w_hh": jax.random.normal(ks[1], (4 * H, H), jnp.float32) * s,
        "b_ih": jax.random.normal(ks[2], (4 * H,), jnp.float32) * s,
        "b_hh": jax.random.normal(ks[3], (4 * H,), jnp.float32) * s,
        "w1": jax.random.normal(ks[4], (32, H), jnp.float32) * s,
        "b1": jax.random.normal(ks[5], (32,), jnp.float32) * s,
        "w2": jax.random.normal(ks[6], (16, 32), jnp.float32) * s,
        "b2": jax.random.normal(ks[7], (16,), jnp.float32) * s,
        "w3": jax.random.normal(ks[8], (TARGETS, 16), jnp.float32) * s,
        "b3": jnp.zeros((TARGETS,), jnp.float32),
    }


def lstm_forward_pallas(x, params):
    """x: (B, T, 1) float32 -> (B, TARGETS) float32."""
    B, T, _ = x.shape
    H = HIDDEN_SIZE

    # ---- weights: PyTorch (out, in) orientation is exactly what the transposed
    # (batch-on-lanes) recurrence needs; no transposes, no gate padding. -------------
    w_hh = params["w_hh"]                                        # (4H, H)
    w_ih = params["w_ih"]                                        # (4H, 1)
    b = (params["b_ih"] + params["b_hh"]).reshape(4 * H, 1)      # (4H, 1)
    w1 = params["w1"]
    b1 = params["b1"].reshape(-1, 1)                             # (32, 1)
    w2 = params["w2"]
    b2 = params["b2"].reshape(-1, 1)                             # (16, 1)
    w3 = params["w3"]
    b3 = params["b3"].reshape(-1, 1)                             # (TARGETS, 1)

    # ---- batch tiling: batch lives on the 128-lane axis. ---------------------------
    b_tile = 128
    b_pad = _round_up(B, b_tile)
    n_tiles = b_pad // b_tile
    # NOTE: on v7x (2 TensorCores) a 64-wide tile when B <= 128 would occupy both
    # cores; on v5e/v6e (single TC) that only adds grid overhead, so keep 128.

    # ---- raw x, time-major, batch on lanes: (T, 1, b_pad).  The size-1 middle dim
    # keeps the per-step index on the cheap (dynamic-friendly) leading axis. ---------
    x_t = jnp.transpose(x[:, :, 0], (1, 0))                      # (T, B)
    if b_pad != B:
        x_t = jnp.pad(x_t, ((0, 0), (0, b_pad - B)))
    x_t = x_t[:, None, :]                                        # (T, 1, b_pad)

    def w_spec(shape):
        return pl.BlockSpec(shape, lambda i: (0, 0))

    bytes_f32 = 4
    # VMEM: the x block is sublane-padded 1->8; everything else is tiny.
    x_block_vmem = T * 8 * b_tile * bytes_f32
    w_vmem = bytes_f32 * (4 * H * (H + 2) + 32 * H + 32 + 16 * 32 + 16
                          + TARGETS * 16 + TARGETS)
    vmem_need = 2 * x_block_vmem + w_vmem + 2 * 8 * b_tile * bytes_f32 + (2 << 20)
    vmem_limit = int(min(max(vmem_need, 32 * 2**20), 64 * 2**20))
    # TODO(synk): for T large enough that the double-buffered x block exceeds ~64 MiB
    # (T ~> 8000), add a second "arbitrary" T-chunk grid axis with h/c in VMEM scratch.

    cost = pl.CostEstimate(
        flops=int(n_tiles * (T * (2 * 4 * H * H * b_tile + 10 * H * b_tile)
                             + 2 * b_tile * (32 * H + 16 * 32 + TARGETS * 16))),
        transcendentals=int(n_tiles * T * 5 * H * b_tile),
        bytes_accessed=int(bytes_f32 * (T * b_pad + 4 * H * (H + 2) + 32 * H + 16 * 32
                                        + TARGETS * 16 + TARGETS * b_pad)),
    )

    out = pl.pallas_call(
        lstm_mlp_kernel,
        out_shape=jax.ShapeDtypeStruct((TARGETS, b_pad), jnp.float32),
        grid_spec=pltpu.PrefetchScalarGridSpec(
            num_scalar_prefetch=0,
            grid=(n_tiles,),
            in_specs=[
                pl.BlockSpec((T, 1, b_tile), lambda i: (0, 0, i)),  # raw x per batch tile
                w_spec((4 * H, H)),        # w_hh
                w_spec((4 * H, 1)),        # w_ih
                w_spec((4 * H, 1)),        # b_ih + b_hh
                w_spec((32, H)),           # w1
                w_spec((32, 1)),           # b1
                w_spec((16, 32)),          # w2
                w_spec((16, 1)),           # b2
                w_spec((TARGETS, 16)),     # w3
                w_spec((TARGETS, 1)),      # b3
            ],
            out_specs=pl.BlockSpec((TARGETS, b_tile), lambda i: (0, i)),
        ),
        compiler_params=pltpu.CompilerParams(
            dimension_semantics=("parallel",),
            vmem_limit_bytes=vmem_limit,
        ),
        cost_estimate=cost,
    )(x_t, w_hh, w_ih, b, w1, b1, w2, b2, w3, b3)
    return out[:, :B].T


def lstm_forward_ref(x, params):
    """Pure-JAX reference matching PyTorch nn.LSTM (gate order i,f,g,o) + MLP."""
    B, T, _ = x.shape
    H = HIDDEN_SIZE
    h = jnp.zeros((B, H), jnp.float32)
    c = jnp.zeros((B, H), jnp.float32)
    w_ih, w_hh = params["w_ih"], params["w_hh"]
    b = params["b_ih"] + params["b_hh"]
    for t in range(T):
        x_t = x[:, t, :]
        gates = (jnp.dot(x_t, w_ih.T, precision="highest")
                 + jnp.dot(h, w_hh.T, precision="highest") + b)
        i_g = jax.nn.sigmoid(gates[:, 0 * H:1 * H])
        f_g = jax.nn.sigmoid(gates[:, 1 * H:2 * H])
        g_g = jnp.tanh(gates[:, 2 * H:3 * H])
        o_g = jax.nn.sigmoid(gates[:, 3 * H:4 * H])
        c = f_g * c + i_g * g_g
        h = o_g * jnp.tanh(c)
    y = _leaky_relu(jnp.dot(h, params["w1"].T, precision="highest") + params["b1"])
    y = _leaky_relu(jnp.dot(y, params["w2"].T, precision="highest") + params["b2"])
    return jnp.dot(y, params["w3"].T, precision="highest") + params["b3"]


if __name__ == "__main__":
    key = jax.random.PRNGKey(0)
    k_x, k_p = jax.random.split(key)
    B, T = 8, 8
    x = jax.random.normal(k_x, (B, T, INPUT_SIZE), jnp.float32)
    params = init_params(k_p)

    fwd = jax.jit(lstm_forward_pallas)
    out = jax.block_until_ready(fwd(x, params))

    ref = lstm_forward_ref(x, params)
    assert out.shape == (B, TARGETS)
    assert jnp.allclose(out, ref, atol=2e-5, rtol=2e-5), (out, ref)
    print("KERNEL_OK")
</pallas_src>

<mosaic_0001>
module attributes {stable_mosaic.version = 11 : i64} {
  func.func @lstm_mlp_kernel(%arg0: i32, %arg1: memref<8x1x128xf32, #tpu.memory_space<vmem>>, %arg2: memref<256x64xf32, #tpu.memory_space<vmem>>, %arg3: memref<256x1xf32, #tpu.memory_space<vmem>>, %arg4: memref<256x1xf32, #tpu.memory_space<vmem>>, %arg5: memref<32x64xf32, #tpu.memory_space<vmem>>, %arg6: memref<32x1xf32, #tpu.memory_space<vmem>>, %arg7: memref<16x32xf32, #tpu.memory_space<vmem>>, %arg8: memref<16x1xf32, #tpu.memory_space<vmem>>, %arg9: memref<4x16xf32, #tpu.memory_space<vmem>>, %arg10: memref<4x1xf32, #tpu.memory_space<vmem>>, %arg11: memref<4x128xf32, #tpu.memory_space<vmem>>) attributes {dimension_semantics = [#tpu.dimension_semantics<parallel>], iteration_bounds = array<i64: 1>, scalar_prefetch = 0 : i64, scratch_operands = 0 : i64, tpu.core_type = #tpu.core_type<tc>, window_params = [{transform_indices = @transform_0, window_bounds = array<i64: 8, 1, 128>}, {pipeline_mode = #tpu.pipeline_mode<synchronous>, transform_indices = @transform_1, window_bounds = array<i64: 256, 64>}, {pipeline_mode = #tpu.pipeline_mode<synchronous>, transform_indices = @transform_2, window_bounds = array<i64: 256, 1>}, {pipeline_mode = #tpu.pipeline_mode<synchronous>, transform_indices = @transform_3, window_bounds = array<i64: 256, 1>}, {pipeline_mode = #tpu.pipeline_mode<synchronous>, transform_indices = @transform_4, window_bounds = array<i64: 32, 64>}, {pipeline_mode = #tpu.pipeline_mode<synchronous>, transform_indices = @transform_5, window_bounds = array<i64: 32, 1>}, {pipeline_mode = #tpu.pipeline_mode<synchronous>, transform_indices = @transform_6, window_bounds = array<i64: 16, 32>}, {pipeline_mode = #tpu.pipeline_mode<synchronous>, transform_indices = @transform_7, window_bounds = array<i64: 16, 1>}, {pipeline_mode = #tpu.pipeline_mode<synchronous>, transform_indices = @transform_8, window_bounds = array<i64: 4, 16>}, {pipeline_mode = #tpu.pipeline_mode<synchronous>, transform_indices = @transform_9, window_bounds = array<i64: 4, 1>}, {transform_indices = @transform_10, window_bounds = array<i64: 4, 128>}]} {
    %c0 = arith.constant 0 : index
    %c0_0 = arith.constant 0 : index
    %0 = vector.load %arg2[%c0, %c0_0] : memref<256x64xf32, #tpu.memory_space<vmem>>, vector<256x64xf32>
    %c0_1 = arith.constant 0 : index
    %c0_2 = arith.constant 0 : index
    %1 = vector.load %arg3[%c0_1, %c0_2] : memref<256x1xf32, #tpu.memory_space<vmem>>, vector<256x1xf32>
    %c0_3 = arith.constant 0 : index
    %c0_4 = arith.constant 0 : index
    %2 = vector.load %arg4[%c0_3, %c0_4] : memref<256x1xf32, #tpu.memory_space<vmem>>, vector<256x1xf32>
    %cst = arith.constant 0.000000e+00 : f32
    %3 = vector.broadcast %cst : f32 to vector<64x128xf32>
    %cst_5 = arith.constant 0.000000e+00 : f32
    %4 = vector.broadcast %cst_5 : f32 to vector<64x128xf32>
    %c0_6 = arith.constant 0 : index
    %c0_7 = arith.constant 0 : index
    %c0_8 = arith.constant 0 : index
    %5 = vector.load %arg1[%c0_6, %c0_7, %c0_8] : memref<8x1x128xf32, #tpu.memory_space<vmem>>, vector<1x1x128xf32>
    %6 = vector.shape_cast %5 : vector<1x1x128xf32> to vector<1x128xf32>
    %cst_9 = arith.constant dense<0.000000e+00> : vector<256x128xf32>
    %7 = tpu.matmul %0, %3, %cst_9 {dimension_numbers = #tpu.dot_dimension_numbers<[1], [0], [0], [1], [0, 0, 1, 1], [], []>} : vector<256x64xf32>, vector<64x128xf32>, vector<256x128xf32> -> vector<256x128xf32>
    %8 = vector.broadcast %1 : vector<256x1xf32> to vector<256x128xf32>
    %9 = vector.broadcast %6 : vector<1x128xf32> to vector<256x128xf32>
    %10 = arith.mulf %8, %9 : vector<256x128xf32>
    %11 = arith.addf %7, %10 : vector<256x128xf32>
    %12 = vector.broadcast %2 : vector<256x1xf32> to vector<256x128xf32>
    %13 = arith.addf %11, %12 : vector<256x128xf32>
    %14 = vector.extract_strided_slice %13 {offsets = [0, 0], sizes = [64, 128], strides = [1, 1]} : vector<256x128xf32> to vector<64x128xf32>
    %15 = arith.negf %14 : vector<64x128xf32>
    %16 = math.exp %15 : vector<64x128xf32>
    %cst_10 = arith.constant 1.000000e+00 : f32
    %17 = vector.broadcast %cst_10 : f32 to vector<64x128xf32>
    %18 = arith.addf %17, %16 : vector<64x128xf32>
    %19 = arith.divf %17, %18 : vector<64x128xf32>
    %20 = vector.extract_strided_slice %13 {offsets = [64, 0], sizes = [64, 128], strides = [1, 1]} : vector<256x128xf32> to vector<64x128xf32>
    %21 = arith.negf %20 : vector<64x128xf32>
    %22 = math.exp %21 : vector<64x128xf32>
    %cst_11 = arith.constant 1.000000e+00 : f32
    %23 = vector.broadcast %cst_11 : f32 to vector<64x128xf32>
    %24 = arith.addf %23, %22 : vector<64x128xf32>
    %25 = arith.divf %23, %24 : vector<64x128xf32>
    %26 = vector.extract_strided_slice %13 {offsets = [128, 0], sizes = [64, 128], strides = [1, 1]} : vector<256x128xf32> to vector<64x128xf32>
    %27 = math.tanh %26 : vector<64x128xf32>
    %28 = vector.extract_strided_slice %13 {offsets = [192, 0], sizes = [64, 128], strides = [1, 1]} : vector<256x128xf32> to vector<64x128xf32>
    %29 = arith.negf %28 : vector<64x128xf32>
    %30 = math.exp %29 : vector<64x128xf32>
    %cst_12 = arith.constant 1.000000e+00 : f32
    %31 = vector.broadcast %cst_12 : f32 to vector<64x128xf32>
    %32 = arith.addf %31, %30 : vector<64x128xf32>
    %33 = arith.divf %31, %32 : vector<64x128xf32>
    %34 = arith.mulf %25, %4 : vector<64x128xf32>
    %35 = arith.mulf %19, %27 : vector<64x128xf32>
    %36 = arith.addf %34, %35 : vector<64x128xf32>
    %37 = math.tanh %36 : vector<64x128xf32>
    %38 = arith.mulf %33, %37 : vector<64x128xf32>
    %c1 = arith.constant 1 : index
    %c0_13 = arith.constant 0 : index
    %c0_14 = arith.constant 0 : index
    %39 = vector.load %arg1[%c1, %c0_13, %c0_14] : memref<8x1x128xf32, #tpu.memory_space<vmem>>, vector<1x1x128xf32>
    %40 = vector.shape_cast %39 : vector<1x1x128xf32> to vector<1x128xf32>
    %cst_15 = arith.constant dense<0.000000e+00> : vector<256x128xf32>
    %41 = tpu.matmul %0, %38, %cst_15 {dimension_numbers = #tpu.dot_dimension_numbers<[1], [0], [0], [1], [0, 0, 1, 1], [], []>} : vector<256x64xf32>, vector<64x128xf32>, vector<256x128xf32> -> vector<256x128xf32>
    %42 = vector.broadcast %1 : vector<256x1xf32> to vector<256x128xf32>
    %43 = vector.broadcast %40 : vector<1x128xf32> to vector<256x128xf32>
    %44 = arith.mulf %42, %43 : vector<256x128xf32>
    %45 = arith.addf %41, %44 : vector<256x128xf32>
    %46 = vector.broadcast %2 : vector<256x1xf32> to vector<256x128xf32>
    %47 = arith.addf %45, %46 : vector<256x128xf32>
    %48 = vector.extract_strided_slice %47 {offsets = [0, 0], sizes = [64, 128], strides = [1, 1]} : vector<256x128xf32> to vector<64x128xf32>
    %49 = arith.negf %48 : vector<64x128xf32>
    %50 = math.exp %49 : vector<64x128xf32>
    %cst_16 = arith.constant 1.000000e+00 : f32
    %51 = vector.broadcast %cst_16 : f32 to vector<64x128xf32>
    %52 = arith.addf %51, %50 : vector<64x128xf32>
    %53 = arith.divf %51, %52 : vector<64x128xf32>
    %54 = vector.extract_strided_slice %47 {offsets = [64, 0], sizes = [64, 128], strides = [1, 1]} : vector<256x128xf32> to vector<64x128xf32>
    %55 = arith.negf %54 : vector<64x128xf32>
    %56 = math.exp %55 : vector<64x128xf32>
    %cst_17 = arith.constant 1.000000e+00 : f32
    %57 = vector.broadcast %cst_17 : f32 to vector<64x128xf32>
    %58 = arith.addf %57, %56 : vector<64x128xf32>
    %59 = arith.divf %57, %58 : vector<64x128xf32>
    %60 = vector.extract_strided_slice %47 {offsets = [128, 0], sizes = [64, 128], strides = [1, 1]} : vector<256x128xf32> to vector<64x128xf32>
    %61 = math.tanh %60 : vector<64x128xf32>
    %62 = vector.extract_strided_slice %47 {offsets = [192, 0], sizes = [64, 128], strides = [1, 1]} : vector<256x128xf32> to vector<64x128xf32>
    %63 = arith.negf %62 : vector<64x128xf32>
    %64 = math.exp %63 : vector<64x128xf32>
    %cst_18 = arith.constant 1.000000e+00 : f32
    %65 = vector.broadcast %cst_18 : f32 to vector<64x128xf32>
    %66 = arith.addf %65, %64 : vector<64x128xf32>
    %67 = arith.divf %65, %66 : vector<64x128xf32>
    %68 = arith.mulf %59, %36 : vector<64x128xf32>
    %69 = arith.mulf %53, %61 : vector<64x128xf32>
    %70 = arith.addf %68, %69 : vector<64x128xf32>
    %71 = math.tanh %70 : vector<64x128xf32>
    %72 = arith.mulf %67, %71 : vector<64x128xf32>
    %c2 = arith.constant 2 : index
    %c0_19 = arith.constant 0 : index
    %c0_20 = arith.constant 0 : index
    %73 = vector.load %arg1[%c2, %c0_19, %c0_20] : memref<8x1x128xf32, #tpu.memory_space<vmem>>, vector<1x1x128xf32>
    %74 = vector.shape_cast %73 : vector<1x1x128xf32> to vector<1x128xf32>
    %cst_21 = arith.constant dense<0.000000e+00> : vector<256x128xf32>
    %75 = tpu.matmul %0, %72, %cst_21 {dimension_numbers = #tpu.dot_dimension_numbers<[1], [0], [0], [1], [0, 0, 1, 1], [], []>} : vector<256x64xf32>, vector<64x128xf32>, vector<256x128xf32> -> vector<256x128xf32>
    %76 = vector.broadcast %1 : vector<256x1xf32> to vector<256x128xf32>
    %77 = vector.broadcast %74 : vector<1x128xf32> to vector<256x128xf32>
    %78 = arith.mulf %76, %77 : vector<256x128xf32>
    %79 = arith.addf %75, %78 : vector<256x128xf32>
    %80 = vector.broadcast %2 : vector<256x1xf32> to vector<256x128xf32>
    %81 = arith.addf %79, %80 : vector<256x128xf32>
    %82 = vector.extract_strided_slice %81 {offsets = [0, 0], sizes = [64, 128], strides = [1, 1]} : vector<256x128xf32> to vector<64x128xf32>
    %83 = arith.negf %82 : vector<64x128xf32>
    %84 = math.exp %83 : vector<64x128xf32>
    %cst_22 = arith.constant 1.000000e+00 : f32
    %85 = vector.broadcast %cst_22 : f32 to vector<64x128xf32>
    %86 = arith.addf %85, %84 : vector<64x128xf32>
    %87 = arith.divf %85, %86 : vector<64x128xf32>
    %88 = vector.extract_strided_slice %81 {offsets = [64, 0], sizes = [64, 128], strides = [1, 1]} : vector<256x128xf32> to vector<64x128xf32>
    %89 = arith.negf %88 : vector<64x128xf32>
    %90 = math.exp %89 : vector<64x128xf32>
    %cst_23 = arith.constant 1.000000e+00 : f32
    %91 = vector.broadcast %cst_23 : f32 to vector<64x128xf32>
    %92 = arith.addf %91, %90 : vector<64x128xf32>
    %93 = arith.divf %91, %92 : vector<64x128xf32>
    %94 = vector.extract_strided_slice %81 {offsets = [128, 0], sizes = [64, 128], strides = [1, 1]} : vector<256x128xf32> to vector<64x128xf32>
    %95 = math.tanh %94 : vector<64x128xf32>
    %96 = vector.extract_strided_slice %81 {offsets = [192, 0], sizes = [64, 128], strides = [1, 1]} : vector<256x128xf32> to vector<64x128xf32>
    %97 = arith.negf %96 : vector<64x128xf32>
    %98 = math.exp %97 : vector<64x128xf32>
    %cst_24 = arith.constant 1.000000e+00 : f32
    %99 = vector.broadcast %cst_24 : f32 to vector<64x128xf32>
    %100 = arith.addf %99, %98 : vector<64x128xf32>
    %101 = arith.divf %99, %100 : vector<64x128xf32>
    %102 = arith.mulf %93, %70 : vector<64x128xf32>
    %103 = arith.mulf %87, %95 : vector<64x128xf32>
    %104 = arith.addf %102, %103 : vector<64x128xf32>
    %105 = math.tanh %104 : vector<64x128xf32>
    %106 = arith.mulf %101, %105 : vector<64x128xf32>
    %c3 = arith.constant 3 : index
    %c0_25 = arith.constant 0 : index
    %c0_26 = arith.constant 0 : index
    %107 = vector.load %arg1[%c3, %c0_25, %c0_26] : memref<8x1x128xf32, #tpu.memory_space<vmem>>, vector<1x1x128xf32>
    %108 = vector.shape_cast %107 : vector<1x1x128xf32> to vector<1x128xf32>
    %cst_27 = arith.constant dense<0.000000e+00> : vector<256x128xf32>
    %109 = tpu.matmul %0, %106, %cst_27 {dimension_numbers = #tpu.dot_dimension_numbers<[1], [0], [0], [1], [0, 0, 1, 1], [], []>} : vector<256x64xf32>, vector<64x128xf32>, vector<256x128xf32> -> vector<256x128xf32>
    %110 = vector.broadcast %1 : vector<256x1xf32> to vector<256x128xf32>
    %111 = vector.broadcast %108 : vector<1x128xf32> to vector<256x128xf32>
    %112 = arith.mulf %110, %111 : vector<256x128xf32>
    %113 = arith.addf %109, %112 : vector<256x128xf32>
    %114 = vector.broadcast %2 : vector<256x1xf32> to vector<256x128xf32>
    %115 = arith.addf %113, %114 : vector<256x128xf32>
    %116 = vector.extract_strided_slice %115 {offsets = [0, 0], sizes = [64, 128], strides = [1, 1]} : vector<256x128xf32> to vector<64x128xf32>
    %117 = arith.negf %116 : vector<64x128xf32>
    %118 = math.exp %117 : vector<64x128xf32>
    %cst_28 = arith.constant 1.000000e+00 : f32
    %119 = vector.broadcast %cst_28 : f32 to vector<64x128xf32>
    %120 = arith.addf %119, %118 : vector<64x128xf32>
    %121 = arith.divf %119, %120 : vector<64x128xf32>
    %122 = vector.extract_strided_slice %115 {offsets = [64, 0], sizes = [64, 128], strides = [1, 1]} : vector<256x128xf32> to vector<64x128xf32>
    %123 = arith.negf %122 : vector<64x128xf32>
    %124 = math.exp %123 : vector<64x128xf32>
    %cst_29 = arith.constant 1.000000e+00 : f32
    %125 = vector.broadcast %cst_29 : f32 to vector<64x128xf32>
    %126 = arith.addf %125, %124 : vector<64x128xf32>
    %127 = arith.divf %125, %126 : vector<64x128xf32>
    %128 = vector.extract_strided_slice %115 {offsets = [128, 0], sizes = [64, 128], strides = [1, 1]} : vector<256x128xf32> to vector<64x128xf32>
    %129 = math.tanh %128 : vector<64x128xf32>
    %130 = vector.extract_strided_slice %115 {offsets = [192, 0], sizes = [64, 128], strides = [1, 1]} : vector<256x128xf32> to vector<64x128xf32>
    %131 = arith.negf %130 : vector<64x128xf32>
    %132 = math.exp %131 : vector<64x128xf32>
    %cst_30 = arith.constant 1.000000e+00 : f32
    %133 = vector.broadcast %cst_30 : f32 to vector<64x128xf32>
    %134 = arith.addf %133, %132 : vector<64x128xf32>
    %135 = arith.divf %133, %134 : vector<64x128xf32>
    %136 = arith.mulf %127, %104 : vector<64x128xf32>
    %137 = arith.mulf %121, %129 : vector<64x128xf32>
    %138 = arith.addf %136, %137 : vector<64x128xf32>
    %139 = math.tanh %138 : vector<64x128xf32>
    %140 = arith.mulf %135, %139 : vector<64x128xf32>
    %c4 = arith.constant 4 : index
    %c0_31 = arith.constant 0 : index
    %c0_32 = arith.constant 0 : index
    %141 = vector.load %arg1[%c4, %c0_31, %c0_32] : memref<8x1x128xf32, #tpu.memory_space<vmem>>, vector<1x1x128xf32>
    %142 = vector.shape_cast %141 : vector<1x1x128xf32> to vector<1x128xf32>
    %cst_33 = arith.constant dense<0.000000e+00> : vector<256x128xf32>
    %143 = tpu.matmul %0, %140, %cst_33 {dimension_numbers = #tpu.dot_dimension_numbers<[1], [0], [0], [1], [0, 0, 1, 1], [], []>} : vector<256x64xf32>, vector<64x128xf32>, vector<256x128xf32> -> vector<256x128xf32>
    %144 = vector.broadcast %1 : vector<256x1xf32> to vector<256x128xf32>
    %145 = vector.broadcast %142 : vector<1x128xf32> to vector<256x128xf32>
    %146 = arith.mulf %144, %145 : vector<256x128xf32>
    %147 = arith.addf %143, %146 : vector<256x128xf32>
    %148 = vector.broadcast %2 : vector<256x1xf32> to vector<256x128xf32>
    %149 = arith.addf %147, %148 : vector<256x128xf32>
    %150 = vector.extract_strided_slice %149 {offsets = [0, 0], sizes = [64, 128], strides = [1, 1]} : vector<256x128xf32> to vector<64x128xf32>
    %151 = arith.negf %150 : vector<64x128xf32>
    %152 = math.exp %151 : vector<64x128xf32>
    %cst_34 = arith.constant 1.000000e+00 : f32
    %153 = vector.broadcast %cst_34 : f32 to vector<64x128xf32>
    %154 = arith.addf %153, %152 : vector<64x128xf32>
    %155 = arith.divf %153, %154 : vector<64x128xf32>
    %156 = vector.extract_strided_slice %149 {offsets = [64, 0], sizes = [64, 128], strides = [1, 1]} : vector<256x128xf32> to vector<64x128xf32>
    %157 = arith.negf %156 : vector<64x128xf32>
    %158 = math.exp %157 : vector<64x128xf32>
    %cst_35 = arith.constant 1.000000e+00 : f32
    %159 = vector.broadcast %cst_35 : f32 to vector<64x128xf32>
    %160 = arith.addf %159, %158 : vector<64x128xf32>
    %161 = arith.divf %159, %160 : vector<64x128xf32>
    %162 = vector.extract_strided_slice %149 {offsets = [128, 0], sizes = [64, 128], strides = [1, 1]} : vector<256x128xf32> to vector<64x128xf32>
    %163 = math.tanh %162 : vector<64x128xf32>
    %164 = vector.extract_strided_slice %149 {offsets = [192, 0], sizes = [64, 128], strides = [1, 1]} : vector<256x128xf32> to vector<64x128xf32>
    %165 = arith.negf %164 : vector<64x128xf32>
    %166 = math.exp %165 : vector<64x128xf32>
    %cst_36 = arith.constant 1.000000e+00 : f32
    %167 = vector.broadcast %cst_36 : f32 to vector<64x128xf32>
    %168 = arith.addf %167, %166 : vector<64x128xf32>
    %169 = arith.divf %167, %168 : vector<64x128xf32>
    %170 = arith.mulf %161, %138 : vector<64x128xf32>
    %171 = arith.mulf %155, %163 : vector<64x128xf32>
    %172 = arith.addf %170, %171 : vector<64x128xf32>
    %173 = math.tanh %172 : vector<64x128xf32>
    %174 = arith.mulf %169, %173 : vector<64x128xf32>
    %c5 = arith.constant 5 : index
    %c0_37 = arith.constant 0 : index
    %c0_38 = arith.constant 0 : index
    %175 = vector.load %arg1[%c5, %c0_37, %c0_38] : memref<8x1x128xf32, #tpu.memory_space<vmem>>, vector<1x1x128xf32>
    %176 = vector.shape_cast %175 : vector<1x1x128xf32> to vector<1x128xf32>
    %cst_39 = arith.constant dense<0.000000e+00> : vector<256x128xf32>
    %177 = tpu.matmul %0, %174, %cst_39 {dimension_numbers = #tpu.dot_dimension_numbers<[1], [0], [0], [1], [0, 0, 1, 1], [], []>} : vector<256x64xf32>, vector<64x128xf32>, vector<256x128xf32> -> vector<256x128xf32>
    %178 = vector.broadcast %1 : vector<256x1xf32> to vector<256x128xf32>
    %179 = vector.broadcast %176 : vector<1x128xf32> to vector<256x128xf32>
    %180 = arith.mulf %178, %179 : vector<256x128xf32>
    %181 = arith.addf %177, %180 : vector<256x128xf32>
    %182 = vector.broadcast %2 : vector<256x1xf32> to vector<256x128xf32>
    %183 = arith.addf %181, %182 : vector<256x128xf32>
    %184 = vector.extract_strided_slice %183 {offsets = [0, 0], sizes = [64, 128], strides = [1, 1]} : vector<256x128xf32> to vector<64x128xf32>
    %185 = arith.negf %184 : vector<64x128xf32>
    %186 = math.exp %185 : vector<64x128xf32>
    %cst_40 = arith.constant 1.000000e+00 : f32
    %187 = vector.broadcast %cst_40 : f32 to vector<64x128xf32>
    %188 = arith.addf %187, %186 : vector<64x128xf32>
    %189 = arith.divf %187, %188 : vector<64x128xf32>
    %190 = vector.extract_strided_slice %183 {offsets = [64, 0], sizes = [64, 128], strides = [1, 1]} : vector<256x128xf32> to vector<64x128xf32>
    %191 = arith.negf %190 : vector<64x128xf32>
    %192 = math.exp %191 : vector<64x128xf32>
    %cst_41 = arith.constant 1.000000e+00 : f32
    %193 = vector.broadcast %cst_41 : f32 to vector<64x128xf32>
    %194 = arith.addf %193, %192 : vector<64x128xf32>
    %195 = arith.divf %193, %194 : vector<64x128xf32>
    %196 = vector.extract_strided_slice %183 {offsets = [128, 0], sizes = [64, 128], strides = [1, 1]} : vector<256x128xf32> to vector<64x128xf32>
    %197 = math.tanh %196 : vector<64x128xf32>
    %198 = vector.extract_strided_slice %183 {offsets = [192, 0], sizes = [64, 128], strides = [1, 1]} : vector<256x128xf32> to vector<64x128xf32>
    %199 = arith.negf %198 : vector<64x128xf32>
    %200 = math.exp %199 : vector<64x128xf32>
    %cst_42 = arith.constant 1.000000e+00 : f32
    %201 = vector.broadcast %cst_42 : f32 to vector<64x128xf32>
    %202 = arith.addf %201, %200 : vector<64x128xf32>
    %203 = arith.divf %201, %202 : vector<64x128xf32>
    %204 = arith.mulf %195, %172 : vector<64x128xf32>
    %205 = arith.mulf %189, %197 : vector<64x128xf32>
    %206 = arith.addf %204, %205 : vector<64x128xf32>
    %207 = math.tanh %206 : vector<64x128xf32>
    %208 = arith.mulf %203, %207 : vector<64x128xf32>
    %c6 = arith.constant 6 : index
    %c0_43 = arith.constant 0 : index
    %c0_44 = arith.constant 0 : index
    %209 = vector.load %arg1[%c6, %c0_43, %c0_44] : memref<8x1x128xf32, #tpu.memory_space<vmem>>, vector<1x1x128xf32>
    %210 = vector.shape_cast %209 : vector<1x1x128xf32> to vector<1x128xf32>
    %cst_45 = arith.constant dense<0.000000e+00> : vector<256x128xf32>
    %211 = tpu.matmul %0, %208, %cst_45 {dimension_numbers = #tpu.dot_dimension_numbers<[1], [0], [0], [1], [0, 0, 1, 1], [], []>} : vector<256x64xf32>, vector<64x128xf32>, vector<256x128xf32> -> vector<256x128xf32>
    %212 = vector.broadcast %1 : vector<256x1xf32> to vector<256x128xf32>
    %213 = vector.broadcast %210 : vector<1x128xf32> to vector<256x128xf32>
    %214 = arith.mulf %212, %213 : vector<256x128xf32>
    %215 = arith.addf %211, %214 : vector<256x128xf32>
    %216 = vector.broadcast %2 : vector<256x1xf32> to vector<256x128xf32>
    %217 = arith.addf %215, %216 : vector<256x128xf32>
    %218 = vector.extract_strided_slice %217 {offsets = [0, 0], sizes = [64, 128], strides = [1, 1]} : vector<256x128xf32> to vector<64x128xf32>
    %219 = arith.negf %218 : vector<64x128xf32>
    %220 = math.exp %219 : vector<64x128xf32>
    %cst_46 = arith.constant 1.000000e+00 : f32
    %221 = vector.broadcast %cst_46 : f32 to vector<64x128xf32>
    %222 = arith.addf %221, %220 : vector<64x128xf32>
    %223 = arith.divf %221, %222 : vector<64x128xf32>
    %224 = vector.extract_strided_slice %217 {offsets = [64, 0], sizes = [64, 128], strides = [1, 1]} : vector<256x128xf32> to vector<64x128xf32>
    %225 = arith.negf %224 : vector<64x128xf32>
    %226 = math.exp %225 : vector<64x128xf32>
    %cst_47 = arith.constant 1.000000e+00 : f32
    %227 = vector.broadcast %cst_47 : f32 to vector<64x128xf32>
    %228 = arith.addf %227, %226 : vector<64x128xf32>
    %229 = arith.divf %227, %228 : vector<64x128xf32>
    %230 = vector.extract_strided_slice %217 {offsets = [128, 0], sizes = [64, 128], strides = [1, 1]} : vector<256x128xf32> to vector<64x128xf32>
    %231 = math.tanh %230 : vector<64x128xf32>
    %232 = vector.extract_strided_slice %217 {offsets = [192, 0], sizes = [64, 128], strides = [1, 1]} : vector<256x128xf32> to vector<64x128xf32>
    %233 = arith.negf %232 : vector<64x128xf32>
    %234 = math.exp %233 : vector<64x128xf32>
    %cst_48 = arith.constant 1.000000e+00 : f32
    %235 = vector.broadcast %cst_48 : f32 to vector<64x128xf32>
    %236 = arith.addf %235, %234 : vector<64x128xf32>
    %237 = arith.divf %235, %236 : vector<64x128xf32>
    %238 = arith.mulf %229, %206 : vector<64x128xf32>
    %239 = arith.mulf %223, %231 : vector<64x128xf32>
    %240 = arith.addf %238, %239 : vector<64x128xf32>
    %241 = math.tanh %240 : vector<64x128xf32>
    %242 = arith.mulf %237, %241 : vector<64x128xf32>
    %c7 = arith.constant 7 : index
    %c0_49 = arith.constant 0 : index
    %c0_50 = arith.constant 0 : index
    %243 = vector.load %arg1[%c7, %c0_49, %c0_50] : memref<8x1x128xf32, #tpu.memory_space<vmem>>, vector<1x1x128xf32>
    %244 = vector.shape_cast %243 : vector<1x1x128xf32> to vector<1x128xf32>
    %cst_51 = arith.constant dense<0.000000e+00> : vector<256x128xf32>
    %245 = tpu.matmul %0, %242, %cst_51 {dimension_numbers = #tpu.dot_dimension_numbers<[1], [0], [0], [1], [0, 0, 1, 1], [], []>} : vector<256x64xf32>, vector<64x128xf32>, vector<256x128xf32> -> vector<256x128xf32>
    %246 = vector.broadcast %1 : vector<256x1xf32> to vector<256x128xf32>
    %247 = vector.broadcast %244 : vector<1x128xf32> to vector<256x128xf32>
    %248 = arith.mulf %246, %247 : vector<256x128xf32>
    %249 = arith.addf %245, %248 : vector<256x128xf32>
    %250 = vector.broadcast %2 : vector<256x1xf32> to vector<256x128xf32>
    %251 = arith.addf %249, %250 : vector<256x128xf32>
    %252 = vector.extract_strided_slice %251 {offsets = [0, 0], sizes = [64, 128], strides = [1, 1]} : vector<256x128xf32> to vector<64x128xf32>
    %253 = arith.negf %252 : vector<64x128xf32>
    %254 = math.exp %253 : vector<64x128xf32>
    %cst_52 = arith.constant 1.000000e+00 : f32
    %255 = vector.broadcast %cst_52 : f32 to vector<64x128xf32>
    %256 = arith.addf %255, %254 : vector<64x128xf32>
    %257 = arith.divf %255, %256 : vector<64x128xf32>
    %258 = vector.extract_strided_slice %251 {offsets = [64, 0], sizes = [64, 128], strides = [1, 1]} : vector<256x128xf32> to vector<64x128xf32>
    %259 = arith.negf %258 : vector<64x128xf32>
    %260 = math.exp %259 : vector<64x128xf32>
    %cst_53 = arith.constant 1.000000e+00 : f32
    %261 = vector.broadcast %cst_53 : f32 to vector<64x128xf32>
    %262 = arith.addf %261, %260 : vector<64x128xf32>
    %263 = arith.divf %261, %262 : vector<64x128xf32>
    %264 = vector.extract_strided_slice %251 {offsets = [128, 0], sizes = [64, 128], strides = [1, 1]} : vector<256x128xf32> to vector<64x128xf32>
    %265 = math.tanh %264 : vector<64x128xf32>
    %266 = vector.extract_strided_slice %251 {offsets = [192, 0], sizes = [64, 128], strides = [1, 1]} : vector<256x128xf32> to vector<64x128xf32>
    %267 = arith.negf %266 : vector<64x128xf32>
    %268 = math.exp %267 : vector<64x128xf32>
    %cst_54 = arith.constant 1.000000e+00 : f32
    %269 = vector.broadcast %cst_54 : f32 to vector<64x128xf32>
    %270 = arith.addf %269, %268 : vector<64x128xf32>
    %271 = arith.divf %269, %270 : vector<64x128xf32>
    %272 = arith.mulf %263, %240 : vector<64x128xf32>
    %273 = arith.mulf %257, %265 : vector<64x128xf32>
    %274 = arith.addf %272, %273 : vector<64x128xf32>
    %275 = math.tanh %274 : vector<64x128xf32>
    %276 = arith.mulf %271, %275 : vector<64x128xf32>
    %c0_55 = arith.constant 0 : index
    %c0_56 = arith.constant 0 : index
    %277 = vector.load %arg5[%c0_55, %c0_56] : memref<32x64xf32, #tpu.memory_space<vmem>>, vector<32x64xf32>
    %cst_57 = arith.constant dense<0.000000e+00> : vector<32x128xf32>
    %278 = tpu.matmul %277, %276, %cst_57 {dimension_numbers = #tpu.dot_dimension_numbers<[1], [0], [0], [1], [0, 0, 1, 1], [], []>} : vector<32x64xf32>, vector<64x128xf32>, vector<32x128xf32> -> vector<32x128xf32>
    %c0_58 = arith.constant 0 : index
    %c0_59 = arith.constant 0 : index
    %279 = vector.load %arg6[%c0_58, %c0_59] : memref<32x1xf32, #tpu.memory_space<vmem>>, vector<32x1xf32>
    %280 = vector.broadcast %279 : vector<32x1xf32> to vector<32x128xf32>
    %281 = arith.addf %278, %280 : vector<32x128xf32>
    %cst_60 = arith.constant 0.000000e+00 : f32
    %282 = vector.broadcast %cst_60 : f32 to vector<32x128xf32>
    %283 = arith.cmpf oge, %281, %282 : vector<32x128xf32>
    %cst_61 = arith.constant 0.00999999977 : f32
    %284 = vector.broadcast %cst_61 : f32 to vector<32x128xf32>
    %285 = arith.mulf %284, %281 : vector<32x128xf32>
    %286 = arith.select %283, %281, %285 : vector<32x128xi1>, vector<32x128xf32>
    %c0_62 = arith.constant 0 : index
    %c0_63 = arith.constant 0 : index
    %287 = vector.load %arg7[%c0_62, %c0_63] : memref<16x32xf32, #tpu.memory_space<vmem>>, vector<16x32xf32>
    %cst_64 = arith.constant dense<0.000000e+00> : vector<16x128xf32>
    %288 = tpu.matmul %287, %286, %cst_64 {dimension_numbers = #tpu.dot_dimension_numbers<[1], [0], [0], [1], [0, 0, 1, 1], [], []>} : vector<16x32xf32>, vector<32x128xf32>, vector<16x128xf32> -> vector<16x128xf32>
    %c0_65 = arith.constant 0 : index
    %c0_66 = arith.constant 0 : index
    %289 = vector.load %arg8[%c0_65, %c0_66] : memref<16x1xf32, #tpu.memory_space<vmem>>, vector<16x1xf32>
    %290 = vector.broadcast %289 : vector<16x1xf32> to vector<16x128xf32>
    %291 = arith.addf %288, %290 : vector<16x128xf32>
    %cst_67 = arith.constant 0.000000e+00 : f32
    %292 = vector.broadcast %cst_67 : f32 to vector<16x128xf32>
    %293 = arith.cmpf oge, %291, %292 : vector<16x128xf32>
    %cst_68 = arith.constant 0.00999999977 : f32
    %294 = vector.broadcast %cst_68 : f32 to vector<16x128xf32>
    %295 = arith.mulf %294, %291 : vector<16x128xf32>
    %296 = arith.select %293, %291, %295 : vector<16x128xi1>, vector<16x128xf32>
    %c0_69 = arith.constant 0 : index
    %c0_70 = arith.constant 0 : index
    %297 = vector.load %arg9[%c0_69, %c0_70] : memref<4x16xf32, #tpu.memory_space<vmem>>, vector<4x16xf32>
    %cst_71 = arith.constant dense<0.000000e+00> : vector<4x128xf32>
    %298 = tpu.matmul %297, %296, %cst_71 {dimension_numbers = #tpu.dot_dimension_numbers<[1], [0], [0], [1], [0, 0, 1, 1], [], []>} : vector<4x16xf32>, vector<16x128xf32>, vector<4x128xf32> -> vector<4x128xf32>
    %c0_72 = arith.constant 0 : index
    %c0_73 = arith.constant 0 : index
    %299 = vector.load %arg10[%c0_72, %c0_73] : memref<4x1xf32, #tpu.memory_space<vmem>>, vector<4x1xf32>
    %300 = vector.broadcast %299 : vector<4x1xf32> to vector<4x128xf32>
    %301 = arith.addf %298, %300 : vector<4x128xf32>
    %c0_74 = arith.constant 0 : index
    %c0_75 = arith.constant 0 : index
    %302 = vector.load %arg11[%c0_74, %c0_75] : memref<4x128xf32, #tpu.memory_space<vmem>>, vector<4x128xf32>
    tpu.vector_store %arg11[%c0_74, %c0_75], %301 {strides = array<i32>} : memref<4x128xf32, #tpu.memory_space<vmem>>, vector<4x128xf32>,
    return
  }
  func.func @transform_0(%arg0: i32) -> (i32, i32, i32) {
    %c0_i32 = arith.constant 0 : i32
    %c0_i32_0 = arith.constant 0 : i32
    %c0_i32_1 = arith.constant 0 : i32
    return %c0_i32, %c0_i32_0, %arg0 : i32, i32, i32
  }
  func.func @transform_1(%arg0: i32) -> (i32, i32) {
    %c0_i32 = arith.constant 0 : i32
    %c0_i32_0 = arith.constant 0 : i32
    %c0_i32_1 = arith.constant 0 : i32
    return %c0_i32, %c0_i32_0 : i32, i32
  }
  func.func @transform_2(%arg0: i32) -> (i32, i32) {
    %c0_i32 = arith.constant 0 : i32
    %c0_i32_0 = arith.constant 0 : i32
    %c0_i32_1 = arith.constant 0 : i32
    return %c0_i32, %c0_i32_0 : i32, i32
  }
  func.func @transform_3(%arg0: i32) -> (i32, i32) {
    %c0_i32 = arith.constant 0 : i32
    %c0_i32_0 = arith.constant 0 : i32
    %c0_i32_1 = arith.constant 0 : i32
    return %c0_i32, %c0_i32_0 : i32, i32
  }
  func.func @transform_4(%arg0: i32) -> (i32, i32) {
    %c0_i32 = arith.constant 0 : i32
    %c0_i32_0 = arith.constant 0 : i32
    %c0_i32_1 = arith.constant 0 : i32
    return %c0_i32, %c0_i32_0 : i32, i32
  }
  func.func @transform_5(%arg0: i32) -> (i32, i32) {
    %c0_i32 = arith.constant 0 : i32
    %c0_i32_0 = arith.constant 0 : i32
    %c0_i32_1 = arith.constant 0 : i32
    return %c0_i32, %c0_i32_0 : i32, i32
  }
  func.func @transform_6(%arg0: i32) -> (i32, i32) {
    %c0_i32 = arith.constant 0 : i32
    %c0_i32_0 = arith.constant 0 : i32
    %c0_i32_1 = arith.constant 0 : i32
    return %c0_i32, %c0_i32_0 : i32, i32
  }
  func.func @transform_7(%arg0: i32) -> (i32, i32) {
    %c0_i32 = arith.constant 0 : i32
    %c0_i32_0 = arith.constant 0 : i32
    %c0_i32_1 = arith.constant 0 : i32
    return %c0_i32, %c0_i32_0 : i32, i32
  }
  func.func @transform_8(%arg0: i32) -> (i32, i32) {
    %c0_i32 = arith.constant 0 : i32
    %c0_i32_0 = arith.constant 0 : i32
    %c0_i32_1 = arith.constant 0 : i32
    return %c0_i32, %c0_i32_0 : i32, i32
  }
  func.func @transform_9(%arg0: i32) -> (i32, i32) {
    %c0_i32 = arith.constant 0 : i32
    %c0_i32_0 = arith.constant 0 : i32
    %c0_i32_1 = arith.constant 0 : i32
    return %c0_i32, %c0_i32_0 : i32, i32
  }
  func.func @transform_10(%arg0: i32) -> (i32, i32) {
    %c0_i32 = arith.constant 0 : i32
    %c0_i32_0 = arith.constant 0 : i32
    return %c0_i32, %arg0 : i32, i32
  }
}

</mosaic_0001>

<bundles_post_ra>
// kernel: lstm_forward_pallas.1
= control target key start
LH: loop header
LB: loop body
LE: loop exit
PB: predicated region body
PF: predicated region fallthrough
CT: control target
= control target key end

     0   :  { %v10925_v0 = vmov 0.0   ;;  %v7423_v1 = vmov 0   ;;  %vm330_vm0 = vcmask 523264   ;;  %vm4610_vm1 = vcmask 261120   ;;  %s10914_s2 = inlined_call_operand.vmem [shape: f32[256,1], index: 2, kind: input, shape index: {}]   ;;  %s10915_s1 = inlined_call_operand.vmem [shape: f32[256,64], index: 1, kind: input, shape index: {}]   ;;  %s10916_s3 = inlined_call_operand.vmem [shape: f32[256,1], index: 3, kind: input, shape index: {}]   ;;  %s10917_s5 = inlined_call_operand.vmem [shape: f32[32,1], index: 5, kind: input, shape index: {}]   ;;  %s10918_s0 = inlined_call_operand.vmem [shape: f32[8,1,128], index: 0, kind: input, shape index: {}]   ;;  %s10919_s7 = inlined_call_operand.vmem [shape: f32[16,1], index: 7, kind: input, shape index: {}]   ;;  %s10920_s9 = inlined_call_operand.vmem [shape: f32[4,1], index: 9, kind: input, shape index: {}]   ;;  %s10921_s4 = inlined_call_operand.vmem [shape: f32[32,64], index: 4, kind: input, shape index: {}]   ;;  %s10922_s6 = inlined_call_operand.vmem [shape: f32[16,32], index: 6, kind: input, shape index: {}]   ;;  %s10923_s8 = inlined_call_operand.vmem [shape: f32[4,16], index: 8, kind: input, shape index: {}]   ;;  %s10924_s10 = inlined_call_operand.vmem [shape: f32[4,128], index: 10, kind: output, shape index: {}]  }
   0x1   :  { %5588 = vmatprep.subr.mxu0 %v10925_v0  ;;  %6270 = vset.pattern.permute.xlu1 %v7423_v1  ;;  %v75_v2 = vld [vmem:[%s10914_s2 + $0x40] sm:$0xff]  ;;  %v36_v5 = vld [vmem:[%s10915_s1 + $0x8] sm:$0xff]  ;;  %v37_v6 = vld [vmem:[%s10915_s1 + $0x10] sm:$0xff]  ;;  %vm7425_vm6 = vmmov 0   ;;  %vm4705_vm9 = vcmask 130048  }
   0x2   :  { %v67_v3 = vld [vmem:[%s10914_s2] sm:$0xff]  ;;  %6269 = vset.pattern.permute.xlu0 %v7423_v1  ;;  %5589 = vmatpush3.msra.mxu0 %v10925_v0  ;;  %v76_v7 = vld [vmem:[%s10914_s2 + $0x48] sm:$0xff]  ;;  %v38_v9 = vld [vmem:[%s10915_s1 + $0x18] sm:$0xff] }
   0x3   :  { %v7491_v4 = vld [vmem:[%s10915_s1] sm:$0xff]  ;;  %174 = vperm.xlu1 %6270, %v75_v2   ;;  %134 = vperm.xlu0 %6269, %v67_v3   ;;  %v68_v8 = vld [vmem:[%s10914_s2 + $0x8] sm:$0xff]  ;;  %v70_v11 = vld [vmem:[%s10914_s2 + $0x18] sm:$0xff] }
   0x4   :  { %5590 = vmatprep.mubr.msk.f32.mxu0 %vm330_vm0, %v7491_v4  ;;  %5654 = vmatprep.mubr.msk.f32.mxu1 %vm330_vm0, %v7491_v4  ;;  %v39_v10 = vld [vmem:[%s10915_s1 + $0x20] sm:$0xff]  ;;  %v69_v12 = vld [vmem:[%s10914_s2 + $0x10] sm:$0xff]  ;;  %v40_v13 = vld [vmem:[%s10915_s1 + $0x28] sm:$0xff] }
   0x5   :  { %5591 = vmatmul.mubr.msk.f32.vlgmr.msra.gmra.mrb[0].mxu0 %vm330_vm0, %v36_v5  ;;  %v41_v14 = vld [vmem:[%s10915_s1 + $0x30] sm:$0xff]  ;;  %v78_v15 = vld [vmem:[%s10914_s2 + $0x58] sm:$0xff]  ;;  %v43_v18 = vld [vmem:[%s10915_s1 + $0x40] sm:$0xff] }
   0x6   :  { %5593 = vmatprep.mubr.msk.f32.mxu0 %vm330_vm0, %v37_v6  ;;  %v77_v16 = vld [vmem:[%s10914_s2 + $0x50] sm:$0xff]  ;;  %v42_v17 = vld [vmem:[%s10915_s1 + $0x38] sm:$0xff]  ;;  %v100_v19 = vld [vmem:[%s10916_s3 + $0x8] sm:$0xff] }
   0x7   :  { %179 = vperm.xlu1 %6270, %v76_v7   ;;  %139 = vperm.xlu0 %6269, %v68_v8   ;;  %v99_v20 = vld [vmem:[%s10916_s3] sm:$0xff]  ;;  %v44_v21 = vld [vmem:[%s10915_s1 + $0x48] sm:$0xff]  ;;  %v45_v22 = vld [vmem:[%s10915_s1 + $0x50] sm:$0xff] }
   0x8   :  { %v108_v23 = vld [vmem:[%s10916_s3 + $0x48] sm:$0xff]  ;;  %v107_v24 = vld [vmem:[%s10916_s3 + $0x40] sm:$0xff]  ;;  %v46_v25 = vld [vmem:[%s10915_s1 + $0x58] sm:$0xff] }
   0x9   :  { %5594 = vmatmul.mubr.msk.f32.gmra.mrb[2].mxu0 %vm330_vm0, %v38_v9  ;;  %v47_v26 = vld [vmem:[%s10915_s1 + $0x60] sm:$0xff]  ;;  %v72_v27 = vld [vmem:[%s10914_s2 + $0x28] sm:$0xff]  ;;  %v49_v30 = vld [vmem:[%s10915_s1 + $0x70] sm:$0xff] }
   0xa   :  { %5596 = vmatprep.mubr.msk.f32.mxu0 %vm330_vm0, %v39_v10  ;;  %v71_v28 = vld [vmem:[%s10914_s2 + $0x20] sm:$0xff]  ;;  %v48_v29 = vld [vmem:[%s10915_s1 + $0x68] sm:$0xff]  ;;  %v50_v33 = vld [vmem:[%s10915_s1 + $0x78] sm:$0xff] }
   0xb   :  { %149 = vperm.xlu1 %6270, %v70_v11   ;;  %144 = vperm.xlu0 %6269, %v69_v12   ;;  %v80_v31 = vld [vmem:[%s10914_s2 + $0x68] sm:$0xff]  ;;  %v79_v32 = vld [vmem:[%s10914_s2 + $0x60] sm:$0xff]  ;;  %v102_v35 = vld [vmem:[%s10916_s3 + $0x18] sm:$0xff] }
   0xc   :  { %v51_v34 = vld [vmem:[%s10915_s1 + $0x80] sm:$0xff]  ;;  %v101_v36 = vld [vmem:[%s10916_s3 + $0x10] sm:$0xff]  ;;  %v52_v37 = vld [vmem:[%s10915_s1 + $0x88] sm:$0xff] }
   0xd   :  { %5597 = vmatmul.mubr.msk.f32.gmra.mrb[4].mxu0 %vm330_vm0, %v40_v13  ;;  %v53_v38 = vld [vmem:[%s10915_s1 + $0x90] sm:$0xff]  ;;  %v110_v39 = vld [vmem:[%s10916_s3 + $0x58] sm:$0xff]  ;;  %v55_v42 = vld [vmem:[%s10915_s1 + $0xa0] sm:$0xff] }
   0xe   :  { %5599 = vmatprep.mubr.msk.f32.mxu0 %vm330_vm0, %v41_v14  ;;  %v109_v40 = vld [vmem:[%s10916_s3 + $0x50] sm:$0xff]  ;;  %v54_v41 = vld [vmem:[%s10915_s1 + $0x98] sm:$0xff]  ;;  %v56_v45 = vld [vmem:[%s10915_s1 + $0xa8] sm:$0xff] }
   0xf   :  { %189 = vperm.xlu1 %6270, %v78_v15   ;;  %184 = vperm.xlu0 %6269, %v77_v16   ;;  %v74_v43 = vld [vmem:[%s10914_s2 + $0x38] sm:$0xff]  ;;  %v73_v44 = vld [vmem:[%s10914_s2 + $0x30] sm:$0xff]  ;;  %v59_v50 = vld [vmem:[%s10915_s1 + $0xc0] sm:$0xff] }
  0x10   :  { %v57_v46 = vld [vmem:[%s10915_s1 + $0xb0] sm:$0xff]  ;;  %v82_v47 = vld [vmem:[%s10914_s2 + $0x78] sm:$0xff]  ;;  %v104_v51 = vld [vmem:[%s10916_s3 + $0x28] sm:$0xff] }
  0x11   :  { %5600 = vmatmul.mubr.msk.f32.gmra.mrb[6].mxu0 %vm330_vm0, %v42_v17  ;;  %v81_v48 = vld [vmem:[%s10914_s2 + $0x70] sm:$0xff]  ;;  %v58_v49 = vld [vmem:[%s10915_s1 + $0xb8] sm:$0xff]  ;;  %v103_v52 = vld [vmem:[%s10916_s3 + $0x20] sm:$0xff] }
  0x12   :  { %5602 = vmatprep.mubr.msk.f32.mxu0 %vm330_vm0, %v43_v18  ;;  %v60_v53 = vld [vmem:[%s10915_s1 + $0xc8] sm:$0xff]  ;;  %v61_v54 = vld [vmem:[%s10915_s1 + $0xd0] sm:$0xff]  ;;  %v111_v56 = vld [vmem:[%s10916_s3 + $0x60] sm:$0xff] }
  0x13   :  { %659 = vperm.xlu1 %6270, %v100_v19   ;;  %654 = vperm.xlu0 %6269, %v99_v20   ;;  %v112_v55 = vld [vmem:[%s10916_s3 + $0x68] sm:$0xff]  ;;  %v62_v57 = vld [vmem:[%s10915_s1 + $0xd8] sm:$0xff]  ;;  %v63_v58 = vld [vmem:[%s10915_s1 + $0xe0] sm:$0xff] }
  0x14   :  { %v84_v59 = vld [vmem:[%s10914_s2 + $0x88] sm:$0xff]  ;;  %v83_v60 = vld [vmem:[%s10914_s2 + $0x80] sm:$0xff]  ;;  %v65_v62 = vld [vmem:[%s10915_s1 + $0xf0] sm:$0xff] }
  0x15   :  { %5603 = vmatmul.mubr.msk.f32.gmra.mrb[8].mxu0 %vm330_vm0, %v44_v21  ;;  %v64_v61 = vld [vmem:[%s10915_s1 + $0xe8] sm:$0xff]  ;;  %v91_v1 = vld [vmem:[%s10914_s2 + $0xc0] sm:$0xff]  ;;  %v66_v2 = vld [vmem:[%s10915_s1 + $0xf8] sm:$0xff] }
  0x16   :  { %5605 = vmatprep.mubr.msk.f32.mxu0 %vm330_vm0, %v45_v22  ;;  %v92_v63 = vld [vmem:[%s10914_s2 + $0xc8] sm:$0xff]  ;;  %v106_v3 = vld [vmem:[%s10916_s3 + $0x38] sm:$0xff]  ;;  %v105_v5 = vld [vmem:[%s10916_s3 + $0x30] sm:$0xff] }
  0x17   :  { %699 = vperm.xlu1 %6270, %v108_v23   ;;  %694 = vperm.xlu0 %6269, %v107_v24   ;;  %v114_v6 = vld [vmem:[%s10916_s3 + $0x78] sm:$0xff]  ;;  %v113_v7 = vld [vmem:[%s10916_s3 + $0x70] sm:$0xff]  ;;  %v116_v11 = vld [vmem:[%s10916_s3 + $0x88] sm:$0xff] }
  0x18   :  { %v86_v8 = vld [vmem:[%s10914_s2 + $0x98] sm:$0xff]  ;;  %v93_v10 = vld [vmem:[%s10914_s2 + $0xd0] sm:$0xff]  ;;  %v115_v12 = vld [vmem:[%s10916_s3 + $0x80] sm:$0xff] }
  0x19   :  { %5606 = vmatmul.mubr.msk.f32.gmra.mrb[10].mxu0 %vm330_vm0, %v46_v25  ;;  %v94_v9 = vld [vmem:[%s10914_s2 + $0xd8] sm:$0xff]  ;;  %v124_v13 = vld [vmem:[%s10916_s3 + $0xc8] sm:$0xff]  ;;  %v123_v14 = vld [vmem:[%s10916_s3 + $0xc0] sm:$0xff] }
  0x1a   :  { %5608 = vmatprep.mubr.msk.f32.mxu0 %vm330_vm0, %v47_v26  ;;  %v88_v15 = vld [vmem:[%s10914_s2 + $0xa8] sm:$0xff]  ;;  %v87_v16 = vld [vmem:[%s10914_s2 + $0xa0] sm:$0xff]  ;;  %v118_v19 = vld [vmem:[%s10916_s3 + $0x98] sm:$0xff] }
  0x1b   :  { %159 = vperm.xlu1 %6270, %v72_v27   ;;  %154 = vperm.xlu0 %6269, %v71_v28   ;;  %v96_v17 = vld [vmem:[%s10914_s2 + $0xe8] sm:$0xff]  ;;  %v95_v18 = vld [vmem:[%s10914_s2 + $0xe0] sm:$0xff]  ;;  %v117_v20 = vld [vmem:[%s10916_s3 + $0x90] sm:$0xff] }
  0x1c   :  { %v126_v21 = vld [vmem:[%s10916_s3 + $0xd8] sm:$0xff]  ;;  %v125_v22 = vld [vmem:[%s10916_s3 + $0xd0] sm:$0xff]  ;;  %v120_v27 = vld [vmem:[%s10916_s3 + $0xa8] sm:$0xff] }
  0x1d   :  { %5609 = vmatmul.mubr.msk.f32.gmra.mrb[12].mxu0 %vm330_vm0, %v48_v29  ;;  %v90_v23 = vld [vmem:[%s10914_s2 + $0xb8] sm:$0xff]  ;;  %v89_v24 = vld [vmem:[%s10914_s2 + $0xb0] sm:$0xff]  ;;  %v119_v28 = vld [vmem:[%s10916_s3 + $0xa0] sm:$0xff] }
  0x1e   :  { %5611 = vmatprep.mubr.msk.f32.mxu0 %vm330_vm0, %v49_v30  ;;  %v98_v25 = vld [vmem:[%s10914_s2 + $0xf8] sm:$0xff]  ;;  %v97_v26 = vld [vmem:[%s10914_s2 + $0xf0] sm:$0xff]  ;;  %v128_v29 = vld [vmem:[%s10916_s3 + $0xe8] sm:$0xff] }
  0x1f   :  { %199 = vperm.xlu1 %6270, %v80_v31   ;;  %194 = vperm.xlu0 %6269, %v79_v32   ;;  %v127_v30 = vld [vmem:[%s10916_s3 + $0xe0] sm:$0xff]  ;;  %v122_v31 = vld [vmem:[%s10916_s3 + $0xb8] sm:$0xff]  ;;  %v121_v32 = vld [vmem:[%s10916_s3 + $0xb0] sm:$0xff] }
  0x21   :  { %5612 = vmatmul.mubr.msk.f32.gmra.mrb[14].mxu0 %vm330_vm0, %v50_v33  ;;  %v130_v33 = vld [vmem:[%s10916_s3 + $0xf8] sm:$0xff] }
  0x22   :  { %5614 = vmatprep.mubr.msk.f32.mxu0 %vm330_vm0, %v51_v34  ;;  %v129_v34 = vld [vmem:[%s10916_s3 + $0xf0] sm:$0xff] }
  0x23   :  { %669 = vperm.xlu1 %6270, %v102_v35   ;;  %664 = vperm.xlu0 %6269, %v101_v36   ;;  %v4464_v35 = vld [vmem:[%s10917_s5 + $0x8] sm:$0xff]  ;;  %v4463_v36 = vld [vmem:[%s10917_s5] sm:$0xff] }
  0x25   :  { %5615 = vmatmul.mubr.msk.f32.gmra.mrb[16].mxu0 %vm330_vm0, %v52_v37  ;;  %v7819_v37 = vld [vmem:[%s10918_s0 + $0x1] ss:$0 sm:$0xff] }
  0x26   :  { %5617 = vmatprep.mubr.msk.f32.mxu0 %vm330_vm0, %v53_v38  ;;  %v7824_v38 = vld [vmem:[%s10918_s0 + $0x2] ss:$0 sm:$0xff] }
  0x27   :  { %709 = vperm.xlu1 %6270, %v110_v39   ;;  %704 = vperm.xlu0 %6269, %v109_v40   ;;  %v7829_v39 = vld [vmem:[%s10918_s0 + $0x3] ss:$0 sm:$0xff] }
  0x29   :  { %5618 = vmatmul.mubr.msk.f32.gmra.mrb[18].mxu0 %vm330_vm0, %v54_v41 }
  0x2a   :  { %5620 = vmatprep.mubr.msk.f32.mxu0 %vm330_vm0, %v55_v42  ;;  %v7838_v42 = vld [vmem:[%s10918_s0 + $0x4] ss:$0 sm:$0xff] }
  0x2b   :  { %169 = vperm.xlu1 %6270, %v74_v43   ;;  %164 = vperm.xlu0 %6269, %v73_v44   ;;  %v7843_v43 = vld [vmem:[%s10918_s0 + $0x5] ss:$0 sm:$0xff] }
  0x2d   :  { %5621 = vmatmul.mubr.msk.f32.gmra.mrb[20].mxu0 %vm330_vm0, %v56_v45  ;;  %v7852_v45 = vld [vmem:[%s10918_s0 + $0x6] ss:$0 sm:$0xff] }
  0x2e   :  { %5623 = vmatprep.mubr.msk.f32.mxu0 %vm330_vm0, %v57_v46  ;;  %v7857_v46 = vld [vmem:[%s10918_s0 + $0x7] ss:$0 sm:$0xff] }
  0x2f   :  { %209 = vperm.xlu1 %6270, %v82_v47   ;;  %204 = vperm.xlu0 %6269, %v81_v48   ;;  %v4466_v47 = vld [vmem:[%s10917_s5 + $0x18] sm:$0xff]  ;;  %v4465_v48 = vld [vmem:[%s10917_s5 + $0x10] sm:$0xff] }
  0x31   :  { %5624 = vmatmul.mubr.msk.f32.gmra.mrb[22].mxu0 %vm330_vm0, %v58_v49 }
  0x32   :  { %5626 = vmatprep.mubr.msk.f32.mxu0 %vm330_vm0, %v59_v50 }
  0x33   :  { %679 = vperm.xlu1 %6270, %v104_v51   ;;  %674 = vperm.xlu0 %6269, %v103_v52  }
  0x35   :  { %5627 = vmatmul.mubr.msk.f32.gmra.mrb[24].mxu0 %vm330_vm0, %v60_v53 }
  0x36   :  { %5629 = vmatprep.mubr.msk.f32.mxu0 %vm330_vm0, %v61_v54 }
  0x37   :  { %719 = vperm.xlu1 %6270, %v112_v55   ;;  %714 = vperm.xlu0 %6269, %v111_v56  }
  0x39   :  { %5630 = vmatmul.mubr.msk.f32.gmra.mrb[26].mxu0 %vm330_vm0, %v62_v57 }
  0x3a   :  { %5632 = vmatprep.mubr.msk.f32.mxu0 %vm330_vm0, %v63_v58 }
  0x3b   :  { %219 = vperm.xlu1 %6270, %v84_v59   ;;  %214 = vperm.xlu0 %6269, %v83_v60  }
  0x3d   :  { %5633 = vmatmul.mubr.msk.f32.gmra.mrb[28].mxu0 %vm330_vm0, %v64_v61 }
  0x3e   :  { %5635 = vmatprep.mubr.msk.f32.mxu0 %vm330_vm0, %v65_v62 }
  0x3f   :  { %259 = vperm.xlu1 %6270, %v92_v63   ;;  %254 = vperm.xlu0 %6269, %v91_v1   ;;  %v4599_v1 = vld [vmem:[%s10919_s7 + $0x8] sm:$0xff] }
  0x41   :  { %5636 = vmatmul.mubr.msk.f32.gmra.mrb[30].mxu0 %vm330_vm0, %v66_v2  ;;  %v4598_v2 = vld [vmem:[%s10919_s7] sm:$0xff] }
  0x42   :  { %5718 = vmatprep.mubr.msk.f32.mxu0 %vm330_vm0, %v7491_v4  ;;  %v85_v4 = vld [vmem:[%s10914_s2 + $0x90] sm:$0xff] }
  0x43   :  { %689 = vperm.xlu1 %6270, %v106_v3   ;;  %684 = vperm.xlu0 %6269, %v105_v5  }
  0x47   :  { %729 = vperm.xlu1 %6270, %v114_v6   ;;  %724 = vperm.xlu0 %6269, %v113_v7  }
  0x4b   :  { %229 = vperm.xlu1 %6270, %v86_v8   ;;  %224 = vperm.xlu0 %6269, %v85_v4  }
  0x4f   :  { %269 = vperm.xlu1 %6270, %v94_v9   ;;  %264 = vperm.xlu0 %6269, %v93_v10  }
  0x53   :  { %739 = vperm.xlu1 %6270, %v116_v11   ;;  %734 = vperm.xlu0 %6269, %v115_v12  }
  0x57   :  { %779 = vperm.xlu1 %6270, %v124_v13   ;;  %774 = vperm.xlu0 %6269, %v123_v14  }
  0x5b   :  { %239 = vperm.xlu1 %6270, %v88_v15   ;;  %234 = vperm.xlu0 %6269, %v87_v16  }
  0x5f   :  { %279 = vperm.xlu1 %6270, %v96_v17   ;;  %274 = vperm.xlu0 %6269, %v95_v18   ;;  %v4699_v18 = vld [vmem:[%s10920_s9] sm:$0xf] }
  0x63   :  { %749 = vperm.xlu1 %6270, %v118_v19   ;;  %744 = vperm.xlu0 %6269, %v117_v20  }
  0x67   :  { %789 = vperm.xlu1 %6270, %v126_v21   ;;  %784 = vperm.xlu0 %6269, %v125_v22  }
  0x6b   :  { %249 = vperm.xlu1 %6270, %v90_v23   ;;  %244 = vperm.xlu0 %6269, %v89_v24  }
  0x6f   :  { %289 = vperm.xlu1 %6270, %v98_v25   ;;  %284 = vperm.xlu0 %6269, %v97_v26  }
  0x73   :  { %759 = vperm.xlu1 %6270, %v120_v27   ;;  %754 = vperm.xlu0 %6269, %v119_v28  }
  0x77   :  { %799 = vperm.xlu1 %6270, %v128_v29   ;;  %794 = vperm.xlu0 %6269, %v127_v30  }
  0x7b   :  { %769 = vperm.xlu1 %6270, %v122_v31   ;;  %764 = vperm.xlu0 %6269, %v121_v32  }
  0x7f   :  { %809 = vperm.xlu1 %6270, %v130_v33   ;;  %804 = vperm.xlu0 %6269, %v129_v34  }
  0x82   :  { %v7831_v40 = vpop.permute.xlu1 %174  ;;  %v7833_v41 = vpop.permute.xlu0 %134 }
  0x83   :  { %4474 = vperm.xlu1 %6270, %v4464_v35   ;;  %4469 = vperm.xlu0 %6269, %v4463_v36   ;;  %v7847_v44 = vmul.f32 %v7819_v37, %v7833_v41  ;;  %v7867_v49 = vmul.f32 %v7819_v37, %v7831_v40  ;;  %v7871_v50 = vmul.f32 %v7824_v38, %v7833_v41 }
  0x84   :  { %v7875_v51 = vmul.f32 %v7824_v38, %v7831_v40  ;;  %v7879_v52 = vmul.f32 %v7829_v39, %v7833_v41  ;;  %v7883_v53 = vmul.f32 %v7829_v39, %v7831_v40  ;;  %v7887_v54 = vmul.f32 %v7838_v42, %v7833_v41 }
  0x85   :  { %11050 = vst [vmem:[#allocation2_spill] sm:$0xff] %v7847_v44  ;;  %11051 = vst [vmem:[#allocation3_spill] sm:$0xff] %v7867_v49  ;;  %v7891_v55 = vmul.f32 %v7838_v42, %v7831_v40  ;;  %v7895_v56 = vmul.f32 %v7843_v43, %v7833_v41  ;;  %v7903_v59 = vmul.f32 %v7843_v43, %v7831_v40 }
  0x86   :  { %11052 = vst [vmem:[#allocation4_spill] sm:$0xff] %v7871_v50  ;;  %11053 = vst [vmem:[#allocation5_spill] sm:$0xff] %v7875_v51  ;;  %v7897_v57 = vpop.permute.xlu1 %179  ;;  %v7899_v58 = vpop.permute.xlu0 %139  ;;  %v7907_v60 = vmul.f32 %v7852_v45, %v7833_v41  ;;  %v7911_v61 = vmul.f32 %v7852_v45, %v7831_v40  ;;  %v7915_v62 = vmul.f32 %v7857_v46, %v7833_v41 }
  0x87   :  { %11054 = vst [vmem:[#allocation6_spill] sm:$0xff] %v7879_v52  ;;  %11055 = vst [vmem:[#allocation7_spill] sm:$0xff] %v7883_v53  ;;  %4484 = vperm.xlu1 %6270, %v4466_v47   ;;  %4479 = vperm.xlu0 %6269, %v4465_v48   ;;  %v7919_v63 = vmul.f32 %v7819_v37, %v7899_v58  ;;  %v7929_v3 = vmul.f32 %v7819_v37, %v7897_v57 }
  0x88   :  { %11056 = vst [vmem:[#allocation8_spill] sm:$0xff] %v7887_v54  ;;  %11057 = vst [vmem:[#allocation9_spill] sm:$0xff] %v7891_v55  ;;  %v7933_v5 = vmul.f32 %v7824_v38, %v7899_v58  ;;  %v7937_v6 = vmul.f32 %v7824_v38, %v7897_v57  ;;  %v7941_v7 = vmul.f32 %v7829_v39, %v7899_v58 }
  0x89   :  { %11058 = vst [vmem:[#allocation10_spill] sm:$0xff] %v7895_v56  ;;  %11059 = vst [vmem:[#allocation11_spill] sm:$0xff] %v7903_v59  ;;  %v7945_v8 = vmul.f32 %v7829_v39, %v7897_v57  ;;  %v7949_v4 = vmul.f32 %v7838_v42, %v7899_v58  ;;  %v7953_v9 = vmul.f32 %v7838_v42, %v7897_v57 }
  0x8a   :  { %11060 = vst [vmem:[#allocation12_spill] sm:$0xff] %v7907_v60  ;;  %11061 = vst [vmem:[#allocation13_spill] sm:$0xff] %v7911_v61  ;;  %v7957_v10 = vmul.f32 %v7843_v43, %v7899_v58  ;;  %v7959_v11 = vpop.permute.xlu1 %149  ;;  %v7961_v12 = vpop.permute.xlu0 %144  ;;  %v7965_v13 = vmul.f32 %v7843_v43, %v7897_v57  ;;  %v7969_v14 = vmul.f32 %v7852_v45, %v7899_v58 }
  0x8b   :  { %11062 = vst [vmem:[#allocation14_spill] sm:$0xff] %v7915_v62  ;;  %11063 = vst [vmem:[#allocation15_spill] sm:$0xff] %v7929_v3  ;;  %v7973_v15 = vmul.f32 %v7852_v45, %v7897_v57  ;;  %v7977_v16 = vmul.f32 %v7857_v46, %v7899_v58  ;;  %4607 = vperm.xlu1 %6270, %v4599_v1   ;;  %4602 = vperm.xlu0 %6269, %v4598_v2  }
  0x8c   :  { %11064 = vst [vmem:[#allocation16_spill] sm:$0xff] %v7933_v5  ;;  %11065 = vst [vmem:[#allocation17_spill] sm:$0xff] %v7937_v6  ;;  %v7981_v17 = vmul.f32 %v7819_v37, %v7959_v11  ;;  %v7988_v19 = vmul.f32 %v7819_v37, %v7961_v12  ;;  %v7992_v20 = vmul.f32 %v7824_v38, %v7959_v11 }
  0x8d   :  { %11066 = vst [vmem:[#allocation18_spill] sm:$0xff] %v7941_v7  ;;  %11067 = vst [vmem:[#allocation19_spill] sm:$0xff] %v7945_v8  ;;  %v7996_v21 = vmul.f32 %v7824_v38, %v7961_v12  ;;  %v8000_v22 = vmul.f32 %v7829_v39, %v7959_v11  ;;  %v8004_v23 = vmul.f32 %v7829_v39, %v7961_v12 }
  0x8e   :  { %11068 = vst [vmem:[#allocation20_spill] sm:$0xff] %v7949_v4  ;;  %11069 = vst [vmem:[#allocation21_spill] sm:$0xff] %v7953_v9  ;;  %v8008_v24 = vmul.f32 %v7838_v42, %v7959_v11  ;;  %v8012_v25 = vmul.f32 %v7838_v42, %v7961_v12  ;;  %v8016_v26 = vmul.f32 %v7843_v43, %v7959_v11  ;;  %v8018_v27 = vpop.permute.xlu1 %189  ;;  %v8020_v28 = vpop.permute.xlu0 %184 }
  0x8f   :  { %11070 = vst [vmem:[#allocation22_spill] sm:$0xff] %v7957_v10  ;;  %11071 = vst [vmem:[#allocation23_spill] sm:$0xff] %v7965_v13  ;;  %v8024_v29 = vmul.f32 %v7843_v43, %v7961_v12  ;;  %v8028_v30 = vmul.f32 %v7852_v45, %v7959_v11  ;;  %v8032_v31 = vmul.f32 %v7852_v45, %v7961_v12  ;;  %4702 = vperm.xlu0 %6269, %v4699_v18  }
  0x90   :  { %11072 = vst [vmem:[#allocation24_spill] sm:$0xff] %v7969_v14  ;;  %11073 = vst [vmem:[#allocation25_spill] sm:$0xff] %v7973_v15  ;;  %v8036_v32 = vmul.f32 %v7857_v46, %v7959_v11  ;;  %v8040_v33 = vmul.f32 %v7819_v37, %v8018_v27  ;;  %v8044_v34 = vmul.f32 %v7819_v37, %v8020_v28 }
  0x91   :  { %11074 = vst [vmem:[#allocation26_spill] sm:$0xff] %v7977_v16  ;;  %11075 = vst [vmem:[#allocation27_spill] sm:$0xff] %v7981_v17  ;;  %v8048_v35 = vmul.f32 %v7824_v38, %v8018_v27  ;;  %v8052_v36 = vmul.f32 %v7824_v38, %v8020_v28  ;;  %v8056_v47 = vmul.f32 %v7829_v39, %v8018_v27 }
  0x92   :  { %11076 = vst [vmem:[#allocation28_spill] sm:$0xff] %v7988_v19  ;;  %11077 = vst [vmem:[#allocation29_spill] sm:$0xff] %v7992_v20  ;;  %v8060_v48 = vmul.f32 %v7829_v39, %v8020_v28  ;;  %v8064_v1 = vmul.f32 %v7838_v42, %v8018_v27  ;;  %v8068_v2 = vmul.f32 %v7838_v42, %v8020_v28  ;;  %v8080_v62 = vpop.permute.xlu0 %654 }
  0x93   :  { %11078 = vst [vmem:[#allocation30_spill] sm:$0xff] %v7996_v21  ;;  %11079 = vst [vmem:[#allocation31_spill] sm:$0xff] %v8000_v22  ;;  %v8072_v18 = vmul.f32 %v7843_v43, %v8018_v27  ;;  %v8076_v0 = vmul.f32 %v7843_v43, %v8020_v28  ;;  %v8084_v16 = vmul.f32 %v7852_v45, %v8018_v27 }
  0x94   :  { %11080 = vst [vmem:[#allocation32_spill] sm:$0xff] %v8004_v23  ;;  %11081 = vst [vmem:[#allocation33_spill] sm:$0xff] %v8008_v24  ;;  %v8088_v61 = vmul.f32 %v7852_v45, %v8020_v28  ;;  %v8092_v15 = vmul.f32 %v7857_v46, %v7961_v12  ;;  %v8104_v60 = vmul.f32 %v7857_v46, %v8018_v27 }
  0x95   :  { %11082 = vst [vmem:[#allocation34_spill] sm:$0xff] %v8012_v25  ;;  %11083 = vst [vmem:[#allocation35_spill] sm:$0xff] %v8016_v26 }
  0x96   :  { %11084 = vst [vmem:[#allocation36_spill] sm:$0xff] %v8024_v29  ;;  %11085 = vst [vmem:[#allocation37_spill] sm:$0xff] %v8028_v30  ;;  %v8100_v30 = vmul.f32 %v7857_v46, %v7831_v40  ;;  %v8112_v14 = vpop.permute.xlu0 %694 }
  0x97   :  { %11086 = vst [vmem:[#allocation38_spill] sm:$0xff] %v8032_v31  ;;  %11087 = vst [vmem:[#allocation39_spill] sm:$0xff] %v8036_v32  ;;  %v8078_v32 = vpop.permute.xlu1 %659  ;;  %v8096_v31 = vmul.f32 %v7857_v46, %v7897_v57 }
  0x98   :  { %11088 = vst [vmem:[#allocation40_spill] sm:$0xff] %v8040_v33  ;;  %11089 = vst [vmem:[#allocation41_spill] sm:$0xff] %v8044_v34 }
  0x99   :  { %11090 = vst [vmem:[#allocation42_spill] sm:$0xff] %v8048_v35  ;;  %11091 = vst [vmem:[#allocation43_spill] sm:$0xff] %v8052_v36 }
  0x9a   :  { %11092 = vst [vmem:[#allocation44_spill] sm:$0xff] %v8056_v47  ;;  %11093 = vst [vmem:[#allocation45_spill] sm:$0xff] %v8060_v48 }
  0x9b   :  { %11094 = vst [vmem:[#allocation46_spill] sm:$0xff] %v8064_v1  ;;  %11095 = vst [vmem:[#allocation47_spill] sm:$0xff] %v8068_v2 }
  0x9c   :  { %11096 = vst [vmem:[#allocation48_spill] sm:$0xff] %v8072_v18  ;;  %11097 = vst [vmem:[#allocation49_spill] sm:$0xff] %v8076_v0  ;;  %v8116_v0 = vpop.permute.xlu0 %154 }
  0x9d   :  { %11098 = vst [vmem:[#allocation50_spill] sm:$0xff] %v8078_v32  ;;  %11099 = vst [vmem:[#allocation51_spill] sm:$0xff] %v8080_v62  ;;  %v8140_v59 = vmul.f32 %v7829_v39, %v8116_v0  ;;  %v8148_v29 = vmul.f32 %v7838_v42, %v8116_v0  ;;  %v8156_v56 = vmul.f32 %v7843_v43, %v8116_v0 }
  0x9e   :  { %11100 = vst [vmem:[#allocation52_spill] sm:$0xff] %v8084_v16  ;;  %11101 = vst [vmem:[#allocation53_spill] sm:$0xff] %v8088_v61  ;;  %v8108_v16 = vmul.f32 %v7857_v46, %v8020_v28  ;;  %v8110_v61 = vpop.permute.xlu1 %699  ;;  %v8168_v55 = vmul.f32 %v7852_v45, %v8116_v0 }
  0x9f   :  { %11102 = vst [vmem:[#allocation54_spill] sm:$0xff] %v8092_v15  ;;  %11103 = vst [vmem:[#allocation55_spill] sm:$0xff] %v8096_v31 }
  0xa0   :  { %11104 = vst [vmem:[#allocation56_spill] sm:$0xff] %v8100_v30  ;;  %11105 = vst [vmem:[#allocation57_spill] sm:$0xff] %v8104_v60  ;;  %v8124_v30 = vmul.f32 %v7819_v37, %v8116_v0  ;;  %v8160_v2 = vpop.permute.xlu0 %194 }
  0xa1   :  { %11106 = vst [vmem:[#allocation58_spill] sm:$0xff] %v8108_v16  ;;  %11107 = vst [vmem:[#allocation59_spill] sm:$0xff] %v8110_v61  ;;  %v8132_v16 = vmul.f32 %v7824_v38, %v8116_v0  ;;  %v8208_v25 = vmul.f32 %v7838_v42, %v8160_v2  ;;  %v8216_v54 = vmul.f32 %v7843_v43, %v8160_v2 }
  0xa2   :  { %11108 = vst [vmem:[#allocation60_spill] sm:$0xff] %v8112_v14  ;;  %v8114_v15 = vpop.permute.xlu1 %159  ;;  %11110 = vst [vmem:[#allocation62_spill] sm:$0xff] %v8124_v30 }
  0xa3   :  { %v8120_v31 = vmul.f32 %v7819_v37, %v8114_v15  ;;  %v8128_v60 = vmul.f32 %v7824_v38, %v8114_v15  ;;  %11112 = vst [vmem:[#allocation64_spill] sm:$0xff] %v8132_v16  ;;  %v8136_v18 = vmul.f32 %v7829_v39, %v8114_v15  ;;  %11114 = vst [vmem:[#allocation66_spill] sm:$0xff] %v8140_v59 }
  0xa4   :  { %v8144_v13 = vmul.f32 %v7838_v42, %v8114_v15  ;;  %11116 = vst [vmem:[#allocation68_spill] sm:$0xff] %v8148_v29  ;;  %v8152_v26 = vmul.f32 %v7843_v43, %v8114_v15  ;;  %11118 = vst [vmem:[#allocation70_spill] sm:$0xff] %v8156_v56  ;;  %v8164_v1 = vmul.f32 %v7852_v45, %v8114_v15 }
  0xa5   :  { %11109 = vst [vmem:[#allocation61_spill] sm:$0xff] %v8120_v31  ;;  %11111 = vst [vmem:[#allocation63_spill] sm:$0xff] %v8128_v60  ;;  %v8172_v9 = vmul.f32 %v7857_v46, %v8114_v15  ;;  %v8184_v29 = vmul.f32 %v7819_v37, %v8160_v2 }
  0xa6   :  { %11113 = vst [vmem:[#allocation65_spill] sm:$0xff] %v8136_v18  ;;  %11115 = vst [vmem:[#allocation67_spill] sm:$0xff] %v8144_v13  ;;  %v8158_v10 = vpop.permute.xlu1 %199 }
  0xa7   :  { %11117 = vst [vmem:[#allocation69_spill] sm:$0xff] %v8152_v26  ;;  %11119 = vst [vmem:[#allocation71_spill] sm:$0xff] %v8164_v1  ;;  %v8176_v26 = vmul.f32 %v7857_v46, %v8116_v0  ;;  %v8180_v56 = vmul.f32 %v7819_v37, %v8158_v10  ;;  %v8188_v1 = vmul.f32 %v7824_v38, %v8158_v10 }
  0xa8   :  { %11120 = vst [vmem:[#allocation72_spill] sm:$0xff] %v8168_v55  ;;  %11121 = vst [vmem:[#allocation73_spill] sm:$0xff] %v8172_v9  ;;  %v8192_v55 = vmul.f32 %v7824_v38, %v8160_v2  ;;  %v8196_v9 = vmul.f32 %v7829_v39, %v8158_v10  ;;  %v8204_v13 = vmul.f32 %v7838_v42, %v8158_v10 }
  0xa9   :  { %11122 = vst [vmem:[#allocation74_spill] sm:$0xff] %v8176_v26  ;;  %11123 = vst [vmem:[#allocation75_spill] sm:$0xff] %v8180_v56  ;;  %v8200_v26 = vmul.f32 %v7829_v39, %v8160_v2  ;;  %v8212_v24 = vmul.f32 %v7843_v43, %v8158_v10 }
  0xaa   :  { %11124 = vst [vmem:[#allocation76_spill] sm:$0xff] %v8184_v29  ;;  %11125 = vst [vmem:[#allocation77_spill] sm:$0xff] %v8188_v1  ;;  %v8218_v4 = vpop.permute.xlu1 %669 }
  0xab   :  { %11126 = vst [vmem:[#allocation78_spill] sm:$0xff] %v8192_v55  ;;  %11127 = vst [vmem:[#allocation79_spill] sm:$0xff] %v8196_v9  ;;  %v8220_v9 = vpop.permute.xlu0 %664 }
  0xac   :  { %11128 = vst [vmem:[#allocation80_spill] sm:$0xff] %v8200_v26  ;;  %11129 = vst [vmem:[#allocation81_spill] sm:$0xff] %v8204_v13  ;;  %v8224_v26 = vmul.f32 %v7852_v45, %v8158_v10  ;;  %v8228_v13 = vmul.f32 %v7852_v45, %v8160_v2 }
  0xad   :  { %11130 = vst [vmem:[#allocation82_spill] sm:$0xff] %v8208_v25  ;;  %11131 = vst [vmem:[#allocation83_spill] sm:$0xff] %v8212_v24  ;;  %v8232_v25 = vmul.f32 %v7857_v46, %v8158_v10  ;;  %v8236_v24 = vmul.f32 %v7857_v46, %v8160_v2 }
  0xae   :  { %11132 = vst [vmem:[#allocation84_spill] sm:$0xff] %v8216_v54  ;;  %11133 = vst [vmem:[#allocation85_spill] sm:$0xff] %v8218_v4  ;;  %v8238_v54 = vpop.permute.xlu1 %709 }
  0xaf   :  { %11134 = vst [vmem:[#allocation86_spill] sm:$0xff] %v8220_v9  ;;  %11135 = vst [vmem:[#allocation87_spill] sm:$0xff] %v8224_v26  ;;  %v8240_v48 = vpop.permute.xlu0 %704 }
  0xb0   :  { %11136 = vst [vmem:[#allocation88_spill] sm:$0xff] %v8228_v13  ;;  %11137 = vst [vmem:[#allocation89_spill] sm:$0xff] %v8232_v25 }
  0xb1   :  { %11138 = vst [vmem:[#allocation90_spill] sm:$0xff] %v8236_v24  ;;  %11139 = vst [vmem:[#allocation91_spill] sm:$0xff] %v8238_v54 }
  0xb2   :  { %11140 = vst [vmem:[#allocation92_spill] sm:$0xff] %v8240_v48  ;;  %v8242_v47 = vpop.permute.xlu1 %169 }
  0xb3   :  { %v8244_v53 = vpop.permute.xlu0 %164  ;;  %v8248_v26 = vmul.f32 %v7819_v37, %v8242_v47  ;;  %v8256_v25 = vmul.f32 %v7824_v38, %v8242_v47  ;;  %v8264_v8 = vmul.f32 %v7829_v39, %v8242_v47  ;;  %v8272_v18 = vmul.f32 %v7838_v42, %v8242_v47 }
  0xb4   :  { %v8252_v13 = vmul.f32 %v7819_v37, %v8244_v53  ;;  %v8260_v24 = vmul.f32 %v7824_v38, %v8244_v53  ;;  %v8268_v59 = vmul.f32 %v7829_v39, %v8244_v53  ;;  %v8276_v23 = vmul.f32 %v7838_v42, %v8244_v53 }
  0xb5   :  { %11141 = vst [vmem:[#allocation93_spill] sm:$0xff] %v8248_v26  ;;  %11143 = vst [vmem:[#allocation95_spill] sm:$0xff] %v8256_v25  ;;  %v8280_v22 = vmul.f32 %v7843_v43, %v8242_v47  ;;  %v8284_v52 = vmul.f32 %v7843_v43, %v8244_v53 }
  0xb6   :  { %11142 = vst [vmem:[#allocation94_spill] sm:$0xff] %v8252_v13  ;;  %11144 = vst [vmem:[#allocation96_spill] sm:$0xff] %v8260_v24 }
  0xb7   :  { %11145 = vst [vmem:[#allocation97_spill] sm:$0xff] %v8264_v8  ;;  %11146 = vst [vmem:[#allocation98_spill] sm:$0xff] %v8268_v59  ;;  %v8286_v8 = vpop.permute.xlu1 %209  ;;  %v8288_v7 = vpop.permute.xlu0 %204  ;;  %v8292_v59 = vmul.f32 %v7852_v45, %v8242_v47 }
  0xb8   :  { %11147 = vst [vmem:[#allocation99_spill] sm:$0xff] %v8272_v18  ;;  %11148 = vst [vmem:[#allocation100_spill] sm:$0xff] %v8276_v23  ;;  %v8296_v18 = vmul.f32 %v7852_v45, %v8244_v53  ;;  %v8300_v23 = vmul.f32 %v7857_v46, %v8242_v47  ;;  %v8312_v55 = vmul.f32 %v7819_v37, %v8288_v7 }
  0xb9   :  { %11149 = vst [vmem:[#allocation101_spill] sm:$0xff] %v8280_v22  ;;  %11150 = vst [vmem:[#allocation102_spill] sm:$0xff] %v8284_v52  ;;  %v8304_v22 = vmul.f32 %v7857_v46, %v8244_v53  ;;  %v8308_v52 = vmul.f32 %v7819_v37, %v8286_v8  ;;  %v8332_v1 = vmul.f32 %v7838_v42, %v8286_v8 }
  0xba   :  { %11151 = vst [vmem:[#allocation103_spill] sm:$0xff] %v8292_v59  ;;  %11152 = vst [vmem:[#allocation104_spill] sm:$0xff] %v8296_v18  ;;  %v8316_v59 = vmul.f32 %v7824_v38, %v8286_v8  ;;  %v8320_v18 = vmul.f32 %v7824_v38, %v8288_v7  ;;  %v8336_v36 = vmul.f32 %v7838_v42, %v8288_v7 }
  0xbb   :  { %11153 = vst [vmem:[#allocation105_spill] sm:$0xff] %v8300_v23  ;;  %11154 = vst [vmem:[#allocation106_spill] sm:$0xff] %v8304_v22  ;;  %v8324_v23 = vmul.f32 %v7829_v39, %v8286_v8  ;;  %v8328_v22 = vmul.f32 %v7829_v39, %v8288_v7  ;;  %v8348_v35 = vpop.permute.xlu0 %674 }
  0xbc   :  { %11155 = vst [vmem:[#allocation107_spill] sm:$0xff] %v8308_v52  ;;  %11156 = vst [vmem:[#allocation108_spill] sm:$0xff] %v8312_v55 }
  0xbd   :  { %11157 = vst [vmem:[#allocation109_spill] sm:$0xff] %v8316_v59  ;;  %11158 = vst [vmem:[#allocation110_spill] sm:$0xff] %v8320_v18  ;;  %v8340_v59 = vmul.f32 %v7843_v43, %v8286_v8  ;;  %v8344_v18 = vmul.f32 %v7843_v43, %v8288_v7 }
  0xbe   :  { %11159 = vst [vmem:[#allocation111_spill] sm:$0xff] %v8324_v23  ;;  %11160 = vst [vmem:[#allocation112_spill] sm:$0xff] %v8328_v22  ;;  %v8346_v23 = vpop.permute.xlu1 %679  ;;  %v8352_v22 = vmul.f32 %v7852_v45, %v8286_v8 }
  0xbf   :  { %11161 = vst [vmem:[#allocation113_spill] sm:$0xff] %v8332_v1  ;;  %11162 = vst [vmem:[#allocation114_spill] sm:$0xff] %v8336_v36  ;;  %v8356_v1 = vmul.f32 %v7852_v45, %v8288_v7  ;;  %v8360_v36 = vmul.f32 %v7857_v46, %v8286_v8  ;;  %v8368_v51 = vpop.permute.xlu0 %714 }
  0xc0   :  { %11163 = vst [vmem:[#allocation115_spill] sm:$0xff] %v8340_v59  ;;  %11164 = vst [vmem:[#allocation116_spill] sm:$0xff] %v8344_v18  ;;  %v8364_v59 = vmul.f32 %v7857_v46, %v8288_v7 }
  0xc1   :  { %11165 = vst [vmem:[#allocation117_spill] sm:$0xff] %v8346_v23  ;;  %11166 = vst [vmem:[#allocation118_spill] sm:$0xff] %v8348_v35 }
  0xc2   :  { %11167 = vst [vmem:[#allocation119_spill] sm:$0xff] %v8352_v22  ;;  %11168 = vst [vmem:[#allocation120_spill] sm:$0xff] %v8356_v1  ;;  %v8366_v18 = vpop.permute.xlu1 %719 }
  0xc3   :  { %11169 = vst [vmem:[#allocation121_spill] sm:$0xff] %v8360_v36  ;;  %11170 = vst [vmem:[#allocation122_spill] sm:$0xff] %v8364_v59  ;;  %v8372_v24 = vpop.permute.xlu0 %214 }
  0xc4   :  { %11171 = vst [vmem:[#allocation123_spill] sm:$0xff] %v8366_v18  ;;  %11172 = vst [vmem:[#allocation124_spill] sm:$0xff] %v8368_v51  ;;  %v8380_v1 = vmul.f32 %v7819_v37, %v8372_v24  ;;  %v8388_v59 = vmul.f32 %v7824_v38, %v8372_v24  ;;  %v8396_v16 = vmul.f32 %v7829_v39, %v8372_v24 }
  0xc5   :  { %v8404_v21 = vmul.f32 %v7838_v42, %v8372_v24 }
  0xc6   :  { %v8370_v6 = vpop.permute.xlu1 %219  ;;  %11174 = vst [vmem:[#allocation126_spill] sm:$0xff] %v8380_v1  ;;  %11176 = vst [vmem:[#allocation128_spill] sm:$0xff] %v8388_v59  ;;  %v8412_v59 = vmul.f32 %v7843_v43, %v8372_v24 }
  0xc7   :  { %v8376_v22 = vmul.f32 %v7819_v37, %v8370_v6  ;;  %v8384_v36 = vmul.f32 %v7824_v38, %v8370_v6  ;;  %v8392_v25 = vmul.f32 %v7829_v39, %v8370_v6  ;;  %11178 = vst [vmem:[#allocation130_spill] sm:$0xff] %v8396_v16  ;;  %v8400_v60 = vmul.f32 %v7838_v42, %v8370_v6  ;;  %v8416_v20 = vpop.permute.xlu0 %254 }
  0xc8   :  { %11180 = vst [vmem:[#allocation132_spill] sm:$0xff] %v8404_v21  ;;  %11182 = vst [vmem:[#allocation134_spill] sm:$0xff] %v8412_v59  ;;  %v8420_v16 = vmul.f32 %v7852_v45, %v8370_v6  ;;  %v8428_v21 = vmul.f32 %v7857_v46, %v8370_v6  ;;  %v8440_v50 = vmul.f32 %v7819_v37, %v8416_v20 }
  0xc9   :  { %11173 = vst [vmem:[#allocation125_spill] sm:$0xff] %v8376_v22  ;;  %11175 = vst [vmem:[#allocation127_spill] sm:$0xff] %v8384_v36  ;;  %v8408_v36 = vmul.f32 %v7843_v43, %v8370_v6 }
  0xca   :  { %11177 = vst [vmem:[#allocation129_spill] sm:$0xff] %v8392_v25  ;;  %11179 = vst [vmem:[#allocation131_spill] sm:$0xff] %v8400_v60  ;;  %v8414_v25 = vpop.permute.xlu1 %259  ;;  %v8424_v60 = vmul.f32 %v7852_v45, %v8372_v24 }
  0xcb   :  { %11181 = vst [vmem:[#allocation133_spill] sm:$0xff] %v8408_v36  ;;  %11183 = vst [vmem:[#allocation135_spill] sm:$0xff] %v8420_v16  ;;  %v8432_v36 = vmul.f32 %v7857_v46, %v8372_v24  ;;  %v8436_v59 = vmul.f32 %v7819_v37, %v8414_v25  ;;  %v8444_v16 = vmul.f32 %v7824_v38, %v8414_v25 }
  0xcc   :  { %11184 = vst [vmem:[#allocation136_spill] sm:$0xff] %v8424_v60  ;;  %11185 = vst [vmem:[#allocation137_spill] sm:$0xff] %v8428_v21  ;;  %v8448_v60 = vmul.f32 %v7824_v38, %v8416_v20  ;;  %v8452_v21 = vmul.f32 %v7829_v39, %v8414_v25  ;;  %v8460_v5 = vmul.f32 %v7838_v42, %v8414_v25 }
  0xcd   :  { %11186 = vst [vmem:[#allocation138_spill] sm:$0xff] %v8432_v36  ;;  %11187 = vst [vmem:[#allocation139_spill] sm:$0xff] %v8436_v59  ;;  %v8456_v36 = vmul.f32 %v7829_v39, %v8416_v20  ;;  %v8476_v59 = vpop.permute.xlu0 %684 }
  0xce   :  { %11188 = vst [vmem:[#allocation140_spill] sm:$0xff] %v8440_v50  ;;  %11189 = vst [vmem:[#allocation141_spill] sm:$0xff] %v8444_v16  ;;  %v8464_v50 = vmul.f32 %v7838_v42, %v8416_v20  ;;  %v8468_v16 = vmul.f32 %v7843_v43, %v8414_v25 }
  0xcf   :  { %11190 = vst [vmem:[#allocation142_spill] sm:$0xff] %v8448_v60  ;;  %11191 = vst [vmem:[#allocation143_spill] sm:$0xff] %v8452_v21  ;;  %v8472_v60 = vmul.f32 %v7843_v43, %v8416_v20  ;;  %v8474_v21 = vpop.permute.xlu1 %689 }
  0xd0   :  { %11192 = vst [vmem:[#allocation144_spill] sm:$0xff] %v8456_v36  ;;  %11193 = vst [vmem:[#allocation145_spill] sm:$0xff] %v8460_v5  ;;  %v8480_v36 = vmul.f32 %v7852_v45, %v8414_v25  ;;  %v8484_v5 = vmul.f32 %v7852_v45, %v8416_v20 }
  0xd1   :  { %11194 = vst [vmem:[#allocation146_spill] sm:$0xff] %v8464_v50  ;;  %11195 = vst [vmem:[#allocation147_spill] sm:$0xff] %v8468_v16  ;;  %v8488_v50 = vmul.f32 %v7857_v46, %v8414_v25  ;;  %v8492_v16 = vmul.f32 %v7857_v46, %v8416_v20  ;;  %v8496_v1 = vpop.permute.xlu0 %724 }
  0xd2   :  { %11196 = vst [vmem:[#allocation148_spill] sm:$0xff] %v8472_v60  ;;  %11197 = vst [vmem:[#allocation149_spill] sm:$0xff] %v8474_v21 }
  0xd3   :  { %11198 = vst [vmem:[#allocation150_spill] sm:$0xff] %v8476_v59  ;;  %11199 = vst [vmem:[#allocation151_spill] sm:$0xff] %v8480_v36  ;;  %v8494_v60 = vpop.permute.xlu1 %729 }
  0xd4   :  { %11200 = vst [vmem:[#allocation152_spill] sm:$0xff] %v8484_v5  ;;  %11201 = vst [vmem:[#allocation153_spill] sm:$0xff] %v8488_v50 }
  0xd5   :  { %11202 = vst [vmem:[#allocation154_spill] sm:$0xff] %v8492_v16  ;;  %11203 = vst [vmem:[#allocation155_spill] sm:$0xff] %v8494_v60  ;;  %v8500_v55 = vpop.permute.xlu0 %224 }
  0xd6   :  { %11204 = vst [vmem:[#allocation156_spill] sm:$0xff] %v8496_v1  ;;  %v8508_v5 = vmul.f32 %v7819_v37, %v8500_v55  ;;  %v8516_v16 = vmul.f32 %v7824_v38, %v8500_v55  ;;  %v8524_v29 = vmul.f32 %v7829_v39, %v8500_v55 }
  0xd7   :  { %v8498_v22 = vpop.permute.xlu1 %229 }
  0xd8   :  { %v8504_v36 = vmul.f32 %v7819_v37, %v8498_v22  ;;  %11206 = vst [vmem:[#allocation158_spill] sm:$0xff] %v8508_v5  ;;  %v8512_v50 = vmul.f32 %v7824_v38, %v8498_v22  ;;  %11208 = vst [vmem:[#allocation160_spill] sm:$0xff] %v8516_v16  ;;  %v8520_v52 = vmul.f32 %v7829_v39, %v8498_v22  ;;  %v5592_v13 = vpop.f32.mrb[0].mxu0 }
  0xd9   :  { %11210 = vst [vmem:[#allocation162_spill] sm:$0xff] %v8524_v29  ;;  %v8532_v5 = vmul.f32 %v7838_v42, %v8500_v55  ;;  %v8540_v16 = vmul.f32 %v7843_v43, %v8500_v55  ;;  %v8544_v56 = vpop.permute.xlu0 %264  ;;  %v8548_v29 = vmul.f32 %v7852_v45, %v8498_v22  ;;  %v493_v31 = vpop.f32.mrb[1].mxu0 }
  0xda   :  { %11205 = vst [vmem:[#allocation157_spill] sm:$0xff] %v8504_v36  ;;  %11207 = vst [vmem:[#allocation159_spill] sm:$0xff] %v8512_v50  ;;  %v8528_v36 = vmul.f32 %v7838_v42, %v8498_v22  ;;  %v8536_v50 = vmul.f32 %v7843_v43, %v8498_v22  ;;  %v8568_v34 = vmul.f32 %v7819_v37, %v8544_v56 }
  0xdb   :  { %11209 = vst [vmem:[#allocation161_spill] sm:$0xff] %v8520_v52  ;;  %11212 = vst [vmem:[#allocation164_spill] sm:$0xff] %v8532_v5  ;;  %v8542_v52 = vpop.permute.xlu1 %269  ;;  %v8556_v5 = vmul.f32 %v7857_v46, %v8498_v22 }
  0xdc   :  { %11211 = vst [vmem:[#allocation163_spill] sm:$0xff] %v8528_v36  ;;  %11213 = vst [vmem:[#allocation165_spill] sm:$0xff] %v8536_v50  ;;  %v8552_v36 = vmul.f32 %v7852_v45, %v8500_v55  ;;  %v8560_v50 = vmul.f32 %v7857_v46, %v8500_v55 }
  0xdd   :  { %11214 = vst [vmem:[#allocation166_spill] sm:$0xff] %v8540_v16  ;;  %11215 = vst [vmem:[#allocation167_spill] sm:$0xff] %v8548_v29  ;;  %v8564_v16 = vmul.f32 %v7819_v37, %v8542_v52  ;;  %v8572_v29 = vmul.f32 %v7824_v38, %v8542_v52  ;;  %v8604_v33 = vpop.permute.xlu0 %734 }
  0xde   :  { %11216 = vst [vmem:[#allocation168_spill] sm:$0xff] %v8552_v36  ;;  %11217 = vst [vmem:[#allocation169_spill] sm:$0xff] %v8556_v5  ;;  %v8576_v36 = vmul.f32 %v7824_v38, %v8544_v56  ;;  %v8580_v5 = vmul.f32 %v7829_v39, %v8542_v52 }
  0xdf   :  { %11218 = vst [vmem:[#allocation170_spill] sm:$0xff] %v8560_v50  ;;  %11219 = vst [vmem:[#allocation171_spill] sm:$0xff] %v8564_v16  ;;  %v8584_v50 = vmul.f32 %v7829_v39, %v8544_v56  ;;  %v8588_v16 = vmul.f32 %v7838_v42, %v8542_v52 }
  0xe0   :  { %11220 = vst [vmem:[#allocation172_spill] sm:$0xff] %v8568_v34  ;;  %11221 = vst [vmem:[#allocation173_spill] sm:$0xff] %v8572_v29  ;;  %v8592_v34 = vmul.f32 %v7838_v42, %v8544_v56  ;;  %v8596_v29 = vmul.f32 %v7843_v43, %v8542_v52 }
  0xe1   :  { %11222 = vst [vmem:[#allocation174_spill] sm:$0xff] %v8576_v36  ;;  %11223 = vst [vmem:[#allocation175_spill] sm:$0xff] %v8580_v5  ;;  %v8600_v36 = vmul.f32 %v7843_v43, %v8544_v56  ;;  %v8602_v5 = vpop.permute.xlu1 %739 }
  0xe2   :  { %11224 = vst [vmem:[#allocation176_spill] sm:$0xff] %v8584_v50  ;;  %11225 = vst [vmem:[#allocation177_spill] sm:$0xff] %v8588_v16  ;;  %v8608_v50 = vmul.f32 %v7852_v45, %v8542_v52  ;;  %v8612_v16 = vmul.f32 %v7852_v45, %v8544_v56 }
  0xe3   :  { %11226 = vst [vmem:[#allocation178_spill] sm:$0xff] %v8592_v34  ;;  %11227 = vst [vmem:[#allocation179_spill] sm:$0xff] %v8596_v29  ;;  %v8616_v34 = vmul.f32 %v7857_v46, %v8542_v52  ;;  %v8620_v29 = vmul.f32 %v7857_v46, %v8544_v56 }
  0xe4   :  { %11228 = vst [vmem:[#allocation180_spill] sm:$0xff] %v8600_v36  ;;  %11229 = vst [vmem:[#allocation181_spill] sm:$0xff] %v8602_v5  ;;  %v8625_v36 = vld [vmem:[%s10918_s0] ss:$0 sm:$0xff] }
  0xe5   :  { %11230 = vst [vmem:[#allocation182_spill] sm:$0xff] %v8604_v33  ;;  %11231 = vst [vmem:[#allocation183_spill] sm:$0xff] %v8608_v50  ;;  %v8627_v49 = vpop.permute.xlu1 %779  ;;  %v8629_v50 = vpop.permute.xlu0 %774  ;;  %v298_v3 = vmul.f32 %v8625_v36, %v7833_v41  ;;  %v301_v26 = vmul.f32 %v8625_v36, %v7959_v11  ;;  %v300_v30 = vmul.f32 %v8625_v36, %v7961_v12 }
  0xe6   :  { %11232 = vst [vmem:[#allocation184_spill] sm:$0xff] %v8612_v16  ;;  %11233 = vst [vmem:[#allocation185_spill] sm:$0xff] %v8616_v34  ;;  %v299_v16 = vmul.f32 %v8625_v36, %v7899_v58  ;;  %v8637_v34 = vmul.f32 %v8625_v36, %v7897_v57  ;;  %v8649_v58 = vmul.f32 %v8625_v36, %v8018_v27 }
  0xe7   :  { %11234 = vst [vmem:[#allocation186_spill] sm:$0xff] %v8620_v29  ;;  %v8641_v29 = vmul.f32 %v8625_v36, %v7831_v40  ;;  %v8653_v41 = vmul.f32 %v8625_v36, %v8020_v28  ;;  %v303_v40 = vmul.f32 %v8625_v36, %v8114_v15  ;;  %v302_v19 = vmul.f32 %v8625_v36, %v8116_v0 }
  0xe8   :  { %v499_v57 = vadd.f32 %v5592_v13, %v299_v16  ;;  %v8661_v11 = vmul.f32 %v8625_v36, %v8158_v10  ;;  %v494_v12 = vadd.f32 %v493_v31, %v298_v3  ;;  %v305_v28 = vmul.f32 %v8625_v36, %v8242_v47  ;;  %v5595_v31 = vpop.f32.mrb[2].mxu0 }
  0xe9   :  { %v8663_v17 = vpop.permute.xlu1 %239  ;;  %v8665_v27 = vpop.permute.xlu0 %234  ;;  %v304_v13 = vmul.f32 %v8625_v36, %v8244_v53  ;;  %v8673_v15 = vmul.f32 %v8625_v36, %v8160_v2  ;;  %v8678_v10 = vmul.f32 %v8625_v36, %v8286_v8  ;;  %v8682_v3 = vmul.f32 %v8625_v36, %v8288_v7 }
  0xea   :  { %v813_v0 = vadd.f32 %v8078_v32, %v499_v57  ;;  %v8686_v16 = vmul.f32 %v7819_v37, %v8663_v17  ;;  %v812_v53 = vadd.f32 %v8080_v62, %v494_v12  ;;  %v8691_v47 = vmul.f32 %v7819_v37, %v8665_v27  ;;  %v503_v32 = vpop.f32.mrb[3].mxu0 }
  0xeb   :  { %v8695_v2 = vmul.f32 %v7824_v38, %v8663_v17  ;;  %v8699_v8 = vmul.f32 %v7824_v38, %v8665_v27  ;;  %v509_v57 = vadd.f32 %v5595_v31, %v301_v26  ;;  %v8707_v12 = vmul.f32 %v7829_v39, %v8665_v27 }
  0xec   :  { %11235 = vst [vmem:[#allocation187_spill] sm:$0xff] %v8686_v16  ;;  %11236 = vst [vmem:[#allocation188_spill] sm:$0xff] %v8691_v47  ;;  %v4818_v7 = vmul.f32 -1.442695, %v813_v0  ;;  %v8703_v16 = vmul.f32 %v7829_v39, %v8663_v17  ;;  %v4817_v47 = vmul.f32 -1.442695, %v812_v53  ;;  %v504_v62 = vadd.f32 %v503_v32, %v300_v30 }
  0xed   :  { %11237 = vst [vmem:[#allocation189_spill] sm:$0xff] %v8695_v2  ;;  %11238 = vst [vmem:[#allocation190_spill] sm:$0xff] %v8699_v8  ;;  %v8709_v44 = vpop.permute.xlu1 %279  ;;  %v8711_v2 = vpop.permute.xlu0 %274  ;;  %v8715_v8 = vmul.f32 %v7838_v42, %v8663_v17  ;;  %v8719_v26 = vmul.f32 %v7838_v42, %v8665_v27  ;;  %v815_v0 = vadd.f32 %v8218_v4, %v509_v57 }
  0xee   :  { %11239 = vst [vmem:[#allocation191_spill] sm:$0xff] %v8703_v16  ;;  %11240 = vst [vmem:[#allocation192_spill] sm:$0xff] %v8707_v12  ;;  %6271 = vpow2.f32 %v4818_v7  ;;  %v8724_v31 = vmul.f32 %v8625_v36, %v8370_v6  ;;  %v8728_v30 = vmul.f32 %v8625_v36, %v8372_v24  ;;  %v814_v32 = vadd.f32 %v8220_v9, %v504_v62  ;;  %v5598_v53 = vpop.f32.mrb[4].mxu0 }
  0xef   :  { %11241 = vst [vmem:[#allocation193_spill] sm:$0xff] %v8715_v8  ;;  %11242 = vst [vmem:[#allocation194_spill] sm:$0xff] %v8719_v26  ;;  %6273 = vpow2.f32 %v4817_v47  ;;  %v8733_v8 = vmul.f32 %v7819_v37, %v8709_v44  ;;  %v8737_v7 = vmul.f32 %v7819_v37, %v8711_v2  ;;  %v4820_v57 = vmul.f32 -1.442695, %v815_v0  ;;  %v513_v6 = vpop.f32.mrb[5].mxu0 }
  0xf0   :  { %v519_v26 = vadd.f32 %v5598_v53, %v303_v40  ;;  %v8741_v12 = vmul.f32 %v7824_v38, %v8709_v44  ;;  %v8745_v24 = vmul.f32 %v7824_v38, %v8711_v2  ;;  %v4819_v62 = vmul.f32 -1.442695, %v814_v32 }
  0xf1   :  { %11243 = vst [vmem:[#allocation195_spill] sm:$0xff] %v8733_v8  ;;  %11244 = vst [vmem:[#allocation196_spill] sm:$0xff] %v8737_v7  ;;  %v514_v47 = vadd.f32 %v513_v6, %v302_v19  ;;  %v8747_v16 = vpop.permute.xlu1 %749  ;;  %v8749_v8 = vpop.permute.xlu0 %744  ;;  %v8753_v7 = vmul.f32 %v7829_v39, %v8709_v44  ;;  %v8757_v40 = vmul.f32 %v7829_v39, %v8711_v2  ;;  %6275 = vpow2.f32 %v4820_v57 }
  0xf2   :  { %11245 = vst [vmem:[#allocation197_spill] sm:$0xff] %v8741_v12  ;;  %11246 = vst [vmem:[#allocation198_spill] sm:$0xff] %v8745_v24  ;;  %v817_v0 = vadd.f32 %v8346_v23, %v519_v26  ;;  %v8762_v53 = vmul.f32 %v7838_v42, %v8709_v44  ;;  %v8766_v19 = vmul.f32 %v7838_v42, %v8711_v2  ;;  %6277 = vpow2.f32 %v4819_v62  ;;  %v5601_v6 = vpop.f32.mrb[6].mxu0 }
  0xf3   :  { %11247 = vst [vmem:[#allocation199_spill] sm:$0xff] %v8747_v16  ;;  %11248 = vst [vmem:[#allocation200_spill] sm:$0xff] %v8749_v8  ;;  %v816_v32 = vadd.f32 %v8348_v35, %v514_v47  ;;  %v8775_v57 = vmul.f32 %v7843_v43, %v8665_v27  ;;  %v523_v24 = vpop.f32.mrb[7].mxu0  ;;  %v8783_v62 = vmul.f32 %v7843_v43, %v8711_v2 }
  0xf4   :  { %11249 = vst [vmem:[#allocation201_spill] sm:$0xff] %v8753_v7  ;;  %11250 = vst [vmem:[#allocation202_spill] sm:$0xff] %v8757_v40  ;;  %v8771_v7 = vmul.f32 %v7843_v43, %v8663_v17  ;;  %v4822_v26 = vmul.f32 -1.442695, %v817_v0  ;;  %v529_v40 = vadd.f32 %v5601_v6, %v305_v28  ;;  %v8795_v28 = vmul.f32 %v7852_v45, %v8665_v27 }
  0xf5   :  { %11251 = vst [vmem:[#allocation203_spill] sm:$0xff] %v8762_v53  ;;  %11252 = vst [vmem:[#allocation204_spill] sm:$0xff] %v8766_v19  ;;  %v8779_v53 = vmul.f32 %v7843_v43, %v8709_v44  ;;  %v4821_v47 = vmul.f32 -1.442695, %v816_v32  ;;  %v524_v19 = vadd.f32 %v523_v24, %v304_v13  ;;  %v8785_v12 = vpop.permute.xlu1 %789  ;;  %v8800_v6 = vmul.f32 %v7852_v45, %v8709_v44  ;;  %v5604_v32 = vpop.f32.mrb[8].mxu0 }
  0xf6   :  { %11253 = vst [vmem:[#allocation205_spill] sm:$0xff] %v8771_v7  ;;  %11254 = vst [vmem:[#allocation206_spill] sm:$0xff] %v8775_v57  ;;  %v8787_v7 = vpop.permute.xlu0 %784  ;;  %v8791_v57 = vmul.f32 %v7852_v45, %v8663_v17  ;;  %6279 = vpow2.f32 %v4822_v26  ;;  %v819_v0 = vadd.f32 %v8474_v21, %v529_v40  ;;  %v8804_v13 = vmul.f32 %v7852_v45, %v8711_v2 }
  0xf7   :  { %11255 = vst [vmem:[#allocation207_spill] sm:$0xff] %v8779_v53  ;;  %11256 = vst [vmem:[#allocation208_spill] sm:$0xff] %v8783_v62  ;;  %6281 = vpow2.f32 %v4821_v47  ;;  %v818_v24 = vadd.f32 %v8476_v59, %v524_v19  ;;  %v8813_v26 = vmul.f32 %v7857_v46, %v8665_v27  ;;  %v533_v62 = vpop.f32.mrb[9].mxu0  ;;  %v8822_v19 = vmul.f32 %v7857_v46, %v8711_v2 }
  0xf8   :  { %11257 = vst [vmem:[#allocation209_spill] sm:$0xff] %v8791_v57  ;;  %11258 = vst [vmem:[#allocation210_spill] sm:$0xff] %v8795_v28  ;;  %v8809_v57 = vmul.f32 %v7857_v46, %v8663_v17  ;;  %v6272_v40 = vpop.eup %6271  ;;  %v4824_v28 = vmul.f32 -1.442695, %v819_v0  ;;  %v534_v59 = vadd.f32 %v533_v62, %v8641_v29  ;;  %v5607_v29 = vpop.f32.mrb[10].mxu0  ;;  %v8841_v62 = vmul.f32 %v8625_v36, %v8663_v17 }
  0xf9   :  { %11259 = vst [vmem:[#allocation211_spill] sm:$0xff] %v8800_v6  ;;  %11260 = vst [vmem:[#allocation212_spill] sm:$0xff] %v8804_v13  ;;  %v539_v6 = vadd.f32 %v5604_v32, %v8637_v34  ;;  %v8818_v13 = vmul.f32 %v7857_v46, %v8709_v44  ;;  %v6274_v47 = vpop.eup %6273  ;;  %v869_v53 = vadd.f32 1.0, %v6272_v40  ;;  %v8825_v21 = vpop.permute.xlu1 %249  ;;  %v8831_v34 = vmul.f32 %v8625_v36, %v8498_v22 }
  0xfa   :  { %11261 = vst [vmem:[#allocation213_spill] sm:$0xff] %v8809_v57  ;;  %11262 = vst [vmem:[#allocation214_spill] sm:$0xff] %v8813_v26  ;;  %v4823_v57 = vmul.f32 -1.442695, %v818_v24  ;;  %v8827_v26 = vpop.permute.xlu0 %244  ;;  %v868_v0 = vadd.f32 1.0, %v6274_v47  ;;  %6283 = vpow2.f32 %v4824_v28  ;;  %v820_v24 = vadd.f32 %v8112_v14, %v534_v59  ;;  %v543_v47 = vpop.f32.mrb[11].mxu0 }
  0xfb   :  { %11263 = vst [vmem:[#allocation215_spill] sm:$0xff] %v8818_v13  ;;  %11264 = vst [vmem:[#allocation216_spill] sm:$0xff] %v8822_v19  ;;  %v821_v32 = vadd.f32 %v8110_v61, %v539_v6  ;;  %v8836_v19 = vmul.f32 %v8625_v36, %v8500_v55  ;;  %6285 = vrcp.f32 %v869_v53  ;;  %v8845_v22 = vmul.f32 %v7819_v37, %v8825_v21  ;;  %v6276_v40 = vpop.eup %6275 }
  0xfc   :  { %6287 = vrcp.f32 %v868_v0  ;;  %v549_v6 = vadd.f32 %v5607_v29, %v8649_v58  ;;  %v8850_v55 = vmul.f32 %v7819_v37, %v8827_v26  ;;  %v6278_v59 = vpop.eup %6277  ;;  %v871_v53 = vadd.f32 1.0, %v6276_v40  ;;  %v5610_v29 = vpop.f32.mrb[12].mxu0 }
  0xfd   :  { %11265 = vst [vmem:[#allocation217_spill] sm:$0xff] %v8845_v22  ;;  %v4826_v28 = vmul.f32 -1.442695, %v821_v32  ;;  %6289 = vpow2.f32 %v4823_v57  ;;  %v4825_v13 = vmul.f32 -1.442695, %v820_v24  ;;  %v544_v17 = vadd.f32 %v543_v47, %v8653_v41  ;;  %v8853_v14 = vpop.permute.xlu1 %289 }
  0xfe   :  { %11266 = vst [vmem:[#allocation218_spill] sm:$0xff] %v8850_v55  ;;  %v8855_v61 = vpop.permute.xlu0 %284  ;;  %v870_v22 = vadd.f32 1.0, %v6278_v59  ;;  %v823_v0 = vadd.f32 %v8238_v54, %v549_v6  ;;  %v8860_v58 = vmul.f32 %v8625_v36, %v8665_v27  ;;  %v8865_v57 = vmul.f32 %v8625_v36, %v8825_v21  ;;  %v553_v6 = vpop.f32.mrb[13].mxu0 }
  0xff   :  { %6291 = vpow2.f32 %v4826_v28  ;;  %v822_v32 = vadd.f32 %v8240_v48, %v544_v17  ;;  %v8869_v41 = vmul.f32 %v7819_v37, %v8853_v14  ;;  %v559_v28 = vadd.f32 %v5610_v29, %v8661_v11 }
 0x100   :  { %6293 = vrcp.f32 %v871_v53  ;;  %v6280_v24 = vpop.eup %6279  ;;  %v4828_v40 = vmul.f32 -1.442695, %v823_v0  ;;  %v8874_v27 = vmul.f32 %v7819_v37, %v8855_v61  ;;  %v554_v17 = vadd.f32 %v553_v6, %v8673_v15  ;;  %v5613_v0 = vpop.f32.mrb[14].mxu0 }
 0x101   :  { %11267 = vst [vmem:[#allocation219_spill] sm:$0xff] %v8869_v41  ;;  %6295 = vrcp.f32 %v870_v22  ;;  %v6282_v47 = vpop.eup %6281  ;;  %v873_v59 = vadd.f32 1.0, %v6280_v24  ;;  %v4827_v53 = vmul.f32 -1.442695, %v822_v32  ;;  %v825_v41 = vadd.f32 %v8366_v18, %v559_v28  ;;  %v563_v24 = vpop.f32.mrb[15].mxu0 }
 0x102   :  { %11268 = vst [vmem:[#allocation220_spill] sm:$0xff] %v8874_v27  ;;  %6297 = vpow2.f32 %v4825_v13  ;;  %v872_v55 = vadd.f32 1.0, %v6282_v47  ;;  %v8880_v22 = vmul.f32 %v7824_v38, %v8825_v21  ;;  %v824_v11 = vadd.f32 %v8368_v51, %v554_v17 }
 0x103   :  { %6299 = vpow2.f32 %v4828_v40  ;;  %v8885_v37 = vmul.f32 %v7824_v38, %v8827_v26  ;;  %v8889_v13 = vmul.f32 %v7824_v38, %v8853_v14  ;;  %v4830_v32 = vmul.f32 -1.442695, %v825_v41 }
 0x104   :  { %11269 = vst [vmem:[#allocation221_spill] sm:$0xff] %v8880_v22  ;;  %6301 = vrcp.f32 %v873_v59  ;;  %v6284_v15 = vpop.eup %6283  ;;  %v569_v29 = vadd.f32 %v5613_v0, %v8678_v10  ;;  %v8894_v40 = vmul.f32 %v7824_v38, %v8855_v61  ;;  %v4829_v47 = vmul.f32 -1.442695, %v824_v11  ;;  %v5616_v11 = vpop.f32.mrb[16].mxu0 }
 0x105   :  { %11270 = vst [vmem:[#allocation222_spill] sm:$0xff] %v8885_v37  ;;  %11271 = vst [vmem:[#allocation223_spill] sm:$0xff] %v8889_v13  ;;  %6303 = vrcp.f32 %v872_v55  ;;  %v8896_v28 = vpop.eup %6285  ;;  %v875_v6 = vadd.f32 1.0, %v6284_v15  ;;  %v564_v59 = vadd.f32 %v563_v24, %v8682_v3  ;;  %v8904_v10 = vmul.f32 %v7829_v39, %v8825_v21 }
 0x106   :  { %11272 = vst [vmem:[#allocation224_spill] sm:$0xff] %v8894_v40  ;;  %6305 = vpow2.f32 %v4827_v53  ;;  %v8899_v17 = vpop.eup %6287  ;;  %v827_v55 = vadd.f32 %v8494_v60, %v569_v29  ;;  %v8908_v38 = vmul.f32 %v7829_v39, %v8827_v26  ;;  %v8913_v3 = vmul.f32 %v7829_v39, %v8853_v14 }
 0x107   :  { %6307 = vpow2.f32 %v4830_v32  ;;  %11273 = vst [vmem:[#allocation225_spill] sm:$0xff] %v8904_v10  ;;  %v6290_v41 = vpop.eup %6289  ;;  %v826_v53 = vadd.f32 %v8496_v1, %v564_v59  ;;  %v8917_v0 = vmul.f32 %v7829_v39, %v8855_v61  ;;  %v579_v24 = vadd.f32 %v5616_v11, %v8724_v31  ;;  %v8929_v39 = vpop.permute.xlu1 %759 }
 0x108   :  { %11274 = vst [vmem:[#allocation226_spill] sm:$0xff] %v8908_v38  ;;  %6309 = vrcp.f32 %v875_v6  ;;  %11275 = vst [vmem:[#allocation227_spill] sm:$0xff] %v8913_v3  ;;  %v874_v32 = vadd.f32 1.0, %v6290_v41  ;;  %v4832_v29 = vmul.f32 -1.442695, %v827_v55  ;;  %v573_v38 = vpop.f32.mrb[17].mxu0  ;;  %v8925_v3 = vmul.f32 %v7838_v42, %v8825_v21 }
 0x109   :  { %11276 = vst [vmem:[#allocation228_spill] sm:$0xff] %v8917_v0  ;;  %v6292_v15 = vpop.eup %6291  ;;  %6311 = vpow2.f32 %v4829_v47  ;;  %v4831_v59 = vmul.f32 -1.442695, %v826_v53  ;;  %v574_v40 = vadd.f32 %v573_v38, %v8728_v30  ;;  %11278 = vst [vmem:[#allocation230_spill] sm:$0xff] %v8929_v39  ;;  %v320_v47 = vmul.f32 %v8625_v36, %v8827_v26  ;;  %v8941_v38 = vpop.permute.xlu0 %754 }
 0x10a   :  { %v8920_v10 = vpop.eup %6293  ;;  %v917_v6 = vadd.f32 1.0, %v6292_v15  ;;  %11277 = vst [vmem:[#allocation229_spill] sm:$0xff] %v8925_v3  ;;  %6313 = vrcp.f32 %v874_v32  ;;  %v8935_v31 = vmul.f32 %v7838_v42, %v8827_v26  ;;  %v8939_v55 = vmul.f32 %v7838_v42, %v8853_v14  ;;  %11281 = vst [vmem:[#allocation233_spill] sm:$0xff] %v8941_v38  ;;  %v5619_v53 = vpop.f32.mrb[18].mxu0 }
 0x10b   :  { %v8927_v13 = vpop.eup %6295  ;;  %v829_v41 = vadd.f32 %v8602_v5, %v579_v24  ;;  %v8946_v11 = vmul.f32 %v7838_v42, %v8855_v61  ;;  %v8950_v15 = vmul.f32 %v7843_v43, %v8825_v21  ;;  %v583_v3 = vpop.f32.mrb[19].mxu0  ;;  %v828_v42 = vadd.f32 %v8604_v33, %v574_v40 }
 0x10c   :  { %11279 = vst [vmem:[#allocation231_spill] sm:$0xff] %v8935_v31  ;;  %11280 = vst [vmem:[#allocation232_spill] sm:$0xff] %v8939_v55  ;;  %v6298_v30 = vpop.eup %6297  ;;  %6315 = vrcp.f32 %v917_v6  ;;  %v589_v55 = vadd.f32 %v5619_v53, %v8831_v34  ;;  %v8955_v6 = vmul.f32 %v7843_v43, %v8827_v26  ;;  %v584_v34 = vadd.f32 %v583_v3, %v8836_v19  ;;  %v5622_v53 = vpop.f32.mrb[20].mxu0 }
 0x10d   :  { %11282 = vst [vmem:[#allocation234_spill] sm:$0xff] %v8946_v11  ;;  %11283 = vst [vmem:[#allocation235_spill] sm:$0xff] %v8950_v15  ;;  %v6300_v32 = vpop.eup %6299  ;;  %v916_v31 = vadd.f32 1.0, %v6298_v30  ;;  %6317 = vpow2.f32 %v4832_v29  ;;  %v8962_v11 = vmul.f32 %v7843_v43, %v8853_v14  ;;  %v8969_v29 = vmul.f32 %v7843_v43, %v8855_v61 }
 0x10e   :  { %11284 = vst [vmem:[#allocation236_spill] sm:$0xff] %v8955_v6  ;;  %v8957_v24 = vpop.eup %6301  ;;  %v919_v0 = vadd.f32 1.0, %v6300_v32  ;;  %6319 = vpow2.f32 %v4831_v59  ;;  %v8973_v30 = vmul.f32 %v7852_v45, %v8825_v21  ;;  %v831_v40 = vadd.f32 %v8747_v16, %v589_v55 }
 0x10f   :  { %11285 = vst [vmem:[#allocation237_spill] sm:$0xff] %v8962_v11  ;;  %v8964_v15 = vpop.eup %6303  ;;  %6321 = vrcp.f32 %v916_v31  ;;  %11286 = vst [vmem:[#allocation238_spill] sm:$0xff] %v8969_v29  ;;  %v8978_v32 = vmul.f32 %v7852_v45, %v8827_v26  ;;  %v8982_v19 = vmul.f32 %v7852_v45, %v8853_v14  ;;  %v8984_v31 = vpop.permute.xlu1 %799 }
 0x110   :  { %11287 = vst [vmem:[#allocation239_spill] sm:$0xff] %v8973_v30  ;;  %v6306_v59 = vpop.eup %6305  ;;  %6323 = vrcp.f32 %v919_v0  ;;  %v599_v30 = vadd.f32 %v5622_v53, %v8841_v62  ;;  %v593_v29 = vpop.f32.mrb[21].mxu0  ;;  %v8989_v0 = vmul.f32 %v7852_v45, %v8855_v61  ;;  %v830_v62 = vadd.f32 %v8749_v8, %v584_v34 }
 0x111   :  { %11288 = vst [vmem:[#allocation240_spill] sm:$0xff] %v8978_v32  ;;  %11289 = vst [vmem:[#allocation241_spill] sm:$0xff] %v8982_v19  ;;  %v6308_v3 = vpop.eup %6307  ;;  %v918_v43 = vadd.f32 1.0, %v6306_v59  ;;  %6325 = vtanh.f32 %v829_v41  ;;  %v8993_v32 = vpop.permute.xlu0 %794  ;;  %v594_v19 = vadd.f32 %v593_v29, %v8860_v58  ;;  %v8998_v59 = vmul.f32 %v7857_v46, %v8825_v21 }
 0x112   :  { %11290 = vst [vmem:[#allocation242_spill] sm:$0xff] %v8989_v0  ;;  %v8991_v55 = vpop.eup %6309  ;;  %v921_v11 = vadd.f32 1.0, %v6308_v3  ;;  %6327 = vtanh.f32 %v828_v42  ;;  %v9003_v45 = vmul.f32 %v7857_v46, %v8827_v26  ;;  %v9007_v53 = vmul.f32 %v7857_v46, %v8853_v14  ;;  %v5625_v29 = vpop.f32.mrb[22].mxu0 }
 0x113   :  { %11291 = vst [vmem:[#allocation243_spill] sm:$0xff] %v8998_v59  ;;  %v6312_v41 = vpop.eup %6311  ;;  %6329 = vrcp.f32 %v918_v43  ;;  %v833_v58 = vadd.f32 %v8929_v39, %v599_v30  ;;  %v9012_v21 = vmul.f32 %v7857_v46, %v8855_v61  ;;  %v832_v34 = vadd.f32 %v8941_v38, %v594_v19  ;;  %v603_v43 = vpop.f32.mrb[23].mxu0 }
 0x114   :  { %11292 = vst [vmem:[#allocation244_spill] sm:$0xff] %v9003_v45  ;;  %11293 = vst [vmem:[#allocation245_spill] sm:$0xff] %v9007_v53  ;;  %6331 = vrcp.f32 %v921_v11  ;;  %v920_v42 = vadd.f32 1.0, %v6312_v41  ;;  %v9014_v3 = vpop.eup %6313  ;;  %v609_v26 = vadd.f32 %v5625_v29, %v8865_v57  ;;  %v604_v53 = vadd.f32 %v603_v43, %v320_v47  ;;  %v9018_v41 = vpop.permute.xlu1 %769 }
 0x115   :  { %11294 = vst [vmem:[#allocation246_spill] sm:$0xff] %v9012_v21  ;;  %6333 = vtanh.f32 %v831_v40  ;;  %v323_v30 = vmul.f32 %v8625_v36, %v8414_v25  ;;  %v322_v46 = vmul.f32 %v8625_v36, %v8416_v20  ;;  %v325_v40 = vmul.f32 %v8625_v36, %v8542_v52  ;;  %v9026_v57 = vpop.permute.xlu0 %764 }
 0x116   :  { %v6316_v45 = vpop.eup %6315  ;;  %6335 = vrcp.f32 %v920_v42  ;;  %v835_v47 = vadd.f32 %v9018_v41, %v609_v26  ;;  %v5628_v42 = vpop.f32.mrb[24].mxu0  ;;  %v834_v25 = vadd.f32 %v9026_v57, %v604_v53 }
 0x117   :  { %v6318_v11 = vpop.eup %6317  ;;  %6337 = vtanh.f32 %v830_v62  ;;  %v324_v62 = vmul.f32 %v8625_v36, %v8544_v56  ;;  %v619_v20 = vadd.f32 %v5628_v42, %v323_v30  ;;  %v613_v59 = vpop.f32.mrb[25].mxu0  ;;  %v997_v52 = vmul.f32 0.0, %v6316_v45 }
 0x118   :  { %v6320_v19 = vpop.eup %6319  ;;  %v923_v21 = vadd.f32 1.0, %v6318_v11  ;;  %6339 = vtanh.f32 %v833_v58  ;;  %v614_v11 = vadd.f32 %v613_v59, %v322_v46  ;;  %v327_v58 = vmul.f32 %v8625_v36, %v8709_v44  ;;  %v5631_v45 = vpop.f32.mrb[26].mxu0 }
 0x119   :  { %v6322_v29 = vpop.eup %6321  ;;  %v922_v43 = vadd.f32 1.0, %v6320_v19  ;;  %6341 = vtanh.f32 %v832_v34  ;;  %v837_v37 = vadd.f32 %v8627_v49, %v619_v20  ;;  %v326_v56 = vmul.f32 %v8625_v36, %v8711_v2  ;;  %v623_v42 = vpop.f32.mrb[27].mxu0 }
 0x11a   :  { %v6324_v0 = vpop.eup %6323  ;;  %6343 = vrcp.f32 %v923_v21  ;;  %v996_v26 = vmul.f32 0.0, %v6322_v29  ;;  %v836_v30 = vadd.f32 %v8629_v50, %v614_v11  ;;  %v329_v59 = vmul.f32 %v8625_v36, %v8853_v14 }
 0x11b   :  { %v6326_v6 = vpop.eup %6325  ;;  %6345 = vrcp.f32 %v922_v43  ;;  %v4834_v46 = vmul.f32 -1.442695, %v837_v37  ;;  %v629_v19 = vadd.f32 %v5631_v45, %v325_v40  ;;  %v999_v43 = vmul.f32 0.0, %v6324_v0  ;;  %v5634_v40 = vpop.f32.mrb[28].mxu0 }
 0x11c   :  { %v6328_v34 = vpop.eup %6327  ;;  %v1005_v53 = vmul.f32 %v6326_v6, %v8896_v28  ;;  %6347 = vtanh.f32 %v835_v47  ;;  %v4833_v20 = vmul.f32 -1.442695, %v836_v30  ;;  %v624_v28 = vadd.f32 %v623_v42, %v324_v62  ;;  %v633_v62 = vpop.f32.mrb[29].mxu0 }
 0x11d   :  { %v6330_v21 = vpop.eup %6329  ;;  %v1004_v44 = vmul.f32 %v6328_v34, %v8899_v17  ;;  %6349 = vtanh.f32 %v834_v25  ;;  %v839_v14 = vadd.f32 %v8785_v12, %v629_v19  ;;  %v639_v34 = vadd.f32 %v5634_v40, %v327_v58  ;;  %v9067_v40 = vpop.permute.xlu0 %804 }
 0x11e   :  { %v6332_v29 = vpop.eup %6331  ;;  %v9042_v2 = vadd.f32 %v1005_v53, %v997_v52  ;;  %v998_v47 = vmul.f32 0.0, %v6330_v21  ;;  %6351 = vpow2.f32 %v4834_v46  ;;  %v838_v37 = vadd.f32 %v8787_v7, %v624_v28 }
 0x11f   :  { %v6334_v6 = vpop.eup %6333  ;;  %v9044_v11 = vadd.f32 %v1004_v44, %v996_v26  ;;  %v1001_v27 = vmul.f32 0.0, %v6332_v29  ;;  %6353 = vpow2.f32 %v4833_v20  ;;  %v4836_v52 = vmul.f32 -1.442695, %v839_v14 }
 0x120   :  { %v6336_v22 = vpop.eup %6335  ;;  %v1007_v17 = vmul.f32 %v6334_v6, %v8920_v10  ;;  %v4835_v45 = vmul.f32 -1.442695, %v838_v37  ;;  %v634_v21 = vadd.f32 %v633_v62, %v326_v56  ;;  %v841_v46 = vadd.f32 %v8984_v31, %v639_v34  ;;  %v9063_v37 = vpop.permute.xlu1 %809 }
 0x121   :  { %v6338_v0 = vpop.eup %6337  ;;  %v1000_v25 = vmul.f32 0.0, %v6336_v22  ;;  %6355 = vtanh.f32 %v9044_v11  ;;  %v328_v22 = vmul.f32 %v8625_v36, %v8855_v61 }
 0x122   :  { %v6340_v26 = vpop.eup %6339  ;;  %v9050_v53 = vadd.f32 %v1007_v17, %v999_v43  ;;  %v1006_v30 = vmul.f32 %v6338_v0, %v8927_v13  ;;  %6357 = vpow2.f32 %v4836_v52  ;;  %v840_v29 = vadd.f32 %v8993_v32, %v634_v21  ;;  %v5637_v13 = vpop.f32.mrb[30].mxu0 }
 0x123   :  { %v6342_v44 = vpop.eup %6341  ;;  %v1009_v10 = vmul.f32 %v6340_v26, %v8957_v24  ;;  %6359 = vpow2.f32 %v4835_v45  ;;  %v4838_v24 = vmul.f32 -1.442695, %v841_v46  ;;  %v649_v28 = vadd.f32 %v5637_v13, %v329_v59  ;;  %v643_v6 = vpop.f32.mrb[31].mxu0 }
 0x124   :  { %v6344_v58 = vpop.eup %6343  ;;  %v9057_v19 = vadd.f32 %v1006_v30, %v998_v47  ;;  %v1008_v42 = vmul.f32 %v6342_v44, %v8964_v15  ;;  %v4837_v36 = vmul.f32 -1.442695, %v840_v29  ;;  %v644_v47 = vadd.f32 %v643_v6, %v328_v22 }
 0x125   :  { %v6346_v43 = vpop.eup %6345  ;;  %v1003_v56 = vmul.f32 0.0, %v6344_v58  ;;  %v9061_v20 = vadd.f32 %v1009_v10, %v1001_v27  ;;  %6361 = vpow2.f32 %v4838_v24  ;;  %v843_v27 = vadd.f32 %v9063_v37, %v649_v28 }
 0x126   :  { %v6348_v14 = vpop.eup %6347  ;;  %v1002_v17 = vmul.f32 0.0, %v6346_v43  ;;  %v9065_v61 = vadd.f32 %v1008_v42, %v1000_v25  ;;  %6363 = vpow2.f32 %v4837_v36  ;;  %v842_v59 = vadd.f32 %v9067_v40, %v644_v47 }
 0x127   :  { %v6350_v15 = vpop.eup %6349  ;;  %v1011_v0 = vmul.f32 %v6348_v14, %v8991_v55  ;;  %v4840_v25 = vmul.f32 -1.442695, %v843_v27  ;;  %6365 = vtanh.f32 %v9042_v2 }
 0x128   :  { %v1010_v52 = vmul.f32 %v6350_v15, %v9014_v3  ;;  %v6352_v34 = vpop.eup %6351  ;;  %v4839_v21 = vmul.f32 -1.442695, %v842_v59  ;;  %6367 = vtanh.f32 %v9057_v19 }
 0x129   :  { %v9073_v62 = vadd.f32 %v1011_v0, %v1003_v56  ;;  %v6354_v26 = vpop.eup %6353  ;;  %v973_v45 = vadd.f32 1.0, %v6352_v34  ;;  %6369 = vpow2.f32 %v4840_v25 }
 0x12a   :  { %v9076_v30 = vadd.f32 %v1010_v52, %v1002_v17  ;;  %v972_v44 = vadd.f32 1.0, %v6354_v26 }
 0x12b   :  { %v6356_v55 = vpop.eup %6355  ;;  %6371 = vrcp.f32 %v973_v45 }
 0x12c   :  { %v6358_v3 = vpop.eup %6357  ;;  %6373 = vrcp.f32 %v972_v44 }
 0x12d   :  { %v6360_v10 = vpop.eup %6359  ;;  %v975_v46 = vadd.f32 1.0, %v6358_v3  ;;  %6375 = vpow2.f32 %v4839_v21 }
 0x12e   :  { %v974_v22 = vadd.f32 1.0, %v6360_v10  ;;  %6377 = vtanh.f32 %v9050_v53 }
 0x12f   :  { %6379 = vrcp.f32 %v975_v46  ;;  %v6362_v58 = vpop.eup %6361 }
 0x130   :  { %6381 = vrcp.f32 %v974_v22  ;;  %v6364_v42 = vpop.eup %6363  ;;  %v977_v29 = vadd.f32 1.0, %v6362_v58 }
 0x131   :  { %6383 = vtanh.f32 %v9065_v61  ;;  %v6366_v13 = vpop.eup %6365  ;;  %v976_v43 = vadd.f32 1.0, %v6364_v42 }
 0x132   :  { %6385 = vtanh.f32 %v9061_v20  ;;  %v6368_v56 = vpop.eup %6367 }
 0x133   :  { %6387 = vrcp.f32 %v977_v29  ;;  %v6370_v24 = vpop.eup %6369 }
 0x134   :  { %6389 = vrcp.f32 %v976_v43  ;;  %v979_v6 = vadd.f32 1.0, %v6370_v24 }
 0x135   :  { %v6372_v28 = vpop.eup %6371 }
 0x136   :  { %v6374_v14 = vpop.eup %6373  ;;  %v1029_v17 = vmul.f32 %v6372_v28, %v6366_v13  ;;  %6391 = vrcp.f32 %v979_v6  ;;  %v9094_v28 = vld [vmem:[%s10915_s1 + $0x10] sm:$0xff]  ;;  %v9101_v6 = vld [vmem:[%s10915_s1 + $0x18] sm:$0xff] }
 0x137   :  { %v6376_v36 = vpop.eup %6375  ;;  %v1028_v47 = vmul.f32 %v6374_v14, %v6356_v55  ;;  %6393 = vtanh.f32 %v9073_v62  ;;  %v9108_v14 = vld [vmem:[%s10915_s1 + $0x20] sm:$0xff] }
 0x138   :  { %v6378_v15 = vpop.eup %6377  ;;  %v978_v0 = vadd.f32 1.0, %v6376_v36  ;;  %6395 = vtanh.f32 %v9076_v30  ;;  %v9122_v36 = vld [vmem:[%s10915_s1 + $0x30] sm:$0xff] }
 0x139   :  { %v6380_v27 = vpop.eup %6379  ;;  %v6126_v52 = vpack.c.bf16 %v1029_v17, %v1028_v47  ;;  %v9115_v17 = vld [vmem:[%s10915_s1 + $0x28] sm:$0xff]  ;;  %v9129_v47 = vld [vmem:[%s10915_s1 + $0x38] sm:$0xff] }
 0x13a   :  { %v6382_v59 = vpop.eup %6381  ;;  %6397 = vrcp.f32 %v978_v0  ;;  %v1031_v34 = vmul.f32 %v6380_v27, %v6378_v15  ;;  %v9136_v15 = vld [vmem:[%s10915_s1 + $0x40] sm:$0xff]  ;;  %v9143_v0 = vld [vmem:[%s10915_s1 + $0x48] sm:$0xff]  ;;  %v9150_v27 = vld [vmem:[%s10915_s1 + $0x50] sm:$0xff] }
 0x13b   :  { %v6384_v25 = vpop.eup %6383  ;;  %6127 = vmatprep.subr.bf16.mxu1 %v6126_v52  ;;  %v1030_v26 = vmul.f32 %v6382_v59, %v6368_v56  ;;  %v9087_v56 = vld [vmem:[%s10915_s1 + $0x8] sm:$0xff]  ;;  %v9164_v59 = vld [vmem:[%s10915_s1 + $0x60] sm:$0xff] }
 0x13c   :  { %v6386_v45 = vpop.eup %6385  ;;  %6129 = vmatpush3.bf16.msra.mxu1 %v6126_v52  ;;  %v9157_v52 = vld [vmem:[%s10915_s1 + $0x58] sm:$0xff]  ;;  %11296 = vst [vmem:[#allocation248_spill] sm:$0xff] %v9164_v59 }
 0x13d   :  { %v6388_v21 = vpop.eup %6387  ;;  %v6130_v44 = vpack.c.bf16 %v1031_v34, %v1030_v26  ;;  %11295 = vst [vmem:[#allocation247_spill] sm:$0xff] %v9157_v52  ;;  %v9171_v34 = vld [vmem:[%s10915_s1 + $0x68] sm:$0xff]  ;;  %v9185_v26 = vld [vmem:[%s10915_s1 + $0x78] sm:$0xff] }
 0x13e   :  { %v6390_v3 = vpop.eup %6389  ;;  %v1033_v55 = vmul.f32 %v6388_v21, %v6386_v45  ;;  %11297 = vst [vmem:[#allocation249_spill] sm:$0xff] %v9171_v34  ;;  %11299 = vst [vmem:[#allocation251_spill] sm:$0xff] %v9185_v26  ;;  %v9192_v45 = vld [vmem:[%s10915_s1 + $0x80] sm:$0xff]  ;;  %v9199_v21 = vld [vmem:[%s10915_s1 + $0x88] sm:$0xff] }
 0x13f   :  { %6131 = vmatprep.subr.bf16.mxu1 %v6130_v44  ;;  %v1032_v10 = vmul.f32 %v6390_v3, %v6384_v25  ;;  %v9178_v25 = vld [vmem:[%s10915_s1 + $0x70] sm:$0xff]  ;;  %11300 = vst [vmem:[#allocation252_spill] sm:$0xff] %v9192_v45  ;;  %11301 = vst [vmem:[#allocation253_spill] sm:$0xff] %v9199_v21  ;;  %v9213_v3 = vld [vmem:[%s10915_s1 + $0x98] sm:$0xff] }
 0x140   :  { %6133 = vmatpush3.bf16.msra.mxu1 %v6130_v44  ;;  %v6392_v46 = vpop.eup %6391  ;;  %11298 = vst [vmem:[#allocation250_spill] sm:$0xff] %v9178_v25  ;;  %v9206_v44 = vld [vmem:[%s10915_s1 + $0x90] sm:$0xff]  ;;  %11303 = vst [vmem:[#allocation255_spill] sm:$0xff] %v9213_v3 }
 0x141   :  { %v6134_v22 = vpack.c.bf16 %v1033_v55, %v1032_v10  ;;  %v6394_v58 = vpop.eup %6393  ;;  %11302 = vst [vmem:[#allocation254_spill] sm:$0xff] %v9206_v44  ;;  %v9220_v55 = vld [vmem:[%s10915_s1 + $0xa0] sm:$0xff]  ;;  %v9227_v10 = vld [vmem:[%s10915_s1 + $0xa8] sm:$0xff] }
 0x142   :  { %v6396_v42 = vpop.eup %6395  ;;  %v1035_v29 = vmul.f32 %v6394_v58, %v6392_v46  ;;  %11304 = vst [vmem:[#allocation256_spill] sm:$0xff] %v9220_v55  ;;  %11305 = vst [vmem:[#allocation257_spill] sm:$0xff] %v9227_v10  ;;  %v9234_v46 = vld [vmem:[%s10915_s1 + $0xb0] sm:$0xff]  ;;  %v9248_v58 = vld [vmem:[%s10915_s1 + $0xc0] sm:$0xff] }
 0x143   :  { %6135 = vmatprep.subr.bf16.mxu1 %v6134_v22  ;;  %11306 = vst [vmem:[#allocation258_spill] sm:$0xff] %v9234_v46  ;;  %11308 = vst [vmem:[#allocation260_spill] sm:$0xff] %v9248_v58 }
 0x144   :  { %v6398_v13 = vpop.eup %6397  ;;  %6137 = vmatpush3.bf16.msra.mxu1 %v6134_v22  ;;  %v9241_v22 = vld [vmem:[%s10915_s1 + $0xb8] sm:$0xff] }
 0x145   :  { %v1034_v43 = vmul.f32 %v6398_v13, %v6396_v42  ;;  %11307 = vst [vmem:[#allocation259_spill] sm:$0xff] %v9241_v22  ;;  %v9255_v42 = vld [vmem:[%s10915_s1 + $0xc8] sm:$0xff]  ;;  %v9269_v13 = vld [vmem:[%s10915_s1 + $0xd8] sm:$0xff] }
 0x146   :  { %11309 = vst [vmem:[#allocation261_spill] sm:$0xff] %v9255_v42  ;;  %11311 = vst [vmem:[#allocation263_spill] sm:$0xff] %v9269_v13 }
 0x147   :  { %v6138_v24 = vpack.c.bf16 %v1035_v29, %v1034_v43  ;;  %v9262_v29 = vld [vmem:[%s10915_s1 + $0xd0] sm:$0xff]  ;;  %v9276_v43 = vld [vmem:[%s10915_s1 + $0xe0] sm:$0xff] }
 0x148   :  { %11310 = vst [vmem:[#allocation262_spill] sm:$0xff] %v9262_v29  ;;  %11312 = vst [vmem:[#allocation264_spill] sm:$0xff] %v9276_v43 }
 0x149   :  { %6139 = vmatprep.subr.bf16.mxu1 %v6138_v24 }
 0x14a   :  { %6141 = vmatpush3.bf16.msra.mxu1 %v6138_v24  ;;  %v9283_v24 = vld [vmem:[%s10915_s1 + $0xe8] sm:$0xff] }
 0x14b   :  { %11313 = vst [vmem:[#allocation265_spill] sm:$0xff] %v9283_v24 }
 0x14d   :  { %5655 = vmatmul.mubr.msk.f32.vlgmr.msra.gmra.mrb[0].mxu1 %vm330_vm0, %v9087_v56 }
 0x14e   :  { %5657 = vmatprep.mubr.msk.f32.mxu1 %vm330_vm0, %v9094_v28 }
 0x151   :  { %5658 = vmatmul.mubr.msk.f32.gmra.mrb[2].mxu1 %vm330_vm0, %v9101_v6 }
 0x152   :  { %5660 = vmatprep.mubr.msk.f32.mxu1 %vm330_vm0, %v9108_v14 }
 0x155   :  { %5661 = vmatmul.mubr.msk.f32.gmra.mrb[4].mxu1 %vm330_vm0, %v9115_v17 }
 0x156   :  { %5663 = vmatprep.mubr.msk.f32.mxu1 %vm330_vm0, %v9122_v36 }
 0x159   :  { %5664 = vmatmul.mubr.msk.f32.gmra.mrb[6].mxu1 %vm330_vm0, %v9129_v47 }
 0x15a   :  { %5666 = vmatprep.mubr.msk.f32.mxu1 %vm330_vm0, %v9136_v15 }
 0x15d   :  { %5667 = vmatmul.mubr.msk.f32.gmra.mrb[8].mxu1 %vm330_vm0, %v9143_v0 }
 0x15e   :  { %5669 = vmatprep.mubr.msk.f32.mxu1 %vm330_vm0, %v9150_v27 }
 0x161   :  { %5670 = vmatmul.mubr.msk.f32.gmra.mrb[10].mxu1 %vm330_vm0, %v9157_v52 }
 0x162   :  { %5672 = vmatprep.mubr.msk.f32.mxu1 %vm330_vm0, %v9164_v59 }
 0x165   :  { %5673 = vmatmul.mubr.msk.f32.gmra.mrb[12].mxu1 %vm330_vm0, %v9171_v34  ;;  %v11321_v34 = vld [vmem:[#allocation28_spill] sm:$0xff] }
 0x166   :  { %5675 = vmatprep.mubr.msk.f32.mxu1 %vm330_vm0, %v9178_v25 }
 0x169   :  { %5676 = vmatmul.mubr.msk.f32.gmra.mrb[14].mxu1 %vm330_vm0, %v9185_v26 }
 0x16a   :  { %5678 = vmatprep.mubr.msk.f32.mxu1 %vm330_vm0, %v9192_v45 }
 0x16d   :  { %5679 = vmatmul.mubr.msk.f32.gmra.mrb[16].mxu1 %vm330_vm0, %v9199_v21  ;;  %v11320_v21 = vld [vmem:[#allocation27_spill] sm:$0xff] }
 0x16e   :  { %5681 = vmatprep.mubr.msk.f32.mxu1 %vm330_vm0, %v9206_v44 }
 0x171   :  { %5682 = vmatmul.mubr.msk.f32.gmra.mrb[18].mxu1 %vm330_vm0, %v9213_v3 }
 0x172   :  { %5684 = vmatprep.mubr.msk.f32.mxu1 %vm330_vm0, %v9220_v55  ;;  %v11319_v55 = vld [vmem:[#allocation51_spill] sm:$0xff] }
 0x175   :  { %5685 = vmatmul.mubr.msk.f32.gmra.mrb[20].mxu1 %vm330_vm0, %v9227_v10 }
 0x176   :  { %5687 = vmatprep.mubr.msk.f32.mxu1 %vm330_vm0, %v9234_v46  ;;  %v11318_v46 = vld [vmem:[#allocation50_spill] sm:$0xff] }
 0x179   :  { %5688 = vmatmul.mubr.msk.f32.gmra.mrb[22].mxu1 %vm330_vm0, %v9241_v22 }
 0x17a   :  { %5690 = vmatprep.mubr.msk.f32.mxu1 %vm330_vm0, %v9248_v58  ;;  %v11317_v58 = vld [vmem:[#allocation2_spill] sm:$0xff] }
 0x17d   :  { %5691 = vmatmul.mubr.msk.f32.gmra.mrb[24].mxu1 %vm330_vm0, %v9255_v42 }
 0x17e   :  { %5693 = vmatprep.mubr.msk.f32.mxu1 %vm330_vm0, %v9262_v29 }
 0x181   :  { %5694 = vmatmul.mubr.msk.f32.gmra.mrb[26].mxu1 %vm330_vm0, %v9269_v13  ;;  %v9290_v13 = vld [vmem:[%s10915_s1 + $0xf0] sm:$0xff] }
 0x182   :  { %5696 = vmatprep.mubr.msk.f32.mxu1 %vm330_vm0, %v9276_v43  ;;  %11314 = vst [vmem:[#allocation266_spill] sm:$0xff] %v9290_v13  ;;  %v9297_v43 = vld [vmem:[%s10915_s1 + $0xf8] sm:$0xff] }
 0x183   :  { %11315 = vst [vmem:[#allocation267_spill] sm:$0xff] %v9297_v43 }
 0x185   :  { %5697 = vmatmul.mubr.msk.f32.gmra.mrb[28].mxu1 %vm330_vm0, %v9283_v24  ;;  %v9304_v24 = vld [vmem:[%s10915_s1] sm:$0xff] }
 0x186   :  { %5699 = vmatprep.mubr.msk.f32.mxu1 %vm330_vm0, %v9290_v13  ;;  %11316 = vst [vmem:[#allocation268_spill] sm:$0xff] %v9304_v24 }
 0x189   :  { %5700 = vmatmul.mubr.msk.f32.gmra.mrb[30].mxu1 %vm330_vm0, %v9297_v43 }
 0x18a   :  { %5782 = vmatprep.mubr.msk.f32.mxu1 %vm330_vm0, %v9304_v24 }
 0x220   :  { %v5656_v29 = vpop.f32.mrb[0].mxu1 }
 0x221   :  { %v1148_v42 = vadd.f32 %v5656_v29, %v7919_v63  ;;  %v1142_v13 = vpop.f32.mrb[1].mxu1 }
 0x222   :  { %v1143_v22 = vadd.f32 %v1142_v13, %v11317_v58  ;;  %v11322_v13 = vld [vmem:[#allocation61_spill] sm:$0xff] }
 0x223   :  { %v1302_v10 = vadd.f32 %v1148_v42, %v11318_v46 }
 0x224   :  { %v1301_v3 = vadd.f32 %v1143_v22, %v11319_v55  ;;  %v5659_v44 = vpop.f32.mrb[2].mxu1  ;;  %v11323_v55 = vld [vmem:[#allocation62_spill] sm:$0xff] }
 0x225   :  { %v4876_v43 = vmul.f32 -1.442695, %v1302_v10  ;;  %v1158_v45 = vadd.f32 %v5659_v44, %v11320_v21  ;;  %v1152_v26 = vpop.f32.mrb[3].mxu1 }
 0x226   :  { %v4875_v25 = vmul.f32 -1.442695, %v1301_v3  ;;  %v1153_v59 = vadd.f32 %v1152_v26, %v11321_v34 }
 0x227   :  { %6399 = vpow2.f32 %v4876_v43  ;;  %v1304_v24 = vadd.f32 %v1158_v45, %v8218_v4  ;;  %v11324_v45 = vld [vmem:[#allocation93_spill] sm:$0xff]  ;;  %v11325_v43 = vld [vmem:[#allocation94_spill] sm:$0xff] }
 0x228   :  { %6401 = vpow2.f32 %v4875_v25  ;;  %v1303_v63 = vadd.f32 %v1153_v59, %v8220_v9  ;;  %v5662_v29 = vpop.f32.mrb[4].mxu1 }
 0x229   :  { %v4878_v58 = vmul.f32 -1.442695, %v1304_v24  ;;  %v1168_v42 = vadd.f32 %v5662_v29, %v11322_v13  ;;  %v1162_v46 = vpop.f32.mrb[5].mxu1  ;;  %v11326_v29 = vld [vmem:[#allocation149_spill] sm:$0xff] }
 0x22a   :  { %v4877_v22 = vmul.f32 -1.442695, %v1303_v63  ;;  %v1163_v10 = vadd.f32 %v1162_v46, %v11323_v55  ;;  %v11327_v63 = vld [vmem:[#allocation150_spill] sm:$0xff] }
 0x22b   :  { %6403 = vpow2.f32 %v4878_v58  ;;  %v1306_v21 = vadd.f32 %v1168_v42, %v8346_v23 }
 0x22c   :  { %6405 = vpow2.f32 %v4877_v22  ;;  %v1305_v34 = vadd.f32 %v1163_v10, %v8348_v35  ;;  %v5665_v26 = vpop.f32.mrb[6].mxu1  ;;  %v11328_v22 = vld [vmem:[#allocation15_spill] sm:$0xff] }
 0x22d   :  { %v4880_v44 = vmul.f32 -1.442695, %v1306_v21  ;;  %v1178_v25 = vadd.f32 %v5665_v26, %v11324_v45  ;;  %v1172_v3 = vpop.f32.mrb[7].mxu1  ;;  %v11329_v26 = vld [vmem:[#allocation3_spill] sm:$0xff] }
 0x22e   :  { %v4879_v59 = vmul.f32 -1.442695, %v1305_v34  ;;  %v1173_v24 = vadd.f32 %v1172_v3, %v11325_v43  ;;  %v11330_v34 = vld [vmem:[#allocation59_spill] sm:$0xff]  ;;  %v11331_v43 = vld [vmem:[#allocation60_spill] sm:$0xff] }
 0x22f   :  { %6407 = vpow2.f32 %v4880_v44  ;;  %v1308_v13 = vadd.f32 %v1178_v25, %v11326_v29 }
 0x230   :  { %6409 = vpow2.f32 %v4879_v59  ;;  %v1307_v55 = vadd.f32 %v1173_v24, %v11327_v63  ;;  %v5668_v46 = vpop.f32.mrb[8].mxu1  ;;  %v11332_v63 = vld [vmem:[#allocation40_spill] sm:$0xff] }
 0x231   :  { %v6400_v58 = vpop.eup %6399  ;;  %v4882_v42 = vmul.f32 -1.442695, %v1308_v13  ;;  %v1188_v23 = vadd.f32 %v5668_v46, %v11328_v22  ;;  %v1182_v10 = vpop.f32.mrb[9].mxu1 }
 0x232   :  { %v6402_v35 = vpop.eup %6401  ;;  %v1358_v21 = vadd.f32 1.0, %v6400_v58  ;;  %v4881_v9 = vmul.f32 -1.442695, %v1307_v55  ;;  %v1183_v45 = vadd.f32 %v1182_v10, %v11329_v26  ;;  %v11333_v55 = vld [vmem:[#allocation41_spill] sm:$0xff] }
 0x233   :  { %6411 = vpow2.f32 %v4882_v42  ;;  %v1310_v3 = vadd.f32 %v1188_v23, %v11330_v34  ;;  %v1357_v44 = vadd.f32 1.0, %v6402_v35 }
 0x234   :  { %v1309_v25 = vadd.f32 %v1183_v45, %v11331_v43  ;;  %v5671_v59 = vpop.f32.mrb[10].mxu1  ;;  %6413 = vrcp.f32 %v1358_v21  ;;  %v11334_v45 = vld [vmem:[#allocation75_spill] sm:$0xff] }
 0x235   :  { %v6404_v29 = vpop.eup %6403  ;;  %v4884_v24 = vmul.f32 -1.442695, %v1310_v3  ;;  %v1198_v13 = vadd.f32 %v5671_v59, %v11332_v63  ;;  %v1192_v4 = vpop.f32.mrb[11].mxu1  ;;  %6415 = vpow2.f32 %v4881_v9 }
 0x236   :  { %v6406_v46 = vpop.eup %6405  ;;  %v1360_v22 = vadd.f32 1.0, %v6404_v29  ;;  %v4883_v58 = vmul.f32 -1.442695, %v1309_v25  ;;  %v1193_v52 = vadd.f32 %v1192_v4, %v11333_v55  ;;  %v11335_v25 = vld [vmem:[#allocation76_spill] sm:$0xff]  ;;  %v11336_v55 = vld [vmem:[#allocation107_spill] sm:$0xff] }
 0x237   :  { %6417 = vpow2.f32 %v4884_v24  ;;  %v1312_v42 = vadd.f32 %v1198_v13, %v8238_v54  ;;  %v1359_v23 = vadd.f32 1.0, %v6406_v46 }
 0x238   :  { %6419 = vrcp.f32 %v1357_v44  ;;  %v1311_v35 = vadd.f32 %v1193_v52, %v8240_v48  ;;  %v5674_v10 = vpop.f32.mrb[12].mxu1 }
 0x239   :  { %v6408_v26 = vpop.eup %6407  ;;  %6421 = vrcp.f32 %v1360_v22  ;;  %v4886_v21 = vmul.f32 -1.442695, %v1312_v42  ;;  %v1208_v63 = vadd.f32 %v5674_v10, %v11334_v45  ;;  %v1202_v3 = vpop.f32.mrb[13].mxu1 }
 0x23a   :  { %v6410_v59 = vpop.eup %6409  ;;  %v1362_v29 = vadd.f32 1.0, %v6408_v26  ;;  %6423 = vpow2.f32 %v4883_v58  ;;  %v4885_v9 = vmul.f32 -1.442695, %v1311_v35  ;;  %v1203_v4 = vadd.f32 %v1202_v3, %v11335_v25  ;;  %v11337_v35 = vld [vmem:[#allocation108_spill] sm:$0xff] }
 0x23b   :  { %6425 = vpow2.f32 %v4886_v21  ;;  %v1314_v24 = vadd.f32 %v1208_v63, %v8366_v18  ;;  %v1361_v44 = vadd.f32 1.0, %v6410_v59 }
 0x23c   :  { %6427 = vrcp.f32 %v1359_v23  ;;  %v1313_v52 = vadd.f32 %v1203_v4, %v8368_v51  ;;  %v5677_v13 = vpop.f32.mrb[14].mxu1 }
 0x23d   :  { %v6412_v46 = vpop.eup %6411  ;;  %6429 = vrcp.f32 %v1362_v29  ;;  %v4888_v22 = vmul.f32 -1.442695, %v1314_v24  ;;  %v1218_v42 = vadd.f32 %v5677_v13, %v11336_v55  ;;  %v1212_v10 = vpop.f32.mrb[15].mxu1  ;;  %v11338_v24 = vld [vmem:[#allocation125_spill] sm:$0xff] }
 0x23e   :  { %v1364_v45 = vadd.f32 1.0, %v6412_v46  ;;  %6431 = vpow2.f32 %v4885_v9  ;;  %v4887_v58 = vmul.f32 -1.442695, %v1313_v52  ;;  %v1213_v26 = vadd.f32 %v1212_v10, %v11337_v35  ;;  %v9338_v3 = vpop.eup %6413 }
 0x23f   :  { %6433 = vpow2.f32 %v4888_v22  ;;  %v1316_v23 = vadd.f32 %v1218_v42, %v8494_v60  ;;  %v6416_v21 = vpop.eup %6415  ;;  %v11339_v22 = vld [vmem:[#allocation126_spill] sm:$0xff] }
 0x240   :  { %6435 = vrcp.f32 %v1361_v44  ;;  %v1315_v63 = vadd.f32 %v1213_v26, %v8496_v1  ;;  %v5680_v59 = vpop.f32.mrb[16].mxu1  ;;  %v1363_v25 = vadd.f32 1.0, %v6416_v21 }
 0x241   :  { %v6418_v29 = vpop.eup %6417  ;;  %6437 = vpow2.f32 %v4887_v58  ;;  %v4890_v4 = vmul.f32 -1.442695, %v1316_v23  ;;  %v1228_v13 = vadd.f32 %v5680_v59, %v11338_v24  ;;  %v1222_v9 = vpop.f32.mrb[17].mxu1  ;;  %v11340_v23 = vld [vmem:[#allocation157_spill] sm:$0xff] }
 0x242   :  { %v9343_v52 = vpop.eup %6419  ;;  %6439 = vrcp.f32 %v1364_v45  ;;  %v1406_v46 = vadd.f32 1.0, %v6418_v29  ;;  %v4889_v55 = vmul.f32 -1.442695, %v1315_v63  ;;  %v1223_v10 = vadd.f32 %v1222_v9, %v11339_v22  ;;  %v11341_v29 = vld [vmem:[#allocation158_spill] sm:$0xff] }
 0x243   :  { %v9346_v42 = vpop.eup %6421  ;;  %6441 = vrcp.f32 %v1363_v25  ;;  %v1318_v58 = vadd.f32 %v1228_v13, %v8602_v5 }
 0x244   :  { %v6424_v44 = vpop.eup %6423  ;;  %6443 = vrcp.f32 %v1406_v46  ;;  %v5683_v35 = vpop.f32.mrb[18].mxu1  ;;  %v1317_v63 = vadd.f32 %v1223_v10, %v8604_v33  ;;  %v11343_v10 = vld [vmem:[#allocation188_spill] sm:$0xff] }
 0x245   :  { %v6426_v26 = vpop.eup %6425  ;;  %v1405_v21 = vadd.f32 1.0, %v6424_v44  ;;  %6445 = vpow2.f32 %v4890_v4  ;;  %v1238_v59 = vadd.f32 %v5683_v35, %v11340_v23  ;;  %v1232_v24 = vpop.f32.mrb[19].mxu1  ;;  %v11342_v35 = vld [vmem:[#allocation187_spill] sm:$0xff] }
 0x246   :  { %v9350_v1 = vpop.eup %6427  ;;  %v1408_v45 = vadd.f32 1.0, %v6426_v26  ;;  %6447 = vpow2.f32 %v4889_v55  ;;  %v1233_v9 = vadd.f32 %v1232_v24, %v11341_v29 }
 0x247   :  { %v9354_v25 = vpop.eup %6429  ;;  %6449 = vrcp.f32 %v1405_v21  ;;  %v1320_v13 = vadd.f32 %v1238_v59, %v8747_v16 }
 0x248   :  { %v6432_v46 = vpop.eup %6431  ;;  %6451 = vrcp.f32 %v1408_v45  ;;  %v5686_v22 = vpop.f32.mrb[20].mxu1  ;;  %v1319_v21 = vadd.f32 %v1233_v9, %v8749_v8 }
 0x249   :  { %v6434_v4 = vpop.eup %6433  ;;  %v1407_v44 = vadd.f32 1.0, %v6432_v46  ;;  %6453 = vtanh.f32 %v1318_v58  ;;  %v1248_v23 = vadd.f32 %v5686_v22, %v11342_v35  ;;  %v1242_v5 = vpop.f32.mrb[21].mxu1 }
 0x24a   :  { %v9358_v26 = vpop.eup %6435  ;;  %v1410_v55 = vadd.f32 1.0, %v6434_v4  ;;  %6455 = vtanh.f32 %v1317_v63  ;;  %v1243_v24 = vadd.f32 %v1242_v5, %v11343_v10  ;;  %v11344_v4 = vld [vmem:[#allocation217_spill] sm:$0xff] }
 0x24b   :  { %v6438_v29 = vpop.eup %6437  ;;  %6457 = vrcp.f32 %v1407_v44  ;;  %v1322_v58 = vadd.f32 %v1248_v23, %v8929_v39  ;;  %v11345_v44 = vld [vmem:[#allocation218_spill] sm:$0xff] }
 0x24c   :  { %v9362_v45 = vpop.eup %6439  ;;  %6459 = vrcp.f32 %v1410_v55  ;;  %v1409_v46 = vadd.f32 1.0, %v6438_v29  ;;  %v5689_v59 = vpop.f32.mrb[22].mxu1  ;;  %v1321_v22 = vadd.f32 %v1243_v24, %v8941_v38  ;;  %v11346_v24 = vld [vmem:[#allocation139_spill] sm:$0xff] }
 0x24d   :  { %v9365_v16 = vpop.eup %6441  ;;  %6461 = vtanh.f32 %v1320_v13  ;;  %v1258_v63 = vadd.f32 %v5689_v59, %v11344_v4  ;;  %v1252_v35 = vpop.f32.mrb[23].mxu1 }
 0x24e   :  { %v6444_v5 = vpop.eup %6443  ;;  %6463 = vrcp.f32 %v1409_v46  ;;  %v1253_v10 = vadd.f32 %v1252_v35, %v11345_v44  ;;  %v11347_v35 = vld [vmem:[#allocation140_spill] sm:$0xff] }
 0x24f   :  { %v6446_v9 = vpop.eup %6445  ;;  %6465 = vtanh.f32 %v1319_v21  ;;  %v1324_v23 = vadd.f32 %v1258_v63, %v9018_v41  ;;  %v1486_v46 = vmul.f32 %v6444_v5, %v9042_v2  ;;  %v11348_v5 = vld [vmem:[#allocation171_spill] sm:$0xff] }
 0x250   :  { %v6448_v8 = vpop.eup %6447  ;;  %v1412_v55 = vadd.f32 1.0, %v6446_v9  ;;  %6467 = vtanh.f32 %v1322_v58  ;;  %v5692_v29 = vpop.f32.mrb[24].mxu1  ;;  %v1323_v13 = vadd.f32 %v1253_v10, %v9026_v57 }
 0x251   :  { %v6450_v39 = vpop.eup %6449  ;;  %v1411_v33 = vadd.f32 1.0, %v6448_v8  ;;  %6469 = vtanh.f32 %v1321_v22  ;;  %v1268_v59 = vadd.f32 %v5692_v29, %v11346_v24  ;;  %v1262_v4 = vpop.f32.mrb[25].mxu1 }
 0x252   :  { %v6452_v38 = vpop.eup %6451  ;;  %6471 = vrcp.f32 %v1412_v55  ;;  %v1263_v21 = vadd.f32 %v1262_v4, %v11347_v35  ;;  %v1485_v58 = vmul.f32 %v6450_v39, %v9044_v11 }
 0x253   :  { %v6454_v44 = vpop.eup %6453  ;;  %6473 = vrcp.f32 %v1411_v33  ;;  %v1326_v63 = vadd.f32 %v1268_v59, %v8627_v49  ;;  %v1488_v33 = vmul.f32 %v6452_v38, %v9050_v53  ;;  %v11349_v59 = vld [vmem:[#allocation172_spill] sm:$0xff] }
 0x254   :  { %v6456_v9 = vpop.eup %6455  ;;  %v1494_v8 = vmul.f32 %v6454_v44, %v9338_v3  ;;  %6475 = vtanh.f32 %v1324_v23  ;;  %v1325_v22 = vadd.f32 %v1263_v21, %v8629_v50  ;;  %v5695_v10 = vpop.f32.mrb[26].mxu1 }
 0x255   :  { %v6458_v29 = vpop.eup %6457  ;;  %v1493_v24 = vmul.f32 %v6456_v9, %v9343_v52  ;;  %6477 = vtanh.f32 %v1323_v13  ;;  %v4892_v2 = vmul.f32 -1.442695, %v1326_v63  ;;  %v1278_v55 = vadd.f32 %v5695_v10, %v11348_v5  ;;  %v1272_v4 = vpop.f32.mrb[27].mxu1  ;;  %v11350_v10 = vld [vmem:[#allocation195_spill] sm:$0xff] }
 0x256   :  { %v6460_v35 = vpop.eup %6459  ;;  %v9382_v39 = vadd.f32 %v1494_v8, %v1486_v46  ;;  %v4891_v11 = vmul.f32 -1.442695, %v1325_v22  ;;  %v1273_v3 = vadd.f32 %v1272_v4, %v11349_v59  ;;  %v1487_v21 = vmul.f32 %v6458_v29, %v9057_v19 }
 0x257   :  { %v6462_v23 = vpop.eup %6461  ;;  %v9386_v44 = vadd.f32 %v1493_v24, %v1485_v58  ;;  %6479 = vpow2.f32 %v4892_v2  ;;  %v1328_v52 = vadd.f32 %v1278_v55, %v8785_v12  ;;  %v1490_v63 = vmul.f32 %v6460_v35, %v9061_v20 }
 0x258   :  { %v6464_v13 = vpop.eup %6463  ;;  %v1496_v9 = vmul.f32 %v6462_v23, %v9346_v42  ;;  %6481 = vpow2.f32 %v4891_v11  ;;  %v1327_v38 = vadd.f32 %v1273_v3, %v8787_v7  ;;  %v5698_v53 = vpop.f32.mrb[28].mxu1  ;;  %v11351_v42 = vld [vmem:[#allocation196_spill] sm:$0xff] }
 0x259   :  { %v6466_v46 = vpop.eup %6465  ;;  %v1489_v8 = vmul.f32 %v6464_v13, %v9065_v61  ;;  %v4894_v22 = vmul.f32 -1.442695, %v1328_v52  ;;  %v1288_v19 = vadd.f32 %v5698_v53, %v11350_v10  ;;  %v1282_v58 = vpop.f32.mrb[29].mxu1  ;;  %6483 = vtanh.f32 %v9386_v44 }
 0x25a   :  { %v6468_v29 = vpop.eup %6467  ;;  %v9395_v24 = vadd.f32 %v1496_v9, %v1488_v33  ;;  %v1495_v20 = vmul.f32 %v6466_v46, %v9350_v1  ;;  %v4893_v2 = vmul.f32 -1.442695, %v1327_v38  ;;  %v1283_v5 = vadd.f32 %v1282_v58, %v11351_v42  ;;  %v11352_v9 = vld [vmem:[#allocation219_spill] sm:$0xff] }
 0x25b   :  { %v6470_v55 = vpop.eup %6469  ;;  %v1498_v4 = vmul.f32 %v6468_v29, %v9354_v25  ;;  %6485 = vpow2.f32 %v4894_v22  ;;  %v1330_v61 = vadd.f32 %v1288_v19, %v8984_v31 }
 0x25c   :  { %v6472_v35 = vpop.eup %6471  ;;  %v9401_v11 = vadd.f32 %v1495_v20, %v1487_v21  ;;  %v1497_v59 = vmul.f32 %v6470_v55, %v9358_v26  ;;  %6487 = vpow2.f32 %v4893_v2  ;;  %v1329_v33 = vadd.f32 %v1283_v5, %v8993_v32  ;;  %v5701_v3 = vpop.f32.mrb[30].mxu1  ;;  %v11353_v26 = vld [vmem:[#allocation220_spill] sm:$0xff] }
 0x25d   :  { %v6474_v23 = vpop.eup %6473  ;;  %v1492_v1 = vmul.f32 %v6472_v35, %v9073_v62  ;;  %v9406_v52 = vadd.f32 %v1498_v4, %v1490_v63  ;;  %v4896_v13 = vmul.f32 -1.442695, %v1330_v61  ;;  %v1298_v25 = vadd.f32 %v5701_v3, %v11352_v9  ;;  %v1292_v38 = vpop.f32.mrb[31].mxu1 }
 0x25e   :  { %v6476_v53 = vpop.eup %6475  ;;  %v1491_v46 = vmul.f32 %v6474_v23, %v9076_v30  ;;  %v9410_v21 = vadd.f32 %v1497_v59, %v1489_v8  ;;  %v4895_v22 = vmul.f32 -1.442695, %v1329_v33  ;;  %v1293_v10 = vadd.f32 %v1292_v38, %v11353_v26 }
 0x25f   :  { %v6478_v19 = vpop.eup %6477  ;;  %v1500_v58 = vmul.f32 %v6476_v53, %v9362_v45  ;;  %6489 = vpow2.f32 %v4896_v13  ;;  %v1332_v62 = vadd.f32 %v1298_v25, %v9063_v37 }
 0x260   :  { %v1499_v63 = vmul.f32 %v6478_v19, %v9365_v16  ;;  %6491 = vpow2.f32 %v4895_v22  ;;  %v1331_v29 = vadd.f32 %v1293_v10, %v9067_v40 }
 0x261   :  { %v6480_v20 = vpop.eup %6479  ;;  %v9417_v2 = vadd.f32 %v1500_v58, %v1492_v1  ;;  %v4898_v30 = vmul.f32 -1.442695, %v1332_v62  ;;  %6493 = vtanh.f32 %v9382_v39 }
 0x262   :  { %v6482_v8 = vpop.eup %6481  ;;  %v9420_v42 = vadd.f32 %v1499_v63, %v1491_v46  ;;  %v1462_v5 = vadd.f32 1.0, %v6480_v20  ;;  %v4897_v55 = vmul.f32 -1.442695, %v1331_v29  ;;  %6495 = vtanh.f32 %v9401_v11 }
 0x263   :  { %v6484_v45 = vpop.eup %6483  ;;  %v1461_v4 = vadd.f32 1.0, %v6482_v8  ;;  %6497 = vpow2.f32 %v4898_v30 }
 0x264   :  { %6499 = vrcp.f32 %v1462_v5 }
 0x265   :  { %v6486_v16 = vpop.eup %6485  ;;  %6501 = vrcp.f32 %v1461_v4 }
 0x266   :  { %v6488_v61 = vpop.eup %6487  ;;  %v1464_v35 = vadd.f32 1.0, %v6486_v16  ;;  %6503 = vpow2.f32 %v4897_v55 }
 0x267   :  { %v1463_v59 = vadd.f32 1.0, %v6488_v61  ;;  %6505 = vtanh.f32 %v9395_v24 }
 0x268   :  { %6507 = vrcp.f32 %v1464_v35 }
 0x269   :  { %v6490_v33 = vpop.eup %6489  ;;  %6509 = vrcp.f32 %v1463_v59 }
 0x26a   :  { %v6492_v3 = vpop.eup %6491  ;;  %v1466_v23 = vadd.f32 1.0, %v6490_v33  ;;  %6511 = vtanh.f32 %v9410_v21 }
 0x26b   :  { %v6494_v1 = vpop.eup %6493  ;;  %v1465_v13 = vadd.f32 1.0, %v6492_v3  ;;  %6513 = vtanh.f32 %v9406_v52 }
 0x26c   :  { %v6496_v9 = vpop.eup %6495  ;;  %6515 = vrcp.f32 %v1466_v23 }
 0x26d   :  { %v6498_v25 = vpop.eup %6497  ;;  %6517 = vrcp.f32 %v1465_v13 }
 0x26e   :  { %v6500_v38 = vpop.eup %6499  ;;  %v1468_v53 = vadd.f32 1.0, %v6498_v25 }
 0x26f   :  { %v6502_v46 = vpop.eup %6501  ;;  %v1518_v22 = vmul.f32 %v6500_v38, %v6494_v1  ;;  %v11365_v38 = vld [vmem:[#allocation258_spill] sm:$0xff] }
 0x270   :  { %v6504_v26 = vpop.eup %6503  ;;  %6519 = vrcp.f32 %v1468_v53  ;;  %v1517_v10 = vmul.f32 %v6502_v46, %v6484_v45  ;;  %v11366_v53 = vld [vmem:[#allocation259_spill] sm:$0xff]  ;;  %v11367_v46 = vld [vmem:[#allocation260_spill] sm:$0xff] }
 0x271   :  { %v6506_v19 = vpop.eup %6505  ;;  %v1467_v58 = vadd.f32 1.0, %v6504_v26  ;;  %6521 = vtanh.f32 %v9417_v2  ;;  %v11369_v26 = vld [vmem:[#allocation262_spill] sm:$0xff] }
 0x272   :  { %v6508_v62 = vpop.eup %6507  ;;  %v6142_v63 = vpack.c.bf16 %v1518_v22, %v1517_v10  ;;  %6523 = vtanh.f32 %v9420_v42  ;;  %v11368_v22 = vld [vmem:[#allocation261_spill] sm:$0xff]  ;;  %v11370_v10 = vld [vmem:[#allocation263_spill] sm:$0xff] }
 0x273   :  { %v6510_v29 = vpop.eup %6509  ;;  %6525 = vrcp.f32 %v1467_v58  ;;  %v1520_v20 = vmul.f32 %v6508_v62, %v6506_v19  ;;  %v11371_v19 = vld [vmem:[#allocation264_spill] sm:$0xff]  ;;  %v11372_v58 = vld [vmem:[#allocation265_spill] sm:$0xff]  ;;  %v11373_v62 = vld [vmem:[#allocation266_spill] sm:$0xff] }
 0x274   :  { %v6512_v30 = vpop.eup %6511  ;;  %6143 = vmatprep.subr.bf16.mxu0 %v6142_v63  ;;  %v1519_v8 = vmul.f32 %v6510_v29, %v6496_v9  ;;  %v11364_v9 = vld [vmem:[#allocation257_spill] sm:$0xff]  ;;  %v11375_v29 = vld [vmem:[#allocation268_spill] sm:$0xff] }
 0x275   :  { %v6514_v5 = vpop.eup %6513  ;;  %6145 = vmatpush3.bf16.msra.mxu0 %v6142_v63  ;;  %v11374_v63 = vld [vmem:[#allocation267_spill] sm:$0xff] }
 0x276   :  { %v6516_v55 = vpop.eup %6515  ;;  %v6146_v4 = vpack.c.bf16 %v1520_v20, %v1519_v8 }
 0x277   :  { %v6518_v16 = vpop.eup %6517  ;;  %v1522_v45 = vmul.f32 %v6516_v55, %v6514_v5  ;;  %v11377_v55 = vld [vmem:[#allocation4_spill] sm:$0xff] }
 0x278   :  { %6147 = vmatprep.subr.bf16.mxu0 %v6146_v4  ;;  %v1521_v61 = vmul.f32 %v6518_v16, %v6512_v30  ;;  %v11376_v30 = vld [vmem:[#allocation16_spill] sm:$0xff]  ;;  %v11378_v16 = vld [vmem:[#allocation50_spill] sm:$0xff] }
 0x279   :  { %6149 = vmatpush3.bf16.msra.mxu0 %v6146_v4 }
 0x27a   :  { %v6520_v35 = vpop.eup %6519  ;;  %v6150_v59 = vpack.c.bf16 %v1522_v45, %v1521_v61  ;;  %v11379_v61 = vld [vmem:[#allocation51_spill] sm:$0xff] }
 0x27b   :  { %v6522_v33 = vpop.eup %6521 }
 0x27c   :  { %v6524_v3 = vpop.eup %6523  ;;  %6151 = vmatprep.subr.bf16.mxu0 %v6150_v59  ;;  %v1524_v23 = vmul.f32 %v6522_v33, %v6520_v35 }
 0x27d   :  { %v6526_v1 = vpop.eup %6525  ;;  %6153 = vmatpush3.bf16.msra.mxu0 %v6150_v59 }
 0x27e   :  { %v1523_v13 = vmul.f32 %v6526_v1, %v6524_v3  ;;  %v11380_v3 = vld [vmem:[#allocation29_spill] sm:$0xff] }
 0x280   :  { %v6154_v25 = vpack.c.bf16 %v1524_v23, %v1523_v13 }
 0x282   :  { %6155 = vmatprep.subr.bf16.mxu0 %v6154_v25 }
 0x283   :  { %6157 = vmatpush3.bf16.msra.mxu0 %v6154_v25  ;;  %v11381_v25 = vld [vmem:[#allocation30_spill] sm:$0xff] }
 0x286   :  { %5719 = vmatmul.mubr.msk.f32.vlgmr.msra.gmra.mrb[32].mxu0 %vm330_vm0, %v9087_v56  ;;  %v11354_v56 = vld [vmem:[#allocation247_spill] sm:$0xff] }
 0x287   :  { %5721 = vmatprep.mubr.msk.f32.mxu0 %vm330_vm0, %v9094_v28  ;;  %v11355_v28 = vld [vmem:[#allocation248_spill] sm:$0xff] }
 0x28a   :  { %5722 = vmatmul.mubr.msk.f32.gmra.mrb[34].mxu0 %vm330_vm0, %v9101_v6  ;;  %v11356_v6 = vld [vmem:[#allocation249_spill] sm:$0xff] }
 0x28b   :  { %5724 = vmatprep.mubr.msk.f32.mxu0 %vm330_vm0, %v9108_v14  ;;  %v11357_v14 = vld [vmem:[#allocation250_spill] sm:$0xff] }
 0x28e   :  { %5725 = vmatmul.mubr.msk.f32.gmra.mrb[36].mxu0 %vm330_vm0, %v9115_v17  ;;  %v11358_v17 = vld [vmem:[#allocation251_spill] sm:$0xff] }
 0x28f   :  { %5727 = vmatprep.mubr.msk.f32.mxu0 %vm330_vm0, %v9122_v36  ;;  %v11359_v36 = vld [vmem:[#allocation252_spill] sm:$0xff] }
 0x292   :  { %5728 = vmatmul.mubr.msk.f32.gmra.mrb[38].mxu0 %vm330_vm0, %v9129_v47  ;;  %v11360_v47 = vld [vmem:[#allocation253_spill] sm:$0xff] }
 0x293   :  { %5730 = vmatprep.mubr.msk.f32.mxu0 %vm330_vm0, %v9136_v15  ;;  %v11361_v15 = vld [vmem:[#allocation254_spill] sm:$0xff] }
 0x296   :  { %5731 = vmatmul.mubr.msk.f32.gmra.mrb[40].mxu0 %vm330_vm0, %v9143_v0  ;;  %v11362_v0 = vld [vmem:[#allocation255_spill] sm:$0xff] }
 0x297   :  { %5733 = vmatprep.mubr.msk.f32.mxu0 %vm330_vm0, %v9150_v27  ;;  %v11363_v27 = vld [vmem:[#allocation256_spill] sm:$0xff] }
 0x29a   :  { %5734 = vmatmul.mubr.msk.f32.gmra.mrb[42].mxu0 %vm330_vm0, %v11354_v56 }
 0x29b   :  { %5736 = vmatprep.mubr.msk.f32.mxu0 %vm330_vm0, %v11355_v28  ;;  %v11382_v28 = vld [vmem:[#allocation85_spill] sm:$0xff] }
 0x29e   :  { %5737 = vmatmul.mubr.msk.f32.gmra.mrb[44].mxu0 %vm330_vm0, %v11356_v6 }
 0x29f   :  { %5739 = vmatprep.mubr.msk.f32.mxu0 %vm330_vm0, %v11357_v14  ;;  %v11383_v14 = vld [vmem:[#allocation86_spill] sm:$0xff] }
 0x2a2   :  { %5740 = vmatmul.mubr.msk.f32.gmra.mrb[46].mxu0 %vm330_vm0, %v11358_v17 }
 0x2a3   :  { %5742 = vmatprep.mubr.msk.f32.mxu0 %vm330_vm0, %v11359_v36 }
 0x2a6   :  { %5743 = vmatmul.mubr.msk.f32.gmra.mrb[48].mxu0 %vm330_vm0, %v11360_v47 }
 0x2a7   :  { %5745 = vmatprep.mubr.msk.f32.mxu0 %vm330_vm0, %v11361_v15  ;;  %v11384_v15 = vld [vmem:[#allocation63_spill] sm:$0xff] }
 0x2aa   :  { %5746 = vmatmul.mubr.msk.f32.gmra.mrb[50].mxu0 %vm330_vm0, %v11362_v0 }
 0x2ab   :  { %5748 = vmatprep.mubr.msk.f32.mxu0 %vm330_vm0, %v11363_v27 }
 0x2ae   :  { %5749 = vmatmul.mubr.msk.f32.gmra.mrb[52].mxu0 %vm330_vm0, %v11364_v9 }
 0x2af   :  { %5751 = vmatprep.mubr.msk.f32.mxu0 %vm330_vm0, %v11365_v38  ;;  %v11385_v38 = vld [vmem:[#allocation64_spill] sm:$0xff] }
 0x2b2   :  { %5752 = vmatmul.mubr.msk.f32.gmra.mrb[54].mxu0 %vm330_vm0, %v11366_v53 }
 0x2b3   :  { %5754 = vmatprep.mubr.msk.f32.mxu0 %vm330_vm0, %v11367_v46  ;;  %v11386_v46 = vld [vmem:[#allocation117_spill] sm:$0xff] }
 0x2b6   :  { %5755 = vmatmul.mubr.msk.f32.gmra.mrb[56].mxu0 %vm330_vm0, %v11368_v22 }
 0x2b7   :  { %5757 = vmatprep.mubr.msk.f32.mxu0 %vm330_vm0, %v11369_v26  ;;  %v11387_v26 = vld [vmem:[#allocation118_spill] sm:$0xff] }
 0x2ba   :  { %5758 = vmatmul.mubr.msk.f32.gmra.mrb[58].mxu0 %vm330_vm0, %v11370_v10 }
 0x2bb   :  { %5760 = vmatprep.mubr.msk.f32.mxu0 %vm330_vm0, %v11371_v19 }
 0x2be   :  { %5761 = vmatmul.mubr.msk.f32.gmra.mrb[60].mxu0 %vm330_vm0, %v11372_v58 }
 0x2bf   :  { %5763 = vmatprep.mubr.msk.f32.mxu0 %vm330_vm0, %v11373_v62  ;;  %v11388_v62 = vld [vmem:[#allocation95_spill] sm:$0xff] }
 0x2c2   :  { %5764 = vmatmul.mubr.msk.f32.gmra.mrb[62].mxu0 %vm330_vm0, %v11374_v63 }
 0x2c3   :  { %5846 = vmatprep.mubr.msk.f32.mxu0 %vm330_vm0, %v11375_v29 }
 0x359   :  { %v5720_v20 = vpop.f32.mrb[32].mxu0 }
 0x35a   :  { %v1637_v8 = vadd.f32 %v5720_v20, %v11376_v30  ;;  %v1631_v5 = vpop.f32.mrb[33].mxu0  ;;  %v11389_v30 = vld [vmem:[#allocation96_spill] sm:$0xff] }
 0x35b   :  { %v1632_v4 = vadd.f32 %v1631_v5, %v11377_v55  ;;  %v11390_v5 = vld [vmem:[#allocation149_spill] sm:$0xff] }
 0x35c   :  { %v1791_v45 = vadd.f32 %v1637_v8, %v11378_v16 }
 0x35d   :  { %v1790_v35 = vadd.f32 %v1632_v4, %v11379_v61  ;;  %v5723_v59 = vpop.f32.mrb[34].mxu0  ;;  %v11391_v4 = vld [vmem:[#allocation150_spill] sm:$0xff] }
 0x35e   :  { %v4934_v33 = vmul.f32 -1.442695, %v1791_v45  ;;  %v1647_v23 = vadd.f32 %v5723_v59, %v11380_v3  ;;  %v1641_v1 = vpop.f32.mrb[35].mxu0  ;;  %v11392_v3 = vld [vmem:[#allocation17_spill] sm:$0xff] }
 0x35f   :  { %v4933_v13 = vmul.f32 -1.442695, %v1790_v35  ;;  %v1642_v56 = vadd.f32 %v1641_v1, %v11381_v25 }
 0x360   :  { %6527 = vpow2.f32 %v4934_v33  ;;  %v1793_v6 = vadd.f32 %v1647_v23, %v11382_v28 }
 0x361   :  { %6529 = vpow2.f32 %v4933_v13  ;;  %v1792_v17 = vadd.f32 %v1642_v56, %v11383_v14  ;;  %v5726_v36 = vpop.f32.mrb[36].mxu0 }
 0x362   :  { %v4936_v47 = vmul.f32 -1.442695, %v1793_v6  ;;  %v1657_v0 = vadd.f32 %v5726_v36, %v11384_v15  ;;  %v1651_v27 = vpop.f32.mrb[37].mxu0  ;;  %v11393_v6 = vld [vmem:[#allocation5_spill] sm:$0xff] }
 0x363   :  { %v4935_v9 = vmul.f32 -1.442695, %v1792_v17  ;;  %v1652_v53 = vadd.f32 %v1651_v27, %v11385_v38  ;;  %v11394_v38 = vld [vmem:[#allocation42_spill] sm:$0xff] }
 0x364   :  { %6531 = vpow2.f32 %v4936_v47  ;;  %v1795_v22 = vadd.f32 %v1657_v0, %v11386_v46 }
 0x365   :  { %6533 = vpow2.f32 %v4935_v9  ;;  %v1794_v10 = vadd.f32 %v1652_v53, %v11387_v26  ;;  %v5729_v19 = vpop.f32.mrb[38].mxu0 }
 0x366   :  { %v4938_v58 = vmul.f32 -1.442695, %v1795_v22  ;;  %v1667_v63 = vadd.f32 %v5729_v19, %v11388_v62  ;;  %v1661_v29 = vpop.f32.mrb[39].mxu0  ;;  %v11395_v62 = vld [vmem:[#allocation43_spill] sm:$0xff] }
 0x367   :  { %v4937_v20 = vmul.f32 -1.442695, %v1794_v10  ;;  %v1662_v8 = vadd.f32 %v1661_v29, %v11389_v30 }
 0x368   :  { %6535 = vpow2.f32 %v4938_v58  ;;  %v1797_v55 = vadd.f32 %v1667_v63, %v11390_v5 }
 0x369   :  { %6537 = vpow2.f32 %v4937_v20  ;;  %v1796_v45 = vadd.f32 %v1662_v8, %v11391_v4  ;;  %v5732_v35 = vpop.f32.mrb[40].mxu0 }
 0x36a   :  { %v6528_v59 = vpop.eup %6527  ;;  %v4940_v33 = vmul.f32 -1.442695, %v1797_v55  ;;  %v1677_v23 = vadd.f32 %v5732_v35, %v11392_v3  ;;  %v1671_v1 = vpop.f32.mrb[41].mxu0  ;;  %v11396_v35 = vld [vmem:[#allocation77_spill] sm:$0xff] }
 0x36b   :  { %v6530_v13 = vpop.eup %6529  ;;  %v1847_v25 = vadd.f32 1.0, %v6528_v59  ;;  %v4939_v56 = vmul.f32 -1.442695, %v1796_v45  ;;  %v1672_v17 = vadd.f32 %v1671_v1, %v11393_v6 }
 0x36c   :  { %6539 = vpow2.f32 %v4940_v33  ;;  %v1799_v36 = vadd.f32 %v1677_v23, %v11330_v34  ;;  %v1846_v47 = vadd.f32 1.0, %v6530_v13  ;;  %v11397_v13 = vld [vmem:[#allocation78_spill] sm:$0xff] }
 0x36d   :  { %v1798_v15 = vadd.f32 %v1672_v17, %v11331_v43  ;;  %v5735_v0 = vpop.f32.mrb[42].mxu0  ;;  %6541 = vrcp.f32 %v1847_v25 }
 0x36e   :  { %v6532_v27 = vpop.eup %6531  ;;  %v4942_v9 = vmul.f32 -1.442695, %v1799_v36  ;;  %v1687_v53 = vadd.f32 %v5735_v0, %v11394_v38  ;;  %v1681_v22 = vpop.f32.mrb[43].mxu0  ;;  %6543 = vpow2.f32 %v4939_v56  ;;  %v11398_v0 = vld [vmem:[#allocation109_spill] sm:$0xff] }
 0x36f   :  { %v6534_v10 = vpop.eup %6533  ;;  %v1849_v19 = vadd.f32 1.0, %v6532_v27  ;;  %v4941_v58 = vmul.f32 -1.442695, %v1798_v15  ;;  %v1682_v63 = vadd.f32 %v1681_v22, %v11395_v62  ;;  %v11399_v22 = vld [vmem:[#allocation110_spill] sm:$0xff] }
 0x370   :  { %6545 = vpow2.f32 %v4942_v9  ;;  %v1801_v29 = vadd.f32 %v1687_v53, %v8238_v54  ;;  %v1848_v20 = vadd.f32 1.0, %v6534_v10 }
 0x371   :  { %6547 = vrcp.f32 %v1846_v47  ;;  %v1800_v30 = vadd.f32 %v1682_v63, %v8240_v48  ;;  %v5738_v8 = vpop.f32.mrb[44].mxu0  ;;  %v11400_v63 = vld [vmem:[#allocation156_spill] sm:$0xff] }
 0x372   :  { %v6536_v55 = vpop.eup %6535  ;;  %6549 = vrcp.f32 %v1849_v19  ;;  %v4944_v45 = vmul.f32 -1.442695, %v1801_v29  ;;  %v1697_v59 = vadd.f32 %v5738_v8, %v11396_v35  ;;  %v1691_v33 = vpop.f32.mrb[45].mxu0 }
 0x373   :  { %v6538_v3 = vpop.eup %6537  ;;  %v1851_v23 = vadd.f32 1.0, %v6536_v55  ;;  %6551 = vpow2.f32 %v4941_v58  ;;  %v4943_v1 = vmul.f32 -1.442695, %v1800_v30  ;;  %v1692_v25 = vadd.f32 %v1691_v33, %v11397_v13 }
 0x374   :  { %6553 = vpow2.f32 %v4944_v45  ;;  %v1803_v56 = vadd.f32 %v1697_v59, %v8366_v18  ;;  %v1850_v6 = vadd.f32 1.0, %v6538_v3  ;;  %v11401_v45 = vld [vmem:[#allocation127_spill] sm:$0xff] }
 0x375   :  { %6555 = vrcp.f32 %v1848_v20  ;;  %v1802_v17 = vadd.f32 %v1692_v25, %v8368_v51  ;;  %v5741_v36 = vpop.f32.mrb[46].mxu0 }
 0x376   :  { %v6540_v47 = vpop.eup %6539  ;;  %6557 = vrcp.f32 %v1851_v23  ;;  %v4946_v15 = vmul.f32 -1.442695, %v1803_v56  ;;  %v1707_v27 = vadd.f32 %v5741_v36, %v11398_v0  ;;  %v1701_v9 = vpop.f32.mrb[47].mxu0  ;;  %v11404_v0 = vld [vmem:[#allocation159_spill] sm:$0xff] }
 0x377   :  { %v1853_v38 = vadd.f32 1.0, %v6540_v47  ;;  %6559 = vpow2.f32 %v4943_v1  ;;  %v4945_v53 = vmul.f32 -1.442695, %v1802_v17  ;;  %v1702_v10 = vadd.f32 %v1701_v9, %v11399_v22  ;;  %v9522_v19 = vpop.eup %6541  ;;  %v11402_v1 = vld [vmem:[#allocation128_spill] sm:$0xff]  ;;  %v11403_v47 = vld [vmem:[#allocation181_spill] sm:$0xff]  ;;  %v11405_v22 = vld [vmem:[#allocation182_spill] sm:$0xff] }
 0x378   :  { %6561 = vpow2.f32 %v4946_v15  ;;  %v1805_v58 = vadd.f32 %v1707_v27, %v8494_v60  ;;  %v6544_v62 = vpop.eup %6543 }
 0x379   :  { %6563 = vrcp.f32 %v1850_v6  ;;  %v1804_v29 = vadd.f32 %v1702_v10, %v11400_v63  ;;  %v5744_v20 = vpop.f32.mrb[48].mxu0  ;;  %v1852_v8 = vadd.f32 1.0, %v6544_v62 }
 0x37a   :  { %v6546_v30 = vpop.eup %6545  ;;  %6565 = vpow2.f32 %v4945_v53  ;;  %v4948_v55 = vmul.f32 -1.442695, %v1805_v58  ;;  %v1717_v35 = vadd.f32 %v5744_v20, %v11401_v45  ;;  %v1711_v59 = vpop.f32.mrb[49].mxu0  ;;  %v11406_v58 = vld [vmem:[#allocation160_spill] sm:$0xff]  ;;  %v11407_v45 = vld [vmem:[#allocation199_spill] sm:$0xff] }
 0x37b   :  { %v9527_v33 = vpop.eup %6547  ;;  %6567 = vrcp.f32 %v1853_v38  ;;  %v1895_v3 = vadd.f32 1.0, %v6546_v30  ;;  %v4947_v23 = vmul.f32 -1.442695, %v1804_v29  ;;  %v1712_v13 = vadd.f32 %v1711_v59, %v11402_v1  ;;  %v11408_v59 = vld [vmem:[#allocation189_spill] sm:$0xff] }
 0x37c   :  { %v9530_v25 = vpop.eup %6549  ;;  %6569 = vrcp.f32 %v1852_v8  ;;  %v1807_v15 = vadd.f32 %v1717_v35, %v11403_v47 }
 0x37d   :  { %v6552_v56 = vpop.eup %6551  ;;  %6571 = vrcp.f32 %v1895_v3  ;;  %v5747_v6 = vpop.f32.mrb[50].mxu0  ;;  %v1806_v10 = vadd.f32 %v1712_v13, %v11405_v22  ;;  %v11409_v13 = vld [vmem:[#allocation190_spill] sm:$0xff] }
 0x37e   :  { %v6554_v17 = vpop.eup %6553  ;;  %v1894_v36 = vadd.f32 1.0, %v6552_v56  ;;  %6573 = vpow2.f32 %v4948_v55  ;;  %v1727_v27 = vadd.f32 %v5747_v6, %v11404_v0  ;;  %v1721_v9 = vpop.f32.mrb[51].mxu0 }
 0x37f   :  { %v9534_v53 = vpop.eup %6555  ;;  %v1897_v38 = vadd.f32 1.0, %v6554_v17  ;;  %6575 = vpow2.f32 %v4947_v23  ;;  %v1722_v62 = vadd.f32 %v1721_v9, %v11406_v58 }
 0x380   :  { %v9538_v29 = vpop.eup %6557  ;;  %6577 = vrcp.f32 %v1894_v36  ;;  %v1809_v35 = vadd.f32 %v1727_v27, %v11407_v45  ;;  %v11410_v36 = vld [vmem:[#allocation200_spill] sm:$0xff] }
 0x381   :  { %v6560_v20 = vpop.eup %6559  ;;  %6579 = vrcp.f32 %v1897_v38  ;;  %v5750_v30 = vpop.f32.mrb[52].mxu0  ;;  %v1808_v0 = vadd.f32 %v1722_v62, %v11410_v36 }
 0x382   :  { %v6562_v8 = vpop.eup %6561  ;;  %v1896_v55 = vadd.f32 1.0, %v6560_v20  ;;  %6581 = vtanh.f32 %v1807_v15  ;;  %v1737_v3 = vadd.f32 %v5750_v30, %v11408_v59  ;;  %v1731_v1 = vpop.f32.mrb[53].mxu0  ;;  %v11411_v15 = vld [vmem:[#allocation230_spill] sm:$0xff]  ;;  %v11412_v30 = vld [vmem:[#allocation233_spill] sm:$0xff] }
 0x383   :  { %v9542_v56 = vpop.eup %6563  ;;  %v1899_v23 = vadd.f32 1.0, %v6562_v8  ;;  %6583 = vtanh.f32 %v1806_v10  ;;  %v1732_v6 = vadd.f32 %v1731_v1, %v11409_v13  ;;  %v11413_v8 = vld [vmem:[#allocation221_spill] sm:$0xff] }
 0x384   :  { %v6566_v17 = vpop.eup %6565  ;;  %6585 = vrcp.f32 %v1896_v55  ;;  %v1811_v58 = vadd.f32 %v1737_v3, %v11411_v15  ;;  %v11414_v55 = vld [vmem:[#allocation222_spill] sm:$0xff] }
 0x385   :  { %v9546_v9 = vpop.eup %6567  ;;  %6587 = vrcp.f32 %v1899_v23  ;;  %v1898_v38 = vadd.f32 1.0, %v6566_v17  ;;  %v5753_v27 = vpop.f32.mrb[54].mxu0  ;;  %v1810_v59 = vadd.f32 %v1732_v6, %v11412_v30  ;;  %v11415_v6 = vld [vmem:[#allocation141_spill] sm:$0xff] }
 0x386   :  { %v9549_v20 = vpop.eup %6569  ;;  %6589 = vtanh.f32 %v1809_v35  ;;  %v1747_v10 = vadd.f32 %v5753_v27, %v11413_v8  ;;  %v1741_v45 = vpop.f32.mrb[55].mxu0 }
 0x387   :  { %v6572_v1 = vpop.eup %6571  ;;  %6591 = vrcp.f32 %v1898_v38  ;;  %v1742_v13 = vadd.f32 %v1741_v45, %v11414_v55  ;;  %v11416_v45 = vld [vmem:[#allocation142_spill] sm:$0xff] }
 0x388   :  { %v6574_v62 = vpop.eup %6573  ;;  %6593 = vtanh.f32 %v1808_v0  ;;  %v1813_v3 = vadd.f32 %v1747_v10, %v9018_v41  ;;  %v1975_v38 = vmul.f32 %v6572_v1, %v9382_v39  ;;  %v11417_v1 = vld [vmem:[#allocation173_spill] sm:$0xff] }
 0x389   :  { %v6576_v36 = vpop.eup %6575  ;;  %v1901_v23 = vadd.f32 1.0, %v6574_v62  ;;  %6595 = vtanh.f32 %v1811_v58  ;;  %v5756_v17 = vpop.f32.mrb[56].mxu0  ;;  %v1812_v35 = vadd.f32 %v1742_v13, %v9026_v57 }
 0x38a   :  { %v6578_v15 = vpop.eup %6577  ;;  %v1900_v22 = vadd.f32 1.0, %v6576_v36  ;;  %6597 = vtanh.f32 %v1810_v59  ;;  %v1757_v27 = vadd.f32 %v5756_v17, %v11415_v6  ;;  %v1751_v8 = vpop.f32.mrb[57].mxu0 }
 0x38b   :  { %v6580_v30 = vpop.eup %6579  ;;  %6599 = vrcp.f32 %v1901_v23  ;;  %v1752_v0 = vadd.f32 %v1751_v8, %v11416_v45  ;;  %v1974_v58 = vmul.f32 %v6578_v15, %v9386_v44 }
 0x38c   :  { %v6582_v55 = vpop.eup %6581  ;;  %6601 = vrcp.f32 %v1900_v22  ;;  %v1815_v10 = vadd.f32 %v1757_v27, %v8627_v49  ;;  %v1977_v44 = vmul.f32 %v6580_v30, %v9395_v24  ;;  %v11418_v27 = vld [vmem:[#allocation174_spill] sm:$0xff] }
 0x38d   :  { %v6584_v62 = vpop.eup %6583  ;;  %v1983_v36 = vmul.f32 %v6582_v55, %v9522_v19  ;;  %6603 = vtanh.f32 %v1813_v3  ;;  %v1814_v59 = vadd.f32 %v1752_v0, %v8629_v50  ;;  %v5759_v13 = vpop.f32.mrb[58].mxu0 }
 0x38e   :  { %v6586_v17 = vpop.eup %6585  ;;  %v1982_v6 = vmul.f32 %v6584_v62, %v9527_v33  ;;  %6605 = vtanh.f32 %v1812_v35  ;;  %v4950_v39 = vmul.f32 -1.442695, %v1815_v10  ;;  %v1767_v23 = vadd.f32 %v5759_v13, %v11417_v1  ;;  %v1761_v8 = vpop.f32.mrb[59].mxu0  ;;  %v11419_v13 = vld [vmem:[#allocation197_spill] sm:$0xff] }
 0x38f   :  { %v6588_v45 = vpop.eup %6587  ;;  %v9566_v22 = vadd.f32 %v1983_v36, %v1975_v38  ;;  %v4949_v15 = vmul.f32 -1.442695, %v1814_v59  ;;  %v1762_v19 = vadd.f32 %v1761_v8, %v11418_v27  ;;  %v1976_v0 = vmul.f32 %v6586_v17, %v9401_v11 }
 0x390   :  { %v6590_v3 = vpop.eup %6589  ;;  %v9570_v55 = vadd.f32 %v1982_v6, %v1974_v58  ;;  %6607 = vpow2.f32 %v4950_v39  ;;  %v1817_v33 = vadd.f32 %v1767_v23, %v8785_v12  ;;  %v1979_v10 = vmul.f32 %v6588_v45, %v9406_v52 }
 0x391   :  { %v6592_v35 = vpop.eup %6591  ;;  %v1985_v62 = vmul.f32 %v6590_v3, %v9530_v25  ;;  %6609 = vpow2.f32 %v4949_v15  ;;  %v1816_v24 = vadd.f32 %v1762_v19, %v8787_v7  ;;  %v5762_v30 = vpop.f32.mrb[60].mxu0  ;;  %v11420_v25 = vld [vmem:[#allocation198_spill] sm:$0xff] }
 0x392   :  { %v6594_v38 = vpop.eup %6593  ;;  %v1978_v36 = vmul.f32 %v6592_v35, %v9410_v21  ;;  %v4952_v59 = vmul.f32 -1.442695, %v1817_v33  ;;  %v1777_v11 = vadd.f32 %v5762_v30, %v11419_v13  ;;  %v1771_v58 = vpop.f32.mrb[61].mxu0  ;;  %6611 = vtanh.f32 %v9570_v55 }
 0x393   :  { %v6596_v17 = vpop.eup %6595  ;;  %v9579_v6 = vadd.f32 %v1985_v62, %v1977_v44  ;;  %v1984_v52 = vmul.f32 %v6594_v38, %v9534_v53  ;;  %v4951_v39 = vmul.f32 -1.442695, %v1816_v24  ;;  %v1772_v1 = vadd.f32 %v1771_v58, %v11420_v25  ;;  %v11421_v62 = vld [vmem:[#allocation223_spill] sm:$0xff] }
 0x394   :  { %v6598_v23 = vpop.eup %6597  ;;  %v1987_v8 = vmul.f32 %v6596_v17, %v9538_v29  ;;  %6613 = vpow2.f32 %v4952_v59  ;;  %v1819_v21 = vadd.f32 %v1777_v11, %v8984_v31 }
 0x395   :  { %v6600_v45 = vpop.eup %6599  ;;  %v9585_v15 = vadd.f32 %v1984_v52, %v1976_v0  ;;  %v1986_v27 = vmul.f32 %v6598_v23, %v9542_v56  ;;  %6615 = vpow2.f32 %v4951_v39  ;;  %v1818_v44 = vadd.f32 %v1772_v1, %v8993_v32  ;;  %v5765_v19 = vpop.f32.mrb[62].mxu0  ;;  %v11422_v56 = vld [vmem:[#allocation224_spill] sm:$0xff] }
 0x396   :  { %v6602_v3 = vpop.eup %6601  ;;  %v1981_v53 = vmul.f32 %v6600_v45, %v9417_v2  ;;  %v9590_v33 = vadd.f32 %v1987_v8, %v1979_v10  ;;  %v4954_v35 = vmul.f32 -1.442695, %v1819_v21  ;;  %v1787_v29 = vadd.f32 %v5765_v19, %v11421_v62  ;;  %v1781_v24 = vpop.f32.mrb[63].mxu0 }
 0x397   :  { %v6604_v30 = vpop.eup %6603  ;;  %v1980_v38 = vmul.f32 %v6602_v3, %v9420_v42  ;;  %v9594_v0 = vadd.f32 %v1986_v27, %v1978_v36  ;;  %v4953_v59 = vmul.f32 -1.442695, %v1818_v44  ;;  %v1782_v13 = vadd.f32 %v1781_v24, %v11422_v56 }
 0x398   :  { %v6606_v11 = vpop.eup %6605  ;;  %v1989_v58 = vmul.f32 %v6604_v30, %v9546_v9  ;;  %6617 = vpow2.f32 %v4954_v35  ;;  %v1821_v2 = vadd.f32 %v1787_v29, %v9063_v37 }
 0x399   :  { %v1988_v10 = vmul.f32 %v6606_v11, %v9549_v20  ;;  %6619 = vpow2.f32 %v4953_v59  ;;  %v1820_v17 = vadd.f32 %v1782_v13, %v9067_v40 }
 0x39a   :  { %v6608_v52 = vpop.eup %6607  ;;  %v9601_v39 = vadd.f32 %v1989_v58, %v1981_v53  ;;  %v4956_v42 = vmul.f32 -1.442695, %v1821_v2  ;;  %6621 = vtanh.f32 %v9566_v22 }
 0x39b   :  { %v6610_v36 = vpop.eup %6609  ;;  %v9604_v25 = vadd.f32 %v1988_v10, %v1980_v38  ;;  %v1951_v1 = vadd.f32 1.0, %v6608_v52  ;;  %v4955_v23 = vmul.f32 -1.442695, %v1820_v17  ;;  %6623 = vtanh.f32 %v9585_v15 }
 0x39c   :  { %v6612_v9 = vpop.eup %6611  ;;  %v1950_v8 = vadd.f32 1.0, %v6610_v36  ;;  %6625 = vpow2.f32 %v4956_v42 }
 0x39d   :  { %6627 = vrcp.f32 %v1951_v1 }
 0x39e   :  { %v6614_v20 = vpop.eup %6613  ;;  %6629 = vrcp.f32 %v1950_v8 }
 0x39f   :  { %v6616_v21 = vpop.eup %6615  ;;  %v1953_v45 = vadd.f32 1.0, %v6614_v20  ;;  %6631 = vpow2.f32 %v4955_v23 }
 0x3a0   :  { %v1952_v27 = vadd.f32 1.0, %v6616_v21  ;;  %6633 = vtanh.f32 %v9579_v6 }
 0x3a1   :  { %6635 = vrcp.f32 %v1953_v45 }
 0x3a2   :  { %v6618_v44 = vpop.eup %6617  ;;  %6637 = vrcp.f32 %v1952_v27 }
 0x3a3   :  { %v6620_v19 = vpop.eup %6619  ;;  %v1955_v3 = vadd.f32 1.0, %v6618_v44  ;;  %6639 = vtanh.f32 %v9594_v0 }
 0x3a4   :  { %v6622_v53 = vpop.eup %6621  ;;  %v1954_v35 = vadd.f32 1.0, %v6620_v19  ;;  %6641 = vtanh.f32 %v9590_v33 }
 0x3a5   :  { %v6624_v62 = vpop.eup %6623  ;;  %6643 = vrcp.f32 %v1955_v3 }
 0x3a6   :  { %v6626_v29 = vpop.eup %6625  ;;  %6645 = vrcp.f32 %v1954_v35 }
 0x3a7   :  { %v6628_v24 = vpop.eup %6627  ;;  %v1957_v30 = vadd.f32 1.0, %v6626_v29 }
 0x3a8   :  { %v6630_v38 = vpop.eup %6629  ;;  %v2007_v59 = vmul.f32 %v6628_v24, %v6622_v53  ;;  %v9622_v24 = vld [vmem:[%s10915_s1 + $0x10] sm:$0xff] }
 0x3a9   :  { %v6632_v56 = vpop.eup %6631  ;;  %6647 = vrcp.f32 %v1957_v30  ;;  %v2006_v13 = vmul.f32 %v6630_v38, %v6612_v9  ;;  %v9629_v30 = vld [vmem:[%s10915_s1 + $0x18] sm:$0xff]  ;;  %v9636_v38 = vld [vmem:[%s10915_s1 + $0x20] sm:$0xff] }
 0x3aa   :  { %v6634_v11 = vpop.eup %6633  ;;  %v1956_v58 = vadd.f32 1.0, %v6632_v56  ;;  %6649 = vtanh.f32 %v9601_v39  ;;  %v9650_v56 = vld [vmem:[%s10915_s1 + $0x30] sm:$0xff] }
 0x3ab   :  { %v6636_v2 = vpop.eup %6635  ;;  %v6158_v10 = vpack.c.bf16 %v2007_v59, %v2006_v13  ;;  %6651 = vtanh.f32 %v9604_v25  ;;  %v9643_v59 = vld [vmem:[%s10915_s1 + $0x28] sm:$0xff]  ;;  %v9657_v13 = vld [vmem:[%s10915_s1 + $0x38] sm:$0xff] }
 0x3ac   :  { %v6638_v17 = vpop.eup %6637  ;;  %6653 = vrcp.f32 %v1956_v58  ;;  %v2009_v52 = vmul.f32 %v6636_v2, %v6634_v11  ;;  %v9664_v11 = vld [vmem:[%s10915_s1 + $0x40] sm:$0xff]  ;;  %v9671_v58 = vld [vmem:[%s10915_s1 + $0x48] sm:$0xff]  ;;  %v9678_v2 = vld [vmem:[%s10915_s1 + $0x50] sm:$0xff] }
 0x3ad   :  { %v6640_v42 = vpop.eup %6639  ;;  %6159 = vmatprep.subr.bf16.mxu1 %v6158_v10  ;;  %v2008_v36 = vmul.f32 %v6638_v17, %v6624_v62  ;;  %v9615_v62 = vld [vmem:[%s10915_s1 + $0x8] sm:$0xff]  ;;  %v9692_v17 = vld [vmem:[%s10915_s1 + $0x60] sm:$0xff] }
 0x3ae   :  { %v6642_v1 = vpop.eup %6641  ;;  %6161 = vmatpush3.bf16.msra.mxu1 %v6158_v10  ;;  %v9685_v10 = vld [vmem:[%s10915_s1 + $0x58] sm:$0xff] }
 0x3af   :  { %v6644_v23 = vpop.eup %6643  ;;  %v6162_v8 = vpack.c.bf16 %v2009_v52, %v2008_v36  ;;  %v9699_v52 = vld [vmem:[%s10915_s1 + $0x68] sm:$0xff]  ;;  %v9713_v36 = vld [vmem:[%s10915_s1 + $0x78] sm:$0xff] }
 0x3b0   :  { %v6646_v20 = vpop.eup %6645  ;;  %v2011_v9 = vmul.f32 %v6644_v23, %v6642_v1  ;;  %11423 = vst [vmem:[#allocation2_spill] sm:$0xff] %v9699_v52  ;;  %11425 = vst [vmem:[#allocation28_spill] sm:$0xff] %v9713_v36  ;;  %v9720_v1 = vld [vmem:[%s10915_s1 + $0x80] sm:$0xff]  ;;  %v9727_v23 = vld [vmem:[%s10915_s1 + $0x88] sm:$0xff] }
 0x3b1   :  { %6163 = vmatprep.subr.bf16.mxu1 %v6162_v8  ;;  %v2010_v21 = vmul.f32 %v6646_v20, %v6640_v42  ;;  %v9706_v42 = vld [vmem:[%s10915_s1 + $0x70] sm:$0xff]  ;;  %11426 = vst [vmem:[#allocation61_spill] sm:$0xff] %v9720_v1  ;;  %11427 = vst [vmem:[#allocation62_spill] sm:$0xff] %v9727_v23  ;;  %v9741_v20 = vld [vmem:[%s10915_s1 + $0x98] sm:$0xff] }
 0x3b2   :  { %6165 = vmatpush3.bf16.msra.mxu1 %v6162_v8  ;;  %11424 = vst [vmem:[#allocation27_spill] sm:$0xff] %v9706_v42  ;;  %v9734_v8 = vld [vmem:[%s10915_s1 + $0x90] sm:$0xff]  ;;  %11429 = vst [vmem:[#allocation94_spill] sm:$0xff] %v9741_v20 }
 0x3b3   :  { %v6648_v45 = vpop.eup %6647  ;;  %v6166_v27 = vpack.c.bf16 %v2011_v9, %v2010_v21  ;;  %11428 = vst [vmem:[#allocation93_spill] sm:$0xff] %v9734_v8  ;;  %v9748_v9 = vld [vmem:[%s10915_s1 + $0xa0] sm:$0xff]  ;;  %v9755_v21 = vld [vmem:[%s10915_s1 + $0xa8] sm:$0xff] }
 0x3b4   :  { %v6650_v44 = vpop.eup %6649  ;;  %11430 = vst [vmem:[#allocation15_spill] sm:$0xff] %v9748_v9  ;;  %11431 = vst [vmem:[#allocation3_spill] sm:$0xff] %v9755_v21 }
 0x3b5   :  { %v6652_v19 = vpop.eup %6651  ;;  %6167 = vmatprep.subr.bf16.mxu1 %v6166_v27  ;;  %v2013_v3 = vmul.f32 %v6650_v44, %v6648_v45  ;;  %v9762_v45 = vld [vmem:[%s10915_s1 + $0xb0] sm:$0xff]  ;;  %v9776_v44 = vld [vmem:[%s10915_s1 + $0xc0] sm:$0xff] }
 0x3b6   :  { %v6654_v53 = vpop.eup %6653  ;;  %6169 = vmatpush3.bf16.msra.mxu1 %v6166_v27  ;;  %11432 = vst [vmem:[#allocation59_spill] sm:$0xff] %v9762_v45  ;;  %v9769_v27 = vld [vmem:[%s10915_s1 + $0xb8] sm:$0xff]  ;;  %11434 = vst [vmem:[#allocation40_spill] sm:$0xff] %v9776_v44 }
 0x3b7   :  { %v2012_v35 = vmul.f32 %v6654_v53, %v6652_v19  ;;  %11433 = vst [vmem:[#allocation60_spill] sm:$0xff] %v9769_v27  ;;  %v9783_v19 = vld [vmem:[%s10915_s1 + $0xc8] sm:$0xff]  ;;  %v9797_v53 = vld [vmem:[%s10915_s1 + $0xd8] sm:$0xff] }
 0x3b8   :  { %11435 = vst [vmem:[#allocation41_spill] sm:$0xff] %v9783_v19  ;;  %11437 = vst [vmem:[#allocation76_spill] sm:$0xff] %v9797_v53 }
 0x3b9   :  { %v6170_v29 = vpack.c.bf16 %v2013_v3, %v2012_v35  ;;  %v9790_v3 = vld [vmem:[%s10915_s1 + $0xd0] sm:$0xff]  ;;  %v9804_v35 = vld [vmem:[%s10915_s1 + $0xe0] sm:$0xff] }
 0x3ba   :  { %11436 = vst [vmem:[#allocation75_spill] sm:$0xff] %v9790_v3  ;;  %11438 = vst [vmem:[#allocation107_spill] sm:$0xff] %v9804_v35 }
 0x3bb   :  { %6171 = vmatprep.subr.bf16.mxu1 %v6170_v29 }
 0x3bc   :  { %6173 = vmatpush3.bf16.msra.mxu1 %v6170_v29  ;;  %v9811_v29 = vld [vmem:[%s10915_s1 + $0xe8] sm:$0xff] }
 0x3bd   :  { %11439 = vst [vmem:[#allocation108_spill] sm:$0xff] %v9811_v29 }
 0x3bf   :  { %5783 = vmatmul.mubr.msk.f32.vlgmr.msra.gmra.mrb[32].mxu1 %vm330_vm0, %v9615_v62 }
 0x3c0   :  { %5785 = vmatprep.mubr.msk.f32.mxu1 %vm330_vm0, %v9622_v24 }
 0x3c3   :  { %5786 = vmatmul.mubr.msk.f32.gmra.mrb[34].mxu1 %vm330_vm0, %v9629_v30 }
 0x3c4   :  { %5788 = vmatprep.mubr.msk.f32.mxu1 %vm330_vm0, %v9636_v38 }
 0x3c7   :  { %5789 = vmatmul.mubr.msk.f32.gmra.mrb[36].mxu1 %vm330_vm0, %v9643_v59 }
 0x3c8   :  { %5791 = vmatprep.mubr.msk.f32.mxu1 %vm330_vm0, %v9650_v56 }
 0x3cb   :  { %5792 = vmatmul.mubr.msk.f32.gmra.mrb[38].mxu1 %vm330_vm0, %v9657_v13 }
 0x3cc   :  { %5794 = vmatprep.mubr.msk.f32.mxu1 %vm330_vm0, %v9664_v11 }
 0x3cf   :  { %5795 = vmatmul.mubr.msk.f32.gmra.mrb[40].mxu1 %vm330_vm0, %v9671_v58 }
 0x3d0   :  { %5797 = vmatprep.mubr.msk.f32.mxu1 %vm330_vm0, %v9678_v2 }
 0x3d3   :  { %5798 = vmatmul.mubr.msk.f32.gmra.mrb[42].mxu1 %vm330_vm0, %v9685_v10 }
 0x3d4   :  { %5800 = vmatprep.mubr.msk.f32.mxu1 %vm330_vm0, %v9692_v17 }
 0x3d7   :  { %5801 = vmatmul.mubr.msk.f32.gmra.mrb[44].mxu1 %vm330_vm0, %v9699_v52 }
 0x3d8   :  { %5803 = vmatprep.mubr.msk.f32.mxu1 %vm330_vm0, %v9706_v42  ;;  %v11446_v42 = vld [vmem:[#allocation32_spill] sm:$0xff] }
 0x3db   :  { %5804 = vmatmul.mubr.msk.f32.gmra.mrb[46].mxu1 %vm330_vm0, %v9713_v36 }
 0x3dc   :  { %5806 = vmatprep.mubr.msk.f32.mxu1 %vm330_vm0, %v9720_v1 }
 0x3df   :  { %5807 = vmatmul.mubr.msk.f32.gmra.mrb[48].mxu1 %vm330_vm0, %v9727_v23 }
 0x3e0   :  { %5809 = vmatprep.mubr.msk.f32.mxu1 %vm330_vm0, %v9734_v8  ;;  %v11445_v8 = vld [vmem:[#allocation31_spill] sm:$0xff] }
 0x3e3   :  { %5810 = vmatmul.mubr.msk.f32.gmra.mrb[50].mxu1 %vm330_vm0, %v9741_v20 }
 0x3e4   :  { %5812 = vmatprep.mubr.msk.f32.mxu1 %vm330_vm0, %v9748_v9 }
 0x3e7   :  { %5813 = vmatmul.mubr.msk.f32.gmra.mrb[52].mxu1 %vm330_vm0, %v9755_v21 }
 0x3e8   :  { %5815 = vmatprep.mubr.msk.f32.mxu1 %vm330_vm0, %v9762_v45 }
 0x3eb   :  { %5816 = vmatmul.mubr.msk.f32.gmra.mrb[54].mxu1 %vm330_vm0, %v9769_v27  ;;  %v11444_v27 = vld [vmem:[#allocation6_spill] sm:$0xff] }
 0x3ec   :  { %5818 = vmatprep.mubr.msk.f32.mxu1 %vm330_vm0, %v9776_v44 }
 0x3ef   :  { %5819 = vmatmul.mubr.msk.f32.gmra.mrb[56].mxu1 %vm330_vm0, %v9783_v19  ;;  %v11443_v19 = vld [vmem:[#allocation18_spill] sm:$0xff] }
 0x3f0   :  { %5821 = vmatprep.mubr.msk.f32.mxu1 %vm330_vm0, %v9790_v3 }
 0x3f3   :  { %5822 = vmatmul.mubr.msk.f32.gmra.mrb[58].mxu1 %vm330_vm0, %v9797_v53  ;;  %v9818_v53 = vld [vmem:[%s10915_s1 + $0xf0] sm:$0xff] }
 0x3f4   :  { %5824 = vmatprep.mubr.msk.f32.mxu1 %vm330_vm0, %v9804_v35  ;;  %11440 = vst [vmem:[#allocation125_spill] sm:$0xff] %v9818_v53  ;;  %v9825_v35 = vld [vmem:[%s10915_s1 + $0xf8] sm:$0xff] }
 0x3f5   :  { %11441 = vst [vmem:[#allocation126_spill] sm:$0xff] %v9825_v35 }
 0x3f7   :  { %5825 = vmatmul.mubr.msk.f32.gmra.mrb[60].mxu1 %vm330_vm0, %v9811_v29  ;;  %v9832_v29 = vld [vmem:[%s10915_s1] sm:$0xff] }
 0x3f8   :  { %5827 = vmatprep.mubr.msk.f32.mxu1 %vm330_vm0, %v9818_v53  ;;  %11442 = vst [vmem:[#allocation157_spill] sm:$0xff] %v9832_v29 }
 0x3fb   :  { %5828 = vmatmul.mubr.msk.f32.gmra.mrb[62].mxu1 %vm330_vm0, %v9825_v35 }
 0x3fc   :  { %5910 = vmatprep.mubr.msk.f32.mxu1 %vm330_vm0, %v9832_v29 }
 0x492   :  { %v5784_v3 = vpop.f32.mrb[32].mxu1 }
 0x493   :  { %v2126_v44 = vadd.f32 %v5784_v3, %v11443_v19  ;;  %v2120_v53 = vpop.f32.mrb[33].mxu1 }
 0x494   :  { %v2121_v45 = vadd.f32 %v2120_v53, %v11444_v27  ;;  %v11447_v53 = vld [vmem:[#allocation65_spill] sm:$0xff] }
 0x495   :  { %v2280_v21 = vadd.f32 %v2126_v44, %v11378_v16 }
 0x496   :  { %v2279_v9 = vadd.f32 %v2121_v45, %v11379_v61  ;;  %v5787_v20 = vpop.f32.mrb[34].mxu1  ;;  %v11448_v61 = vld [vmem:[#allocation66_spill] sm:$0xff] }
 0x497   :  { %v4992_v35 = vmul.f32 -1.442695, %v2280_v21  ;;  %v2136_v23 = vadd.f32 %v5787_v20, %v11445_v8  ;;  %v2130_v1 = vpop.f32.mrb[35].mxu1 }
 0x498   :  { %v4991_v36 = vmul.f32 -1.442695, %v2279_v9  ;;  %v2131_v52 = vadd.f32 %v2130_v1, %v11446_v42 }
 0x499   :  { %6655 = vpow2.f32 %v4992_v35  ;;  %v2282_v29 = vadd.f32 %v2136_v23, %v11382_v28  ;;  %v11449_v23 = vld [vmem:[#allocation97_spill] sm:$0xff]  ;;  %v11450_v35 = vld [vmem:[#allocation98_spill] sm:$0xff] }
 0x49a   :  { %6657 = vpow2.f32 %v4991_v36  ;;  %v2281_v19 = vadd.f32 %v2131_v52, %v11383_v14  ;;  %v5790_v3 = vpop.f32.mrb[36].mxu1 }
 0x49b   :  { %v4994_v27 = vmul.f32 -1.442695, %v2282_v29  ;;  %v2146_v44 = vadd.f32 %v5790_v3, %v11447_v53  ;;  %v2140_v16 = vpop.f32.mrb[37].mxu1  ;;  %v11451_v53 = vld [vmem:[#allocation19_spill] sm:$0xff] }
 0x49c   :  { %v4993_v45 = vmul.f32 -1.442695, %v2281_v19  ;;  %v2141_v21 = vadd.f32 %v2140_v16, %v11448_v61 }
 0x49d   :  { %6659 = vpow2.f32 %v4994_v27  ;;  %v2284_v8 = vadd.f32 %v2146_v44, %v11386_v46 }
 0x49e   :  { %6661 = vpow2.f32 %v4993_v45  ;;  %v2283_v42 = vadd.f32 %v2141_v21, %v11387_v26  ;;  %v5793_v1 = vpop.f32.mrb[38].mxu1 }
 0x49f   :  { %v4996_v20 = vmul.f32 -1.442695, %v2284_v8  ;;  %v2156_v36 = vadd.f32 %v5793_v1, %v11449_v23  ;;  %v2150_v9 = vpop.f32.mrb[39].mxu1  ;;  %v11452_v1 = vld [vmem:[#allocation7_spill] sm:$0xff] }
 0x4a0   :  { %v4995_v52 = vmul.f32 -1.442695, %v2283_v42  ;;  %v2151_v29 = vadd.f32 %v2150_v9, %v11450_v35 }
 0x4a1   :  { %6663 = vpow2.f32 %v4996_v20  ;;  %v2286_v3 = vadd.f32 %v2156_v36, %v11390_v5 }
 0x4a2   :  { %6665 = vpow2.f32 %v4995_v52  ;;  %v2285_v16 = vadd.f32 %v2151_v29, %v11391_v4  ;;  %v5796_v61 = vpop.f32.mrb[40].mxu1  ;;  %v11453_v29 = vld [vmem:[#allocation44_spill] sm:$0xff] }
 0x4a3   :  { %v6656_v19 = vpop.eup %6655  ;;  %v4998_v27 = vmul.f32 -1.442695, %v2286_v3  ;;  %v2166_v44 = vadd.f32 %v5796_v61, %v11451_v53  ;;  %v2160_v45 = vpop.f32.mrb[41].mxu1 }
 0x4a4   :  { %v6658_v21 = vpop.eup %6657  ;;  %v2336_v8 = vadd.f32 1.0, %v6656_v19  ;;  %v4997_v26 = vmul.f32 -1.442695, %v2285_v16  ;;  %v2161_v23 = vadd.f32 %v2160_v45, %v11452_v1  ;;  %v11454_v16 = vld [vmem:[#allocation45_spill] sm:$0xff] }
 0x4a5   :  { %6667 = vpow2.f32 %v4998_v27  ;;  %v2288_v42 = vadd.f32 %v2166_v44, %v11330_v34  ;;  %v2335_v20 = vadd.f32 1.0, %v6658_v21 }
 0x4a6   :  { %v2287_v36 = vadd.f32 %v2161_v23, %v11331_v43  ;;  %v5799_v9 = vpop.f32.mrb[42].mxu1  ;;  %6669 = vrcp.f32 %v2336_v8  ;;  %v11455_v23 = vld [vmem:[#allocation79_spill] sm:$0xff] }
 0x4a7   :  { %v6660_v52 = vpop.eup %6659  ;;  %v5000_v35 = vmul.f32 -1.442695, %v2288_v42  ;;  %v2176_v3 = vadd.f32 %v5799_v9, %v11453_v29  ;;  %v2170_v4 = vpop.f32.mrb[43].mxu1  ;;  %6671 = vpow2.f32 %v4997_v26 }
 0x4a8   :  { %v6662_v61 = vpop.eup %6661  ;;  %v2338_v53 = vadd.f32 1.0, %v6660_v52  ;;  %v4999_v19 = vmul.f32 -1.442695, %v2287_v36  ;;  %v2171_v5 = vadd.f32 %v2170_v4, %v11454_v16  ;;  %v11456_v36 = vld [vmem:[#allocation80_spill] sm:$0xff]  ;;  %v11457_v16 = vld [vmem:[#allocation111_spill] sm:$0xff] }
 0x4a9   :  { %6673 = vpow2.f32 %v5000_v35  ;;  %v2290_v27 = vadd.f32 %v2176_v3, %v8238_v54  ;;  %v2337_v44 = vadd.f32 1.0, %v6662_v61 }
 0x4aa   :  { %6675 = vrcp.f32 %v2335_v20  ;;  %v2289_v45 = vadd.f32 %v2171_v5, %v8240_v48  ;;  %v5802_v21 = vpop.f32.mrb[44].mxu1 }
 0x4ab   :  { %v6664_v1 = vpop.eup %6663  ;;  %6677 = vrcp.f32 %v2338_v53  ;;  %v5002_v8 = vmul.f32 -1.442695, %v2290_v27  ;;  %v2186_v42 = vadd.f32 %v5802_v21, %v11455_v23  ;;  %v2180_v9 = vpop.f32.mrb[45].mxu1 }
 0x4ac   :  { %v6666_v29 = vpop.eup %6665  ;;  %v2340_v52 = vadd.f32 1.0, %v6664_v1  ;;  %6679 = vpow2.f32 %v4999_v19  ;;  %v5001_v26 = vmul.f32 -1.442695, %v2289_v45  ;;  %v2181_v4 = vadd.f32 %v2180_v9, %v11456_v36  ;;  %v11458_v45 = vld [vmem:[#allocation112_spill] sm:$0xff] }
 0x4ad   :  { %6681 = vpow2.f32 %v5002_v8  ;;  %v2292_v35 = vadd.f32 %v2186_v42, %v8366_v18  ;;  %v2339_v20 = vadd.f32 1.0, %v6666_v29 }
 0x4ae   :  { %6683 = vrcp.f32 %v2337_v44  ;;  %v2291_v5 = vadd.f32 %v2181_v4, %v8368_v51  ;;  %v5805_v3 = vpop.f32.mrb[46].mxu1 }
 0x4af   :  { %v6668_v61 = vpop.eup %6667  ;;  %6685 = vrcp.f32 %v2340_v52  ;;  %v5004_v53 = vmul.f32 -1.442695, %v2292_v35  ;;  %v2196_v27 = vadd.f32 %v5805_v3, %v11457_v16  ;;  %v2190_v21 = vpop.f32.mrb[47].mxu1  ;;  %v11459_v35 = vld [vmem:[#allocation129_spill] sm:$0xff] }
 0x4b0   :  { %v2342_v23 = vadd.f32 1.0, %v6668_v61  ;;  %6687 = vpow2.f32 %v5001_v26  ;;  %v5003_v19 = vmul.f32 -1.442695, %v2291_v5  ;;  %v2191_v1 = vadd.f32 %v2190_v21, %v11458_v45  ;;  %v9866_v9 = vpop.eup %6669 }
 0x4b1   :  { %6689 = vpow2.f32 %v5004_v53  ;;  %v2294_v44 = vadd.f32 %v2196_v27, %v8494_v60  ;;  %v6672_v8 = vpop.eup %6671  ;;  %v11460_v53 = vld [vmem:[#allocation130_spill] sm:$0xff] }
 0x4b2   :  { %6691 = vrcp.f32 %v2339_v20  ;;  %v2293_v42 = vadd.f32 %v2191_v1, %v11400_v63  ;;  %v5808_v29 = vpop.f32.mrb[48].mxu1  ;;  %v2341_v36 = vadd.f32 1.0, %v6672_v8 }
 0x4b3   :  { %v6674_v52 = vpop.eup %6673  ;;  %6693 = vpow2.f32 %v5003_v19  ;;  %v5006_v4 = vmul.f32 -1.442695, %v2294_v44  ;;  %v2206_v3 = vadd.f32 %v5808_v29, %v11459_v35  ;;  %v2200_v26 = vpop.f32.mrb[49].mxu1  ;;  %v11461_v44 = vld [vmem:[#allocation161_spill] sm:$0xff] }
 0x4b4   :  { %v9871_v5 = vpop.eup %6675  ;;  %6695 = vrcp.f32 %v2342_v23  ;;  %v2384_v61 = vadd.f32 1.0, %v6674_v52  ;;  %v5005_v16 = vmul.f32 -1.442695, %v2293_v42  ;;  %v2201_v21 = vadd.f32 %v2200_v26, %v11460_v53  ;;  %v11462_v42 = vld [vmem:[#allocation182_spill] sm:$0xff] }
 0x4b5   :  { %v9874_v27 = vpop.eup %6677  ;;  %6697 = vrcp.f32 %v2341_v36  ;;  %v2296_v19 = vadd.f32 %v2206_v3, %v11403_v47  ;;  %v11463_v26 = vld [vmem:[#allocation162_spill] sm:$0xff]  ;;  %v11464_v3 = vld [vmem:[#allocation199_spill] sm:$0xff] }
 0x4b6   :  { %v6680_v20 = vpop.eup %6679  ;;  %6699 = vrcp.f32 %v2384_v61  ;;  %v5811_v45 = vpop.f32.mrb[50].mxu1  ;;  %v2295_v52 = vadd.f32 %v2201_v21, %v11462_v42  ;;  %v11466_v21 = vld [vmem:[#allocation192_spill] sm:$0xff] }
 0x4b7   :  { %v6682_v1 = vpop.eup %6681  ;;  %v2383_v8 = vadd.f32 1.0, %v6680_v20  ;;  %6701 = vpow2.f32 %v5006_v4  ;;  %v2216_v29 = vadd.f32 %v5811_v45, %v11461_v44  ;;  %v2210_v35 = vpop.f32.mrb[51].mxu1  ;;  %v11465_v44 = vld [vmem:[#allocation191_spill] sm:$0xff] }
 0x4b8   :  { %v9878_v63 = vpop.eup %6683  ;;  %v2386_v23 = vadd.f32 1.0, %v6682_v1  ;;  %6703 = vpow2.f32 %v5005_v16  ;;  %v2211_v53 = vadd.f32 %v2210_v35, %v11463_v26 }
 0x4b9   :  { %v9882_v36 = vpop.eup %6685  ;;  %6705 = vrcp.f32 %v2383_v8  ;;  %v2298_v45 = vadd.f32 %v2216_v29, %v11464_v3  ;;  %v11467_v8 = vld [vmem:[#allocation200_spill] sm:$0xff] }
 0x4ba   :  { %v6688_v61 = vpop.eup %6687  ;;  %6707 = vrcp.f32 %v2386_v23  ;;  %v5814_v20 = vpop.f32.mrb[52].mxu1  ;;  %v2297_v42 = vadd.f32 %v2211_v53, %v11467_v8 }
 0x4bb   :  { %v6690_v4 = vpop.eup %6689  ;;  %v2385_v60 = vadd.f32 1.0, %v6688_v61  ;;  %6709 = vtanh.f32 %v2296_v19  ;;  %v2226_v47 = vadd.f32 %v5814_v20, %v11465_v44  ;;  %v2220_v51 = vpop.f32.mrb[53].mxu1  ;;  %v11468_v19 = vld [vmem:[#allocation230_spill] sm:$0xff]  ;;  %v11469_v20 = vld [vmem:[#allocation233_spill] sm:$0xff] }
 0x4bc   :  { %v9886_v1 = vpop.eup %6691  ;;  %v2388_v16 = vadd.f32 1.0, %v6690_v4  ;;  %6711 = vtanh.f32 %v2295_v52  ;;  %v2221_v35 = vadd.f32 %v2220_v51, %v11466_v21  ;;  %v11470_v4 = vld [vmem:[#allocation225_spill] sm:$0xff] }
 0x4bd   :  { %v6694_v26 = vpop.eup %6693  ;;  %6713 = vrcp.f32 %v2385_v60  ;;  %v2300_v18 = vadd.f32 %v2226_v47, %v11468_v19  ;;  %v11471_v60 = vld [vmem:[#allocation226_spill] sm:$0xff] }
 0x4be   :  { %v9890_v23 = vpop.eup %6695  ;;  %6715 = vrcp.f32 %v2388_v16  ;;  %v2387_v61 = vadd.f32 1.0, %v6694_v26  ;;  %v5817_v29 = vpop.f32.mrb[54].mxu1  ;;  %v2299_v44 = vadd.f32 %v2221_v35, %v11469_v20  ;;  %v11472_v35 = vld [vmem:[#allocation143_spill] sm:$0xff] }
 0x4bf   :  { %v9893_v3 = vpop.eup %6697  ;;  %6717 = vtanh.f32 %v2298_v45  ;;  %v2236_v52 = vadd.f32 %v5817_v29, %v11470_v4  ;;  %v2230_v48 = vpop.f32.mrb[55].mxu1 }
 0x4c0   :  { %v6700_v51 = vpop.eup %6699  ;;  %6719 = vrcp.f32 %v2387_v61  ;;  %v2231_v21 = vadd.f32 %v2230_v48, %v11471_v60  ;;  %v11473_v48 = vld [vmem:[#allocation144_spill] sm:$0xff] }
 0x4c1   :  { %v6702_v53 = vpop.eup %6701  ;;  %6721 = vtanh.f32 %v2297_v42  ;;  %v2302_v47 = vadd.f32 %v2236_v52, %v9018_v41  ;;  %v2464_v61 = vmul.f32 %v6700_v51, %v9566_v22  ;;  %v11474_v51 = vld [vmem:[#allocation175_spill] sm:$0xff] }
 0x4c2   :  { %v6704_v8 = vpop.eup %6703  ;;  %v2390_v16 = vadd.f32 1.0, %v6702_v53  ;;  %6723 = vtanh.f32 %v2300_v18  ;;  %v5820_v26 = vpop.f32.mrb[56].mxu1  ;;  %v2301_v45 = vadd.f32 %v2231_v21, %v9026_v57 }
 0x4c3   :  { %v6706_v19 = vpop.eup %6705  ;;  %v2389_v54 = vadd.f32 1.0, %v6704_v8  ;;  %6725 = vtanh.f32 %v2299_v44  ;;  %v2246_v29 = vadd.f32 %v5820_v26, %v11472_v35  ;;  %v2240_v4 = vpop.f32.mrb[57].mxu1 }
 0x4c4   :  { %v6708_v20 = vpop.eup %6707  ;;  %6727 = vrcp.f32 %v2390_v16  ;;  %v2241_v42 = vadd.f32 %v2240_v4, %v11473_v48  ;;  %v2463_v18 = vmul.f32 %v6706_v19, %v9570_v55 }
 0x4c5   :  { %v6710_v60 = vpop.eup %6709  ;;  %6729 = vrcp.f32 %v2389_v54  ;;  %v2304_v52 = vadd.f32 %v2246_v29, %v8627_v49  ;;  %v2466_v54 = vmul.f32 %v6708_v20, %v9579_v6  ;;  %v11475_v29 = vld [vmem:[#allocation176_spill] sm:$0xff] }
 0x4c6   :  { %v6712_v53 = vpop.eup %6711  ;;  %v2472_v8 = vmul.f32 %v6710_v60, %v9866_v9  ;;  %6731 = vtanh.f32 %v2302_v47  ;;  %v2303_v44 = vadd.f32 %v2241_v42, %v8629_v50  ;;  %v5823_v21 = vpop.f32.mrb[58].mxu1 }
 0x4c7   :  { %v6714_v26 = vpop.eup %6713  ;;  %v2471_v35 = vmul.f32 %v6712_v53, %v9871_v5  ;;  %6733 = vtanh.f32 %v2301_v45  ;;  %v5008_v22 = vmul.f32 -1.442695, %v2304_v52  ;;  %v2256_v16 = vadd.f32 %v5823_v21, %v11474_v51  ;;  %v2250_v4 = vpop.f32.mrb[59].mxu1  ;;  %v11476_v21 = vld [vmem:[#allocation201_spill] sm:$0xff] }
 0x4c8   :  { %v6716_v48 = vpop.eup %6715  ;;  %v9910_v55 = vadd.f32 %v2472_v8, %v2464_v61  ;;  %v5007_v19 = vmul.f32 -1.442695, %v2303_v44  ;;  %v2251_v9 = vadd.f32 %v2250_v4, %v11475_v29  ;;  %v2465_v42 = vmul.f32 %v6714_v26, %v9585_v15 }
 0x4c9   :  { %v6718_v47 = vpop.eup %6717  ;;  %v9914_v60 = vadd.f32 %v2471_v35, %v2463_v18  ;;  %6735 = vpow2.f32 %v5008_v22  ;;  %v2306_v5 = vadd.f32 %v2256_v16, %v8785_v12  ;;  %v2468_v52 = vmul.f32 %v6716_v48, %v9590_v33 }
 0x4ca   :  { %v6720_v45 = vpop.eup %6719  ;;  %v2474_v53 = vmul.f32 %v6718_v47, %v9874_v27  ;;  %6737 = vpow2.f32 %v5007_v19  ;;  %v2305_v6 = vadd.f32 %v2251_v9, %v8787_v7  ;;  %v5826_v20 = vpop.f32.mrb[60].mxu1  ;;  %v11477_v27 = vld [vmem:[#allocation202_spill] sm:$0xff] }
 0x4cb   :  { %v6722_v61 = vpop.eup %6721  ;;  %v2467_v8 = vmul.f32 %v6720_v45, %v9594_v0  ;;  %v5010_v44 = vmul.f32 -1.442695, %v2306_v5  ;;  %v2266_v15 = vadd.f32 %v5826_v20, %v11476_v21  ;;  %v2260_v18 = vpop.f32.mrb[61].mxu1  ;;  %6739 = vtanh.f32 %v9914_v60 }
 0x4cc   :  { %v6724_v26 = vpop.eup %6723  ;;  %v9923_v35 = vadd.f32 %v2474_v53, %v2466_v54  ;;  %v2473_v33 = vmul.f32 %v6722_v61, %v9878_v63  ;;  %v5009_v22 = vmul.f32 -1.442695, %v2305_v6  ;;  %v2261_v51 = vadd.f32 %v2260_v18, %v11477_v27  ;;  %v11478_v53 = vld [vmem:[#allocation227_spill] sm:$0xff] }
 0x4cd   :  { %v6726_v16 = vpop.eup %6725  ;;  %v2476_v4 = vmul.f32 %v6724_v26, %v9882_v36  ;;  %6741 = vpow2.f32 %v5010_v44  ;;  %v2308_v0 = vadd.f32 %v2266_v15, %v8984_v31 }
 0x4ce   :  { %v6728_v48 = vpop.eup %6727  ;;  %v9929_v19 = vadd.f32 %v2473_v33, %v2465_v42  ;;  %v2475_v29 = vmul.f32 %v6726_v16, %v9886_v1  ;;  %6743 = vpow2.f32 %v5009_v22  ;;  %v2307_v54 = vadd.f32 %v2261_v51, %v8993_v32  ;;  %v5829_v9 = vpop.f32.mrb[62].mxu1  ;;  %v11479_v1 = vld [vmem:[#allocation228_spill] sm:$0xff] }
 0x4cf   :  { %v6730_v47 = vpop.eup %6729  ;;  %v2470_v63 = vmul.f32 %v6728_v48, %v9601_v39  ;;  %v9934_v5 = vadd.f32 %v2476_v4, %v2468_v52  ;;  %v5012_v45 = vmul.f32 -1.442695, %v2308_v0  ;;  %v2276_v36 = vadd.f32 %v5829_v9, %v11478_v53  ;;  %v2270_v6 = vpop.f32.mrb[63].mxu1 }
 0x4d0   :  { %v6732_v20 = vpop.eup %6731  ;;  %v2469_v61 = vmul.f32 %v6730_v47, %v9604_v25  ;;  %v9938_v42 = vadd.f32 %v2475_v29, %v2467_v8  ;;  %v5011_v44 = vmul.f32 -1.442695, %v2307_v54  ;;  %v2271_v21 = vadd.f32 %v2270_v6, %v11479_v1 }
 0x4d1   :  { %v6734_v15 = vpop.eup %6733  ;;  %v2478_v18 = vmul.f32 %v6732_v20, %v9890_v23  ;;  %6745 = vpow2.f32 %v5012_v45  ;;  %v2310_v39 = vadd.f32 %v2276_v36, %v9063_v37 }
 0x4d2   :  { %v2477_v52 = vmul.f32 %v6734_v15, %v9893_v3  ;;  %6747 = vpow2.f32 %v5011_v44  ;;  %v2309_v26 = vadd.f32 %v2271_v21, %v9067_v40 }
 0x4d3   :  { %v6736_v33 = vpop.eup %6735  ;;  %v9945_v22 = vadd.f32 %v2478_v18, %v2470_v63  ;;  %v5014_v25 = vmul.f32 -1.442695, %v2310_v39  ;;  %6749 = vtanh.f32 %v9910_v55 }
 0x4d4   :  { %v6738_v8 = vpop.eup %6737  ;;  %v9948_v27 = vadd.f32 %v2477_v52, %v2469_v61  ;;  %v2440_v51 = vadd.f32 1.0, %v6736_v33  ;;  %v5013_v16 = vmul.f32 -1.442695, %v2309_v26  ;;  %6751 = vtanh.f32 %v9929_v19 }
 0x4d5   :  { %v6740_v23 = vpop.eup %6739  ;;  %v2439_v4 = vadd.f32 1.0, %v6738_v8  ;;  %6753 = vpow2.f32 %v5014_v25 }
 0x4d6   :  { %6755 = vrcp.f32 %v2440_v51 }
 0x4d7   :  { %v6742_v3 = vpop.eup %6741  ;;  %6757 = vrcp.f32 %v2439_v4 }
 0x4d8   :  { %v6744_v0 = vpop.eup %6743  ;;  %v2442_v48 = vadd.f32 1.0, %v6742_v3  ;;  %6759 = vpow2.f32 %v5013_v16 }
 0x4d9   :  { %v2441_v29 = vadd.f32 1.0, %v6744_v0  ;;  %6761 = vtanh.f32 %v9923_v35 }
 0x4da   :  { %6763 = vrcp.f32 %v2442_v48 }
 0x4db   :  { %v6746_v54 = vpop.eup %6745  ;;  %6765 = vrcp.f32 %v2441_v29 }
 0x4dc   :  { %v6748_v9 = vpop.eup %6747  ;;  %v2444_v47 = vadd.f32 1.0, %v6746_v54  ;;  %6767 = vtanh.f32 %v9938_v42 }
 0x4dd   :  { %v6750_v63 = vpop.eup %6749  ;;  %v2443_v45 = vadd.f32 1.0, %v6748_v9  ;;  %6769 = vtanh.f32 %v9934_v5 }
 0x4de   :  { %v6752_v53 = vpop.eup %6751  ;;  %6771 = vrcp.f32 %v2444_v47 }
 0x4df   :  { %v6754_v36 = vpop.eup %6753  ;;  %6773 = vrcp.f32 %v2443_v45 }
 0x4e0   :  { %v6756_v6 = vpop.eup %6755  ;;  %v2446_v20 = vadd.f32 1.0, %v6754_v36 }
 0x4e1   :  { %v6758_v61 = vpop.eup %6757  ;;  %v2496_v44 = vmul.f32 %v6756_v6, %v6750_v63  ;;  %v11493_v6 = vld [vmem:[#allocation75_spill] sm:$0xff] }
 0x4e2   :  { %v6760_v1 = vpop.eup %6759  ;;  %6775 = vrcp.f32 %v2446_v20  ;;  %v2495_v21 = vmul.f32 %v6758_v61, %v6740_v23  ;;  %v11494_v20 = vld [vmem:[#allocation76_spill] sm:$0xff]  ;;  %v11495_v61 = vld [vmem:[#allocation107_spill] sm:$0xff] }
 0x4e3   :  { %v6762_v15 = vpop.eup %6761  ;;  %v2445_v18 = vadd.f32 1.0, %v6760_v1  ;;  %6777 = vtanh.f32 %v9945_v22  ;;  %v11497_v1 = vld [vmem:[#allocation125_spill] sm:$0xff] }
 0x4e4   :  { %v6764_v39 = vpop.eup %6763  ;;  %v6174_v52 = vpack.c.bf16 %v2496_v44, %v2495_v21  ;;  %6779 = vtanh.f32 %v9948_v27  ;;  %v11496_v44 = vld [vmem:[#allocation108_spill] sm:$0xff]  ;;  %v11498_v21 = vld [vmem:[#allocation126_spill] sm:$0xff] }
 0x4e5   :  { %v6766_v26 = vpop.eup %6765  ;;  %6781 = vrcp.f32 %v2445_v18  ;;  %v2498_v33 = vmul.f32 %v6764_v39, %v6762_v15  ;;  %v11499_v15 = vld [vmem:[#allocation157_spill] sm:$0xff]  ;;  %v11500_v39 = vld [vmem:[#allocation20_spill] sm:$0xff] }
 0x4e6   :  { %v6768_v25 = vpop.eup %6767  ;;  %6175 = vmatprep.subr.bf16.mxu0 %v6174_v52  ;;  %v2497_v8 = vmul.f32 %v6766_v26, %v6752_v53  ;;  %v11492_v53 = vld [vmem:[#allocation41_spill] sm:$0xff] }
 0x4e7   :  { %v6770_v51 = vpop.eup %6769  ;;  %6177 = vmatpush3.bf16.msra.mxu0 %v6174_v52 }
 0x4e8   :  { %v6772_v16 = vpop.eup %6771  ;;  %v6178_v4 = vpack.c.bf16 %v2498_v33, %v2497_v8  ;;  %v11501_v33 = vld [vmem:[#allocation8_spill] sm:$0xff]  ;;  %v11502_v8 = vld [vmem:[#allocation50_spill] sm:$0xff] }
 0x4e9   :  { %v6774_v3 = vpop.eup %6773  ;;  %v2500_v23 = vmul.f32 %v6772_v16, %v6770_v51  ;;  %v11503_v16 = vld [vmem:[#allocation51_spill] sm:$0xff] }
 0x4ea   :  { %6179 = vmatprep.subr.bf16.mxu0 %v6178_v4  ;;  %v2499_v0 = vmul.f32 %v6774_v3, %v6768_v25 }
 0x4eb   :  { %6181 = vmatpush3.bf16.msra.mxu0 %v6178_v4 }
 0x4ec   :  { %v6776_v48 = vpop.eup %6775  ;;  %v6182_v29 = vpack.c.bf16 %v2500_v23, %v2499_v0  ;;  %v11504_v0 = vld [vmem:[#allocation33_spill] sm:$0xff] }
 0x4ed   :  { %v6778_v54 = vpop.eup %6777 }
 0x4ee   :  { %v6780_v9 = vpop.eup %6779  ;;  %6183 = vmatprep.subr.bf16.mxu0 %v6182_v29  ;;  %v2502_v47 = vmul.f32 %v6778_v54, %v6776_v48 }
 0x4ef   :  { %v6782_v63 = vpop.eup %6781  ;;  %6185 = vmatpush3.bf16.msra.mxu0 %v6182_v29 }
 0x4f0   :  { %v2501_v45 = vmul.f32 %v6782_v63, %v6780_v9  ;;  %v11505_v9 = vld [vmem:[#allocation34_spill] sm:$0xff] }
 0x4f2   :  { %v6186_v36 = vpack.c.bf16 %v2502_v47, %v2501_v45 }
 0x4f4   :  { %6187 = vmatprep.subr.bf16.mxu0 %v6186_v36 }
 0x4f5   :  { %6189 = vmatpush3.bf16.msra.mxu0 %v6186_v36 }
 0x4f8   :  { %5847 = vmatmul.mubr.msk.f32.vlgmr.msra.gmra.mrb[64].mxu0 %vm330_vm0, %v9615_v62  ;;  %v11480_v62 = vld [vmem:[#allocation2_spill] sm:$0xff] }
 0x4f9   :  { %5849 = vmatprep.mubr.msk.f32.mxu0 %vm330_vm0, %v9622_v24  ;;  %v11481_v24 = vld [vmem:[#allocation27_spill] sm:$0xff] }
 0x4fc   :  { %5850 = vmatmul.mubr.msk.f32.gmra.mrb[66].mxu0 %vm330_vm0, %v9629_v30  ;;  %v11482_v30 = vld [vmem:[#allocation28_spill] sm:$0xff] }
 0x4fd   :  { %5852 = vmatprep.mubr.msk.f32.mxu0 %vm330_vm0, %v9636_v38  ;;  %v11483_v38 = vld [vmem:[#allocation61_spill] sm:$0xff] }
 0x500   :  { %5853 = vmatmul.mubr.msk.f32.gmra.mrb[68].mxu0 %vm330_vm0, %v9643_v59  ;;  %v11484_v59 = vld [vmem:[#allocation62_spill] sm:$0xff] }
 0x501   :  { %5855 = vmatprep.mubr.msk.f32.mxu0 %vm330_vm0, %v9650_v56  ;;  %v11485_v56 = vld [vmem:[#allocation93_spill] sm:$0xff] }
 0x504   :  { %5856 = vmatmul.mubr.msk.f32.gmra.mrb[70].mxu0 %vm330_vm0, %v9657_v13  ;;  %v11486_v13 = vld [vmem:[#allocation94_spill] sm:$0xff] }
 0x505   :  { %5858 = vmatprep.mubr.msk.f32.mxu0 %vm330_vm0, %v9664_v11  ;;  %v11487_v11 = vld [vmem:[#allocation15_spill] sm:$0xff] }
 0x508   :  { %5859 = vmatmul.mubr.msk.f32.gmra.mrb[72].mxu0 %vm330_vm0, %v9671_v58  ;;  %v11488_v58 = vld [vmem:[#allocation3_spill] sm:$0xff] }
 0x509   :  { %5861 = vmatprep.mubr.msk.f32.mxu0 %vm330_vm0, %v9678_v2  ;;  %v11489_v2 = vld [vmem:[#allocation59_spill] sm:$0xff] }
 0x50c   :  { %5862 = vmatmul.mubr.msk.f32.gmra.mrb[74].mxu0 %vm330_vm0, %v9685_v10  ;;  %v11490_v10 = vld [vmem:[#allocation60_spill] sm:$0xff] }
 0x50d   :  { %5864 = vmatprep.mubr.msk.f32.mxu0 %vm330_vm0, %v9692_v17  ;;  %v11491_v17 = vld [vmem:[#allocation40_spill] sm:$0xff] }
 0x510   :  { %5865 = vmatmul.mubr.msk.f32.gmra.mrb[76].mxu0 %vm330_vm0, %v11480_v62 }
 0x511   :  { %5867 = vmatprep.mubr.msk.f32.mxu0 %vm330_vm0, %v11481_v24  ;;  %v11506_v24 = vld [vmem:[#allocation67_spill] sm:$0xff] }
 0x514   :  { %5868 = vmatmul.mubr.msk.f32.gmra.mrb[78].mxu0 %vm330_vm0, %v11482_v30 }
 0x515   :  { %5870 = vmatprep.mubr.msk.f32.mxu0 %vm330_vm0, %v11483_v38 }
 0x518   :  { %5871 = vmatmul.mubr.msk.f32.gmra.mrb[80].mxu0 %vm330_vm0, %v11484_v59 }
 0x519   :  { %5873 = vmatprep.mubr.msk.f32.mxu0 %vm330_vm0, %v11485_v56  ;;  %v11507_v56 = vld [vmem:[#allocation68_spill] sm:$0xff] }
 0x51c   :  { %5874 = vmatmul.mubr.msk.f32.gmra.mrb[82].mxu0 %vm330_vm0, %v11486_v13 }
 0x51d   :  { %5876 = vmatprep.mubr.msk.f32.mxu0 %vm330_vm0, %v11487_v11 }
 0x520   :  { %5877 = vmatmul.mubr.msk.f32.gmra.mrb[84].mxu0 %vm330_vm0, %v11488_v58  ;;  %v11508_v58 = vld [vmem:[#allocation118_spill] sm:$0xff] }
 0x521   :  { %5879 = vmatprep.mubr.msk.f32.mxu0 %vm330_vm0, %v11489_v2 }
 0x524   :  { %5880 = vmatmul.mubr.msk.f32.gmra.mrb[86].mxu0 %vm330_vm0, %v11490_v10 }
 0x525   :  { %5882 = vmatprep.mubr.msk.f32.mxu0 %vm330_vm0, %v11491_v17 }
 0x528   :  { %5883 = vmatmul.mubr.msk.f32.gmra.mrb[88].mxu0 %vm330_vm0, %v11492_v53  ;;  %v11509_v53 = vld [vmem:[#allocation99_spill] sm:$0xff] }
 0x529   :  { %5885 = vmatprep.mubr.msk.f32.mxu0 %vm330_vm0, %v11493_v6 }
 0x52c   :  { %5886 = vmatmul.mubr.msk.f32.gmra.mrb[90].mxu0 %vm330_vm0, %v11494_v20 }
 0x52d   :  { %5888 = vmatprep.mubr.msk.f32.mxu0 %vm330_vm0, %v11495_v61 }
 0x530   :  { %5889 = vmatmul.mubr.msk.f32.gmra.mrb[92].mxu0 %vm330_vm0, %v11496_v44  ;;  %v11510_v44 = vld [vmem:[#allocation100_spill] sm:$0xff] }
 0x531   :  { %5891 = vmatprep.mubr.msk.f32.mxu0 %vm330_vm0, %v11497_v1 }
 0x534   :  { %5892 = vmatmul.mubr.msk.f32.gmra.mrb[94].mxu0 %vm330_vm0, %v11498_v21  ;;  %v11511_v21 = vld [vmem:[#allocation149_spill] sm:$0xff] }
 0x535   :  { %5974 = vmatprep.mubr.msk.f32.mxu0 %vm330_vm0, %v11499_v15 }
 0x5cb   :  { %v5848_v18 = vpop.f32.mrb[64].mxu0 }
 0x5cc   :  { %v2615_v52 = vadd.f32 %v5848_v18, %v11500_v39  ;;  %v2609_v26 = vpop.f32.mrb[65].mxu0  ;;  %v11512_v18 = vld [vmem:[#allocation150_spill] sm:$0xff] }
 0x5cd   :  { %v2610_v25 = vadd.f32 %v2609_v26, %v11501_v33 }
 0x5ce   :  { %v2769_v51 = vadd.f32 %v2615_v52, %v11502_v8 }
 0x5cf   :  { %v2768_v4 = vadd.f32 %v2610_v25, %v11503_v16  ;;  %v5851_v3 = vpop.f32.mrb[66].mxu0  ;;  %v11513_v25 = vld [vmem:[#allocation21_spill] sm:$0xff] }
 0x5d0   :  { %v5050_v23 = vmul.f32 -1.442695, %v2769_v51  ;;  %v2625_v48 = vadd.f32 %v5851_v3, %v11504_v0  ;;  %v2619_v29 = vpop.f32.mrb[67].mxu0 }
 0x5d1   :  { %v5049_v54 = vmul.f32 -1.442695, %v2768_v4  ;;  %v2620_v47 = vadd.f32 %v2619_v29, %v11505_v9 }
 0x5d2   :  { %6783 = vpow2.f32 %v5050_v23  ;;  %v2771_v63 = vadd.f32 %v2625_v48, %v11382_v28  ;;  %v11514_v48 = vld [vmem:[#allocation9_spill] sm:$0xff] }
 0x5d3   :  { %6785 = vpow2.f32 %v5049_v54  ;;  %v2770_v45 = vadd.f32 %v2620_v47, %v11383_v14  ;;  %v5854_v36 = vpop.f32.mrb[68].mxu0 }
 0x5d4   :  { %v5052_v62 = vmul.f32 -1.442695, %v2771_v63  ;;  %v2635_v30 = vadd.f32 %v5854_v36, %v11506_v24  ;;  %v2629_v38 = vpop.f32.mrb[69].mxu0 }
 0x5d5   :  { %v5051_v59 = vmul.f32 -1.442695, %v2770_v45  ;;  %v2630_v13 = vadd.f32 %v2629_v38, %v11507_v56 }
 0x5d6   :  { %6787 = vpow2.f32 %v5052_v62  ;;  %v2773_v11 = vadd.f32 %v2635_v30, %v11386_v46  ;;  %v11515_v62 = vld [vmem:[#allocation46_spill] sm:$0xff] }
 0x5d7   :  { %6789 = vpow2.f32 %v5051_v59  ;;  %v2772_v2 = vadd.f32 %v2630_v13, %v11508_v58  ;;  %v5857_v10 = vpop.f32.mrb[70].mxu0  ;;  %v11516_v13 = vld [vmem:[#allocation47_spill] sm:$0xff] }
 0x5d8   :  { %v5054_v17 = vmul.f32 -1.442695, %v2773_v11  ;;  %v2645_v6 = vadd.f32 %v5857_v10, %v11509_v53  ;;  %v2639_v20 = vpop.f32.mrb[71].mxu0  ;;  %v11518_v53 = vld [vmem:[#allocation92_spill] sm:$0xff] }
 0x5d9   :  { %v5053_v61 = vmul.f32 -1.442695, %v2772_v2  ;;  %v2640_v1 = vadd.f32 %v2639_v20, %v11510_v44  ;;  %v11517_v2 = vld [vmem:[#allocation91_spill] sm:$0xff] }
 0x5da   :  { %6791 = vpow2.f32 %v5054_v17  ;;  %v2775_v15 = vadd.f32 %v2645_v6, %v11511_v21 }
 0x5db   :  { %6793 = vpow2.f32 %v5053_v61  ;;  %v2774_v39 = vadd.f32 %v2640_v1, %v11512_v18  ;;  %v5860_v52 = vpop.f32.mrb[72].mxu0  ;;  %v11519_v1 = vld [vmem:[#allocation81_spill] sm:$0xff] }
 0x5dc   :  { %v6784_v26 = vpop.eup %6783  ;;  %v5056_v33 = vmul.f32 -1.442695, %v2775_v15  ;;  %v2655_v51 = vadd.f32 %v5860_v52, %v11513_v25  ;;  %v2649_v4 = vpop.f32.mrb[73].mxu0  ;;  %v11520_v25 = vld [vmem:[#allocation82_spill] sm:$0xff] }
 0x5dd   :  { %v6786_v3 = vpop.eup %6785  ;;  %v2825_v23 = vadd.f32 1.0, %v6784_v26  ;;  %v5055_v0 = vmul.f32 -1.442695, %v2774_v39  ;;  %v2650_v29 = vadd.f32 %v2649_v4, %v11514_v48  ;;  %v11521_v4 = vld [vmem:[#allocation123_spill] sm:$0xff] }
 0x5de   :  { %6795 = vpow2.f32 %v5056_v33  ;;  %v2777_v54 = vadd.f32 %v2655_v51, %v11330_v34  ;;  %v2824_v9 = vadd.f32 1.0, %v6786_v3 }
 0x5df   :  { %v2776_v47 = vadd.f32 %v2650_v29, %v11331_v43  ;;  %v5863_v63 = vpop.f32.mrb[74].mxu0  ;;  %6797 = vrcp.f32 %v2825_v23 }
 0x5e0   :  { %v6788_v45 = vpop.eup %6787  ;;  %v5058_v36 = vmul.f32 -1.442695, %v2777_v54  ;;  %v2665_v24 = vadd.f32 %v5863_v63, %v11515_v62  ;;  %v2659_v30 = vpop.f32.mrb[75].mxu0  ;;  %6799 = vpow2.f32 %v5055_v0  ;;  %v11522_v0 = vld [vmem:[#allocation124_spill] sm:$0xff] }
 0x5e1   :  { %v6790_v38 = vpop.eup %6789  ;;  %v2827_v59 = vadd.f32 1.0, %v6788_v45  ;;  %v5057_v56 = vmul.f32 -1.442695, %v2776_v47  ;;  %v2660_v11 = vadd.f32 %v2659_v30, %v11516_v13  ;;  %v11523_v47 = vld [vmem:[#allocation113_spill] sm:$0xff] }
 0x5e2   :  { %6801 = vpow2.f32 %v5058_v36  ;;  %v2779_v10 = vadd.f32 %v2665_v24, %v11517_v2  ;;  %v2826_v17 = vadd.f32 1.0, %v6790_v38  ;;  %v11524_v24 = vld [vmem:[#allocation114_spill] sm:$0xff] }
 0x5e3   :  { %6803 = vrcp.f32 %v2824_v9  ;;  %v2778_v6 = vadd.f32 %v2660_v11, %v11518_v53  ;;  %v5866_v20 = vpop.f32.mrb[76].mxu0  ;;  %v11526_v11 = vld [vmem:[#allocation156_spill] sm:$0xff] }
 0x5e4   :  { %v6792_v61 = vpop.eup %6791  ;;  %6805 = vrcp.f32 %v2827_v59  ;;  %v5060_v44 = vmul.f32 -1.442695, %v2779_v10  ;;  %v2675_v15 = vadd.f32 %v5866_v20, %v11519_v1  ;;  %v2669_v39 = vpop.f32.mrb[77].mxu0  ;;  %v11525_v59 = vld [vmem:[#allocation155_spill] sm:$0xff] }
 0x5e5   :  { %v6794_v52 = vpop.eup %6793  ;;  %v2829_v26 = vadd.f32 1.0, %v6792_v61  ;;  %6807 = vpow2.f32 %v5057_v56  ;;  %v5059_v33 = vmul.f32 -1.442695, %v2778_v6  ;;  %v2670_v51 = vadd.f32 %v2669_v39, %v11520_v25 }
 0x5e6   :  { %6809 = vpow2.f32 %v5060_v44  ;;  %v2781_v3 = vadd.f32 %v2675_v15, %v11521_v4  ;;  %v2828_v23 = vadd.f32 1.0, %v6794_v52  ;;  %v11527_v44 = vld [vmem:[#allocation131_spill] sm:$0xff] }
 0x5e7   :  { %6811 = vrcp.f32 %v2826_v17  ;;  %v2780_v48 = vadd.f32 %v2670_v51, %v11522_v0  ;;  %v5869_v29 = vpop.f32.mrb[78].mxu0 }
 0x5e8   :  { %v6796_v54 = vpop.eup %6795  ;;  %6813 = vrcp.f32 %v2829_v26  ;;  %v5062_v9 = vmul.f32 -1.442695, %v2781_v3  ;;  %v2685_v63 = vadd.f32 %v5869_v29, %v11523_v47  ;;  %v2679_v45 = vpop.f32.mrb[79].mxu0  ;;  %v11530_v47 = vld [vmem:[#allocation163_spill] sm:$0xff] }
 0x5e9   :  { %v2831_v36 = vadd.f32 1.0, %v6796_v54  ;;  %6815 = vpow2.f32 %v5059_v33  ;;  %v5061_v62 = vmul.f32 -1.442695, %v2780_v48  ;;  %v2680_v30 = vadd.f32 %v2679_v45, %v11524_v24  ;;  %v10050_v38 = vpop.eup %6797  ;;  %v11528_v33 = vld [vmem:[#allocation132_spill] sm:$0xff]  ;;  %v11529_v54 = vld [vmem:[#allocation181_spill] sm:$0xff]  ;;  %v11531_v24 = vld [vmem:[#allocation182_spill] sm:$0xff] }
 0x5ea   :  { %6817 = vpow2.f32 %v5062_v9  ;;  %v2783_v56 = vadd.f32 %v2685_v63, %v11525_v59  ;;  %v6800_v13 = vpop.eup %6799 }
 0x5eb   :  { %6819 = vrcp.f32 %v2828_v23  ;;  %v2782_v10 = vadd.f32 %v2680_v30, %v11526_v11  ;;  %v5872_v17 = vpop.f32.mrb[80].mxu0  ;;  %v2830_v20 = vadd.f32 1.0, %v6800_v13 }
 0x5ec   :  { %v6802_v6 = vpop.eup %6801  ;;  %6821 = vpow2.f32 %v5061_v62  ;;  %v5064_v61 = vmul.f32 -1.442695, %v2783_v56  ;;  %v2695_v1 = vadd.f32 %v5872_v17, %v11527_v44  ;;  %v2689_v15 = vpop.f32.mrb[81].mxu0  ;;  %v11532_v56 = vld [vmem:[#allocation164_spill] sm:$0xff]  ;;  %v11533_v44 = vld [vmem:[#allocation199_spill] sm:$0xff] }
 0x5ed   :  { %v10055_v39 = vpop.eup %6803  ;;  %6823 = vrcp.f32 %v2831_v36  ;;  %v2873_v52 = vadd.f32 1.0, %v6802_v6  ;;  %v5063_v26 = vmul.f32 -1.442695, %v2782_v10  ;;  %v2690_v25 = vadd.f32 %v2689_v15, %v11528_v33  ;;  %v11534_v15 = vld [vmem:[#allocation193_spill] sm:$0xff] }
 0x5ee   :  { %v10058_v51 = vpop.eup %6805  ;;  %6825 = vrcp.f32 %v2830_v20  ;;  %v2785_v9 = vadd.f32 %v2695_v1, %v11529_v54 }
 0x5ef   :  { %v6808_v3 = vpop.eup %6807  ;;  %6827 = vrcp.f32 %v2873_v52  ;;  %v5875_v23 = vpop.f32.mrb[82].mxu0  ;;  %v2784_v30 = vadd.f32 %v2690_v25, %v11531_v24  ;;  %v11535_v25 = vld [vmem:[#allocation194_spill] sm:$0xff] }
 0x5f0   :  { %v6810_v48 = vpop.eup %6809  ;;  %v2872_v29 = vadd.f32 1.0, %v6808_v3  ;;  %6829 = vpow2.f32 %v5064_v61  ;;  %v2705_v63 = vadd.f32 %v5875_v23, %v11530_v47  ;;  %v2699_v45 = vpop.f32.mrb[83].mxu0 }
 0x5f1   :  { %v10062_v62 = vpop.eup %6811  ;;  %v2875_v36 = vadd.f32 1.0, %v6810_v48  ;;  %6831 = vpow2.f32 %v5063_v26  ;;  %v2700_v13 = vadd.f32 %v2699_v45, %v11532_v56 }
 0x5f2   :  { %v10066_v10 = vpop.eup %6813  ;;  %6833 = vrcp.f32 %v2872_v29  ;;  %v2787_v1 = vadd.f32 %v2705_v63, %v11533_v44  ;;  %v11536_v29 = vld [vmem:[#allocation200_spill] sm:$0xff] }
 0x5f3   :  { %v6816_v17 = vpop.eup %6815  ;;  %6835 = vrcp.f32 %v2875_v36  ;;  %v5878_v6 = vpop.f32.mrb[84].mxu0  ;;  %v2786_v47 = vadd.f32 %v2700_v13, %v11536_v29 }
 0x5f4   :  { %v6818_v20 = vpop.eup %6817  ;;  %v2874_v61 = vadd.f32 1.0, %v6816_v17  ;;  %6837 = vtanh.f32 %v2785_v9  ;;  %v2715_v52 = vadd.f32 %v5878_v6, %v11534_v15  ;;  %v2709_v33 = vpop.f32.mrb[85].mxu0  ;;  %v11537_v9 = vld [vmem:[#allocation230_spill] sm:$0xff]  ;;  %v11538_v6 = vld [vmem:[#allocation233_spill] sm:$0xff] }
 0x5f5   :  { %v10070_v3 = vpop.eup %6819  ;;  %v2877_v26 = vadd.f32 1.0, %v6818_v20  ;;  %6839 = vtanh.f32 %v2784_v30  ;;  %v2710_v23 = vadd.f32 %v2709_v33, %v11535_v25  ;;  %v11539_v20 = vld [vmem:[#allocation229_spill] sm:$0xff] }
 0x5f6   :  { %v6822_v48 = vpop.eup %6821  ;;  %6841 = vrcp.f32 %v2874_v61  ;;  %v2789_v56 = vadd.f32 %v2715_v52, %v11537_v9  ;;  %v11540_v61 = vld [vmem:[#allocation231_spill] sm:$0xff] }
 0x5f7   :  { %v10074_v45 = vpop.eup %6823  ;;  %6843 = vrcp.f32 %v2877_v26  ;;  %v2876_v36 = vadd.f32 1.0, %v6822_v48  ;;  %v5881_v63 = vpop.f32.mrb[86].mxu0  ;;  %v2788_v15 = vadd.f32 %v2710_v23, %v11538_v6  ;;  %v11541_v23 = vld [vmem:[#allocation145_spill] sm:$0xff] }
 0x5f8   :  { %v10077_v17 = vpop.eup %6825  ;;  %6845 = vtanh.f32 %v2787_v1  ;;  %v2725_v30 = vadd.f32 %v5881_v63, %v11539_v20  ;;  %v2719_v44 = vpop.f32.mrb[87].mxu0 }
 0x5f9   :  { %v6828_v33 = vpop.eup %6827  ;;  %6847 = vrcp.f32 %v2876_v36  ;;  %v2720_v25 = vadd.f32 %v2719_v44, %v11540_v61  ;;  %v11542_v44 = vld [vmem:[#allocation146_spill] sm:$0xff] }
 0x5fa   :  { %v6830_v13 = vpop.eup %6829  ;;  %6849 = vtanh.f32 %v2786_v47  ;;  %v2791_v52 = vadd.f32 %v2725_v30, %v9018_v41  ;;  %v2953_v36 = vmul.f32 %v6828_v33, %v9910_v55  ;;  %v11543_v33 = vld [vmem:[#allocation177_spill] sm:$0xff] }
 0x5fb   :  { %v6832_v29 = vpop.eup %6831  ;;  %v2879_v26 = vadd.f32 1.0, %v6830_v13  ;;  %6851 = vtanh.f32 %v2789_v56  ;;  %v5884_v48 = vpop.f32.mrb[88].mxu0  ;;  %v2790_v1 = vadd.f32 %v2720_v25, %v9026_v57 }
 0x5fc   :  { %v6834_v9 = vpop.eup %6833  ;;  %v2878_v24 = vadd.f32 1.0, %v6832_v29  ;;  %6853 = vtanh.f32 %v2788_v15  ;;  %v2735_v63 = vadd.f32 %v5884_v48, %v11541_v23  ;;  %v2729_v20 = vpop.f32.mrb[89].mxu0 }
 0x5fd   :  { %v6836_v6 = vpop.eup %6835  ;;  %6855 = vrcp.f32 %v2879_v26  ;;  %v2730_v47 = vadd.f32 %v2729_v20, %v11542_v44  ;;  %v2952_v56 = vmul.f32 %v6834_v9, %v9914_v60 }
 0x5fe   :  { %v6838_v61 = vpop.eup %6837  ;;  %6857 = vrcp.f32 %v2878_v24  ;;  %v2793_v30 = vadd.f32 %v2735_v63, %v8627_v49  ;;  %v2955_v60 = vmul.f32 %v6836_v6, %v9923_v35  ;;  %v11544_v63 = vld [vmem:[#allocation178_spill] sm:$0xff] }
 0x5ff   :  { %v6840_v13 = vpop.eup %6839  ;;  %v2961_v29 = vmul.f32 %v6838_v61, %v10050_v38  ;;  %6859 = vtanh.f32 %v2791_v52  ;;  %v2792_v15 = vadd.f32 %v2730_v47, %v8629_v50  ;;  %v5887_v25 = vpop.f32.mrb[90].mxu0 }
 0x600   :  { %v6842_v48 = vpop.eup %6841  ;;  %v2960_v23 = vmul.f32 %v6840_v13, %v10055_v39  ;;  %6861 = vtanh.f32 %v2790_v1  ;;  %v5066_v55 = vmul.f32 -1.442695, %v2793_v30  ;;  %v2745_v26 = vadd.f32 %v5887_v25, %v11543_v33  ;;  %v2739_v20 = vpop.f32.mrb[91].mxu0  ;;  %v11545_v25 = vld [vmem:[#allocation203_spill] sm:$0xff] }
 0x601   :  { %v6844_v44 = vpop.eup %6843  ;;  %v10094_v24 = vadd.f32 %v2961_v29, %v2953_v36  ;;  %v5065_v9 = vmul.f32 -1.442695, %v2792_v15  ;;  %v2740_v38 = vadd.f32 %v2739_v20, %v11544_v63  ;;  %v2954_v47 = vmul.f32 %v6842_v48, %v9929_v19 }
 0x602   :  { %v6846_v52 = vpop.eup %6845  ;;  %v10098_v61 = vadd.f32 %v2960_v23, %v2952_v56  ;;  %6863 = vpow2.f32 %v5066_v55  ;;  %v2795_v39 = vadd.f32 %v2745_v26, %v8785_v12  ;;  %v2957_v30 = vmul.f32 %v6844_v44, %v9934_v5 }
 0x603   :  { %v6848_v1 = vpop.eup %6847  ;;  %v2963_v13 = vmul.f32 %v6846_v52, %v10058_v51  ;;  %6865 = vpow2.f32 %v5065_v9  ;;  %v2794_v35 = vadd.f32 %v2740_v38, %v8787_v7  ;;  %v5890_v6 = vpop.f32.mrb[92].mxu0  ;;  %v11546_v51 = vld [vmem:[#allocation204_spill] sm:$0xff] }
 0x604   :  { %v6850_v36 = vpop.eup %6849  ;;  %v2956_v29 = vmul.f32 %v6848_v1, %v9938_v42  ;;  %v5068_v15 = vmul.f32 -1.442695, %v2795_v39  ;;  %v2755_v19 = vadd.f32 %v5890_v6, %v11545_v25  ;;  %v2749_v56 = vpop.f32.mrb[93].mxu0  ;;  %6867 = vtanh.f32 %v10098_v61 }
 0x605   :  { %v6852_v48 = vpop.eup %6851  ;;  %v10107_v23 = vadd.f32 %v2963_v13, %v2955_v60  ;;  %v2962_v5 = vmul.f32 %v6850_v36, %v10062_v62  ;;  %v5067_v55 = vmul.f32 -1.442695, %v2794_v35  ;;  %v2750_v33 = vadd.f32 %v2749_v56, %v11546_v51  ;;  %v11547_v13 = vld [vmem:[#allocation232_spill] sm:$0xff] }
 0x606   :  { %v6854_v26 = vpop.eup %6853  ;;  %v2965_v20 = vmul.f32 %v6852_v48, %v10066_v10  ;;  %6869 = vpow2.f32 %v5068_v15  ;;  %v2797_v42 = vadd.f32 %v2755_v19, %v8984_v31 }
 0x607   :  { %v6856_v44 = vpop.eup %6855  ;;  %v10113_v9 = vadd.f32 %v2962_v5, %v2954_v47  ;;  %v2964_v63 = vmul.f32 %v6854_v26, %v10070_v3  ;;  %6871 = vpow2.f32 %v5067_v55  ;;  %v2796_v60 = vadd.f32 %v2750_v33, %v8993_v32  ;;  %v5893_v38 = vpop.f32.mrb[94].mxu0  ;;  %v11548_v3 = vld [vmem:[#allocation234_spill] sm:$0xff] }
 0x608   :  { %v6858_v52 = vpop.eup %6857  ;;  %v2959_v62 = vmul.f32 %v6856_v44, %v9945_v22  ;;  %v10118_v39 = vadd.f32 %v2965_v20, %v2957_v30  ;;  %v5070_v1 = vmul.f32 -1.442695, %v2797_v42  ;;  %v2765_v10 = vadd.f32 %v5893_v38, %v11547_v13  ;;  %v2759_v35 = vpop.f32.mrb[95].mxu0 }
 0x609   :  { %v6860_v6 = vpop.eup %6859  ;;  %v2958_v36 = vmul.f32 %v6858_v52, %v9948_v27  ;;  %v10122_v47 = vadd.f32 %v2964_v63, %v2956_v29  ;;  %v5069_v15 = vmul.f32 -1.442695, %v2796_v60  ;;  %v2760_v25 = vadd.f32 %v2759_v35, %v11548_v3 }
 0x60a   :  { %v6862_v19 = vpop.eup %6861  ;;  %v2967_v56 = vmul.f32 %v6860_v6, %v10074_v45  ;;  %6873 = vpow2.f32 %v5070_v1  ;;  %v2799_v22 = vadd.f32 %v2765_v10, %v9063_v37 }
 0x60b   :  { %v2966_v30 = vmul.f32 %v6862_v19, %v10077_v17  ;;  %6875 = vpow2.f32 %v5069_v15  ;;  %v2798_v48 = vadd.f32 %v2760_v25, %v9067_v40 }
 0x60c   :  { %v6864_v5 = vpop.eup %6863  ;;  %v10129_v55 = vadd.f32 %v2967_v56, %v2959_v62  ;;  %v5072_v27 = vmul.f32 -1.442695, %v2799_v22  ;;  %6877 = vtanh.f32 %v10094_v24 }
 0x60d   :  { %v6866_v29 = vpop.eup %6865  ;;  %v10132_v51 = vadd.f32 %v2966_v30, %v2958_v36  ;;  %v2929_v33 = vadd.f32 1.0, %v6864_v5  ;;  %v5071_v26 = vmul.f32 -1.442695, %v2798_v48  ;;  %6879 = vtanh.f32 %v10113_v9 }
 0x60e   :  { %v6868_v45 = vpop.eup %6867  ;;  %v2928_v20 = vadd.f32 1.0, %v6866_v29  ;;  %6881 = vpow2.f32 %v5072_v27 }
 0x60f   :  { %6883 = vrcp.f32 %v2929_v33 }
 0x610   :  { %v6870_v17 = vpop.eup %6869  ;;  %6885 = vrcp.f32 %v2928_v20 }
 0x611   :  { %v6872_v42 = vpop.eup %6871  ;;  %v2931_v44 = vadd.f32 1.0, %v6870_v17  ;;  %6887 = vpow2.f32 %v5071_v26 }
 0x612   :  { %v2930_v63 = vadd.f32 1.0, %v6872_v42  ;;  %6889 = vtanh.f32 %v10107_v23 }
 0x613   :  { %6891 = vrcp.f32 %v2931_v44 }
 0x614   :  { %v6874_v60 = vpop.eup %6873  ;;  %6893 = vrcp.f32 %v2930_v63 }
 0x615   :  { %v6876_v38 = vpop.eup %6875  ;;  %v2933_v52 = vadd.f32 1.0, %v6874_v60  ;;  %6895 = vtanh.f32 %v10122_v47 }
 0x616   :  { %v6878_v62 = vpop.eup %6877  ;;  %v2932_v1 = vadd.f32 1.0, %v6876_v38  ;;  %6897 = vtanh.f32 %v10118_v39 }
 0x617   :  { %v6880_v13 = vpop.eup %6879  ;;  %6899 = vrcp.f32 %v2933_v52 }
 0x618   :  { %v6882_v10 = vpop.eup %6881  ;;  %6901 = vrcp.f32 %v2932_v1 }
 0x619   :  { %v6884_v35 = vpop.eup %6883  ;;  %v2935_v6 = vadd.f32 1.0, %v6882_v10 }
 0x61a   :  { %v6886_v36 = vpop.eup %6885  ;;  %v2985_v15 = vmul.f32 %v6884_v35, %v6878_v62  ;;  %v10150_v35 = vld [vmem:[%s10915_s1 + $0x10] sm:$0xff] }
 0x61b   :  { %v6888_v3 = vpop.eup %6887  ;;  %6903 = vrcp.f32 %v2935_v6  ;;  %v2984_v25 = vmul.f32 %v6886_v36, %v6868_v45  ;;  %v10157_v6 = vld [vmem:[%s10915_s1 + $0x18] sm:$0xff]  ;;  %v10164_v36 = vld [vmem:[%s10915_s1 + $0x20] sm:$0xff] }
 0x61c   :  { %v6890_v19 = vpop.eup %6889  ;;  %v2934_v56 = vadd.f32 1.0, %v6888_v3  ;;  %6905 = vtanh.f32 %v10129_v55  ;;  %v10178_v3 = vld [vmem:[%s10915_s1 + $0x30] sm:$0xff] }
 0x61d   :  { %v6892_v22 = vpop.eup %6891  ;;  %v6190_v30 = vpack.c.bf16 %v2985_v15, %v2984_v25  ;;  %6907 = vtanh.f32 %v10132_v51  ;;  %v10171_v15 = vld [vmem:[%s10915_s1 + $0x28] sm:$0xff]  ;;  %v10185_v25 = vld [vmem:[%s10915_s1 + $0x38] sm:$0xff] }
 0x61e   :  { %v6894_v48 = vpop.eup %6893  ;;  %6909 = vrcp.f32 %v2934_v56  ;;  %v2987_v5 = vmul.f32 %v6892_v22, %v6890_v19  ;;  %v10192_v19 = vld [vmem:[%s10915_s1 + $0x40] sm:$0xff]  ;;  %v10199_v56 = vld [vmem:[%s10915_s1 + $0x48] sm:$0xff]  ;;  %v10206_v22 = vld [vmem:[%s10915_s1 + $0x50] sm:$0xff] }
 0x61f   :  { %v6896_v27 = vpop.eup %6895  ;;  %6191 = vmatprep.subr.bf16.mxu1 %v6190_v30  ;;  %v2986_v29 = vmul.f32 %v6894_v48, %v6880_v13  ;;  %v10143_v13 = vld [vmem:[%s10915_s1 + $0x8] sm:$0xff]  ;;  %v10220_v48 = vld [vmem:[%s10915_s1 + $0x60] sm:$0xff] }
 0x620   :  { %v6898_v33 = vpop.eup %6897  ;;  %6193 = vmatpush3.bf16.msra.mxu1 %v6190_v30  ;;  %v10213_v30 = vld [vmem:[%s10915_s1 + $0x58] sm:$0xff] }
 0x621   :  { %v6900_v26 = vpop.eup %6899  ;;  %v6194_v20 = vpack.c.bf16 %v2987_v5, %v2986_v29  ;;  %v10227_v5 = vld [vmem:[%s10915_s1 + $0x68] sm:$0xff]  ;;  %v10241_v29 = vld [vmem:[%s10915_s1 + $0x78] sm:$0xff] }
 0x622   :  { %v6902_v17 = vpop.eup %6901  ;;  %v2989_v45 = vmul.f32 %v6900_v26, %v6898_v33  ;;  %11549 = vst [vmem:[#allocation158_spill] sm:$0xff] %v10227_v5  ;;  %11551 = vst [vmem:[#allocation188_spill] sm:$0xff] %v10241_v29  ;;  %v10248_v33 = vld [vmem:[%s10915_s1 + $0x80] sm:$0xff]  ;;  %v10255_v26 = vld [vmem:[%s10915_s1 + $0x88] sm:$0xff] }
 0x623   :  { %6195 = vmatprep.subr.bf16.mxu1 %v6194_v20  ;;  %v2988_v42 = vmul.f32 %v6902_v17, %v6896_v27  ;;  %v10234_v27 = vld [vmem:[%s10915_s1 + $0x70] sm:$0xff]  ;;  %11552 = vst [vmem:[#allocation217_spill] sm:$0xff] %v10248_v33  ;;  %11553 = vst [vmem:[#allocation218_spill] sm:$0xff] %v10255_v26  ;;  %v10269_v17 = vld [vmem:[%s10915_s1 + $0x98] sm:$0xff] }
 0x624   :  { %6197 = vmatpush3.bf16.msra.mxu1 %v6194_v20  ;;  %11550 = vst [vmem:[#allocation187_spill] sm:$0xff] %v10234_v27  ;;  %v10262_v20 = vld [vmem:[%s10915_s1 + $0x90] sm:$0xff]  ;;  %11555 = vst [vmem:[#allocation140_spill] sm:$0xff] %v10269_v17 }
 0x625   :  { %v6904_v44 = vpop.eup %6903  ;;  %v6198_v63 = vpack.c.bf16 %v2989_v45, %v2988_v42  ;;  %11554 = vst [vmem:[#allocation139_spill] sm:$0xff] %v10262_v20  ;;  %v10276_v45 = vld [vmem:[%s10915_s1 + $0xa0] sm:$0xff]  ;;  %v10283_v42 = vld [vmem:[%s10915_s1 + $0xa8] sm:$0xff] }
 0x626   :  { %v6906_v60 = vpop.eup %6905  ;;  %11556 = vst [vmem:[#allocation171_spill] sm:$0xff] %v10276_v45  ;;  %11557 = vst [vmem:[#allocation172_spill] sm:$0xff] %v10283_v42 }
 0x627   :  { %v6908_v38 = vpop.eup %6907  ;;  %6199 = vmatprep.subr.bf16.mxu1 %v6198_v63  ;;  %v2991_v52 = vmul.f32 %v6906_v60, %v6904_v44  ;;  %v10290_v44 = vld [vmem:[%s10915_s1 + $0xb0] sm:$0xff]  ;;  %v10304_v60 = vld [vmem:[%s10915_s1 + $0xc0] sm:$0xff] }
 0x628   :  { %v6910_v62 = vpop.eup %6909  ;;  %6201 = vmatpush3.bf16.msra.mxu1 %v6198_v63  ;;  %11558 = vst [vmem:[#allocation195_spill] sm:$0xff] %v10290_v44  ;;  %v10297_v63 = vld [vmem:[%s10915_s1 + $0xb8] sm:$0xff]  ;;  %11560 = vst [vmem:[#allocation219_spill] sm:$0xff] %v10304_v60 }
 0x629   :  { %v2990_v1 = vmul.f32 %v6910_v62, %v6908_v38  ;;  %11559 = vst [vmem:[#allocation196_spill] sm:$0xff] %v10297_v63  ;;  %v10311_v38 = vld [vmem:[%s10915_s1 + $0xc8] sm:$0xff]  ;;  %v10325_v62 = vld [vmem:[%s10915_s1 + $0xd8] sm:$0xff] }
 0x62a   :  { %11561 = vst [vmem:[#allocation220_spill] sm:$0xff] %v10311_v38  ;;  %11563 = vst [vmem:[#allocation248_spill] sm:$0xff] %v10325_v62 }
 0x62b   :  { %v6202_v10 = vpack.c.bf16 %v2991_v52, %v2990_v1  ;;  %v10318_v52 = vld [vmem:[%s10915_s1 + $0xd0] sm:$0xff]  ;;  %v10332_v1 = vld [vmem:[%s10915_s1 + $0xe0] sm:$0xff] }
 0x62c   :  { %11562 = vst [vmem:[#allocation247_spill] sm:$0xff] %v10318_v52  ;;  %11564 = vst [vmem:[#allocation249_spill] sm:$0xff] %v10332_v1 }
 0x62d   :  { %6203 = vmatprep.subr.bf16.mxu1 %v6202_v10 }
 0x62e   :  { %6205 = vmatpush3.bf16.msra.mxu1 %v6202_v10  ;;  %v10339_v10 = vld [vmem:[%s10915_s1 + $0xe8] sm:$0xff] }
 0x62f   :  { %11565 = vst [vmem:[#allocation250_spill] sm:$0xff] %v10339_v10 }
 0x631   :  { %5911 = vmatmul.mubr.msk.f32.vlgmr.msra.gmra.mrb[64].mxu1 %vm330_vm0, %v10143_v13 }
 0x632   :  { %5913 = vmatprep.mubr.msk.f32.mxu1 %vm330_vm0, %v10150_v35 }
 0x635   :  { %5914 = vmatmul.mubr.msk.f32.gmra.mrb[66].mxu1 %vm330_vm0, %v10157_v6 }
 0x636   :  { %5916 = vmatprep.mubr.msk.f32.mxu1 %vm330_vm0, %v10164_v36 }
 0x639   :  { %5917 = vmatmul.mubr.msk.f32.gmra.mrb[68].mxu1 %vm330_vm0, %v10171_v15 }
 0x63a   :  { %5919 = vmatprep.mubr.msk.f32.mxu1 %vm330_vm0, %v10178_v3 }
 0x63d   :  { %5920 = vmatmul.mubr.msk.f32.gmra.mrb[70].mxu1 %vm330_vm0, %v10185_v25 }
 0x63e   :  { %5922 = vmatprep.mubr.msk.f32.mxu1 %vm330_vm0, %v10192_v19 }
 0x641   :  { %5923 = vmatmul.mubr.msk.f32.gmra.mrb[72].mxu1 %vm330_vm0, %v10199_v56 }
 0x642   :  { %5925 = vmatprep.mubr.msk.f32.mxu1 %vm330_vm0, %v10206_v22 }
 0x645   :  { %5926 = vmatmul.mubr.msk.f32.gmra.mrb[74].mxu1 %vm330_vm0, %v10213_v30 }
 0x646   :  { %5928 = vmatprep.mubr.msk.f32.mxu1 %vm330_vm0, %v10220_v48 }
 0x649   :  { %5929 = vmatmul.mubr.msk.f32.gmra.mrb[76].mxu1 %vm330_vm0, %v10227_v5 }
 0x64a   :  { %5931 = vmatprep.mubr.msk.f32.mxu1 %vm330_vm0, %v10234_v27  ;;  %v11571_v27 = vld [vmem:[#allocation36_spill] sm:$0xff] }
 0x64d   :  { %5932 = vmatmul.mubr.msk.f32.gmra.mrb[78].mxu1 %vm330_vm0, %v10241_v29 }
 0x64e   :  { %5934 = vmatprep.mubr.msk.f32.mxu1 %vm330_vm0, %v10248_v33 }
 0x651   :  { %5935 = vmatmul.mubr.msk.f32.gmra.mrb[80].mxu1 %vm330_vm0, %v10255_v26  ;;  %v11570_v26 = vld [vmem:[#allocation35_spill] sm:$0xff] }
 0x652   :  { %5937 = vmatprep.mubr.msk.f32.mxu1 %vm330_vm0, %v10262_v20 }
 0x655   :  { %5938 = vmatmul.mubr.msk.f32.gmra.mrb[82].mxu1 %vm330_vm0, %v10269_v17 }
 0x656   :  { %5940 = vmatprep.mubr.msk.f32.mxu1 %vm330_vm0, %v10276_v45 }
 0x659   :  { %5941 = vmatmul.mubr.msk.f32.gmra.mrb[84].mxu1 %vm330_vm0, %v10283_v42 }
 0x65a   :  { %5943 = vmatprep.mubr.msk.f32.mxu1 %vm330_vm0, %v10290_v44  ;;  %v11569_v44 = vld [vmem:[#allocation10_spill] sm:$0xff] }
 0x65d   :  { %5944 = vmatmul.mubr.msk.f32.gmra.mrb[86].mxu1 %vm330_vm0, %v10297_v63 }
 0x65e   :  { %5946 = vmatprep.mubr.msk.f32.mxu1 %vm330_vm0, %v10304_v60 }
 0x661   :  { %5947 = vmatmul.mubr.msk.f32.gmra.mrb[88].mxu1 %vm330_vm0, %v10311_v38  ;;  %v11568_v38 = vld [vmem:[#allocation22_spill] sm:$0xff] }
 0x662   :  { %5949 = vmatprep.mubr.msk.f32.mxu1 %vm330_vm0, %v10318_v52 }
 0x665   :  { %5950 = vmatmul.mubr.msk.f32.gmra.mrb[90].mxu1 %vm330_vm0, %v10325_v62  ;;  %v10346_v62 = vld [vmem:[%s10915_s1 + $0xf0] sm:$0xff] }
 0x666   :  { %5952 = vmatprep.mubr.msk.f32.mxu1 %vm330_vm0, %v10332_v1  ;;  %11566 = vst [vmem:[#allocation251_spill] sm:$0xff] %v10346_v62  ;;  %v10353_v1 = vld [vmem:[%s10915_s1 + $0xf8] sm:$0xff] }
 0x667   :  { %11567 = vst [vmem:[#allocation252_spill] sm:$0xff] %v10353_v1 }
 0x669   :  { %5953 = vmatmul.mubr.msk.f32.gmra.mrb[92].mxu1 %vm330_vm0, %v10339_v10  ;;  %v7390_v10 = vld [vmem:[%s10915_s1] sm:$0xff] }
 0x66a   :  { %5955 = vmatprep.mubr.msk.f32.mxu1 %vm330_vm0, %v10346_v62 }
 0x66d   :  { %5956 = vmatmul.mubr.msk.f32.gmra.mrb[94].mxu1 %vm330_vm0, %v10353_v1 }
 0x66e   :  { %6038 = vmatprep.mubr.msk.f32.mxu1 %vm330_vm0, %v7390_v10 }
 0x704   :  { %v5912_v52 = vpop.f32.mrb[64].mxu1 }
 0x705   :  { %v3104_v60 = vadd.f32 %v5912_v52, %v11568_v38  ;;  %v3098_v63 = vpop.f32.mrb[65].mxu1 }
 0x706   :  { %v3099_v62 = vadd.f32 %v3098_v63, %v11569_v44  ;;  %v11572_v63 = vld [vmem:[#allocation69_spill] sm:$0xff] }
 0x707   :  { %v3258_v42 = vadd.f32 %v3104_v60, %v11502_v8 }
 0x708   :  { %v3257_v45 = vadd.f32 %v3099_v62, %v11503_v16  ;;  %v5915_v17 = vpop.f32.mrb[66].mxu1  ;;  %v11573_v16 = vld [vmem:[#allocation70_spill] sm:$0xff] }
 0x709   :  { %v5108_v20 = vmul.f32 -1.442695, %v3258_v42  ;;  %v3114_v1 = vadd.f32 %v5915_v17, %v11570_v26  ;;  %v3108_v33 = vpop.f32.mrb[67].mxu1  ;;  %v11574_v17 = vld [vmem:[#allocation101_spill] sm:$0xff] }
 0x70a   :  { %v5107_v29 = vmul.f32 -1.442695, %v3257_v45  ;;  %v3109_v5 = vadd.f32 %v3108_v33, %v11571_v27 }
 0x70b   :  { %6911 = vpow2.f32 %v5108_v20  ;;  %v3260_v10 = vadd.f32 %v3114_v1, %v11382_v28  ;;  %v11575_v1 = vld [vmem:[#allocation102_spill] sm:$0xff] }
 0x70c   :  { %6913 = vpow2.f32 %v5107_v29  ;;  %v3259_v38 = vadd.f32 %v3109_v5, %v11383_v14  ;;  %v5918_v52 = vpop.f32.mrb[68].mxu1 }
 0x70d   :  { %v5110_v44 = vmul.f32 -1.442695, %v3260_v10  ;;  %v3124_v60 = vadd.f32 %v5918_v52, %v11572_v63  ;;  %v3118_v8 = vpop.f32.mrb[69].mxu1  ;;  %v11576_v63 = vld [vmem:[#allocation23_spill] sm:$0xff] }
 0x70e   :  { %v5109_v62 = vmul.f32 -1.442695, %v3259_v38  ;;  %v3119_v42 = vadd.f32 %v3118_v8, %v11573_v16 }
 0x70f   :  { %6915 = vpow2.f32 %v5110_v44  ;;  %v3262_v26 = vadd.f32 %v3124_v60, %v11386_v46 }
 0x710   :  { %6917 = vpow2.f32 %v5109_v62  ;;  %v3261_v27 = vadd.f32 %v3119_v42, %v11508_v58  ;;  %v5921_v33 = vpop.f32.mrb[70].mxu1 }
 0x711   :  { %v5112_v20 = vmul.f32 -1.442695, %v3262_v26  ;;  %v3134_v29 = vadd.f32 %v5921_v33, %v11574_v17  ;;  %v3128_v45 = vpop.f32.mrb[71].mxu1  ;;  %v11577_v33 = vld [vmem:[#allocation11_spill] sm:$0xff] }
 0x712   :  { %v5111_v5 = vmul.f32 -1.442695, %v3261_v27  ;;  %v3129_v10 = vadd.f32 %v3128_v45, %v11575_v1 }
 0x713   :  { %6919 = vpow2.f32 %v5112_v20  ;;  %v3264_v52 = vadd.f32 %v3134_v29, %v11511_v21 }
 0x714   :  { %6921 = vpow2.f32 %v5111_v5  ;;  %v3263_v8 = vadd.f32 %v3129_v10, %v11512_v18  ;;  %v5924_v16 = vpop.f32.mrb[72].mxu1  ;;  %v11578_v10 = vld [vmem:[#allocation48_spill] sm:$0xff] }
 0x715   :  { %v6912_v38 = vpop.eup %6911  ;;  %v5114_v44 = vmul.f32 -1.442695, %v3264_v52  ;;  %v3144_v60 = vadd.f32 %v5924_v16, %v11576_v63  ;;  %v3138_v62 = vpop.f32.mrb[73].mxu1 }
 0x716   :  { %v6914_v42 = vpop.eup %6913  ;;  %v3314_v26 = vadd.f32 1.0, %v6912_v38  ;;  %v5113_v58 = vmul.f32 -1.442695, %v3263_v8  ;;  %v3139_v17 = vadd.f32 %v3138_v62, %v11577_v33  ;;  %v11579_v8 = vld [vmem:[#allocation49_spill] sm:$0xff] }
 0x717   :  { %6923 = vpow2.f32 %v5114_v44  ;;  %v3266_v27 = vadd.f32 %v3144_v60, %v11330_v34  ;;  %v3313_v20 = vadd.f32 1.0, %v6914_v42 }
 0x718   :  { %v3265_v29 = vadd.f32 %v3139_v17, %v11331_v43  ;;  %v5927_v45 = vpop.f32.mrb[74].mxu1  ;;  %6925 = vrcp.f32 %v3314_v26  ;;  %v11580_v17 = vld [vmem:[#allocation83_spill] sm:$0xff] }
 0x719   :  { %v6916_v5 = vpop.eup %6915  ;;  %v5116_v1 = vmul.f32 -1.442695, %v3266_v27  ;;  %v3154_v52 = vadd.f32 %v5927_v45, %v11578_v10  ;;  %v3148_v18 = vpop.f32.mrb[75].mxu1  ;;  %6927 = vpow2.f32 %v5113_v58 }
 0x71a   :  { %v6918_v16 = vpop.eup %6917  ;;  %v3316_v63 = vadd.f32 1.0, %v6916_v5  ;;  %v5115_v38 = vmul.f32 -1.442695, %v3265_v29  ;;  %v3149_v21 = vadd.f32 %v3148_v18, %v11579_v8  ;;  %v11581_v29 = vld [vmem:[#allocation84_spill] sm:$0xff]  ;;  %v11582_v8 = vld [vmem:[#allocation115_spill] sm:$0xff] }
 0x71b   :  { %6929 = vpow2.f32 %v5116_v1  ;;  %v3268_v44 = vadd.f32 %v3154_v52, %v11517_v2  ;;  %v3315_v60 = vadd.f32 1.0, %v6918_v16 }
 0x71c   :  { %6931 = vrcp.f32 %v3313_v20  ;;  %v3267_v62 = vadd.f32 %v3149_v21, %v11518_v53  ;;  %v5930_v42 = vpop.f32.mrb[76].mxu1 }
 0x71d   :  { %v6920_v33 = vpop.eup %6919  ;;  %6933 = vrcp.f32 %v3316_v63  ;;  %v5118_v26 = vmul.f32 -1.442695, %v3268_v44  ;;  %v3164_v27 = vadd.f32 %v5930_v42, %v11580_v17  ;;  %v3158_v45 = vpop.f32.mrb[77].mxu1 }
 0x71e   :  { %v6922_v10 = vpop.eup %6921  ;;  %v3318_v5 = vadd.f32 1.0, %v6920_v33  ;;  %6935 = vpow2.f32 %v5115_v38  ;;  %v5117_v58 = vmul.f32 -1.442695, %v3267_v62  ;;  %v3159_v18 = vadd.f32 %v3158_v45, %v11581_v29  ;;  %v11583_v62 = vld [vmem:[#allocation116_spill] sm:$0xff] }
 0x71f   :  { %6937 = vpow2.f32 %v5118_v26  ;;  %v3270_v1 = vadd.f32 %v3164_v27, %v11521_v4  ;;  %v3317_v20 = vadd.f32 1.0, %v6922_v10 }
 0x720   :  { %6939 = vrcp.f32 %v3315_v60  ;;  %v3269_v21 = vadd.f32 %v3159_v18, %v11522_v0  ;;  %v5933_v52 = vpop.f32.mrb[78].mxu1 }
 0x721   :  { %v6924_v16 = vpop.eup %6923  ;;  %6941 = vrcp.f32 %v3318_v5  ;;  %v5120_v63 = vmul.f32 -1.442695, %v3270_v1  ;;  %v3174_v44 = vadd.f32 %v5933_v52, %v11582_v8  ;;  %v3168_v42 = vpop.f32.mrb[79].mxu1  ;;  %v11584_v1 = vld [vmem:[#allocation133_spill] sm:$0xff] }
 0x722   :  { %v3320_v17 = vadd.f32 1.0, %v6924_v16  ;;  %6943 = vpow2.f32 %v5117_v58  ;;  %v5119_v38 = vmul.f32 -1.442695, %v3269_v21  ;;  %v3169_v33 = vadd.f32 %v3168_v42, %v11583_v62  ;;  %v10391_v45 = vpop.eup %6925 }
 0x723   :  { %6945 = vpow2.f32 %v5120_v63  ;;  %v3272_v60 = vadd.f32 %v3174_v44, %v11525_v59  ;;  %v6928_v26 = vpop.eup %6927  ;;  %v11585_v63 = vld [vmem:[#allocation134_spill] sm:$0xff] }
 0x724   :  { %6947 = vrcp.f32 %v3317_v20  ;;  %v3271_v27 = vadd.f32 %v3169_v33, %v11526_v11  ;;  %v5936_v10 = vpop.f32.mrb[80].mxu1  ;;  %v3319_v29 = vadd.f32 1.0, %v6928_v26 }
 0x725   :  { %v6930_v5 = vpop.eup %6929  ;;  %6949 = vpow2.f32 %v5119_v38  ;;  %v5122_v18 = vmul.f32 -1.442695, %v3272_v60  ;;  %v3184_v52 = vadd.f32 %v5936_v10, %v11584_v1  ;;  %v3178_v58 = vpop.f32.mrb[81].mxu1  ;;  %v11586_v60 = vld [vmem:[#allocation165_spill] sm:$0xff] }
 0x726   :  { %v10396_v21 = vpop.eup %6931  ;;  %6951 = vrcp.f32 %v3320_v17  ;;  %v3362_v16 = vadd.f32 1.0, %v6930_v5  ;;  %v5121_v8 = vmul.f32 -1.442695, %v3271_v27  ;;  %v3179_v42 = vadd.f32 %v3178_v58, %v11585_v63  ;;  %v11587_v27 = vld [vmem:[#allocation182_spill] sm:$0xff] }
 0x727   :  { %v10399_v44 = vpop.eup %6933  ;;  %6953 = vrcp.f32 %v3319_v29  ;;  %v3274_v38 = vadd.f32 %v3184_v52, %v11529_v54  ;;  %v11588_v58 = vld [vmem:[#allocation166_spill] sm:$0xff]  ;;  %v11589_v52 = vld [vmem:[#allocation199_spill] sm:$0xff] }
 0x728   :  { %v6936_v20 = vpop.eup %6935  ;;  %6955 = vrcp.f32 %v3362_v16  ;;  %v5939_v62 = vpop.f32.mrb[82].mxu1  ;;  %v3273_v5 = vadd.f32 %v3179_v42, %v11587_v27  ;;  %v11591_v42 = vld [vmem:[#allocation206_spill] sm:$0xff] }
 0x729   :  { %v6938_v33 = vpop.eup %6937  ;;  %v3361_v26 = vadd.f32 1.0, %v6936_v20  ;;  %6957 = vpow2.f32 %v5122_v18  ;;  %v3194_v10 = vadd.f32 %v5939_v62, %v11586_v60  ;;  %v3188_v1 = vpop.f32.mrb[83].mxu1  ;;  %v11590_v60 = vld [vmem:[#allocation205_spill] sm:$0xff] }
 0x72a   :  { %v10403_v11 = vpop.eup %6939  ;;  %v3364_v17 = vadd.f32 1.0, %v6938_v33  ;;  %6959 = vpow2.f32 %v5121_v8  ;;  %v3189_v63 = vadd.f32 %v3188_v1, %v11588_v58 }
 0x72b   :  { %v10407_v29 = vpop.eup %6941  ;;  %6961 = vrcp.f32 %v3361_v26  ;;  %v3276_v62 = vadd.f32 %v3194_v10, %v11589_v52  ;;  %v11592_v26 = vld [vmem:[#allocation200_spill] sm:$0xff] }
 0x72c   :  { %v6944_v16 = vpop.eup %6943  ;;  %6963 = vrcp.f32 %v3364_v17  ;;  %v5942_v20 = vpop.f32.mrb[84].mxu1  ;;  %v3275_v27 = vadd.f32 %v3189_v63, %v11592_v26 }
 0x72d   :  { %v6946_v18 = vpop.eup %6945  ;;  %v3363_v59 = vadd.f32 1.0, %v6944_v16  ;;  %6965 = vtanh.f32 %v3274_v38  ;;  %v3204_v54 = vadd.f32 %v5942_v20, %v11590_v60  ;;  %v3198_v0 = vpop.f32.mrb[85].mxu1  ;;  %v11593_v38 = vld [vmem:[#allocation230_spill] sm:$0xff]  ;;  %v11594_v20 = vld [vmem:[#allocation233_spill] sm:$0xff] }
 0x72e   :  { %v10411_v33 = vpop.eup %6947  ;;  %v3366_v8 = vadd.f32 1.0, %v6946_v18  ;;  %6967 = vtanh.f32 %v3273_v5  ;;  %v3199_v1 = vadd.f32 %v3198_v0, %v11591_v42  ;;  %v11595_v18 = vld [vmem:[#allocation235_spill] sm:$0xff] }
 0x72f   :  { %v6950_v58 = vpop.eup %6949  ;;  %6969 = vrcp.f32 %v3363_v59  ;;  %v3278_v4 = vadd.f32 %v3204_v54, %v11593_v38  ;;  %v11596_v59 = vld [vmem:[#allocation236_spill] sm:$0xff] }
 0x730   :  { %v10415_v17 = vpop.eup %6951  ;;  %6971 = vrcp.f32 %v3366_v8  ;;  %v3365_v16 = vadd.f32 1.0, %v6950_v58  ;;  %v5945_v10 = vpop.f32.mrb[86].mxu1  ;;  %v3277_v60 = vadd.f32 %v3199_v1, %v11594_v20  ;;  %v11597_v1 = vld [vmem:[#allocation147_spill] sm:$0xff] }
 0x731   :  { %v10418_v52 = vpop.eup %6953  ;;  %6973 = vtanh.f32 %v3276_v62  ;;  %v3214_v5 = vadd.f32 %v5945_v10, %v11595_v18  ;;  %v3208_v53 = vpop.f32.mrb[87].mxu1 }
 0x732   :  { %v6956_v0 = vpop.eup %6955  ;;  %6975 = vrcp.f32 %v3365_v16  ;;  %v3209_v42 = vadd.f32 %v3208_v53, %v11596_v59  ;;  %v11598_v53 = vld [vmem:[#allocation148_spill] sm:$0xff] }
 0x733   :  { %v6958_v63 = vpop.eup %6957  ;;  %6977 = vtanh.f32 %v3275_v27  ;;  %v3280_v54 = vadd.f32 %v3214_v5, %v9018_v41  ;;  %v3442_v16 = vmul.f32 %v6956_v0, %v10094_v24  ;;  %v11599_v0 = vld [vmem:[#allocation179_spill] sm:$0xff] }
 0x734   :  { %v6960_v26 = vpop.eup %6959  ;;  %v3368_v8 = vadd.f32 1.0, %v6958_v63  ;;  %6979 = vtanh.f32 %v3278_v4  ;;  %v5948_v58 = vpop.f32.mrb[88].mxu1  ;;  %v3279_v62 = vadd.f32 %v3209_v42, %v9026_v57 }
 0x735   :  { %v6962_v38 = vpop.eup %6961  ;;  %v3367_v2 = vadd.f32 1.0, %v6960_v26  ;;  %6981 = vtanh.f32 %v3277_v60  ;;  %v3224_v10 = vadd.f32 %v5948_v58, %v11597_v1  ;;  %v3218_v18 = vpop.f32.mrb[89].mxu1 }
 0x736   :  { %v6964_v20 = vpop.eup %6963  ;;  %6983 = vrcp.f32 %v3368_v8  ;;  %v3219_v27 = vadd.f32 %v3218_v18, %v11598_v53  ;;  %v3441_v4 = vmul.f32 %v6962_v38, %v10098_v61 }
 0x737   :  { %v6966_v59 = vpop.eup %6965  ;;  %6985 = vrcp.f32 %v3367_v2  ;;  %v3282_v5 = vadd.f32 %v3224_v10, %v8627_v49  ;;  %v3444_v2 = vmul.f32 %v6964_v20, %v10107_v23  ;;  %v11600_v10 = vld [vmem:[#allocation180_spill] sm:$0xff] }
 0x738   :  { %v6968_v63 = vpop.eup %6967  ;;  %v3450_v26 = vmul.f32 %v6966_v59, %v10391_v45  ;;  %6987 = vtanh.f32 %v3280_v54  ;;  %v3281_v60 = vadd.f32 %v3219_v27, %v8629_v50  ;;  %v5951_v42 = vpop.f32.mrb[90].mxu1 }
 0x739   :  { %v6970_v58 = vpop.eup %6969  ;;  %v3449_v1 = vmul.f32 %v6968_v63, %v10396_v21  ;;  %6989 = vtanh.f32 %v3279_v62  ;;  %v5124_v24 = vmul.f32 -1.442695, %v3282_v5  ;;  %v3234_v8 = vadd.f32 %v5951_v42, %v11599_v0  ;;  %v3228_v18 = vpop.f32.mrb[91].mxu1  ;;  %v11601_v42 = vld [vmem:[#allocation207_spill] sm:$0xff] }
 0x73a   :  { %v6972_v53 = vpop.eup %6971  ;;  %v10435_v61 = vadd.f32 %v3450_v26, %v3442_v16  ;;  %v5123_v38 = vmul.f32 -1.442695, %v3281_v60  ;;  %v3229_v45 = vadd.f32 %v3228_v18, %v11600_v10  ;;  %v3443_v27 = vmul.f32 %v6970_v58, %v10113_v9 }
 0x73b   :  { %v6974_v54 = vpop.eup %6973  ;;  %v10439_v59 = vadd.f32 %v3449_v1, %v3441_v4  ;;  %6991 = vpow2.f32 %v5124_v24  ;;  %v3284_v21 = vadd.f32 %v3234_v8, %v8785_v12  ;;  %v3446_v5 = vmul.f32 %v6972_v53, %v10118_v39 }
 0x73c   :  { %v6976_v62 = vpop.eup %6975  ;;  %v3452_v63 = vmul.f32 %v6974_v54, %v10399_v44  ;;  %6993 = vpow2.f32 %v5123_v38  ;;  %v3283_v23 = vadd.f32 %v3229_v45, %v8787_v7  ;;  %v5954_v20 = vpop.f32.mrb[92].mxu1  ;;  %v11602_v44 = vld [vmem:[#allocation208_spill] sm:$0xff] }
 0x73d   :  { %v6978_v16 = vpop.eup %6977  ;;  %v3445_v26 = vmul.f32 %v6976_v62, %v10122_v47  ;;  %v5126_v60 = vmul.f32 -1.442695, %v3284_v21  ;;  %v3244_v9 = vadd.f32 %v5954_v20, %v11601_v42  ;;  %v3238_v4 = vpop.f32.mrb[93].mxu1  ;;  %6995 = vtanh.f32 %v10439_v59 }
 0x73e   :  { %v6980_v58 = vpop.eup %6979  ;;  %v10448_v1 = vadd.f32 %v3452_v63, %v3444_v2  ;;  %v3451_v39 = vmul.f32 %v6978_v16, %v10403_v11  ;;  %v5125_v24 = vmul.f32 -1.442695, %v3283_v23  ;;  %v3239_v0 = vadd.f32 %v3238_v4, %v11602_v44  ;;  %v11603_v63 = vld [vmem:[#allocation237_spill] sm:$0xff] }
 0x73f   :  { %v6982_v8 = vpop.eup %6981  ;;  %v3454_v18 = vmul.f32 %v6980_v58, %v10407_v29  ;;  %6997 = vpow2.f32 %v5126_v60  ;;  %v3286_v47 = vadd.f32 %v3244_v9, %v8984_v31 }
 0x740   :  { %v6984_v53 = vpop.eup %6983  ;;  %v10454_v38 = vadd.f32 %v3451_v39, %v3443_v27  ;;  %v3453_v10 = vmul.f32 %v6982_v8, %v10411_v33  ;;  %6999 = vpow2.f32 %v5125_v24  ;;  %v3285_v2 = vadd.f32 %v3239_v0, %v8993_v32  ;;  %v5957_v45 = vpop.f32.mrb[94].mxu1  ;;  %v11604_v33 = vld [vmem:[#allocation238_spill] sm:$0xff] }
 0x741   :  { %v6986_v54 = vpop.eup %6985  ;;  %v3448_v11 = vmul.f32 %v6984_v53, %v10129_v55  ;;  %v10459_v21 = vadd.f32 %v3454_v18, %v3446_v5  ;;  %v5128_v62 = vmul.f32 -1.442695, %v3286_v47  ;;  %v3254_v29 = vadd.f32 %v5957_v45, %v11603_v63  ;;  %v3248_v23 = vpop.f32.mrb[95].mxu1 }
 0x742   :  { %v6988_v20 = vpop.eup %6987  ;;  %v3447_v16 = vmul.f32 %v6986_v54, %v10132_v51  ;;  %v10463_v27 = vadd.f32 %v3453_v10, %v3445_v26  ;;  %v5127_v60 = vmul.f32 -1.442695, %v3285_v2  ;;  %v3249_v42 = vadd.f32 %v3248_v23, %v11604_v33 }
 0x743   :  { %v6990_v9 = vpop.eup %6989  ;;  %v3456_v4 = vmul.f32 %v6988_v20, %v10415_v17  ;;  %7001 = vpow2.f32 %v5128_v62  ;;  %v3288_v55 = vadd.f32 %v3254_v29, %v9063_v37 }
 0x744   :  { %v3455_v5 = vmul.f32 %v6990_v9, %v10418_v52  ;;  %7003 = vpow2.f32 %v5127_v60  ;;  %v3287_v58 = vadd.f32 %v3249_v42, %v9067_v40 }
 0x745   :  { %v6992_v39 = vpop.eup %6991  ;;  %v10470_v24 = vadd.f32 %v3456_v4, %v3448_v11  ;;  %v5130_v51 = vmul.f32 -1.442695, %v3288_v55  ;;  %7005 = vtanh.f32 %v10435_v61 }
 0x746   :  { %v6994_v26 = vpop.eup %6993  ;;  %v10473_v44 = vadd.f32 %v3455_v5, %v3447_v16  ;;  %v3418_v0 = vadd.f32 1.0, %v6992_v39  ;;  %v5129_v8 = vmul.f32 -1.442695, %v3287_v58  ;;  %7007 = vtanh.f32 %v10454_v38 }
 0x747   :  { %v6996_v17 = vpop.eup %6995  ;;  %v3417_v18 = vadd.f32 1.0, %v6994_v26  ;;  %7009 = vpow2.f32 %v5130_v51 }
 0x748   :  { %7011 = vrcp.f32 %v3418_v0 }
 0x749   :  { %v6998_v52 = vpop.eup %6997  ;;  %7013 = vrcp.f32 %v3417_v18 }
 0x74a   :  { %v7000_v47 = vpop.eup %6999  ;;  %v3420_v53 = vadd.f32 1.0, %v6998_v52  ;;  %7015 = vpow2.f32 %v5129_v8 }
 0x74b   :  { %v3419_v10 = vadd.f32 1.0, %v7000_v47  ;;  %7017 = vtanh.f32 %v10448_v1 }
 0x74c   :  { %7019 = vrcp.f32 %v3420_v53 }
 0x74d   :  { %v7002_v2 = vpop.eup %7001  ;;  %7021 = vrcp.f32 %v3419_v10 }
 0x74e   :  { %v7004_v45 = vpop.eup %7003  ;;  %v3422_v54 = vadd.f32 1.0, %v7002_v2  ;;  %7023 = vtanh.f32 %v10463_v27 }
 0x74f   :  { %v7006_v11 = vpop.eup %7005  ;;  %v3421_v62 = vadd.f32 1.0, %v7004_v45  ;;  %7025 = vtanh.f32 %v10459_v21 }
 0x750   :  { %v7008_v63 = vpop.eup %7007  ;;  %7027 = vrcp.f32 %v3422_v54 }
 0x751   :  { %v7010_v29 = vpop.eup %7009  ;;  %7029 = vrcp.f32 %v3421_v62 }
 0x752   :  { %v7012_v23 = vpop.eup %7011  ;;  %v3424_v20 = vadd.f32 1.0, %v7010_v29 }
 0x753   :  { %v7014_v16 = vpop.eup %7013  ;;  %v3474_v60 = vmul.f32 %v7012_v23, %v7006_v11  ;;  %v11618_v23 = vld [vmem:[#allocation247_spill] sm:$0xff] }
 0x754   :  { %v7016_v33 = vpop.eup %7015  ;;  %7031 = vrcp.f32 %v3424_v20  ;;  %v3473_v42 = vmul.f32 %v7014_v16, %v6996_v17  ;;  %v11619_v20 = vld [vmem:[#allocation248_spill] sm:$0xff]  ;;  %v11620_v16 = vld [vmem:[#allocation249_spill] sm:$0xff] }
 0x755   :  { %v7018_v9 = vpop.eup %7017  ;;  %v3423_v4 = vadd.f32 1.0, %v7016_v33  ;;  %7033 = vtanh.f32 %v10470_v24  ;;  %v11622_v33 = vld [vmem:[#allocation251_spill] sm:$0xff] }
 0x756   :  { %v7020_v55 = vpop.eup %7019  ;;  %v6206_v5 = vpack.c.bf16 %v3474_v60, %v3473_v42  ;;  %7035 = vtanh.f32 %v10473_v44  ;;  %v11621_v60 = vld [vmem:[#allocation250_spill] sm:$0xff]  ;;  %v11623_v42 = vld [vmem:[#allocation252_spill] sm:$0xff] }
 0x757   :  { %v7022_v58 = vpop.eup %7021  ;;  %7037 = vrcp.f32 %v3423_v4  ;;  %v3476_v39 = vmul.f32 %v7020_v55, %v7018_v9  ;;  %v11624_v4 = vld [vmem:[#allocation24_spill] sm:$0xff] }
 0x758   :  { %v7024_v51 = vpop.eup %7023  ;;  %6207 = vmatprep.subr.bf16.mxu0 %v6206_v5  ;;  %v3475_v26 = vmul.f32 %v7022_v58, %v7008_v63  ;;  %v11617_v63 = vld [vmem:[#allocation220_spill] sm:$0xff] }
 0x759   :  { %v7026_v0 = vpop.eup %7025  ;;  %6209 = vmatpush3.bf16.msra.mxu0 %v6206_v5  ;;  %v11625_v58 = vld [vmem:[#allocation12_spill] sm:$0xff] }
 0x75a   :  { %v7028_v8 = vpop.eup %7027  ;;  %v6210_v18 = vpack.c.bf16 %v3476_v39, %v3475_v26 }
 0x75b   :  { %v7030_v52 = vpop.eup %7029  ;;  %v3478_v17 = vmul.f32 %v7028_v8, %v7026_v0  ;;  %v11627_v0 = vld [vmem:[#allocation51_spill] sm:$0xff] }
 0x75c   :  { %6211 = vmatprep.subr.bf16.mxu0 %v6210_v18  ;;  %v3477_v47 = vmul.f32 %v7030_v52, %v7024_v51  ;;  %v11626_v51 = vld [vmem:[#allocation50_spill] sm:$0xff] }
 0x75d   :  { %6213 = vmatpush3.bf16.msra.mxu0 %v6210_v18 }
 0x75e   :  { %v7032_v53 = vpop.eup %7031  ;;  %v6214_v10 = vpack.c.bf16 %v3478_v17, %v3477_v47  ;;  %v11628_v17 = vld [vmem:[#allocation37_spill] sm:$0xff] }
 0x75f   :  { %v7034_v2 = vpop.eup %7033 }
 0x760   :  { %v7036_v45 = vpop.eup %7035  ;;  %6215 = vmatprep.subr.bf16.mxu0 %v6214_v10  ;;  %v3480_v54 = vmul.f32 %v7034_v2, %v7032_v53  ;;  %v11629_v2 = vld [vmem:[#allocation38_spill] sm:$0xff] }
 0x761   :  { %v7038_v11 = vpop.eup %7037  ;;  %6217 = vmatpush3.bf16.msra.mxu0 %v6214_v10 }
 0x762   :  { %v3479_v62 = vmul.f32 %v7038_v11, %v7036_v45 }
 0x764   :  { %v6218_v29 = vpack.c.bf16 %v3480_v54, %v3479_v62 }
 0x766   :  { %6219 = vmatprep.subr.bf16.mxu0 %v6218_v29 }
 0x767   :  { %6221 = vmatpush3.bf16.msra.mxu0 %v6218_v29 }
 0x76a   :  { %5975 = vmatmul.mubr.msk.f32.vlgmr.msra.gmra.mrb[96].mxu0 %vm330_vm0, %v10143_v13  ;;  %v11605_v13 = vld [vmem:[#allocation158_spill] sm:$0xff] }
 0x76b   :  { %5977 = vmatprep.mubr.msk.f32.mxu0 %vm330_vm0, %v10150_v35  ;;  %v11606_v35 = vld [vmem:[#allocation187_spill] sm:$0xff] }
 0x76e   :  { %5978 = vmatmul.mubr.msk.f32.gmra.mrb[98].mxu0 %vm330_vm0, %v10157_v6  ;;  %v11607_v6 = vld [vmem:[#allocation188_spill] sm:$0xff] }
 0x76f   :  { %5980 = vmatprep.mubr.msk.f32.mxu0 %vm330_vm0, %v10164_v36  ;;  %v11608_v36 = vld [vmem:[#allocation217_spill] sm:$0xff] }
 0x772   :  { %5981 = vmatmul.mubr.msk.f32.gmra.mrb[100].mxu0 %vm330_vm0, %v10171_v15  ;;  %v11609_v15 = vld [vmem:[#allocation218_spill] sm:$0xff] }
 0x773   :  { %5983 = vmatprep.mubr.msk.f32.mxu0 %vm330_vm0, %v10178_v3  ;;  %v11610_v3 = vld [vmem:[#allocation139_spill] sm:$0xff] }
 0x776   :  { %5984 = vmatmul.mubr.msk.f32.gmra.mrb[102].mxu0 %vm330_vm0, %v10185_v25  ;;  %v11611_v25 = vld [vmem:[#allocation140_spill] sm:$0xff] }
 0x777   :  { %5986 = vmatprep.mubr.msk.f32.mxu0 %vm330_vm0, %v10192_v19  ;;  %v11612_v19 = vld [vmem:[#allocation171_spill] sm:$0xff] }
 0x77a   :  { %5987 = vmatmul.mubr.msk.f32.gmra.mrb[104].mxu0 %vm330_vm0, %v10199_v56  ;;  %v11613_v56 = vld [vmem:[#allocation172_spill] sm:$0xff] }
 0x77b   :  { %5989 = vmatprep.mubr.msk.f32.mxu0 %vm330_vm0, %v10206_v22  ;;  %v11614_v22 = vld [vmem:[#allocation195_spill] sm:$0xff] }
 0x77e   :  { %5990 = vmatmul.mubr.msk.f32.gmra.mrb[106].mxu0 %vm330_vm0, %v10213_v30  ;;  %v11615_v30 = vld [vmem:[#allocation196_spill] sm:$0xff] }
 0x77f   :  { %5992 = vmatprep.mubr.msk.f32.mxu0 %vm330_vm0, %v10220_v48  ;;  %v11616_v48 = vld [vmem:[#allocation219_spill] sm:$0xff] }
 0x782   :  { %5993 = vmatmul.mubr.msk.f32.gmra.mrb[108].mxu0 %vm330_vm0, %v11605_v13  ;;  %v11630_v13 = vld [vmem:[#allocation71_spill] sm:$0xff] }
 0x783   :  { %5995 = vmatprep.mubr.msk.f32.mxu0 %vm330_vm0, %v11606_v35 }
 0x786   :  { %5996 = vmatmul.mubr.msk.f32.gmra.mrb[110].mxu0 %vm330_vm0, %v11607_v6 }
 0x787   :  { %5998 = vmatprep.mubr.msk.f32.mxu0 %vm330_vm0, %v11608_v36 }
 0x78a   :  { %5999 = vmatmul.mubr.msk.f32.gmra.mrb[112].mxu0 %vm330_vm0, %v11609_v15  ;;  %v11631_v15 = vld [vmem:[#allocation72_spill] sm:$0xff] }
 0x78b   :  { %6001 = vmatprep.mubr.msk.f32.mxu0 %vm330_vm0, %v11610_v3 }
 0x78e   :  { %6002 = vmatmul.mubr.msk.f32.gmra.mrb[114].mxu0 %vm330_vm0, %v11611_v25 }
 0x78f   :  { %6004 = vmatprep.mubr.msk.f32.mxu0 %vm330_vm0, %v11612_v19  ;;  %v11632_v19 = vld [vmem:[#allocation118_spill] sm:$0xff] }
 0x792   :  { %6005 = vmatmul.mubr.msk.f32.gmra.mrb[116].mxu0 %vm330_vm0, %v11613_v56 }
 0x793   :  { %6007 = vmatprep.mubr.msk.f32.mxu0 %vm330_vm0, %v11614_v22 }
 0x796   :  { %6008 = vmatmul.mubr.msk.f32.gmra.mrb[118].mxu0 %vm330_vm0, %v11615_v30 }
 0x797   :  { %6010 = vmatprep.mubr.msk.f32.mxu0 %vm330_vm0, %v11616_v48  ;;  %v11633_v48 = vld [vmem:[#allocation103_spill] sm:$0xff] }
 0x79a   :  { %6011 = vmatmul.mubr.msk.f32.gmra.mrb[120].mxu0 %vm330_vm0, %v11617_v63 }
 0x79b   :  { %6013 = vmatprep.mubr.msk.f32.mxu0 %vm330_vm0, %v11618_v23 }
 0x79e   :  { %6014 = vmatmul.mubr.msk.f32.gmra.mrb[122].mxu0 %vm330_vm0, %v11619_v20 }
 0x79f   :  { %6016 = vmatprep.mubr.msk.f32.mxu0 %vm330_vm0, %v11620_v16  ;;  %v11634_v16 = vld [vmem:[#allocation104_spill] sm:$0xff] }
 0x7a2   :  { %6017 = vmatmul.mubr.msk.f32.gmra.mrb[124].mxu0 %vm330_vm0, %v11621_v60 }
 0x7a3   :  { %6019 = vmatprep.mubr.msk.f32.mxu0 %vm330_vm0, %v11622_v33  ;;  %v11635_v33 = vld [vmem:[#allocation149_spill] sm:$0xff] }
 0x7a6   :  { %6020 = vmatmul.mubr.msk.f32.gmra.mrb[126].mxu0 %vm330_vm0, %v11623_v42 }
 0x83d   :  { %v5976_v9 = vpop.f32.mrb[96].mxu0 }
 0x83e   :  { %v3593_v55 = vadd.f32 %v5976_v9, %v11624_v4  ;;  %v3587_v5 = vpop.f32.mrb[97].mxu0  ;;  %v11636_v9 = vld [vmem:[#allocation150_spill] sm:$0xff] }
 0x83f   :  { %v3588_v39 = vadd.f32 %v3587_v5, %v11625_v58 }
 0x840   :  { %v3747_v26 = vadd.f32 %v3593_v55, %v11626_v51 }
 0x841   :  { %v3746_v8 = vadd.f32 %v3588_v39, %v11627_v0  ;;  %v5979_v18 = vpop.f32.mrb[98].mxu0  ;;  %v11637_v39 = vld [vmem:[#allocation25_spill] sm:$0xff] }
 0x842   :  { %v5166_v52 = vmul.f32 -1.442695, %v3747_v26  ;;  %v3603_v47 = vadd.f32 %v5979_v18, %v11628_v17  ;;  %v3597_v53 = vpop.f32.mrb[99].mxu0 }
 0x843   :  { %v5165_v10 = vmul.f32 -1.442695, %v3746_v8  ;;  %v3598_v45 = vadd.f32 %v3597_v53, %v11629_v2 }
 0x844   :  { %7039 = vpow2.f32 %v5166_v52  ;;  %v3749_v54 = vadd.f32 %v3603_v47, %v11382_v28  ;;  %v11638_v47 = vld [vmem:[#allocation13_spill] sm:$0xff] }
 0x845   :  { %7041 = vpow2.f32 %v5165_v10  ;;  %v3748_v11 = vadd.f32 %v3598_v45, %v11383_v14  ;;  %v5982_v62 = vpop.f32.mrb[100].mxu0 }
 0x846   :  { %v5168_v29 = vmul.f32 -1.442695, %v3749_v54  ;;  %v3613_v35 = vadd.f32 %v5982_v62, %v11630_v13  ;;  %v3607_v6 = vpop.f32.mrb[101].mxu0 }
 0x847   :  { %v5167_v36 = vmul.f32 -1.442695, %v3748_v11  ;;  %v3608_v3 = vadd.f32 %v3607_v6, %v11631_v15 }
 0x848   :  { %7043 = vpow2.f32 %v5168_v29  ;;  %v3751_v25 = vadd.f32 %v3613_v35, %v11386_v46  ;;  %v11639_v29 = vld [vmem:[#allocation52_spill] sm:$0xff] }
 0x849   :  { %7045 = vpow2.f32 %v5167_v36  ;;  %v3750_v56 = vadd.f32 %v3608_v3, %v11632_v19  ;;  %v5985_v22 = vpop.f32.mrb[102].mxu0  ;;  %v11640_v3 = vld [vmem:[#allocation53_spill] sm:$0xff] }
 0x84a   :  { %v5170_v30 = vmul.f32 -1.442695, %v3751_v25  ;;  %v3623_v63 = vadd.f32 %v5985_v22, %v11633_v48  ;;  %v3617_v23 = vpop.f32.mrb[103].mxu0  ;;  %v11642_v48 = vld [vmem:[#allocation92_spill] sm:$0xff] }
 0x84b   :  { %v5169_v20 = vmul.f32 -1.442695, %v3750_v56  ;;  %v3618_v60 = vadd.f32 %v3617_v23, %v11634_v16  ;;  %v11641_v56 = vld [vmem:[#allocation91_spill] sm:$0xff] }
 0x84c   :  { %7047 = vpow2.f32 %v5170_v30  ;;  %v3753_v42 = vadd.f32 %v3623_v63, %v11635_v33 }
 0x84d   :  { %7049 = vpow2.f32 %v5169_v20  ;;  %v3752_v4 = vadd.f32 %v3618_v60, %v11636_v9  ;;  %v5988_v55 = vpop.f32.mrb[104].mxu0  ;;  %v11643_v60 = vld [vmem:[#allocation87_spill] sm:$0xff] }
 0x84e   :  { %v7040_v5 = vpop.eup %7039  ;;  %v5172_v58 = vmul.f32 -1.442695, %v3753_v42  ;;  %v3633_v26 = vadd.f32 %v5988_v55, %v11637_v39  ;;  %v3627_v8 = vpop.f32.mrb[105].mxu0  ;;  %v11644_v39 = vld [vmem:[#allocation88_spill] sm:$0xff] }
 0x84f   :  { %v7042_v18 = vpop.eup %7041  ;;  %v3803_v52 = vadd.f32 1.0, %v7040_v5  ;;  %v5171_v17 = vmul.f32 -1.442695, %v3752_v4  ;;  %v3628_v53 = vadd.f32 %v3627_v8, %v11638_v47  ;;  %v11645_v8 = vld [vmem:[#allocation123_spill] sm:$0xff] }
 0x850   :  { %7051 = vpow2.f32 %v5172_v58  ;;  %v3755_v10 = vadd.f32 %v3633_v26, %v11330_v34  ;;  %v3802_v2 = vadd.f32 1.0, %v7042_v18 }
 0x851   :  { %v3754_v45 = vadd.f32 %v3628_v53, %v11331_v43  ;;  %v5991_v54 = vpop.f32.mrb[106].mxu0  ;;  %7053 = vrcp.f32 %v3803_v52 }
 0x852   :  { %v7044_v11 = vpop.eup %7043  ;;  %v5174_v62 = vmul.f32 -1.442695, %v3755_v10  ;;  %v3643_v13 = vadd.f32 %v5991_v54, %v11639_v29  ;;  %v3637_v35 = vpop.f32.mrb[107].mxu0  ;;  %7055 = vpow2.f32 %v5171_v17  ;;  %v11646_v17 = vld [vmem:[#allocation124_spill] sm:$0xff] }
 0x853   :  { %v7046_v6 = vpop.eup %7045  ;;  %v3805_v36 = vadd.f32 1.0, %v7044_v11  ;;  %v5173_v15 = vmul.f32 -1.442695, %v3754_v45  ;;  %v3638_v25 = vadd.f32 %v3637_v35, %v11640_v3  ;;  %v11647_v45 = vld [vmem:[#allocation119_spill] sm:$0xff] }
 0x854   :  { %7057 = vpow2.f32 %v5174_v62  ;;  %v3757_v22 = vadd.f32 %v3643_v13, %v11641_v56  ;;  %v3804_v30 = vadd.f32 1.0, %v7046_v6  ;;  %v11648_v13 = vld [vmem:[#allocation120_spill] sm:$0xff] }
 0x855   :  { %7059 = vrcp.f32 %v3802_v2  ;;  %v3756_v63 = vadd.f32 %v3638_v25, %v11642_v48  ;;  %v5994_v23 = vpop.f32.mrb[108].mxu0  ;;  %v11650_v25 = vld [vmem:[#allocation156_spill] sm:$0xff] }
 0x856   :  { %v7048_v20 = vpop.eup %7047  ;;  %7061 = vrcp.f32 %v3805_v36  ;;  %v5176_v16 = vmul.f32 -1.442695, %v3757_v22  ;;  %v3653_v42 = vadd.f32 %v5994_v23, %v11643_v60  ;;  %v3647_v4 = vpop.f32.mrb[109].mxu0  ;;  %v11649_v36 = vld [vmem:[#allocation155_spill] sm:$0xff] }
 0x857   :  { %v7050_v55 = vpop.eup %7049  ;;  %v3807_v5 = vadd.f32 1.0, %v7048_v20  ;;  %7063 = vpow2.f32 %v5173_v15  ;;  %v5175_v58 = vmul.f32 -1.442695, %v3756_v63  ;;  %v3648_v26 = vadd.f32 %v3647_v4, %v11644_v39 }
 0x858   :  { %7065 = vpow2.f32 %v5176_v16  ;;  %v3759_v18 = vadd.f32 %v3653_v42, %v11645_v8  ;;  %v3806_v52 = vadd.f32 1.0, %v7050_v55  ;;  %v11651_v16 = vld [vmem:[#allocation135_spill] sm:$0xff] }
 0x859   :  { %7067 = vrcp.f32 %v3804_v30  ;;  %v3758_v47 = vadd.f32 %v3648_v26, %v11646_v17  ;;  %v5997_v53 = vpop.f32.mrb[110].mxu0 }
 0x85a   :  { %v7052_v10 = vpop.eup %7051  ;;  %7069 = vrcp.f32 %v3807_v5  ;;  %v5178_v2 = vmul.f32 -1.442695, %v3759_v18  ;;  %v3663_v54 = vadd.f32 %v5997_v53, %v11647_v45  ;;  %v3657_v11 = vpop.f32.mrb[111].mxu0  ;;  %v11654_v45 = vld [vmem:[#allocation167_spill] sm:$0xff] }
 0x85b   :  { %v3809_v62 = vadd.f32 1.0, %v7052_v10  ;;  %7071 = vpow2.f32 %v5175_v58  ;;  %v5177_v29 = vmul.f32 -1.442695, %v3758_v47  ;;  %v3658_v35 = vadd.f32 %v3657_v11, %v11648_v13  ;;  %v10573_v6 = vpop.eup %7053  ;;  %v11652_v58 = vld [vmem:[#allocation136_spill] sm:$0xff]  ;;  %v11653_v10 = vld [vmem:[#allocation181_spill] sm:$0xff]  ;;  %v11655_v13 = vld [vmem:[#allocation182_spill] sm:$0xff] }
 0x85c   :  { %7073 = vpow2.f32 %v5178_v2  ;;  %v3761_v15 = vadd.f32 %v3663_v54, %v11649_v36  ;;  %v7056_v3 = vpop.eup %7055 }
 0x85d   :  { %7075 = vrcp.f32 %v3806_v52  ;;  %v3760_v22 = vadd.f32 %v3658_v35, %v11650_v25  ;;  %v6000_v30 = vpop.f32.mrb[112].mxu0  ;;  %v3808_v23 = vadd.f32 1.0, %v7056_v3 }
 0x85e   :  { %v7058_v63 = vpop.eup %7057  ;;  %7077 = vpow2.f32 %v5177_v29  ;;  %v5180_v20 = vmul.f32 -1.442695, %v3761_v15  ;;  %v3673_v60 = vadd.f32 %v6000_v30, %v11651_v16  ;;  %v3667_v42 = vpop.f32.mrb[113].mxu0  ;;  %v11656_v15 = vld [vmem:[#allocation168_spill] sm:$0xff]  ;;  %v11657_v16 = vld [vmem:[#allocation199_spill] sm:$0xff] }
 0x85f   :  { %v10578_v4 = vpop.eup %7059  ;;  %7079 = vrcp.f32 %v3809_v62  ;;  %v3851_v55 = vadd.f32 1.0, %v7058_v63  ;;  %v5179_v5 = vmul.f32 -1.442695, %v3760_v22  ;;  %v3668_v39 = vadd.f32 %v3667_v42, %v11652_v58  ;;  %v11658_v42 = vld [vmem:[#allocation209_spill] sm:$0xff] }
 0x860   :  { %v10581_v26 = vpop.eup %7061  ;;  %7081 = vrcp.f32 %v3808_v23  ;;  %v3763_v2 = vadd.f32 %v3673_v60, %v11653_v10 }
 0x861   :  { %v7064_v18 = vpop.eup %7063  ;;  %7083 = vrcp.f32 %v3851_v55  ;;  %v6003_v52 = vpop.f32.mrb[114].mxu0  ;;  %v3762_v35 = vadd.f32 %v3668_v39, %v11655_v13  ;;  %v11659_v39 = vld [vmem:[#allocation210_spill] sm:$0xff] }
 0x862   :  { %v7066_v47 = vpop.eup %7065  ;;  %v3850_v53 = vadd.f32 1.0, %v7064_v18  ;;  %7085 = vpow2.f32 %v5180_v20  ;;  %v3683_v54 = vadd.f32 %v6003_v52, %v11654_v45  ;;  %v3677_v11 = vpop.f32.mrb[115].mxu0 }
 0x863   :  { %v10585_v29 = vpop.eup %7067  ;;  %v3853_v62 = vadd.f32 1.0, %v7066_v47  ;;  %7087 = vpow2.f32 %v5179_v5  ;;  %v3678_v3 = vadd.f32 %v3677_v11, %v11656_v15 }
 0x864   :  { %v10589_v22 = vpop.eup %7069  ;;  %7089 = vrcp.f32 %v3850_v53  ;;  %v3765_v60 = vadd.f32 %v3683_v54, %v11657_v16  ;;  %v11660_v53 = vld [vmem:[#allocation200_spill] sm:$0xff] }
 0x865   :  { %v7072_v30 = vpop.eup %7071  ;;  %7091 = vrcp.f32 %v3853_v62  ;;  %v6006_v63 = vpop.f32.mrb[116].mxu0  ;;  %v3764_v45 = vadd.f32 %v3678_v3, %v11660_v53 }
 0x866   :  { %v7074_v23 = vpop.eup %7073  ;;  %v3852_v20 = vadd.f32 1.0, %v7072_v30  ;;  %7093 = vtanh.f32 %v3763_v2  ;;  %v3693_v55 = vadd.f32 %v6006_v63, %v11658_v42  ;;  %v3687_v58 = vpop.f32.mrb[117].mxu0  ;;  %v11661_v2 = vld [vmem:[#allocation230_spill] sm:$0xff]  ;;  %v11662_v63 = vld [vmem:[#allocation233_spill] sm:$0xff] }
 0x867   :  { %v10593_v18 = vpop.eup %7075  ;;  %v3855_v5 = vadd.f32 1.0, %v7074_v23  ;;  %7095 = vtanh.f32 %v3762_v35  ;;  %v3688_v52 = vadd.f32 %v3687_v58, %v11659_v39  ;;  %v11663_v23 = vld [vmem:[#allocation239_spill] sm:$0xff] }
 0x868   :  { %v7078_v47 = vpop.eup %7077  ;;  %7097 = vrcp.f32 %v3852_v20  ;;  %v3767_v15 = vadd.f32 %v3693_v55, %v11661_v2  ;;  %v11664_v20 = vld [vmem:[#allocation240_spill] sm:$0xff] }
 0x869   :  { %v10597_v11 = vpop.eup %7079  ;;  %7099 = vrcp.f32 %v3855_v5  ;;  %v3854_v62 = vadd.f32 1.0, %v7078_v47  ;;  %v6009_v54 = vpop.f32.mrb[118].mxu0  ;;  %v3766_v42 = vadd.f32 %v3688_v52, %v11662_v63  ;;  %v11665_v52 = vld [vmem:[#allocation151_spill] sm:$0xff] }
 0x86a   :  { %v10600_v30 = vpop.eup %7081  ;;  %7101 = vtanh.f32 %v3765_v60  ;;  %v3703_v35 = vadd.f32 %v6009_v54, %v11663_v23  ;;  %v3697_v16 = vpop.f32.mrb[119].mxu0 }
 0x86b   :  { %v7084_v58 = vpop.eup %7083  ;;  %7103 = vrcp.f32 %v3854_v62  ;;  %v3698_v39 = vadd.f32 %v3697_v16, %v11664_v20  ;;  %v11666_v16 = vld [vmem:[#allocation152_spill] sm:$0xff] }
 0x86c   :  { %v7086_v3 = vpop.eup %7085  ;;  %7105 = vtanh.f32 %v3764_v45  ;;  %v3769_v55 = vadd.f32 %v3703_v35, %v9018_v41  ;;  %v3931_v62 = vmul.f32 %v7084_v58, %v10435_v61  ;;  %v11667_v58 = vld [vmem:[#allocation183_spill] sm:$0xff] }
 0x86d   :  { %v7088_v53 = vpop.eup %7087  ;;  %v3857_v5 = vadd.f32 1.0, %v7086_v3  ;;  %7107 = vtanh.f32 %v3767_v15  ;;  %v6012_v47 = vpop.f32.mrb[120].mxu0  ;;  %v3768_v60 = vadd.f32 %v3698_v39, %v9026_v57 }
 0x86e   :  { %v7090_v2 = vpop.eup %7089  ;;  %v3856_v13 = vadd.f32 1.0, %v7088_v53  ;;  %7109 = vtanh.f32 %v3766_v42  ;;  %v3713_v54 = vadd.f32 %v6012_v47, %v11665_v52  ;;  %v3707_v23 = vpop.f32.mrb[121].mxu0 }
 0x86f   :  { %v7092_v63 = vpop.eup %7091  ;;  %7111 = vrcp.f32 %v3857_v5  ;;  %v3708_v45 = vadd.f32 %v3707_v23, %v11666_v16  ;;  %v3930_v15 = vmul.f32 %v7090_v2, %v10439_v59 }
 0x870   :  { %v7094_v20 = vpop.eup %7093  ;;  %7113 = vrcp.f32 %v3856_v13  ;;  %v3771_v35 = vadd.f32 %v3713_v54, %v8627_v49  ;;  %v3933_v59 = vmul.f32 %v7092_v63, %v10448_v1  ;;  %v11668_v54 = vld [vmem:[#allocation184_spill] sm:$0xff] }
 0x871   :  { %v7096_v3 = vpop.eup %7095  ;;  %v3939_v53 = vmul.f32 %v7094_v20, %v10573_v6  ;;  %7115 = vtanh.f32 %v3769_v55  ;;  %v3770_v42 = vadd.f32 %v3708_v45, %v8629_v50  ;;  %v6015_v39 = vpop.f32.mrb[122].mxu0 }
 0x872   :  { %v7098_v47 = vpop.eup %7097  ;;  %v3938_v52 = vmul.f32 %v7096_v3, %v10578_v4  ;;  %7117 = vtanh.f32 %v3768_v60  ;;  %v5182_v61 = vmul.f32 -1.442695, %v3771_v35  ;;  %v3723_v5 = vadd.f32 %v6015_v39, %v11667_v58  ;;  %v3717_v23 = vpop.f32.mrb[123].mxu0  ;;  %v11669_v39 = vld [vmem:[#allocation211_spill] sm:$0xff] }
 0x873   :  { %v7100_v16 = vpop.eup %7099  ;;  %v10617_v13 = vadd.f32 %v3939_v53, %v3931_v62  ;;  %v5181_v2 = vmul.f32 -1.442695, %v3770_v42  ;;  %v3718_v6 = vadd.f32 %v3717_v23, %v11668_v54  ;;  %v3932_v45 = vmul.f32 %v7098_v47, %v10454_v38 }
 0x874   :  { %v7102_v55 = vpop.eup %7101  ;;  %v10621_v20 = vadd.f32 %v3938_v52, %v3930_v15  ;;  %7119 = vpow2.f32 %v5182_v61  ;;  %v3773_v4 = vadd.f32 %v3723_v5, %v8785_v12  ;;  %v3935_v35 = vmul.f32 %v7100_v16, %v10459_v21 }
 0x875   :  { %v7104_v60 = vpop.eup %7103  ;;  %v3941_v3 = vmul.f32 %v7102_v55, %v10581_v26  ;;  %7121 = vpow2.f32 %v5181_v2  ;;  %v3772_v1 = vadd.f32 %v3718_v6, %v8787_v7  ;;  %v6018_v63 = vpop.f32.mrb[124].mxu0  ;;  %v11670_v26 = vld [vmem:[#allocation212_spill] sm:$0xff] }
 0x876   :  { %v7106_v62 = vpop.eup %7105  ;;  %v3934_v53 = vmul.f32 %v7104_v60, %v10463_v27  ;;  %v5184_v42 = vmul.f32 -1.442695, %v3773_v4  ;;  %v3733_v38 = vadd.f32 %v6018_v63, %v11669_v39  ;;  %v3727_v15 = vpop.f32.mrb[125].mxu0  ;;  %7123 = vtanh.f32 %v10621_v20 }
 0x877   :  { %v7108_v47 = vpop.eup %7107  ;;  %v10630_v52 = vadd.f32 %v3941_v3, %v3933_v59  ;;  %v3940_v21 = vmul.f32 %v7106_v62, %v10585_v29  ;;  %v5183_v61 = vmul.f32 -1.442695, %v3772_v1  ;;  %v3728_v58 = vadd.f32 %v3727_v15, %v11670_v26  ;;  %v11671_v3 = vld [vmem:[#allocation241_spill] sm:$0xff] }
 0x878   :  { %v7110_v5 = vpop.eup %7109  ;;  %v3943_v23 = vmul.f32 %v7108_v47, %v10589_v22  ;;  %7125 = vpow2.f32 %v5184_v42  ;;  %v3775_v27 = vadd.f32 %v3733_v38, %v8984_v31 }
 0x879   :  { %v7112_v16 = vpop.eup %7111  ;;  %v10636_v2 = vadd.f32 %v3940_v21, %v3932_v45  ;;  %v3942_v54 = vmul.f32 %v7110_v5, %v10593_v18  ;;  %7127 = vpow2.f32 %v5183_v61  ;;  %v3774_v59 = vadd.f32 %v3728_v58, %v8993_v32  ;;  %v6021_v6 = vpop.f32.mrb[126].mxu0  ;;  %v11672_v18 = vld [vmem:[#allocation242_spill] sm:$0xff] }
 0x87a   :  { %v7114_v55 = vpop.eup %7113  ;;  %v3937_v29 = vmul.f32 %v7112_v16, %v10470_v24  ;;  %v10641_v4 = vadd.f32 %v3943_v23, %v3935_v35  ;;  %v5186_v60 = vmul.f32 -1.442695, %v3775_v27  ;;  %v3743_v22 = vadd.f32 %v6021_v6, %v11671_v3  ;;  %v3737_v1 = vpop.f32.mrb[127].mxu0 }
 0x87b   :  { %v7116_v63 = vpop.eup %7115  ;;  %v3936_v62 = vmul.f32 %v7114_v55, %v10473_v44  ;;  %v10645_v45 = vadd.f32 %v3942_v54, %v3934_v53  ;;  %v5185_v42 = vmul.f32 -1.442695, %v3774_v59  ;;  %v3738_v39 = vadd.f32 %v3737_v1, %v11672_v18 }
 0x87c   :  { %v7118_v38 = vpop.eup %7117  ;;  %v3945_v15 = vmul.f32 %v7116_v63, %v10597_v11  ;;  %7129 = vpow2.f32 %v5186_v60  ;;  %v3777_v24 = vadd.f32 %v3743_v22, %v9063_v37 }
 0x87d   :  { %v3944_v35 = vmul.f32 %v7118_v38, %v10600_v30  ;;  %7131 = vpow2.f32 %v5185_v42  ;;  %v3776_v47 = vadd.f32 %v3738_v39, %v9067_v40 }
 0x87e   :  { %v7120_v21 = vpop.eup %7119  ;;  %v10652_v61 = vadd.f32 %v3945_v15, %v3937_v29  ;;  %v5188_v44 = vmul.f32 -1.442695, %v3777_v24  ;;  %7133 = vtanh.f32 %v10617_v13 }
 0x87f   :  { %v7122_v53 = vpop.eup %7121  ;;  %v10655_v26 = vadd.f32 %v3944_v35, %v3936_v62  ;;  %v3907_v58 = vadd.f32 1.0, %v7120_v21  ;;  %v5187_v5 = vmul.f32 -1.442695, %v3776_v47  ;;  %7135 = vtanh.f32 %v10636_v2 }
 0x880   :  { %v7124_v11 = vpop.eup %7123  ;;  %v3906_v23 = vadd.f32 1.0, %v7122_v53  ;;  %7137 = vpow2.f32 %v5188_v44 }
 0x881   :  { %7139 = vrcp.f32 %v3907_v58 }
 0x882   :  { %v7126_v30 = vpop.eup %7125  ;;  %7141 = vrcp.f32 %v3906_v23 }
 0x883   :  { %v7128_v27 = vpop.eup %7127  ;;  %v3909_v16 = vadd.f32 1.0, %v7126_v30  ;;  %7143 = vpow2.f32 %v5187_v5 }
 0x884   :  { %v3908_v54 = vadd.f32 1.0, %v7128_v27  ;;  %7145 = vtanh.f32 %v10630_v52 }
 0x885   :  { %7147 = vrcp.f32 %v3909_v16 }
 0x886   :  { %v7130_v59 = vpop.eup %7129  ;;  %7149 = vrcp.f32 %v3908_v54 }
 0x887   :  { %v7132_v6 = vpop.eup %7131  ;;  %v3911_v55 = vadd.f32 1.0, %v7130_v59  ;;  %7151 = vtanh.f32 %v10645_v45 }
 0x888   :  { %v7134_v29 = vpop.eup %7133  ;;  %v3910_v60 = vadd.f32 1.0, %v7132_v6  ;;  %7153 = vtanh.f32 %v10641_v4 }
 0x889   :  { %v7136_v3 = vpop.eup %7135  ;;  %7155 = vrcp.f32 %v3911_v55 }
 0x88a   :  { %v7138_v22 = vpop.eup %7137  ;;  %7157 = vrcp.f32 %v3910_v60 }
 0x88b   :  { %v7140_v1 = vpop.eup %7139  ;;  %v3913_v63 = vadd.f32 1.0, %v7138_v22 }
 0x88c   :  { %v7142_v62 = vpop.eup %7141  ;;  %v3963_v42 = vmul.f32 %v7140_v1, %v7134_v29  ;;  %v7392_v1 = vld [vmem:[%s10915_s1 + $0x10] sm:$0xff] }
 0x88d   :  { %v7144_v18 = vpop.eup %7143  ;;  %7159 = vrcp.f32 %v3913_v63  ;;  %v3962_v39 = vmul.f32 %v7142_v62, %v7124_v11  ;;  %v7393_v63 = vld [vmem:[%s10915_s1 + $0x18] sm:$0xff]  ;;  %v7394_v62 = vld [vmem:[%s10915_s1 + $0x20] sm:$0xff] }
 0x88e   :  { %v7146_v38 = vpop.eup %7145  ;;  %v3912_v15 = vadd.f32 1.0, %v7144_v18  ;;  %7161 = vtanh.f32 %v10652_v61  ;;  %v7396_v18 = vld [vmem:[%s10915_s1 + $0x30] sm:$0xff] }
 0x88f   :  { %v7148_v24 = vpop.eup %7147  ;;  %v6222_v35 = vpack.c.bf16 %v3963_v42, %v3962_v39  ;;  %7163 = vtanh.f32 %v10655_v26  ;;  %v7395_v42 = vld [vmem:[%s10915_s1 + $0x28] sm:$0xff]  ;;  %v7397_v39 = vld [vmem:[%s10915_s1 + $0x38] sm:$0xff] }
 0x890   :  { %v7150_v47 = vpop.eup %7149  ;;  %7165 = vrcp.f32 %v3912_v15  ;;  %v3965_v21 = vmul.f32 %v7148_v24, %v7146_v38  ;;  %v7398_v38 = vld [vmem:[%s10915_s1 + $0x40] sm:$0xff]  ;;  %v7399_v15 = vld [vmem:[%s10915_s1 + $0x48] sm:$0xff]  ;;  %v7400_v24 = vld [vmem:[%s10915_s1 + $0x50] sm:$0xff] }
 0x891   :  { %v7152_v44 = vpop.eup %7151  ;;  %6223 = vmatprep.subr.bf16.mxu1 %v6222_v35  ;;  %v3964_v53 = vmul.f32 %v7150_v47, %v7136_v3  ;;  %v7391_v3 = vld [vmem:[%s10915_s1 + $0x8] sm:$0xff]  ;;  %v7402_v47 = vld [vmem:[%s10915_s1 + $0x60] sm:$0xff] }
 0x892   :  { %v7154_v58 = vpop.eup %7153  ;;  %6225 = vmatpush3.bf16.msra.mxu1 %v6222_v35  ;;  %v7401_v35 = vld [vmem:[%s10915_s1 + $0x58] sm:$0xff] }
 0x893   :  { %v7156_v5 = vpop.eup %7155  ;;  %v6226_v23 = vpack.c.bf16 %v3965_v21, %v3964_v53  ;;  %v7403_v21 = vld [vmem:[%s10915_s1 + $0x68] sm:$0xff]  ;;  %v7405_v53 = vld [vmem:[%s10915_s1 + $0x78] sm:$0xff] }
 0x894   :  { %v7158_v30 = vpop.eup %7157  ;;  %v3967_v11 = vmul.f32 %v7156_v5, %v7154_v58  ;;  %v7406_v58 = vld [vmem:[%s10915_s1 + $0x80] sm:$0xff]  ;;  %v7407_v5 = vld [vmem:[%s10915_s1 + $0x88] sm:$0xff] }
 0x895   :  { %6227 = vmatprep.subr.bf16.mxu1 %v6226_v23  ;;  %v3966_v27 = vmul.f32 %v7158_v30, %v7152_v44  ;;  %v7404_v44 = vld [vmem:[%s10915_s1 + $0x70] sm:$0xff]  ;;  %v7409_v30 = vld [vmem:[%s10915_s1 + $0x98] sm:$0xff] }
 0x896   :  { %6229 = vmatpush3.bf16.msra.mxu1 %v6226_v23  ;;  %v7408_v23 = vld [vmem:[%s10915_s1 + $0x90] sm:$0xff] }
 0x897   :  { %v7160_v16 = vpop.eup %7159  ;;  %v6230_v54 = vpack.c.bf16 %v3967_v11, %v3966_v27  ;;  %v7410_v11 = vld [vmem:[%s10915_s1 + $0xa0] sm:$0xff]  ;;  %v7411_v27 = vld [vmem:[%s10915_s1 + $0xa8] sm:$0xff] }
 0x898   :  { %v7162_v59 = vpop.eup %7161 }
 0x899   :  { %v7164_v6 = vpop.eup %7163  ;;  %6231 = vmatprep.subr.bf16.mxu1 %v6230_v54  ;;  %v3969_v55 = vmul.f32 %v7162_v59, %v7160_v16  ;;  %v7412_v16 = vld [vmem:[%s10915_s1 + $0xb0] sm:$0xff]  ;;  %v7414_v59 = vld [vmem:[%s10915_s1 + $0xc0] sm:$0xff] }
 0x89a   :  { %v7166_v29 = vpop.eup %7165  ;;  %6233 = vmatpush3.bf16.msra.mxu1 %v6230_v54  ;;  %v7413_v54 = vld [vmem:[%s10915_s1 + $0xb8] sm:$0xff] }
 0x89b   :  { %v3968_v60 = vmul.f32 %v7166_v29, %v7164_v6  ;;  %v7415_v6 = vld [vmem:[%s10915_s1 + $0xc8] sm:$0xff]  ;;  %v7417_v29 = vld [vmem:[%s10915_s1 + $0xd8] sm:$0xff] }
 0x89d   :  { %v6234_v22 = vpack.c.bf16 %v3969_v55, %v3968_v60  ;;  %v7416_v55 = vld [vmem:[%s10915_s1 + $0xd0] sm:$0xff]  ;;  %v7418_v60 = vld [vmem:[%s10915_s1 + $0xe0] sm:$0xff] }
 0x89f   :  { %6235 = vmatprep.subr.bf16.mxu1 %v6234_v22 }
 0x8a0   :  { %6237 = vmatpush3.bf16.msra.mxu1 %v6234_v22  ;;  %v7419_v22 = vld [vmem:[%s10915_s1 + $0xe8] sm:$0xff] }
 0x8a3   :  { %6039 = vmatmul.mubr.msk.f32.vlgmr.msra.gmra.mrb[96].mxu1 %vm330_vm0, %v7391_v3  ;;  %v7420_v3 = vld [vmem:[%s10915_s1 + $0xf0] sm:$0xff] }
 0x8a4   :  { %6041 = vmatprep.mubr.msk.f32.mxu1 %vm330_vm0, %v7392_v1  ;;  %v7421_v1 = vld [vmem:[%s10915_s1 + $0xf8] sm:$0xff] }
 0x8a7   :  { %6042 = vmatmul.mubr.msk.f32.gmra.mrb[98].mxu1 %vm330_vm0, %v7393_v63  ;;  %v4459_v63 = vld [vmem:[%s10921_s4] sm:$0xff] }
 0x8a8   :  { %6044 = vmatprep.mubr.msk.f32.mxu1 %vm330_vm0, %v7394_v62  ;;  %6102 = vmatprep.mubr.msk.f32.mxu0 %vm330_vm0, %v4459_v63 }
 0x8ab   :  { %6045 = vmatmul.mubr.msk.f32.gmra.mrb[100].mxu1 %vm330_vm0, %v7395_v42  ;;  %v11673_v42 = vld [vmem:[#allocation26_spill] sm:$0xff] }
 0x8ac   :  { %6047 = vmatprep.mubr.msk.f32.mxu1 %vm330_vm0, %v7396_v18 }
 0x8af   :  { %6048 = vmatmul.mubr.msk.f32.gmra.mrb[102].mxu1 %vm330_vm0, %v7397_v39 }
 0x8b0   :  { %6050 = vmatprep.mubr.msk.f32.mxu1 %vm330_vm0, %v7398_v38  ;;  %v11674_v38 = vld [vmem:[#allocation14_spill] sm:$0xff] }
 0x8b3   :  { %6051 = vmatmul.mubr.msk.f32.gmra.mrb[104].mxu1 %vm330_vm0, %v7399_v15 }
 0x8b4   :  { %6053 = vmatprep.mubr.msk.f32.mxu1 %vm330_vm0, %v7400_v24 }
 0x8b7   :  { %6054 = vmatmul.mubr.msk.f32.gmra.mrb[106].mxu1 %vm330_vm0, %v7401_v35 }
 0x8b8   :  { %6056 = vmatprep.mubr.msk.f32.mxu1 %vm330_vm0, %v7402_v47 }
 0x8bb   :  { %6057 = vmatmul.mubr.msk.f32.gmra.mrb[108].mxu1 %vm330_vm0, %v7403_v21 }
 0x8bc   :  { %6059 = vmatprep.mubr.msk.f32.mxu1 %vm330_vm0, %v7404_v44  ;;  %v11675_v44 = vld [vmem:[#allocation39_spill] sm:$0xff] }
 0x8bf   :  { %6060 = vmatmul.mubr.msk.f32.gmra.mrb[110].mxu1 %vm330_vm0, %v7405_v53 }
 0x8c0   :  { %6062 = vmatprep.mubr.msk.f32.mxu1 %vm330_vm0, %v7406_v58 }
 0x8c3   :  { %6063 = vmatmul.mubr.msk.f32.gmra.mrb[112].mxu1 %vm330_vm0, %v7407_v5 }
 0x8c4   :  { %6065 = vmatprep.mubr.msk.f32.mxu1 %vm330_vm0, %v7408_v23  ;;  %v11676_v23 = vld [vmem:[#allocation54_spill] sm:$0xff] }
 0x8c7   :  { %6066 = vmatmul.mubr.msk.f32.gmra.mrb[114].mxu1 %vm330_vm0, %v7409_v30 }
 0x8c8   :  { %6068 = vmatprep.mubr.msk.f32.mxu1 %vm330_vm0, %v7410_v11 }
 0x8cb   :  { %6069 = vmatmul.mubr.msk.f32.gmra.mrb[116].mxu1 %vm330_vm0, %v7411_v27 }
 0x8cc   :  { %6071 = vmatprep.mubr.msk.f32.mxu1 %vm330_vm0, %v7412_v16 }
 0x8cf   :  { %6072 = vmatmul.mubr.msk.f32.gmra.mrb[118].mxu1 %vm330_vm0, %v7413_v54 }
 0x8d0   :  { %6074 = vmatprep.mubr.msk.f32.mxu1 %vm330_vm0, %v7414_v59  ;;  %v11677_v59 = vld [vmem:[#allocation73_spill] sm:$0xff] }
 0x8d3   :  { %6075 = vmatmul.mubr.msk.f32.gmra.mrb[120].mxu1 %vm330_vm0, %v7415_v6 }
 0x8d4   :  { %6077 = vmatprep.mubr.msk.f32.mxu1 %vm330_vm0, %v7416_v55  ;;  %v11678_v55 = vld [vmem:[#allocation74_spill] sm:$0xff] }
 0x8d7   :  { %6078 = vmatmul.mubr.msk.f32.gmra.mrb[122].mxu1 %vm330_vm0, %v7417_v29 }
 0x8d8   :  { %6080 = vmatprep.mubr.msk.f32.mxu1 %vm330_vm0, %v7418_v60 }
 0x8db   :  { %6081 = vmatmul.mubr.msk.f32.gmra.mrb[124].mxu1 %vm330_vm0, %v7419_v22 }
 0x8dc   :  { %6083 = vmatprep.mubr.msk.f32.mxu1 %vm330_vm0, %v7420_v3 }
 0x8df   :  { %6084 = vmatmul.mubr.msk.f32.gmra.mrb[126].mxu1 %vm330_vm0, %v7421_v1 }
 0x976   :  { %v6040_v62 = vpop.f32.mrb[96].mxu1 }
 0x977   :  { %v4082_v18 = vadd.f32 %v6040_v62, %v11673_v42  ;;  %v4076_v39 = vpop.f32.mrb[97].mxu1  ;;  %v11680_v42 = vld [vmem:[#allocation106_spill] sm:$0xff] }
 0x978   :  { %v4077_v15 = vadd.f32 %v4076_v39, %v11674_v38 }
 0x979   :  { %v4236_v24 = vadd.f32 %v4082_v18, %v11626_v51 }
 0x97a   :  { %v4235_v35 = vadd.f32 %v4077_v15, %v11627_v0  ;;  %v6043_v47 = vpop.f32.mrb[98].mxu1 }
 0x97b   :  { %v5224_v21 = vmul.f32 -1.442695, %v4236_v24  ;;  %v4092_v53 = vadd.f32 %v6043_v47, %v11675_v44  ;;  %v4086_v58 = vpop.f32.mrb[99].mxu1 }
 0x97c   :  { %v5223_v5 = vmul.f32 -1.442695, %v4235_v35  ;;  %v4087_v30 = vadd.f32 %v4086_v58, %v11676_v23  ;;  %v11681_v35 = vld [vmem:[#allocation55_spill] sm:$0xff]  ;;  %v11682_v58 = vld [vmem:[#allocation56_spill] sm:$0xff] }
 0x97d   :  { %7167 = vpow2.f32 %v5224_v21  ;;  %v4238_v11 = vadd.f32 %v4092_v53, %v11382_v28  ;;  %v11679_v28 = vld [vmem:[#allocation105_spill] sm:$0xff] }
 0x97e   :  { %7169 = vpow2.f32 %v5223_v5  ;;  %v4237_v27 = vadd.f32 %v4087_v30, %v11383_v14  ;;  %v6046_v16 = vpop.f32.mrb[100].mxu1 }
 0x97f   :  { %v5226_v54 = vmul.f32 -1.442695, %v4238_v11  ;;  %v4102_v51 = vadd.f32 %v6046_v16, %v11677_v59  ;;  %v4096_v6 = vpop.f32.mrb[101].mxu1  ;;  %v11683_v16 = vld [vmem:[#allocation57_spill] sm:$0xff] }
 0x980   :  { %v5225_v0 = vmul.f32 -1.442695, %v4237_v27  ;;  %v4097_v29 = vadd.f32 %v4096_v6, %v11678_v55  ;;  %v11684_v55 = vld [vmem:[#allocation58_spill] sm:$0xff] }
 0x981   :  { %7171 = vpow2.f32 %v5226_v54  ;;  %v4240_v60 = vadd.f32 %v4102_v51, %v11386_v46 }
 0x982   :  { %7173 = vpow2.f32 %v5225_v0  ;;  %v4239_v22 = vadd.f32 %v4097_v29, %v11632_v19  ;;  %v6049_v3 = vpop.f32.mrb[102].mxu1 }
 0x983   :  { %v5228_v1 = vmul.f32 -1.442695, %v4240_v60  ;;  %v4112_v63 = vadd.f32 %v6049_v3, %v11679_v28  ;;  %v4106_v62 = vpop.f32.mrb[103].mxu1  ;;  %v11685_v28 = vld [vmem:[#allocation89_spill] sm:$0xff] }
 0x984   :  { %v5227_v14 = vmul.f32 -1.442695, %v4239_v22  ;;  %v4107_v18 = vadd.f32 %v4106_v62, %v11680_v42 }
 0x985   :  { %7175 = vpow2.f32 %v5228_v1  ;;  %v4242_v39 = vadd.f32 %v4112_v63, %v11635_v33 }
 0x986   :  { %7177 = vpow2.f32 %v5227_v14  ;;  %v4241_v38 = vadd.f32 %v4107_v18, %v11636_v9  ;;  %v6052_v15 = vpop.f32.mrb[104].mxu1 }
 0x987   :  { %v7168_v24 = vpop.eup %7167  ;;  %v5230_v46 = vmul.f32 -1.442695, %v4242_v39  ;;  %v4122_v47 = vadd.f32 %v6052_v15, %v11681_v35  ;;  %v4116_v19 = vpop.f32.mrb[105].mxu1  ;;  %v11686_v39 = vld [vmem:[#allocation90_spill] sm:$0xff] }
 0x988   :  { %v7170_v21 = vpop.eup %7169  ;;  %v4292_v44 = vadd.f32 1.0, %v7168_v24  ;;  %v5229_v53 = vmul.f32 -1.442695, %v4241_v38  ;;  %v4117_v5 = vadd.f32 %v4116_v19, %v11682_v58  ;;  %v11688_v58 = vld [vmem:[#allocation122_spill] sm:$0xff] }
 0x989   :  { %7179 = vpow2.f32 %v5230_v46  ;;  %v4244_v23 = vadd.f32 %v4122_v47, %v11330_v34  ;;  %v4291_v30 = vadd.f32 1.0, %v7170_v21  ;;  %v11687_v47 = vld [vmem:[#allocation121_spill] sm:$0xff] }
 0x98a   :  { %v4243_v33 = vadd.f32 %v4117_v5, %v11331_v43  ;;  %v6055_v11 = vpop.f32.mrb[106].mxu1  ;;  %7181 = vrcp.f32 %v4292_v44 }
 0x98b   :  { %v7172_v27 = vpop.eup %7171  ;;  %v5232_v9 = vmul.f32 -1.442695, %v4244_v23  ;;  %v4132_v54 = vadd.f32 %v6055_v11, %v11683_v16  ;;  %v4126_v59 = vpop.f32.mrb[107].mxu1  ;;  %7183 = vpow2.f32 %v5229_v53  ;;  %v11689_v16 = vld [vmem:[#allocation137_spill] sm:$0xff] }
 0x98c   :  { %v7174_v51 = vpop.eup %7173  ;;  %v4294_v6 = vadd.f32 1.0, %v7172_v27  ;;  %v5231_v0 = vmul.f32 -1.442695, %v4243_v33  ;;  %v4127_v29 = vadd.f32 %v4126_v59, %v11684_v55  ;;  %v11690_v55 = vld [vmem:[#allocation138_spill] sm:$0xff] }
 0x98d   :  { %7185 = vpow2.f32 %v5232_v9  ;;  %v4246_v60 = vadd.f32 %v4132_v54, %v11641_v56  ;;  %v4293_v34 = vadd.f32 1.0, %v7174_v51 }
 0x98e   :  { %7187 = vrcp.f32 %v4291_v30  ;;  %v4245_v43 = vadd.f32 %v4127_v29, %v11642_v48  ;;  %v6058_v22 = vpop.f32.mrb[108].mxu1 }
 0x98f   :  { %v7176_v3 = vpop.eup %7175  ;;  %7189 = vrcp.f32 %v4294_v6  ;;  %v5234_v1 = vmul.f32 -1.442695, %v4246_v60  ;;  %v4142_v63 = vadd.f32 %v6058_v22, %v11685_v28  ;;  %v4136_v62 = vpop.f32.mrb[109].mxu1 }
 0x990   :  { %v7178_v14 = vpop.eup %7177  ;;  %v4296_v42 = vadd.f32 1.0, %v7176_v3  ;;  %7191 = vpow2.f32 %v5231_v0  ;;  %v5233_v18 = vmul.f32 -1.442695, %v4245_v43  ;;  %v4137_v38 = vadd.f32 %v4136_v62, %v11686_v39  ;;  %v11691_v3 = vld [vmem:[#allocation169_spill] sm:$0xff] }
 0x991   :  { %7193 = vpow2.f32 %v5234_v1  ;;  %v4248_v56 = vadd.f32 %v4142_v63, %v11645_v8  ;;  %v4295_v15 = vadd.f32 1.0, %v7178_v14  ;;  %v11692_v14 = vld [vmem:[#allocation182_spill] sm:$0xff] }
 0x992   :  { %7195 = vrcp.f32 %v4293_v34  ;;  %v4247_v48 = vadd.f32 %v4137_v38, %v11646_v17  ;;  %v6061_v24 = vpop.f32.mrb[110].mxu1 }
 0x993   :  { %v7180_v46 = vpop.eup %7179  ;;  %7197 = vrcp.f32 %v4296_v42  ;;  %v5236_v35 = vmul.f32 -1.442695, %v4248_v56  ;;  %v4152_v19 = vadd.f32 %v6061_v24, %v11687_v47  ;;  %v4146_v21 = vpop.f32.mrb[111].mxu1 }
 0x994   :  { %v4298_v44 = vadd.f32 1.0, %v7180_v46  ;;  %7199 = vpow2.f32 %v5233_v18  ;;  %v5235_v53 = vmul.f32 -1.442695, %v4247_v48  ;;  %v4147_v5 = vadd.f32 %v4146_v21, %v11688_v58  ;;  %v10821_v23 = vpop.eup %7181  ;;  %v11693_v18 = vld [vmem:[#allocation170_spill] sm:$0xff] }
 0x995   :  { %7201 = vpow2.f32 %v5236_v35  ;;  %v4250_v8 = vadd.f32 %v4152_v19, %v11649_v36  ;;  %v7184_v30 = vpop.eup %7183  ;;  %v11695_v35 = vld [vmem:[#allocation213_spill] sm:$0xff] }
 0x996   :  { %7203 = vrcp.f32 %v4295_v15  ;;  %v4249_v17 = vadd.f32 %v4147_v5, %v11650_v25  ;;  %v6064_v33 = vpop.f32.mrb[112].mxu1  ;;  %v4297_v27 = vadd.f32 1.0, %v7184_v30 }
 0x997   :  { %v7186_v11 = vpop.eup %7185  ;;  %7205 = vpow2.f32 %v5235_v53  ;;  %v5238_v9 = vmul.f32 -1.442695, %v4250_v8  ;;  %v4162_v54 = vadd.f32 %v6064_v33, %v11689_v16  ;;  %v4156_v59 = vpop.f32.mrb[113].mxu1  ;;  %v11696_v53 = vld [vmem:[#allocation214_spill] sm:$0xff]  ;;  %v11697_v8 = vld [vmem:[#allocation200_spill] sm:$0xff] }
 0x998   :  { %v10826_v51 = vpop.eup %7187  ;;  %7207 = vrcp.f32 %v4298_v44  ;;  %v4340_v6 = vadd.f32 1.0, %v7186_v11  ;;  %v5237_v0 = vmul.f32 -1.442695, %v4249_v17  ;;  %v4157_v29 = vadd.f32 %v4156_v59, %v11690_v55  ;;  %v11698_v11 = vld [vmem:[#allocation230_spill] sm:$0xff] }
 0x999   :  { %v10829_v36 = vpop.eup %7189  ;;  %7209 = vrcp.f32 %v4297_v27  ;;  %v4252_v22 = vadd.f32 %v4162_v54, %v11653_v10  ;;  %v11694_v10 = vld [vmem:[#allocation199_spill] sm:$0xff]  ;;  %v11699_v54 = vld [vmem:[#allocation233_spill] sm:$0xff] }
 0x99a   :  { %v7192_v60 = vpop.eup %7191  ;;  %7211 = vrcp.f32 %v4340_v6  ;;  %v6067_v25 = vpop.f32.mrb[114].mxu1  ;;  %v4251_v42 = vadd.f32 %v4157_v29, %v11692_v14  ;;  %v11700_v6 = vld [vmem:[#allocation243_spill] sm:$0xff] }
 0x99b   :  { %v7194_v34 = vpop.eup %7193  ;;  %v4339_v43 = vadd.f32 1.0, %v7192_v60  ;;  %7213 = vpow2.f32 %v5238_v9  ;;  %v4172_v1 = vadd.f32 %v6067_v25, %v11691_v3  ;;  %v4166_v28 = vpop.f32.mrb[115].mxu1  ;;  %v11701_v60 = vld [vmem:[#allocation244_spill] sm:$0xff] }
 0x99c   :  { %v10833_v63 = vpop.eup %7195  ;;  %v4342_v62 = vadd.f32 1.0, %v7194_v34  ;;  %7215 = vpow2.f32 %v5237_v0  ;;  %v4167_v39 = vadd.f32 %v4166_v28, %v11693_v18 }
 0x99d   :  { %v10837_v38 = vpop.eup %7197  ;;  %7217 = vrcp.f32 %v4339_v43  ;;  %v4254_v46 = vadd.f32 %v4172_v1, %v11694_v10 }
 0x99e   :  { %v7200_v56 = vpop.eup %7199  ;;  %7219 = vrcp.f32 %v4342_v62  ;;  %v6070_v15 = vpop.f32.mrb[116].mxu1  ;;  %v4253_v30 = vadd.f32 %v4167_v39, %v11697_v8 }
 0x99f   :  { %v7202_v48 = vpop.eup %7201  ;;  %v4341_v24 = vadd.f32 1.0, %v7200_v56  ;;  %7221 = vtanh.f32 %v4252_v22  ;;  %v4182_v47 = vadd.f32 %v6070_v15, %v11695_v35  ;;  %v4176_v19 = vpop.f32.mrb[117].mxu1 }
 0x9a0   :  { %v10841_v21 = vpop.eup %7203  ;;  %v4344_v44 = vadd.f32 1.0, %v7202_v48  ;;  %7223 = vtanh.f32 %v4251_v42  ;;  %v4177_v58 = vadd.f32 %v4176_v19, %v11696_v53  ;;  %v11702_v42 = vld [vmem:[#allocation153_spill] sm:$0xff]  ;;  %v11703_v48 = vld [vmem:[#allocation154_spill] sm:$0xff] }
 0x9a1   :  { %v7206_v5 = vpop.eup %7205  ;;  %7225 = vrcp.f32 %v4341_v24  ;;  %v4256_v27 = vadd.f32 %v4182_v47, %v11698_v11  ;;  %v11705_v11 = vld [vmem:[#allocation186_spill] sm:$0xff] }
 0x9a2   :  { %v10845_v17 = vpop.eup %7207  ;;  %7227 = vrcp.f32 %v4344_v44  ;;  %v4343_v33 = vadd.f32 1.0, %v7206_v5  ;;  %v6073_v9 = vpop.f32.mrb[118].mxu1  ;;  %v4255_v59 = vadd.f32 %v4177_v58, %v11699_v54  ;;  %v11704_v58 = vld [vmem:[#allocation185_spill] sm:$0xff] }
 0x9a3   :  { %v10848_v16 = vpop.eup %7209  ;;  %7229 = vtanh.f32 %v4254_v46  ;;  %v4192_v0 = vadd.f32 %v6073_v9, %v11700_v6  ;;  %v4186_v55 = vpop.f32.mrb[119].mxu1 }
 0x9a4   :  { %v7212_v29 = vpop.eup %7211  ;;  %7231 = vrcp.f32 %v4343_v33  ;;  %v4187_v25 = vadd.f32 %v4186_v55, %v11701_v60 }
 0x9a5   :  { %v7214_v34 = vpop.eup %7213  ;;  %7233 = vtanh.f32 %v4253_v30  ;;  %v4258_v3 = vadd.f32 %v4192_v0, %v9018_v41  ;;  %v4420_v15 = vmul.f32 %v7212_v29, %v10617_v13 }
 0x9a6   :  { %v7216_v43 = vpop.eup %7215  ;;  %v4346_v22 = vadd.f32 1.0, %v7214_v34  ;;  %7235 = vtanh.f32 %v4256_v27  ;;  %v6076_v1 = vpop.f32.mrb[120].mxu1  ;;  %v4257_v14 = vadd.f32 %v4187_v25, %v9026_v57  ;;  %v11706_v25 = vld [vmem:[#allocation215_spill] sm:$0xff] }
 0x9a7   :  { %v7218_v28 = vpop.eup %7217  ;;  %v4345_v62 = vadd.f32 1.0, %v7216_v43  ;;  %7237 = vtanh.f32 %v4255_v59  ;;  %v4202_v18 = vadd.f32 %v6076_v1, %v11702_v42  ;;  %v4196_v39 = vpop.f32.mrb[121].mxu1 }
 0x9a8   :  { %v7220_v56 = vpop.eup %7219  ;;  %7239 = vrcp.f32 %v4346_v22  ;;  %v4197_v24 = vadd.f32 %v4196_v39, %v11703_v48  ;;  %v4419_v46 = vmul.f32 %v7218_v28, %v10621_v20  ;;  %v11707_v28 = vld [vmem:[#allocation216_spill] sm:$0xff] }
 0x9a9   :  { %v7222_v10 = vpop.eup %7221  ;;  %7241 = vrcp.f32 %v4345_v62  ;;  %v4260_v41 = vadd.f32 %v4202_v18, %v8627_v49  ;;  %v4422_v20 = vmul.f32 %v7220_v56, %v10630_v52 }
 0x9aa   :  { %v7224_v35 = vpop.eup %7223  ;;  %v4428_v47 = vmul.f32 %v7222_v10, %v10821_v23  ;;  %7243 = vtanh.f32 %v4258_v3  ;;  %v4259_v57 = vadd.f32 %v4197_v24, %v8629_v50  ;;  %v6079_v19 = vpop.f32.mrb[122].mxu1 }
 0x9ab   :  { %v7226_v44 = vpop.eup %7225  ;;  %v4427_v53 = vmul.f32 %v7224_v35, %v10826_v51  ;;  %7245 = vtanh.f32 %v4257_v14  ;;  %v5240_v13 = vmul.f32 -1.442695, %v4260_v41  ;;  %v4212_v5 = vadd.f32 %v6079_v19, %v11704_v58  ;;  %v4206_v8 = vpop.f32.mrb[123].mxu1  ;;  %v11708_v41 = vld [vmem:[#allocation245_spill] sm:$0xff]  ;;  %v11709_v35 = vld [vmem:[#allocation246_spill] sm:$0xff] }
 0x9ac   :  { %v7228_v30 = vpop.eup %7227  ;;  %v4436_v33 = vadd.f32 %v4428_v47, %v4420_v15  ;;  %v5239_v49 = vmul.f32 -1.442695, %v4259_v57  ;;  %v4207_v27 = vadd.f32 %v4206_v8, %v11705_v11  ;;  %v4421_v51 = vmul.f32 %v7226_v44, %v10636_v2 }
 0x9ad   :  { %v7230_v23 = vpop.eup %7229  ;;  %v4435_v9 = vadd.f32 %v4427_v53, %v4419_v46  ;;  %7247 = vpow2.f32 %v5240_v13  ;;  %v4262_v50 = vadd.f32 %v4212_v5, %v8785_v12  ;;  %v4424_v52 = vmul.f32 %v7228_v30, %v10641_v4 }
 0x9ae   :  { %v7232_v54 = vpop.eup %7231  ;;  %v4430_v59 = vmul.f32 %v7230_v23, %v10829_v36  ;;  %v4261_v6 = vadd.f32 %v4207_v27, %v8787_v7  ;;  %v6082_v0 = vpop.f32.mrb[124].mxu1  ;;  %7249 = vpow2.f32 %v5239_v49 }
 0x9af   :  { %v7234_v55 = vpop.eup %7233  ;;  %v4423_v29 = vmul.f32 %v7232_v54, %v10645_v45  ;;  %v5242_v60 = vmul.f32 -1.442695, %v4262_v50  ;;  %v4222_v34 = vadd.f32 %v6082_v0, %v11706_v25  ;;  %v4216_v43 = vpop.f32.mrb[125].mxu1 }
 0x9b0   :  { %v7236_v22 = vpop.eup %7235  ;;  %v4438_v3 = vadd.f32 %v4430_v59, %v4422_v20  ;;  %v4429_v12 = vmul.f32 %v7234_v55, %v10833_v63  ;;  %v5241_v2 = vmul.f32 -1.442695, %v4261_v6  ;;  %v4217_v4 = vadd.f32 %v4216_v43, %v11707_v28 }
 0x9b1   :  { %v7238_v1 = vpop.eup %7237  ;;  %v4432_v36 = vmul.f32 %v7236_v22, %v10837_v38  ;;  %7251 = vpow2.f32 %v5242_v60  ;;  %v4264_v7 = vadd.f32 %v4222_v34, %v8984_v31 }
 0x9b2   :  { %v7240_v62 = vpop.eup %7239  ;;  %v4437_v45 = vadd.f32 %v4429_v12, %v4421_v51  ;;  %v4431_v14 = vmul.f32 %v7238_v1, %v10841_v21  ;;  %v6085_v42 = vpop.f32.mrb[126].mxu1  ;;  %7253 = vpow2.f32 %v5241_v2  ;;  %v4263_v31 = vadd.f32 %v4217_v4, %v8993_v32 }
 0x9b3   :  { %v7242_v18 = vpop.eup %7241  ;;  %v4426_v39 = vmul.f32 %v7240_v62, %v10652_v61  ;;  %v4440_v56 = vadd.f32 %v4432_v36, %v4424_v52  ;;  %v5244_v63 = vmul.f32 -1.442695, %v4264_v7  ;;  %v4226_v15 = vpop.f32.mrb[127].mxu1  ;;  %7255 = vtanh.f32 %v4436_v33 }
 0x9b4   :  { %v7244_v48 = vpop.eup %7243  ;;  %v4425_v38 = vmul.f32 %v7242_v18, %v10655_v26  ;;  %v4439_v24 = vadd.f32 %v4431_v14, %v4423_v29  ;;  %v4232_v21 = vadd.f32 %v6085_v42, %v11708_v41  ;;  %v4227_v47 = vadd.f32 %v4226_v15, %v11709_v35  ;;  %v4461_v15 = vld [vmem:[%s10921_s4 + $0x10] sm:$0xff] }
 0x9b5   :  { %v7246_v10 = vpop.eup %7245  ;;  %v4434_v46 = vmul.f32 %v7244_v48, %v10845_v17  ;;  %7257 = vtanh.f32 %v4435_v9  ;;  %v5243_v57 = vmul.f32 -1.442695, %v4263_v31  ;;  %v4462_v48 = vld [vmem:[%s10921_s4 + $0x18] sm:$0xff]  ;;  %v4470_v31 = vpop.permute.xlu0 %4469 }
 0x9b6   :  { %v4433_v61 = vmul.f32 %v7246_v10, %v10848_v16  ;;  %7259 = vpow2.f32 %v5244_v63  ;;  %v4266_v26 = vadd.f32 %v4232_v21, %v9063_v37  ;;  %v4265_v53 = vadd.f32 %v4227_v47, %v9067_v40  ;;  %v4460_v63 = vld [vmem:[%s10921_s4 + $0x8] sm:$0xff] }
 0x9b7   :  { %v7248_v19 = vpop.eup %7247  ;;  %v4442_v44 = vadd.f32 %v4434_v46, %v4426_v39  ;;  %7261 = vpow2.f32 %v5243_v57 }
 0x9b8   :  { %v4441_v32 = vadd.f32 %v4433_v61, %v4425_v38  ;;  %v4396_v13 = vadd.f32 1.0, %v7248_v19  ;;  %7263 = vtanh.f32 %v4438_v3  ;;  %v5246_v17 = vmul.f32 -1.442695, %v4266_v26  ;;  %v7250_v58 = vpop.eup %7249  ;;  %v4596_v38 = vld [vmem:[%s10922_s6] sm:$0xff] }
 0x9b9   :  { %7265 = vtanh.f32 %v4437_v45  ;;  %v4395_v8 = vadd.f32 1.0, %v7250_v58  ;;  %v5245_v30 = vmul.f32 -1.442695, %v4265_v53  ;;  %v4480_v19 = vpop.permute.xlu0 %4479 }
 0x9ba   :  { %7267 = vrcp.f32 %v4396_v13 }
 0x9bb   :  { %v7252_v5 = vpop.eup %7251  ;;  %7269 = vpow2.f32 %v5246_v17 }
 0x9bc   :  { %v4398_v16 = vadd.f32 1.0, %v7252_v5  ;;  %v7254_v20 = vpop.eup %7253  ;;  %7271 = vrcp.f32 %v4395_v8 }
 0x9bd   :  { %v4397_v33 = vadd.f32 1.0, %v7254_v20  ;;  %v7256_v37 = vpop.eup %7255  ;;  %v4597_v20 = vld [vmem:[%s10922_s6 + $0x8] sm:$0xff] }
 0x9be   :  { %7273 = vrcp.f32 %v4398_v16 }
 0x9bf   :  { %7275 = vpow2.f32 %v5245_v30  ;;  %v7258_v40 = vpop.eup %7257 }
 0x9c0   :  { %7277 = vrcp.f32 %v4397_v33  ;;  %v7260_v49 = vpop.eup %7259  ;;  %v7424_v33 = vmov 0.0|0.0  }
 0x9c1   :  { %v7262_v11 = vpop.eup %7261  ;;  %7279 = vtanh.f32 %v4440_v56  ;;  %v4400_v27 = vadd.f32 1.0, %v7260_v49 }
 0x9c2   :  { %v7264_v23 = vpop.eup %7263  ;;  %7281 = vtanh.f32 %v4439_v24  ;;  %v4399_v9 = vadd.f32 1.0, %v7262_v11  ;;  %v4475_v24 = vpop.permute.xlu1 %4474 }
 0x9c3   :  { %v7266_v50 = vpop.eup %7265  ;;  %7283 = vrcp.f32 %v4400_v27  ;;  %v4603_v11 = vpop.permute.xlu0 %4602 }
 0x9c4   :  { %v7268_v54 = vpop.eup %7267  ;;  %7285 = vrcp.f32 %v4399_v9 }
 0x9c5   :  { %v7270_v51 = vpop.eup %7269  ;;  %v4452_v59 = vmul.f32 %v7268_v54, %v7256_v37  ;;  %7287 = vtanh.f32 %v4442_v44  ;;  %v11710_v37 = vmov 0.0  }
 0x9c6   :  { %v7272_v6 = vpop.eup %7271  ;;  %v4402_v0 = vadd.f32 1.0, %v7270_v51  ;;  %v4485_v47 = vpop.permute.xlu1 %4484 }
 0x9c7   :  { %v4451_v52 = vmul.f32 %v7272_v6, %v7258_v40 }
 0x9c8   :  { %v7274_v55 = vpop.eup %7273  ;;  %7289 = vrcp.f32 %v4402_v0  ;;  %v4698_v0 = vld [vmem:[%s10923_s8] sm:$0xf] }
 0x9c9   :  { %v7276_v29 = vpop.eup %7275  ;;  %v4454_v60 = vmul.f32 %v7274_v55, %v7264_v23  ;;  %v6238_v43 = vpack.c.bf16 %v4452_v59, %v4451_v52  ;;  %7291 = vtanh.f32 %v4441_v32  ;;  %v4703_v55 = vpop.permute.xlu0 %4702 }
 0x9ca   :  { %v7278_v25 = vpop.eup %7277  ;;  %v4401_v34 = vadd.f32 1.0, %v7276_v29  ;;  %v4608_v40 = vpop.permute.xlu1 %4607 }
 0x9cb   :  { %v4453_v22 = vmul.f32 %v7278_v25, %v7266_v50  ;;  %v7280_v3 = vpop.eup %7279  ;;  %6239 = vmatprep.subr.bf16.mxu0 %v6238_v43 }
 0x9cc   :  { %7293 = vrcp.f32 %v4401_v34  ;;  %v7282_v12 = vpop.eup %7281  ;;  %6241 = vmatpush3.bf16.msra.mxu0 %v6238_v43 }
 0x9cd   :  { %v6242_v2 = vpack.c.bf16 %v4454_v60, %v4453_v22  ;;  %v7284_v1 = vpop.eup %7283 }
 0x9ce   :  { %v7286_v36 = vpop.eup %7285  ;;  %v4456_v7 = vmul.f32 %v7284_v1, %v7280_v3 }
 0x9cf   :  { %6243 = vmatprep.subr.bf16.mxu0 %v6242_v2  ;;  %v4455_v28 = vmul.f32 %v7286_v36, %v7282_v12  ;;  %v7288_v4 = vpop.eup %7287 }
 0x9d0   :  { %6245 = vmatpush3.bf16.msra.mxu0 %v6242_v2 }
 0x9d1   :  { %v6246_v62 = vpack.c.bf16 %v4456_v7, %v4455_v28 }
 0x9d2   :  { %v7290_v45 = vpop.eup %7289 }
 0x9d3   :  { %6247 = vmatprep.subr.bf16.mxu0 %v6246_v62  ;;  %v4458_v14 = vmul.f32 %v7290_v45, %v7288_v4  ;;  %v7292_v42 = vpop.eup %7291 }
 0x9d4   :  { %6249 = vmatpush3.bf16.msra.mxu0 %v6246_v62 }
 0x9d6   :  { %v7294_v18 = vpop.eup %7293 }
 0x9d7   :  { %v4457_v39 = vmul.f32 %v7294_v18, %v7292_v42 }
 0x9d9   :  { %v6250_v56 = vpack.c.bf16 %v4458_v14, %v4457_v39 }
 0x9db   :  { %6251 = vmatprep.subr.bf16.mxu0 %v6250_v56 }
 0x9dc   :  { %6253 = vmatpush3.bf16.msra.mxu0 %v6250_v56 }
 0x9df   :  { %6103 = vmatmul.mubr.msk.f32.vlgmr.msra.gmra.mrb[128].mxu0 %vm330_vm0, %v4460_v63 }
 0x9e0   :  { %6105 = vmatprep.mubr.msk.f32.mxu0 %vm330_vm0, %v4461_v15 }
 0x9e3   :  { %6106 = vmatmul.mubr.msk.f32.gmra.mrb[130].mxu0 %vm330_vm0, %v4462_v48 }
 0x9e4   :  { %6116 = vmatprep.mubr.msk.f32.mxu0 %vm4610_vm1, %v4596_v38 }
 0xab2   :  { %v6104_v10 = vpop.f32.mrb[128].mxu0 }
 0xab3   :  { %v4571_v46 = vadd.f32 %v6104_v10, %v4475_v24  ;;  %v4565_v41 = vpop.f32.mrb[129].mxu0 }
 0xab4   :  { %v4566_v21 = vadd.f32 %v4565_v41, %v4470_v31 }
 0xab5   :  { %vm4585_vm2 = vcmp.ge.f32.partialorder %v4571_v46, 0.0  ;;  %v4589_v35 = vmul.f32 0.01, %v4571_v46 }
 0xab6   :  { %vm4584_vm3 = vcmp.ge.f32.partialorder %v4566_v21, 0.0  ;;  %v4588_v61 = vmul.f32 0.01, %v4566_v21  ;;  %v6107_v57 = vpop.f32.mrb[130].mxu0 }
 0xab7   :  { %v4581_v44 = vadd.f32 %v6107_v57, %v4485_v47  ;;  %v4575_v26 = vpop.f32.mrb[131].mxu0  ;;  %v4593_v53 = vsel %vm4585_vm2, %v4571_v46, %v4589_v35 }
 0xab8   :  { %v4576_v32 = vadd.f32 %v4575_v26, %v4480_v19  ;;  %v4592_v13 = vsel %vm4584_vm3, %v4566_v21, %v4588_v61 }
 0xab9   :  { %vm4587_vm4 = vcmp.ge.f32.partialorder %v4581_v44, 0.0  ;;  %v4591_v17 = vmul.f32 0.01, %v4581_v44  ;;  %v6254_v58 = vpack.c.bf16 %v4593_v53, %v4592_v13 }
 0xaba   :  { %vm4586_vm5 = vcmp.ge.f32.partialorder %v4576_v32, 0.0  ;;  %v4590_v5 = vmul.f32 0.01, %v4576_v32 }
 0xabb   :  { %6255 = vmatprep.subr.bf16.mxu0 %v6254_v58  ;;  %v4595_v8 = vsel %vm4587_vm4, %v4581_v44, %v4591_v17 }
 0xabc   :  { %6257 = vmatpush3.bf16.msra.mxu0 %v6254_v58  ;;  %v4594_v30 = vsel %vm4586_vm5, %v4576_v32, %v4590_v5 }
 0xabd   :  { %v6258_v16 = vpack.c.bf16 %v4595_v8, %v4594_v30 }
 0xabf   :  { %6259 = vmatprep.subr.bf16.mxu0 %v6258_v16 }
 0xac0   :  { %6261 = vmatpush3.bf16.msra.mxu0 %v6258_v16 }
 0xac1   :  { %6262 = vmatprep.subr.bf16.mxu0 %v7424_v33 }
 0xac3   :  { %6117 = vmatmul.mubr.msk.f32.vlgmr.msra.gmra.mrb[132].mxu0 %vm4610_vm1, %v4597_v20 }
 0xac4   :  { %6123 = vmatprep.mubr.msk.f32.mxu0 %vm7425_vm6, %v11710_v37 }
 0xb96   :  { %v6118_v49 = vpop.f32.mrb[132].mxu0 }
 0xb97   :  { %v4689_v27 = vadd.f32 %v6118_v49, %v4608_v40  ;;  %v4683_v23 = vpop.f32.mrb[133].mxu0 }
 0xb98   :  { %v4684_v9 = vadd.f32 %v4683_v23, %v4603_v11 }
 0xb99   :  { %vm4693_vm7 = vcmp.ge.f32.partialorder %v4689_v27, 0.0  ;;  %v4695_v50 = vmul.f32 0.01, %v4689_v27 }
 0xb9a   :  { %vm4692_vm8 = vcmp.ge.f32.partialorder %v4684_v9, 0.0  ;;  %v4694_v54 = vmul.f32 0.01, %v4684_v9 }
 0xb9b   :  { %v4697_v51 = vsel %vm4693_vm7, %v4689_v27, %v4695_v50 }
 0xb9c   :  { %v4696_v59 = vsel %vm4692_vm8, %v4684_v9, %v4694_v54 }
 0xb9d   :  { %v6263_v6 = vpack.c.bf16 %v4697_v51, %v4696_v59 }
 0xb9f   :  { %6264 = vmatpush3.bf16.msra.mxu0 %v6263_v6 }
 0xba2   :  { %6124 = vmatmul.mubr.msk.f32.vlgmr.msra.gmra.mrb[134].mxu0 %vm4705_vm9, %v4698_v0 }
 0xc75   :  { %v4775_v52 = vpop.f32.mrb[134].mxu0 }
 0xc76   :  { %v4776_v29 = vadd.f32 %v4775_v52, %v4703_v55  ;;  %v6125_v60 = vpop.f32.mrb[135].mxu0 }
 0xc78   :  { %4779 = vst [vmem:[%s10924_s10] sm:$0xf] %v4776_v29 }

</bundles_post_ra>
